<compile_context>
chip_gen: v5e
topology: v5e:2x2
jax: 0.10.0
libtpu: 0.0.40
codegen_flags: <defaults>
</compile_context>

<pallas_src>
import functools

import jax
import jax.numpy as jnp
from jax.experimental import pallas as pl
from jax.experimental.pallas import tpu as pltpu

_EPS = 1e-5
_NEG_SLOPE = 0.2


# ----------------------------------------------------------------------------
# Tile-size selection: whole images per tile, exact divisibility (no padding),
# grid >= 2 when the batch allows it (v7x megacore / pipelining).
# ----------------------------------------------------------------------------
def _largest_divisor_leq(n, bound):
    bound = max(1, min(n, bound))
    for d in range(bound, 0, -1):
        if n % d == 0:
            return d
    return 1


def _pick_tile_rows(n, rows_per_img, target_rows):
    bound = max(1, target_rows // rows_per_img)
    if n >= 2:
        bound = min(bound, n // 2)          # keep at least 2 grid steps
    return rows_per_img * _largest_divisor_leq(n, bound)


# ----------------------------------------------------------------------------
# Kernel 1: matmul + LeakyReLU (no BN), M-tiled, bf16 out
# ----------------------------------------------------------------------------
def _mm_lrelu_kernel(cols_ref, w_ref, o_ref):
    y = jnp.dot(cols_ref[...], w_ref[...], preferred_element_type=jnp.float32)
    o_ref[...] = jnp.where(y > 0, y, _NEG_SLOPE * y).astype(o_ref.dtype)


def conv_lrelu(cols, w_mat, *, tm):
    """cols: (M, K) bf16, w_mat: (K, C) bf16 -> (M, C) bf16."""
    M, K = cols.shape
    C = w_mat.shape[1]
    assert M % tm == 0
    return pl.pallas_call(
        _mm_lrelu_kernel,
        out_shape=jax.ShapeDtypeStruct((M, C), jnp.bfloat16),
        grid=(M // tm,),
        in_specs=[
            pl.BlockSpec((tm, K), lambda i: (i, 0)),
            pl.BlockSpec((K, C), lambda i: (0, 0)),
        ],
        out_specs=pl.BlockSpec((tm, C), lambda i: (i, 0)),
        compiler_params=pltpu.CompilerParams(
            dimension_semantics=("parallel",)),
    )(cols, w_mat)


# ----------------------------------------------------------------------------
# Kernel 2 (phase A): matmul -> y (bf16) + streaming centered batch stats
# ----------------------------------------------------------------------------
def _mm_stats_kernel(cols_ref, w_ref, y_ref, stats_ref, *, tile_rows):
    i = pl.program_id(0)
    y = jnp.dot(cols_ref[...], w_ref[...], preferred_element_type=jnp.float32)
    y_ref[...] = y.astype(y_ref.dtype)

    # Per-tile centered stats + streaming (Chan) combine: numerically robust
    # vs. the single-pass E[y^2] - mean^2 formula.
    t_mean = jnp.mean(y, axis=0, keepdims=True)           # (1, C)
    d = y - t_mean
    t_m2 = jnp.sum(d * d, axis=0, keepdims=True)          # (1, C)

    @pl.when(i == 0)
    def _():
        stats_ref[0:1, :] = t_mean
        stats_ref[1:2, :] = t_m2

    @pl.when(i > 0)
    def _():
        n_prev = (i * tile_rows).astype(jnp.float32)
        n_new = n_prev + float(tile_rows)
        delta = t_mean - stats_ref[0:1, :]
        stats_ref[0:1, :] = stats_ref[0:1, :] + delta * (tile_rows / n_new)
        stats_ref[1:2, :] = (stats_ref[1:2, :] + t_m2
                             + delta * delta * (n_prev * tile_rows / n_new))


def conv_bn_stats(cols, w_mat, *, tm):
    """cols: (M, K) bf16, w_mat: (K, C) bf16 ->
       y: (M, C) bf16, stats: (2, C) f32 with [mean; sum of squared dev]."""
    M, K = cols.shape
    C = w_mat.shape[1]
    assert M % tm == 0
    kernel = functools.partial(_mm_stats_kernel, tile_rows=tm)
    y, stats = pl.pallas_call(
        kernel,
        out_shape=(jax.ShapeDtypeStruct((M, C), jnp.bfloat16),
                   jax.ShapeDtypeStruct((2, C), jnp.float32)),
        grid=(M // tm,),
        in_specs=[
            pl.BlockSpec((tm, K), lambda i: (i, 0)),
            pl.BlockSpec((K, C), lambda i: (0, 0)),
        ],
        out_specs=(pl.BlockSpec((tm, C), lambda i: (i, 0)),
                   pl.BlockSpec((2, C), lambda i: (0, 0))),
        compiler_params=pltpu.CompilerParams(
            dimension_semantics=("arbitrary",)),
    )(cols, w_mat)
    return y, stats


# ----------------------------------------------------------------------------
# Kernel 3 (phase B): BatchNorm (training-mode batch stats) + LeakyReLU
# ----------------------------------------------------------------------------
def _bn_lrelu_kernel(y_ref, stats_ref, gamma_ref, beta_ref, o_ref, *, inv_m):
    mean = stats_ref[0:1, :]
    var = stats_ref[1:2, :] * inv_m                        # biased batch var
    scale = gamma_ref[...] * jax.lax.rsqrt(var + _EPS)
    shift = beta_ref[...] - mean * scale
    z = y_ref[...].astype(jnp.float32) * scale + shift
    o_ref[...] = jnp.where(z > 0, z, _NEG_SLOPE * z).astype(o_ref.dtype)


def bn_lrelu(y, stats, gamma, beta, *, tm):
    M, C = y.shape
    assert M % tm == 0
    kernel = functools.partial(_bn_lrelu_kernel, inv_m=1.0 / M)
    return pl.pallas_call(
        kernel,
        out_shape=jax.ShapeDtypeStruct((M, C), jnp.bfloat16),
        grid=(M // tm,),
        in_specs=[
            pl.BlockSpec((tm, C), lambda i: (i, 0)),
            pl.BlockSpec((2, C), lambda i: (0, 0)),
            pl.BlockSpec((1, C), lambda i: (0, 0)),
            pl.BlockSpec((1, C), lambda i: (0, 0)),
        ],
        out_specs=pl.BlockSpec((tm, C), lambda i: (i, 0)),
        compiler_params=pltpu.CompilerParams(
            dimension_semantics=("parallel",)),
    )(y, stats, gamma, beta)


# ----------------------------------------------------------------------------
# Kernel 4 (phase B + head): BN + LeakyReLU + fused final 4x4 valid conv
# (single output channel) as a reshape-reduce — no iota mask, no tiled weight.
# ----------------------------------------------------------------------------
def _bn_lrelu_head_kernel(y_ref, stats_ref, gamma_ref, beta_ref, w5_ref,
                          o_ref, *, inv_m, imgs, rpi):
    mean = stats_ref[0:1, :]
    var = stats_ref[1:2, :] * inv_m
    scale = gamma_ref[...] * jax.lax.rsqrt(var + _EPS)
    shift = beta_ref[...] - mean * scale
    z = y_ref[...].astype(jnp.float32) * scale + shift
    z = jnp.where(z > 0, z, _NEG_SLOPE * z)                # (imgs*rpi, C)
    C = z.shape[-1]
    # out[img] = sum_{p, c} z[img, p, c] * w5[p, c]
    prod = z.reshape(imgs, rpi, C) * w5_ref[...][None, :, :]
    s = jnp.sum(prod, axis=2, keepdims=True)               # (imgs, rpi, 1)
    s = jnp.sum(s, axis=1, keepdims=True)                  # (imgs, 1, 1)
    lanes = o_ref.shape[-1]
    o_ref[...] = jnp.broadcast_to(
        s, (imgs, rpi, lanes)).reshape(imgs * rpi, lanes)


def bn_lrelu_head(y, stats, gamma, beta, w5, *, tm, rpi):
    """Returns the per-image discriminator logits, shape (N,)."""
    M, C = y.shape
    assert M % tm == 0 and tm % rpi == 0
    imgs = tm // rpi
    kernel = functools.partial(_bn_lrelu_head_kernel, inv_m=1.0 / M,
                               imgs=imgs, rpi=rpi)
    out = pl.pallas_call(
        kernel,
        out_shape=jax.ShapeDtypeStruct((M, 128), jnp.float32),
        grid=(M // tm,),
        in_specs=[
            pl.BlockSpec((tm, C), lambda i: (i, 0)),
            pl.BlockSpec((2, C), lambda i: (0, 0)),
            pl.BlockSpec((1, C), lambda i: (0, 0)),
            pl.BlockSpec((1, C), lambda i: (0, 0)),
            pl.BlockSpec((rpi, C), lambda i: (0, 0)),
        ],
        out_specs=pl.BlockSpec((tm, 128), lambda i: (i, 0)),
        compiler_params=pltpu.CompilerParams(
            dimension_semantics=("parallel",)),
    )(y, stats, gamma, beta, w5)
    # each image's rpi x 128 block is filled with its scalar; take (0, 0)
    return out.reshape(M // rpi, rpi, 128)[:, 0, 0]


# ----------------------------------------------------------------------------
# Glue: channel-last im2col (bf16 in -> bf16 out; strided slices + lane concat)
# ----------------------------------------------------------------------------
def _im2col_nhwc(x, k, stride, pad):
    """x: (N, H, W, C) -> (N*OH*OW, K*K*C); column order (kh, kw, c), matching
    the pre-transformed weight layout."""
    N, H, W, C = x.shape
    if pad:
        x = jnp.pad(x, ((0, 0), (pad, pad), (pad, pad), (0, 0)))
    OH = (H + 2 * pad - k) // stride + 1
    OW = (W + 2 * pad - k) // stride + 1
    slabs = []
    for kh in range(k):
        for kw in range(k):
            slabs.append(jax.lax.slice(
                x,
                (0, kh, kw, 0),
                (N, kh + stride * (OH - 1) + 1, kw + stride * (OW - 1) + 1, C),
                (1, stride, stride, 1)))
    cols = jnp.concatenate(slabs, axis=-1)       # (N, OH, OW, k*k*C)
    return cols.reshape(N * OH * OW, k * k * C), OH, OW


# ----------------------------------------------------------------------------
# Discriminator
# ----------------------------------------------------------------------------
_LAYERS = [
    # (C_in, C_out, kernel, stride, pad, batchnorm)
    (3,   32,  4, 2, 1, False),
    (32,  64,  4, 2, 1, True),
    (64,  128, 4, 2, 1, True),
    (128, 256, 4, 2, 1, True),
    (256, 1,   4, 1, 0, False),
]


def init_params(key):
    """Weights pre-transformed once into kernel-ready layout:
       conv layers 1-4: w (KH*KW*Cin, Cout) bf16, column order (kh, kw, cin);
       final layer:     w (KH*KW, Cin) = (16, 256) f32 for the fused head;
       gamma/beta: (1, Cout) f32."""
    params = []
    for (cin, cout, k, _, _, bn) in _LAYERS:
        key, kw_, kg, kb = jax.random.split(key, 4)
        w = 0.02 * jax.random.normal(kw_, (cout, cin, k, k), jnp.float32)
        if cout == 1:
            w_mat = w[0].transpose(1, 2, 0).reshape(k * k, cin)  # f32
        else:
            w_mat = w.transpose(2, 3, 1, 0).reshape(k * k * cin, cout)
            w_mat = w_mat.astype(jnp.bfloat16)
        if bn:
            gamma = 1.0 + 0.1 * jax.random.normal(kg, (1, cout), jnp.float32)
            beta = 0.1 * jax.random.normal(kb, (1, cout), jnp.float32)
        else:
            gamma = jnp.ones((1, cout), jnp.float32)
            beta = jnp.zeros((1, cout), jnp.float32)
        params.append({"w": w_mat, "gamma": gamma, "beta": beta})
    return params


@jax.jit
def discriminator_forward(params, x_nchw):
    n = x_nchw.shape[0]
    # NCHW -> NHWC once, cast to bf16 BEFORE im2col (halves im2col traffic).
    x = jnp.transpose(x_nchw, (0, 2, 3, 1)).astype(jnp.bfloat16)

    # Layer 1: conv(3->32, 4x4, s2, p1) + LeakyReLU(0.2)     [M-tiled, parallel]
    cols, oh, ow = _im2col_nhwc(x, 4, 2, 1)
    tm = _pick_tile_rows(n, oh * ow, 2048)
    y = conv_lrelu(cols, params[0]["w"], tm=tm)
    y = y.reshape(n, oh, ow, 32)

    # Layers 2-3: conv + BatchNorm(batch stats) + LeakyReLU  [two-phase tiled]
    for idx, cout in ((1, 64), (2, 128)):
        cols, oh, ow = _im2col_nhwc(y, 4, 2, 1)
        tm = _pick_tile_rows(n, oh * ow, 512)
        ymm, stats = conv_bn_stats(cols, params[idx]["w"], tm=tm)
        y = bn_lrelu(ymm, stats, params[idx]["gamma"], params[idx]["beta"],
                     tm=tm)
        y = y.reshape(n, oh, ow, cout)

    # Layer 4 (conv+BN+LeakyReLU) with layer 5 (4x4 valid conv, 1 channel)
    # fused into the normalize/head pass.
    cols, oh, ow = _im2col_nhwc(y, 4, 2, 1)          # oh = ow = 4
    rpi = oh * ow                                    # 16 rows per image
    tm = _pick_tile_rows(n, rpi, 512)
    ymm, stats = conv_bn_stats(cols, params[3]["w"], tm=tm)
    out = bn_lrelu_head(ymm, stats, params[3]["gamma"], params[3]["beta"],
                        params[4]["w"], tm=tm, rpi=rpi)     # (N,)

    # mirror PyTorch's `.squeeze()` on the (N, 1, 1, 1) conv output
    return jnp.squeeze(out.reshape(n, 1, 1, 1))


if __name__ == "__main__":
    key = jax.random.PRNGKey(0)
    kp, kx = jax.random.split(key)
    params = init_params(kp)
    # The architecture (4 stride-2 4x4 convs + final valid 4x4 conv) implies a
    # 64x64 spatial input; keep the batch small.
    x = jax.random.normal(kx, (2, 3, 64, 64), jnp.float32)

    out = discriminator_forward(params, x)
    out = jax.block_until_ready(out)
    assert out.shape == (2,), out.shape
    assert bool(jnp.all(jnp.isfinite(out)))
    print("KERNEL_OK")
</pallas_src>

<mosaic_0001>
module attributes {stable_mosaic.version = 11 : i64} {
  func.func @_mm_lrelu_kernel(%arg0: i32, %arg1: memref<1024x48xbf16, #tpu.memory_space<vmem>>, %arg2: memref<48x32xbf16, #tpu.memory_space<vmem>>, %arg3: memref<1024x32xbf16, #tpu.memory_space<vmem>>) attributes {dimension_semantics = [#tpu.dimension_semantics<parallel>], iteration_bounds = array<i64: 2>, scalar_prefetch = 0 : i64, scratch_operands = 0 : i64, tpu.core_type = #tpu.core_type<tc>, window_params = [{transform_indices = @transform_0, window_bounds = array<i64: 1024, 48>}, {pipeline_mode = #tpu.pipeline_mode<synchronous>, transform_indices = @transform_1, window_bounds = array<i64: 48, 32>}, {transform_indices = @transform_2, window_bounds = array<i64: 1024, 32>}]} {
    %c0 = arith.constant 0 : index
    %c0_0 = arith.constant 0 : index
    %0 = vector.load %arg1[%c0, %c0_0] : memref<1024x48xbf16, #tpu.memory_space<vmem>>, vector<1024x48xbf16>
    %c0_1 = arith.constant 0 : index
    %c0_2 = arith.constant 0 : index
    %1 = vector.load %arg2[%c0_1, %c0_2] : memref<48x32xbf16, #tpu.memory_space<vmem>>, vector<48x32xbf16>
    %cst = arith.constant dense<0.000000e+00> : vector<1024x32xf32>
    %2 = tpu.matmul %0, %1, %cst {dimension_numbers = #tpu.dot_dimension_numbers<[1], [0], [0], [1], [0, 0, 1, 1], [], []>} : vector<1024x48xbf16>, vector<48x32xbf16>, vector<1024x32xf32> -> vector<1024x32xf32>
    %cst_3 = arith.constant 0.000000e+00 : f32
    %3 = vector.broadcast %cst_3 : f32 to vector<1024x32xf32>
    %4 = arith.cmpf ogt, %2, %3 : vector<1024x32xf32>
    %cst_4 = arith.constant 2.000000e-01 : f32
    %5 = vector.broadcast %cst_4 : f32 to vector<1024x32xf32>
    %6 = arith.mulf %5, %2 : vector<1024x32xf32>
    %7 = arith.select %4, %2, %6 : vector<1024x32xi1>, vector<1024x32xf32>
    %8 = arith.truncf %7 : vector<1024x32xf32> to vector<1024x32xbf16>
    %c0_5 = arith.constant 0 : index
    %c0_6 = arith.constant 0 : index
    %9 = vector.load %arg3[%c0_5, %c0_6] : memref<1024x32xbf16, #tpu.memory_space<vmem>>, vector<1024x32xbf16>
    tpu.vector_store %arg3[%c0_5, %c0_6], %8 {strides = array<i32>} : memref<1024x32xbf16, #tpu.memory_space<vmem>>, vector<1024x32xbf16>,
    return
  }
  func.func @transform_0(%arg0: i32) -> (i32, i32) {
    %c0_i32 = arith.constant 0 : i32
    %c0_i32_0 = arith.constant 0 : i32
    return %arg0, %c0_i32 : i32, i32
  }
  func.func @transform_1(%arg0: i32) -> (i32, i32) {
    %c0_i32 = arith.constant 0 : i32
    %c0_i32_0 = arith.constant 0 : i32
    %c0_i32_1 = arith.constant 0 : i32
    return %c0_i32, %c0_i32_0 : i32, i32
  }
  func.func @transform_2(%arg0: i32) -> (i32, i32) {
    %c0_i32 = arith.constant 0 : i32
    %c0_i32_0 = arith.constant 0 : i32
    return %arg0, %c0_i32 : i32, i32
  }
}

module attributes {stable_mosaic.version = 11 : i64} {
  func.func @_mm_stats_kernel(%arg0: i32, %arg1: memref<256x512xbf16, #tpu.memory_space<vmem>>, %arg2: memref<512x64xbf16, #tpu.memory_space<vmem>>, %arg3: memref<256x64xbf16, #tpu.memory_space<vmem>>, %arg4: memref<2x64xf32, #tpu.memory_space<vmem>>) attributes {dimension_semantics = [#tpu.dimension_semantics<arbitrary>], iteration_bounds = array<i64: 2>, scalar_prefetch = 0 : i64, scratch_operands = 0 : i64, tpu.core_type = #tpu.core_type<tc>, window_params = [{transform_indices = @transform_0, window_bounds = array<i64: 256, 512>}, {pipeline_mode = #tpu.pipeline_mode<synchronous>, transform_indices = @transform_1, window_bounds = array<i64: 512, 64>}, {transform_indices = @transform_2, window_bounds = array<i64: 256, 64>}, {pipeline_mode = #tpu.pipeline_mode<synchronous>, transform_indices = @transform_3, window_bounds = array<i64: 2, 64>}]} {
    %c0 = arith.constant 0 : index
    %c0_0 = arith.constant 0 : index
    %0 = vector.load %arg1[%c0, %c0_0] : memref<256x512xbf16, #tpu.memory_space<vmem>>, vector<256x512xbf16>
    %c0_1 = arith.constant 0 : index
    %c0_2 = arith.constant 0 : index
    %1 = vector.load %arg2[%c0_1, %c0_2] : memref<512x64xbf16, #tpu.memory_space<vmem>>, vector<512x64xbf16>
    %cst = arith.constant dense<0.000000e+00> : vector<256x64xf32>
    %2 = tpu.matmul %0, %1, %cst {dimension_numbers = #tpu.dot_dimension_numbers<[1], [0], [0], [1], [0, 0, 1, 1], [], []>} : vector<256x512xbf16>, vector<512x64xbf16>, vector<256x64xf32> -> vector<256x64xf32>
    %3 = arith.truncf %2 : vector<256x64xf32> to vector<256x64xbf16>
    %c0_3 = arith.constant 0 : index
    %c0_4 = arith.constant 0 : index
    %4 = vector.load %arg3[%c0_3, %c0_4] : memref<256x64xbf16, #tpu.memory_space<vmem>>, vector<256x64xbf16>
    tpu.vector_store %arg3[%c0_3, %c0_4], %3 {strides = array<i32>} : memref<256x64xbf16, #tpu.memory_space<vmem>>, vector<256x64xbf16>,
    %cst_5 = arith.constant dense<0.000000e+00> : vector<64xf32>
    %5 = vector.multi_reduction <add>, %2, %cst_5 [0] : vector<256x64xf32> to vector<64xf32>
    %6 = vector.shape_cast %5 : vector<64xf32> to vector<1x64xf32>
    %cst_6 = arith.constant 2.560000e+02 : f32
    %7 = vector.broadcast %cst_6 : f32 to vector<1x64xf32>
    %8 = arith.divf %6, %7 : vector<1x64xf32>
    %9 = vector.broadcast %8 : vector<1x64xf32> to vector<256x64xf32>
    %10 = arith.subf %2, %9 : vector<256x64xf32>
    %11 = arith.mulf %10, %10 : vector<256x64xf32>
    %cst_7 = arith.constant dense<0.000000e+00> : vector<64xf32>
    %12 = vector.multi_reduction <add>, %11, %cst_7 [0] : vector<256x64xf32> to vector<64xf32>
    %13 = vector.shape_cast %12 : vector<64xf32> to vector<1x64xf32>
    %c0_i32 = arith.constant 0 : i32
    %14 = arith.cmpi eq, %arg0, %c0_i32 : i32
    %15 = arith.extui %14 : i1 to i32
    %c0_i32_8 = arith.constant 0 : i32
    %16 = arith.cmpi ne, %15, %c0_i32_8 : i32
    scf.if %16 {
      %c0_11 = arith.constant 0 : index
      %c0_12 = arith.constant 0 : index
      %20 = vector.load %arg4[%c0_11, %c0_12] : memref<2x64xf32, #tpu.memory_space<vmem>>, vector<1x64xf32>
      tpu.vector_store %arg4[%c0_11, %c0_12], %8 {strides = array<i32>} : memref<2x64xf32, #tpu.memory_space<vmem>>, vector<1x64xf32>,
      %c1 = arith.constant 1 : index
      %c0_13 = arith.constant 0 : index
      %21 = vector.load %arg4[%c1, %c0_13] : memref<2x64xf32, #tpu.memory_space<vmem>>, vector<1x64xf32>
      tpu.vector_store %arg4[%c1, %c0_13], %13 {strides = array<i32>} : memref<2x64xf32, #tpu.memory_space<vmem>>, vector<1x64xf32>,
    } else {
    }
    %c0_i32_9 = arith.constant 0 : i32
    %17 = arith.cmpi sgt, %arg0, %c0_i32_9 : i32
    %18 = arith.extui %17 : i1 to i32
    %c0_i32_10 = arith.constant 0 : i32
    %19 = arith.cmpi ne, %18, %c0_i32_10 : i32
    scf.if %19 {
      %c256_i32 = arith.constant 256 : i32
      %20 = arith.muli %arg0, %c256_i32 : i32
      %21 = arith.sitofp %20 : i32 to f32
      %cst_11 = arith.constant 2.560000e+02 : f32
      %22 = arith.addf %21, %cst_11 : f32
      %c0_12 = arith.constant 0 : index
      %c0_13 = arith.constant 0 : index
      %23 = vector.load %arg4[%c0_12, %c0_13] : memref<2x64xf32, #tpu.memory_space<vmem>>, vector<1x64xf32>
      %24 = arith.subf %8, %23 : vector<1x64xf32>
      %c0_14 = arith.constant 0 : index
      %c0_15 = arith.constant 0 : index
      %25 = vector.load %arg4[%c0_14, %c0_15] : memref<2x64xf32, #tpu.memory_space<vmem>>, vector<1x64xf32>
      %cst_16 = arith.constant 2.560000e+02 : f32
      %26 = arith.divf %cst_16, %22 : f32
      %27 = vector.broadcast %26 : f32 to vector<1x64xf32>
      %28 = arith.mulf %24, %27 : vector<1x64xf32>
      %29 = arith.addf %25, %28 : vector<1x64xf32>
      %c0_17 = arith.constant 0 : index
      %c0_18 = arith.constant 0 : index
      %30 = vector.load %arg4[%c0_17, %c0_18] : memref<2x64xf32, #tpu.memory_space<vmem>>, vector<1x64xf32>
      tpu.vector_store %arg4[%c0_17, %c0_18], %29 {strides = array<i32>} : memref<2x64xf32, #tpu.memory_space<vmem>>, vector<1x64xf32>,
      %c1 = arith.constant 1 : index
      %c0_19 = arith.constant 0 : index
      %31 = vector.load %arg4[%c1, %c0_19] : memref<2x64xf32, #tpu.memory_space<vmem>>, vector<1x64xf32>
      %32 = arith.addf %31, %13 : vector<1x64xf32>
      %33 = arith.mulf %24, %24 : vector<1x64xf32>
      %cst_20 = arith.constant 2.560000e+02 : f32
      %34 = arith.mulf %21, %cst_20 : f32
      %35 = arith.divf %34, %22 : f32
      %36 = vector.broadcast %35 : f32 to vector<1x64xf32>
      %37 = arith.mulf %33, %36 : vector<1x64xf32>
      %38 = arith.addf %32, %37 : vector<1x64xf32>
      %c1_21 = arith.constant 1 : index
      %c0_22 = arith.constant 0 : index
      %39 = vector.load %arg4[%c1_21, %c0_22] : memref<2x64xf32, #tpu.memory_space<vmem>>, vector<1x64xf32>
      tpu.vector_store %arg4[%c1_21, %c0_22], %38 {strides = array<i32>} : memref<2x64xf32, #tpu.memory_space<vmem>>, vector<1x64xf32>,
    } else {
    }
    return
  }
  func.func @transform_0(%arg0: i32) -> (i32, i32) {
    %c0_i32 = arith.constant 0 : i32
    %c0_i32_0 = arith.constant 0 : i32
    return %arg0, %c0_i32 : i32, i32
  }
  func.func @transform_1(%arg0: i32) -> (i32, i32) {
    %c0_i32 = arith.constant 0 : i32
    %c0_i32_0 = arith.constant 0 : i32
    %c0_i32_1 = arith.constant 0 : i32
    return %c0_i32, %c0_i32_0 : i32, i32
  }
  func.func @transform_2(%arg0: i32) -> (i32, i32) {
    %c0_i32 = arith.constant 0 : i32
    %c0_i32_0 = arith.constant 0 : i32
    return %arg0, %c0_i32 : i32, i32
  }
  func.func @transform_3(%arg0: i32) -> (i32, i32) {
    %c0_i32 = arith.constant 0 : i32
    %c0_i32_0 = arith.constant 0 : i32
    %c0_i32_1 = arith.constant 0 : i32
    return %c0_i32, %c0_i32_0 : i32, i32
  }
}

module attributes {stable_mosaic.version = 11 : i64} {
  func.func @_bn_lrelu_kernel(%arg0: i32, %arg1: memref<256x64xbf16, #tpu.memory_space<vmem>>, %arg2: memref<2x64xf32, #tpu.memory_space<vmem>>, %arg3: memref<1x64xf32, #tpu.memory_space<vmem>>, %arg4: memref<1x64xf32, #tpu.memory_space<vmem>>, %arg5: memref<256x64xbf16, #tpu.memory_space<vmem>>) attributes {dimension_semantics = [#tpu.dimension_semantics<parallel>], iteration_bounds = array<i64: 2>, scalar_prefetch = 0 : i64, scratch_operands = 0 : i64, tpu.core_type = #tpu.core_type<tc>, window_params = [{transform_indices = @transform_0, window_bounds = array<i64: 256, 64>}, {pipeline_mode = #tpu.pipeline_mode<synchronous>, transform_indices = @transform_1, window_bounds = array<i64: 2, 64>}, {pipeline_mode = #tpu.pipeline_mode<synchronous>, transform_indices = @transform_2, window_bounds = array<i64: 1, 64>}, {pipeline_mode = #tpu.pipeline_mode<synchronous>, transform_indices = @transform_3, window_bounds = array<i64: 1, 64>}, {transform_indices = @transform_4, window_bounds = array<i64: 256, 64>}]} {
    %c0 = arith.constant 0 : index
    %c0_0 = arith.constant 0 : index
    %0 = vector.load %arg2[%c0, %c0_0] : memref<2x64xf32, #tpu.memory_space<vmem>>, vector<1x64xf32>
    %c1 = arith.constant 1 : index
    %c0_1 = arith.constant 0 : index
    %1 = vector.load %arg2[%c1, %c0_1] : memref<2x64xf32, #tpu.memory_space<vmem>>, vector<1x64xf32>
    %cst = arith.constant 0.001953125 : f32
    %2 = vector.broadcast %cst : f32 to vector<1x64xf32>
    %3 = arith.mulf %1, %2 : vector<1x64xf32>
    %c0_2 = arith.constant 0 : index
    %c0_3 = arith.constant 0 : index
    %4 = vector.load %arg3[%c0_2, %c0_3] : memref<1x64xf32, #tpu.memory_space<vmem>>, vector<1x64xf32>
    %cst_4 = arith.constant 9.99999974E-6 : f32
    %5 = vector.broadcast %cst_4 : f32 to vector<1x64xf32>
    %6 = arith.addf %3, %5 : vector<1x64xf32>
    %7 = math.rsqrt %6 : vector<1x64xf32>
    %8 = arith.mulf %4, %7 : vector<1x64xf32>
    %c0_5 = arith.constant 0 : index
    %c0_6 = arith.constant 0 : index
    %9 = vector.load %arg4[%c0_5, %c0_6] : memref<1x64xf32, #tpu.memory_space<vmem>>, vector<1x64xf32>
    %10 = arith.mulf %0, %8 : vector<1x64xf32>
    %11 = arith.subf %9, %10 : vector<1x64xf32>
    %c0_7 = arith.constant 0 : index
    %c0_8 = arith.constant 0 : index
    %12 = vector.load %arg1[%c0_7, %c0_8] : memref<256x64xbf16, #tpu.memory_space<vmem>>, vector<256x64xbf16>
    %13 = arith.extf %12 : vector<256x64xbf16> to vector<256x64xf32>
    %14 = vector.broadcast %8 : vector<1x64xf32> to vector<256x64xf32>
    %15 = arith.mulf %13, %14 : vector<256x64xf32>
    %16 = vector.broadcast %11 : vector<1x64xf32> to vector<256x64xf32>
    %17 = arith.addf %15, %16 : vector<256x64xf32>
    %cst_9 = arith.constant 0.000000e+00 : f32
    %18 = vector.broadcast %cst_9 : f32 to vector<256x64xf32>
    %19 = arith.cmpf ogt, %17, %18 : vector<256x64xf32>
    %cst_10 = arith.constant 2.000000e-01 : f32
    %20 = vector.broadcast %cst_10 : f32 to vector<256x64xf32>
    %21 = arith.mulf %20, %17 : vector<256x64xf32>
    %22 = arith.select %19, %17, %21 : vector<256x64xi1>, vector<256x64xf32>
    %23 = arith.truncf %22 : vector<256x64xf32> to vector<256x64xbf16>
    %c0_11 = arith.constant 0 : index
    %c0_12 = arith.constant 0 : index
    %24 = vector.load %arg5[%c0_11, %c0_12] : memref<256x64xbf16, #tpu.memory_space<vmem>>, vector<256x64xbf16>
    tpu.vector_store %arg5[%c0_11, %c0_12], %23 {strides = array<i32>} : memref<256x64xbf16, #tpu.memory_space<vmem>>, vector<256x64xbf16>,
    return
  }
  func.func @transform_0(%arg0: i32) -> (i32, i32) {
    %c0_i32 = arith.constant 0 : i32
    %c0_i32_0 = arith.constant 0 : i32
    return %arg0, %c0_i32 : i32, i32
  }
  func.func @transform_1(%arg0: i32) -> (i32, i32) {
    %c0_i32 = arith.constant 0 : i32
    %c0_i32_0 = arith.constant 0 : i32
    %c0_i32_1 = arith.constant 0 : i32
    return %c0_i32, %c0_i32_0 : i32, i32
  }
  func.func @transform_2(%arg0: i32) -> (i32, i32) {
    %c0_i32 = arith.constant 0 : i32
    %c0_i32_0 = arith.constant 0 : i32
    %c0_i32_1 = arith.constant 0 : i32
    return %c0_i32, %c0_i32_0 : i32, i32
  }
  func.func @transform_3(%arg0: i32) -> (i32, i32) {
    %c0_i32 = arith.constant 0 : i32
    %c0_i32_0 = arith.constant 0 : i32
    %c0_i32_1 = arith.constant 0 : i32
    return %c0_i32, %c0_i32_0 : i32, i32
  }
  func.func @transform_4(%arg0: i32) -> (i32, i32) {
    %c0_i32 = arith.constant 0 : i32
    %c0_i32_0 = arith.constant 0 : i32
    return %arg0, %c0_i32 : i32, i32
  }
}

module attributes {stable_mosaic.version = 11 : i64} {
  func.func @_bn_lrelu_kernel(%arg0: i32, %arg1: memref<64x128xbf16, #tpu.memory_space<vmem>>, %arg2: memref<2x128xf32, #tpu.memory_space<vmem>>, %arg3: memref<1x128xf32, #tpu.memory_space<vmem>>, %arg4: memref<1x128xf32, #tpu.memory_space<vmem>>, %arg5: memref<64x128xbf16, #tpu.memory_space<vmem>>) attributes {dimension_semantics = [#tpu.dimension_semantics<parallel>], iteration_bounds = array<i64: 2>, scalar_prefetch = 0 : i64, scratch_operands = 0 : i64, tpu.core_type = #tpu.core_type<tc>, window_params = [{transform_indices = @transform_0, window_bounds = array<i64: 64, 128>}, {pipeline_mode = #tpu.pipeline_mode<synchronous>, transform_indices = @transform_1, window_bounds = array<i64: 2, 128>}, {pipeline_mode = #tpu.pipeline_mode<synchronous>, transform_indices = @transform_2, window_bounds = array<i64: 1, 128>}, {pipeline_mode = #tpu.pipeline_mode<synchronous>, transform_indices = @transform_3, window_bounds = array<i64: 1, 128>}, {transform_indices = @transform_4, window_bounds = array<i64: 64, 128>}]} {
    %c0 = arith.constant 0 : index
    %c0_0 = arith.constant 0 : index
    %0 = vector.load %arg2[%c0, %c0_0] : memref<2x128xf32, #tpu.memory_space<vmem>>, vector<1x128xf32>
    %c1 = arith.constant 1 : index
    %c0_1 = arith.constant 0 : index
    %1 = vector.load %arg2[%c1, %c0_1] : memref<2x128xf32, #tpu.memory_space<vmem>>, vector<1x128xf32>
    %cst = arith.constant 7.812500e-03 : f32
    %2 = vector.broadcast %cst : f32 to vector<1x128xf32>
    %3 = arith.mulf %1, %2 : vector<1x128xf32>
    %c0_2 = arith.constant 0 : index
    %c0_3 = arith.constant 0 : index
    %4 = vector.load %arg3[%c0_2, %c0_3] : memref<1x128xf32, #tpu.memory_space<vmem>>, vector<1x128xf32>
    %cst_4 = arith.constant 9.99999974E-6 : f32
    %5 = vector.broadcast %cst_4 : f32 to vector<1x128xf32>
    %6 = arith.addf %3, %5 : vector<1x128xf32>
    %7 = math.rsqrt %6 : vector<1x128xf32>
    %8 = arith.mulf %4, %7 : vector<1x128xf32>
    %c0_5 = arith.constant 0 : index
    %c0_6 = arith.constant 0 : index
    %9 = vector.load %arg4[%c0_5, %c0_6] : memref<1x128xf32, #tpu.memory_space<vmem>>, vector<1x128xf32>
    %10 = arith.mulf %0, %8 : vector<1x128xf32>
    %11 = arith.subf %9, %10 : vector<1x128xf32>
    %c0_7 = arith.constant 0 : index
    %c0_8 = arith.constant 0 : index
    %12 = vector.load %arg1[%c0_7, %c0_8] : memref<64x128xbf16, #tpu.memory_space<vmem>>, vector<64x128xbf16>
    %13 = arith.extf %12 : vector<64x128xbf16> to vector<64x128xf32>
    %14 = vector.broadcast %8 : vector<1x128xf32> to vector<64x128xf32>
    %15 = arith.mulf %13, %14 : vector<64x128xf32>
    %16 = vector.broadcast %11 : vector<1x128xf32> to vector<64x128xf32>
    %17 = arith.addf %15, %16 : vector<64x128xf32>
    %cst_9 = arith.constant 0.000000e+00 : f32
    %18 = vector.broadcast %cst_9 : f32 to vector<64x128xf32>
    %19 = arith.cmpf ogt, %17, %18 : vector<64x128xf32>
    %cst_10 = arith.constant 2.000000e-01 : f32
    %20 = vector.broadcast %cst_10 : f32 to vector<64x128xf32>
    %21 = arith.mulf %20, %17 : vector<64x128xf32>
    %22 = arith.select %19, %17, %21 : vector<64x128xi1>, vector<64x128xf32>
    %23 = arith.truncf %22 : vector<64x128xf32> to vector<64x128xbf16>
    %c0_11 = arith.constant 0 : index
    %c0_12 = arith.constant 0 : index
    %24 = vector.load %arg5[%c0_11, %c0_12] : memref<64x128xbf16, #tpu.memory_space<vmem>>, vector<64x128xbf16>
    tpu.vector_store %arg5[%c0_11, %c0_12], %23 {strides = array<i32>} : memref<64x128xbf16, #tpu.memory_space<vmem>>, vector<64x128xbf16>,
    return
  }
  func.func @transform_0(%arg0: i32) -> (i32, i32) {
    %c0_i32 = arith.constant 0 : i32
    %c0_i32_0 = arith.constant 0 : i32
    return %arg0, %c0_i32 : i32, i32
  }
  func.func @transform_1(%arg0: i32) -> (i32, i32) {
    %c0_i32 = arith.constant 0 : i32
    %c0_i32_0 = arith.constant 0 : i32
    %c0_i32_1 = arith.constant 0 : i32
    return %c0_i32, %c0_i32_0 : i32, i32
  }
  func.func @transform_2(%arg0: i32) -> (i32, i32) {
    %c0_i32 = arith.constant 0 : i32
    %c0_i32_0 = arith.constant 0 : i32
    %c0_i32_1 = arith.constant 0 : i32
    return %c0_i32, %c0_i32_0 : i32, i32
  }
  func.func @transform_3(%arg0: i32) -> (i32, i32) {
    %c0_i32 = arith.constant 0 : i32
    %c0_i32_0 = arith.constant 0 : i32
    %c0_i32_1 = arith.constant 0 : i32
    return %c0_i32, %c0_i32_0 : i32, i32
  }
  func.func @transform_4(%arg0: i32) -> (i32, i32) {
    %c0_i32 = arith.constant 0 : i32
    %c0_i32_0 = arith.constant 0 : i32
    return %arg0, %c0_i32 : i32, i32
  }
}

module attributes {stable_mosaic.version = 11 : i64} {
  func.func @_mm_stats_kernel(%arg0: i32, %arg1: memref<64x1024xbf16, #tpu.memory_space<vmem>>, %arg2: memref<1024x128xbf16, #tpu.memory_space<vmem>>, %arg3: memref<64x128xbf16, #tpu.memory_space<vmem>>, %arg4: memref<2x128xf32, #tpu.memory_space<vmem>>) attributes {dimension_semantics = [#tpu.dimension_semantics<arbitrary>], iteration_bounds = array<i64: 2>, scalar_prefetch = 0 : i64, scratch_operands = 0 : i64, tpu.core_type = #tpu.core_type<tc>, window_params = [{transform_indices = @transform_0, window_bounds = array<i64: 64, 1024>}, {pipeline_mode = #tpu.pipeline_mode<synchronous>, transform_indices = @transform_1, window_bounds = array<i64: 1024, 128>}, {transform_indices = @transform_2, window_bounds = array<i64: 64, 128>}, {pipeline_mode = #tpu.pipeline_mode<synchronous>, transform_indices = @transform_3, window_bounds = array<i64: 2, 128>}]} {
    %c0 = arith.constant 0 : index
    %c0_0 = arith.constant 0 : index
    %0 = vector.load %arg1[%c0, %c0_0] : memref<64x1024xbf16, #tpu.memory_space<vmem>>, vector<64x1024xbf16>
    %c0_1 = arith.constant 0 : index
    %c0_2 = arith.constant 0 : index
    %1 = vector.load %arg2[%c0_1, %c0_2] : memref<1024x128xbf16, #tpu.memory_space<vmem>>, vector<1024x128xbf16>
    %cst = arith.constant dense<0.000000e+00> : vector<64x128xf32>
    %2 = tpu.matmul %0, %1, %cst {dimension_numbers = #tpu.dot_dimension_numbers<[1], [0], [0], [1], [0, 0, 1, 1], [], []>} : vector<64x1024xbf16>, vector<1024x128xbf16>, vector<64x128xf32> -> vector<64x128xf32>
    %3 = arith.truncf %2 : vector<64x128xf32> to vector<64x128xbf16>
    %c0_3 = arith.constant 0 : index
    %c0_4 = arith.constant 0 : index
    %4 = vector.load %arg3[%c0_3, %c0_4] : memref<64x128xbf16, #tpu.memory_space<vmem>>, vector<64x128xbf16>
    tpu.vector_store %arg3[%c0_3, %c0_4], %3 {strides = array<i32>} : memref<64x128xbf16, #tpu.memory_space<vmem>>, vector<64x128xbf16>,
    %cst_5 = arith.constant dense<0.000000e+00> : vector<128xf32>
    %5 = vector.multi_reduction <add>, %2, %cst_5 [0] : vector<64x128xf32> to vector<128xf32>
    %6 = vector.shape_cast %5 : vector<128xf32> to vector<1x128xf32>
    %cst_6 = arith.constant 6.400000e+01 : f32
    %7 = vector.broadcast %cst_6 : f32 to vector<1x128xf32>
    %8 = arith.divf %6, %7 : vector<1x128xf32>
    %9 = vector.broadcast %8 : vector<1x128xf32> to vector<64x128xf32>
    %10 = arith.subf %2, %9 : vector<64x128xf32>
    %11 = arith.mulf %10, %10 : vector<64x128xf32>
    %cst_7 = arith.constant dense<0.000000e+00> : vector<128xf32>
    %12 = vector.multi_reduction <add>, %11, %cst_7 [0] : vector<64x128xf32> to vector<128xf32>
    %13 = vector.shape_cast %12 : vector<128xf32> to vector<1x128xf32>
    %c0_i32 = arith.constant 0 : i32
    %14 = arith.cmpi eq, %arg0, %c0_i32 : i32
    %15 = arith.extui %14 : i1 to i32
    %c0_i32_8 = arith.constant 0 : i32
    %16 = arith.cmpi ne, %15, %c0_i32_8 : i32
    scf.if %16 {
      %c0_11 = arith.constant 0 : index
      %c0_12 = arith.constant 0 : index
      %20 = vector.load %arg4[%c0_11, %c0_12] : memref<2x128xf32, #tpu.memory_space<vmem>>, vector<1x128xf32>
      tpu.vector_store %arg4[%c0_11, %c0_12], %8 {strides = array<i32>} : memref<2x128xf32, #tpu.memory_space<vmem>>, vector<1x128xf32>,
      %c1 = arith.constant 1 : index
      %c0_13 = arith.constant 0 : index
      %21 = vector.load %arg4[%c1, %c0_13] : memref<2x128xf32, #tpu.memory_space<vmem>>, vector<1x128xf32>
      tpu.vector_store %arg4[%c1, %c0_13], %13 {strides = array<i32>} : memref<2x128xf32, #tpu.memory_space<vmem>>, vector<1x128xf32>,
    } else {
    }
    %c0_i32_9 = arith.constant 0 : i32
    %17 = arith.cmpi sgt, %arg0, %c0_i32_9 : i32
    %18 = arith.extui %17 : i1 to i32
    %c0_i32_10 = arith.constant 0 : i32
    %19 = arith.cmpi ne, %18, %c0_i32_10 : i32
    scf.if %19 {
      %c64_i32 = arith.constant 64 : i32
      %20 = arith.muli %arg0, %c64_i32 : i32
      %21 = arith.sitofp %20 : i32 to f32
      %cst_11 = arith.constant 6.400000e+01 : f32
      %22 = arith.addf %21, %cst_11 : f32
      %c0_12 = arith.constant 0 : index
      %c0_13 = arith.constant 0 : index
      %23 = vector.load %arg4[%c0_12, %c0_13] : memref<2x128xf32, #tpu.memory_space<vmem>>, vector<1x128xf32>
      %24 = arith.subf %8, %23 : vector<1x128xf32>
      %c0_14 = arith.constant 0 : index
      %c0_15 = arith.constant 0 : index
      %25 = vector.load %arg4[%c0_14, %c0_15] : memref<2x128xf32, #tpu.memory_space<vmem>>, vector<1x128xf32>
      %cst_16 = arith.constant 6.400000e+01 : f32
      %26 = arith.divf %cst_16, %22 : f32
      %27 = vector.broadcast %26 : f32 to vector<1x128xf32>
      %28 = arith.mulf %24, %27 : vector<1x128xf32>
      %29 = arith.addf %25, %28 : vector<1x128xf32>
      %c0_17 = arith.constant 0 : index
      %c0_18 = arith.constant 0 : index
      %30 = vector.load %arg4[%c0_17, %c0_18] : memref<2x128xf32, #tpu.memory_space<vmem>>, vector<1x128xf32>
      tpu.vector_store %arg4[%c0_17, %c0_18], %29 {strides = array<i32>} : memref<2x128xf32, #tpu.memory_space<vmem>>, vector<1x128xf32>,
      %c1 = arith.constant 1 : index
      %c0_19 = arith.constant 0 : index
      %31 = vector.load %arg4[%c1, %c0_19] : memref<2x128xf32, #tpu.memory_space<vmem>>, vector<1x128xf32>
      %32 = arith.addf %31, %13 : vector<1x128xf32>
      %33 = arith.mulf %24, %24 : vector<1x128xf32>
      %cst_20 = arith.constant 6.400000e+01 : f32
      %34 = arith.mulf %21, %cst_20 : f32
      %35 = arith.divf %34, %22 : f32
      %36 = vector.broadcast %35 : f32 to vector<1x128xf32>
      %37 = arith.mulf %33, %36 : vector<1x128xf32>
      %38 = arith.addf %32, %37 : vector<1x128xf32>
      %c1_21 = arith.constant 1 : index
      %c0_22 = arith.constant 0 : index
      %39 = vector.load %arg4[%c1_21, %c0_22] : memref<2x128xf32, #tpu.memory_space<vmem>>, vector<1x128xf32>
      tpu.vector_store %arg4[%c1_21, %c0_22], %38 {strides = array<i32>} : memref<2x128xf32, #tpu.memory_space<vmem>>, vector<1x128xf32>,
    } else {
    }
    return
  }
  func.func @transform_0(%arg0: i32) -> (i32, i32) {
    %c0_i32 = arith.constant 0 : i32
    %c0_i32_0 = arith.constant 0 : i32
    return %arg0, %c0_i32 : i32, i32
  }
  func.func @transform_1(%arg0: i32) -> (i32, i32) {
    %c0_i32 = arith.constant 0 : i32
    %c0_i32_0 = arith.constant 0 : i32
    %c0_i32_1 = arith.constant 0 : i32
    return %c0_i32, %c0_i32_0 : i32, i32
  }
  func.func @transform_2(%arg0: i32) -> (i32, i32) {
    %c0_i32 = arith.constant 0 : i32
    %c0_i32_0 = arith.constant 0 : i32
    return %arg0, %c0_i32 : i32, i32
  }
  func.func @transform_3(%arg0: i32) -> (i32, i32) {
    %c0_i32 = arith.constant 0 : i32
    %c0_i32_0 = arith.constant 0 : i32
    %c0_i32_1 = arith.constant 0 : i32
    return %c0_i32, %c0_i32_0 : i32, i32
  }
}

module attributes {stable_mosaic.version = 11 : i64} {
  func.func @_bn_lrelu_head_kernel(%arg0: i32, %arg1: memref<16x256xbf16, #tpu.memory_space<vmem>>, %arg2: memref<2x256xf32, #tpu.memory_space<vmem>>, %arg3: memref<1x256xf32, #tpu.memory_space<vmem>>, %arg4: memref<1x256xf32, #tpu.memory_space<vmem>>, %arg5: memref<16x256xf32, #tpu.memory_space<vmem>>, %arg6: memref<16x128xf32, #tpu.memory_space<vmem>>) attributes {dimension_semantics = [#tpu.dimension_semantics<parallel>], iteration_bounds = array<i64: 2>, scalar_prefetch = 0 : i64, scratch_operands = 0 : i64, tpu.core_type = #tpu.core_type<tc>, window_params = [{transform_indices = @transform_0, window_bounds = array<i64: 16, 256>}, {pipeline_mode = #tpu.pipeline_mode<synchronous>, transform_indices = @transform_1, window_bounds = array<i64: 2, 256>}, {pipeline_mode = #tpu.pipeline_mode<synchronous>, transform_indices = @transform_2, window_bounds = array<i64: 1, 256>}, {pipeline_mode = #tpu.pipeline_mode<synchronous>, transform_indices = @transform_3, window_bounds = array<i64: 1, 256>}, {pipeline_mode = #tpu.pipeline_mode<synchronous>, transform_indices = @transform_4, window_bounds = array<i64: 16, 256>}, {transform_indices = @transform_5, window_bounds = array<i64: 16, 128>}]} {
    %c0 = arith.constant 0 : index
    %c0_0 = arith.constant 0 : index
    %0 = vector.load %arg2[%c0, %c0_0] : memref<2x256xf32, #tpu.memory_space<vmem>>, vector<1x256xf32>
    %c1 = arith.constant 1 : index
    %c0_1 = arith.constant 0 : index
    %1 = vector.load %arg2[%c1, %c0_1] : memref<2x256xf32, #tpu.memory_space<vmem>>, vector<1x256xf32>
    %cst = arith.constant 3.125000e-02 : f32
    %2 = vector.broadcast %cst : f32 to vector<1x256xf32>
    %3 = arith.mulf %1, %2 : vector<1x256xf32>
    %c0_2 = arith.constant 0 : index
    %c0_3 = arith.constant 0 : index
    %4 = vector.load %arg3[%c0_2, %c0_3] : memref<1x256xf32, #tpu.memory_space<vmem>>, vector<1x256xf32>
    %cst_4 = arith.constant 9.99999974E-6 : f32
    %5 = vector.broadcast %cst_4 : f32 to vector<1x256xf32>
    %6 = arith.addf %3, %5 : vector<1x256xf32>
    %7 = math.rsqrt %6 : vector<1x256xf32>
    %8 = arith.mulf %4, %7 : vector<1x256xf32>
    %c0_5 = arith.constant 0 : index
    %c0_6 = arith.constant 0 : index
    %9 = vector.load %arg4[%c0_5, %c0_6] : memref<1x256xf32, #tpu.memory_space<vmem>>, vector<1x256xf32>
    %10 = arith.mulf %0, %8 : vector<1x256xf32>
    %11 = arith.subf %9, %10 : vector<1x256xf32>
    %c0_7 = arith.constant 0 : index
    %c0_8 = arith.constant 0 : index
    %12 = vector.load %arg1[%c0_7, %c0_8] : memref<16x256xbf16, #tpu.memory_space<vmem>>, vector<16x256xbf16>
    %13 = arith.extf %12 : vector<16x256xbf16> to vector<16x256xf32>
    %14 = vector.broadcast %8 : vector<1x256xf32> to vector<16x256xf32>
    %15 = arith.mulf %13, %14 : vector<16x256xf32>
    %16 = vector.broadcast %11 : vector<1x256xf32> to vector<16x256xf32>
    %17 = arith.addf %15, %16 : vector<16x256xf32>
    %cst_9 = arith.constant 0.000000e+00 : f32
    %18 = vector.broadcast %cst_9 : f32 to vector<16x256xf32>
    %19 = arith.cmpf ogt, %17, %18 : vector<16x256xf32>
    %cst_10 = arith.constant 2.000000e-01 : f32
    %20 = vector.broadcast %cst_10 : f32 to vector<16x256xf32>
    %21 = arith.mulf %20, %17 : vector<16x256xf32>
    %22 = arith.select %19, %17, %21 : vector<16x256xi1>, vector<16x256xf32>
    %23 = vector.shape_cast %22 : vector<16x256xf32> to vector<1x16x256xf32>
    %c0_11 = arith.constant 0 : index
    %c0_12 = arith.constant 0 : index
    %24 = vector.load %arg5[%c0_11, %c0_12] : memref<16x256xf32, #tpu.memory_space<vmem>>, vector<16x256xf32>
    %25 = vector.shape_cast %24 : vector<16x256xf32> to vector<1x16x256xf32>
    %26 = arith.mulf %23, %25 : vector<1x16x256xf32>
    %cst_13 = arith.constant dense<0.000000e+00> : vector<1x16xf32>
    %27 = vector.multi_reduction <add>, %26, %cst_13 [2] : vector<1x16x256xf32> to vector<1x16xf32>
    %28 = vector.shape_cast %27 : vector<1x16xf32> to vector<1x16x1xf32>
    %cst_14 = arith.constant dense<0.000000e+00> : vector<1x1xf32>
    %29 = vector.multi_reduction <add>, %28, %cst_14 [1] : vector<1x16x1xf32> to vector<1x1xf32>
    %30 = vector.shape_cast %29 : vector<1x1xf32> to vector<1x1x1xf32>
    %31 = vector.shape_cast %30 : vector<1x1x1xf32> to vector<1x1x1xf32>
    %32 = vector.broadcast %31 : vector<1x1x1xf32> to vector<1x16x128xf32>
    %33 = vector.shape_cast %32 : vector<1x16x128xf32> to vector<16x128xf32>
    %c0_15 = arith.constant 0 : index
    %c0_16 = arith.constant 0 : index
    %34 = vector.load %arg6[%c0_15, %c0_16] : memref<16x128xf32, #tpu.memory_space<vmem>>, vector<16x128xf32>
    tpu.vector_store %arg6[%c0_15, %c0_16], %33 {strides = array<i32>} : memref<16x128xf32, #tpu.memory_space<vmem>>, vector<16x128xf32>,
    return
  }
  func.func @transform_0(%arg0: i32) -> (i32, i32) {
    %c0_i32 = arith.constant 0 : i32
    %c0_i32_0 = arith.constant 0 : i32
    return %arg0, %c0_i32 : i32, i32
  }
  func.func @transform_1(%arg0: i32) -> (i32, i32) {
    %c0_i32 = arith.constant 0 : i32
    %c0_i32_0 = arith.constant 0 : i32
    %c0_i32_1 = arith.constant 0 : i32
    return %c0_i32, %c0_i32_0 : i32, i32
  }
  func.func @transform_2(%arg0: i32) -> (i32, i32) {
    %c0_i32 = arith.constant 0 : i32
    %c0_i32_0 = arith.constant 0 : i32
    %c0_i32_1 = arith.constant 0 : i32
    return %c0_i32, %c0_i32_0 : i32, i32
  }
  func.func @transform_3(%arg0: i32) -> (i32, i32) {
    %c0_i32 = arith.constant 0 : i32
    %c0_i32_0 = arith.constant 0 : i32
    %c0_i32_1 = arith.constant 0 : i32
    return %c0_i32, %c0_i32_0 : i32, i32
  }
  func.func @transform_4(%arg0: i32) -> (i32, i32) {
    %c0_i32 = arith.constant 0 : i32
    %c0_i32_0 = arith.constant 0 : i32
    %c0_i32_1 = arith.constant 0 : i32
    return %c0_i32, %c0_i32_0 : i32, i32
  }
  func.func @transform_5(%arg0: i32) -> (i32, i32) {
    %c0_i32 = arith.constant 0 : i32
    %c0_i32_0 = arith.constant 0 : i32
    return %arg0, %c0_i32 : i32, i32
  }
}

module attributes {stable_mosaic.version = 11 : i64} {
  func.func @_mm_stats_kernel(%arg0: i32, %arg1: memref<16x2048xbf16, #tpu.memory_space<vmem>>, %arg2: memref<2048x256xbf16, #tpu.memory_space<vmem>>, %arg3: memref<16x256xbf16, #tpu.memory_space<vmem>>, %arg4: memref<2x256xf32, #tpu.memory_space<vmem>>) attributes {dimension_semantics = [#tpu.dimension_semantics<arbitrary>], iteration_bounds = array<i64: 2>, scalar_prefetch = 0 : i64, scratch_operands = 0 : i64, tpu.core_type = #tpu.core_type<tc>, window_params = [{transform_indices = @transform_0, window_bounds = array<i64: 16, 2048>}, {pipeline_mode = #tpu.pipeline_mode<synchronous>, transform_indices = @transform_1, window_bounds = array<i64: 2048, 256>}, {transform_indices = @transform_2, window_bounds = array<i64: 16, 256>}, {pipeline_mode = #tpu.pipeline_mode<synchronous>, transform_indices = @transform_3, window_bounds = array<i64: 2, 256>}]} {
    %c0 = arith.constant 0 : index
    %c0_0 = arith.constant 0 : index
    %0 = vector.load %arg1[%c0, %c0_0] : memref<16x2048xbf16, #tpu.memory_space<vmem>>, vector<16x2048xbf16>
    %c0_1 = arith.constant 0 : index
    %c0_2 = arith.constant 0 : index
    %1 = vector.load %arg2[%c0_1, %c0_2] : memref<2048x256xbf16, #tpu.memory_space<vmem>>, vector<2048x256xbf16>
    %cst = arith.constant dense<0.000000e+00> : vector<16x256xf32>
    %2 = tpu.matmul %0, %1, %cst {dimension_numbers = #tpu.dot_dimension_numbers<[1], [0], [0], [1], [0, 0, 1, 1], [], []>} : vector<16x2048xbf16>, vector<2048x256xbf16>, vector<16x256xf32> -> vector<16x256xf32>
    %3 = arith.truncf %2 : vector<16x256xf32> to vector<16x256xbf16>
    %c0_3 = arith.constant 0 : index
    %c0_4 = arith.constant 0 : index
    %4 = vector.load %arg3[%c0_3, %c0_4] : memref<16x256xbf16, #tpu.memory_space<vmem>>, vector<16x256xbf16>
    tpu.vector_store %arg3[%c0_3, %c0_4], %3 {strides = array<i32>} : memref<16x256xbf16, #tpu.memory_space<vmem>>, vector<16x256xbf16>,
    %cst_5 = arith.constant dense<0.000000e+00> : vector<256xf32>
    %5 = vector.multi_reduction <add>, %2, %cst_5 [0] : vector<16x256xf32> to vector<256xf32>
    %6 = vector.shape_cast %5 : vector<256xf32> to vector<1x256xf32>
    %cst_6 = arith.constant 1.600000e+01 : f32
    %7 = vector.broadcast %cst_6 : f32 to vector<1x256xf32>
    %8 = arith.divf %6, %7 : vector<1x256xf32>
    %9 = vector.broadcast %8 : vector<1x256xf32> to vector<16x256xf32>
    %10 = arith.subf %2, %9 : vector<16x256xf32>
    %11 = arith.mulf %10, %10 : vector<16x256xf32>
    %cst_7 = arith.constant dense<0.000000e+00> : vector<256xf32>
    %12 = vector.multi_reduction <add>, %11, %cst_7 [0] : vector<16x256xf32> to vector<256xf32>
    %13 = vector.shape_cast %12 : vector<256xf32> to vector<1x256xf32>
    %c0_i32 = arith.constant 0 : i32
    %14 = arith.cmpi eq, %arg0, %c0_i32 : i32
    %15 = arith.extui %14 : i1 to i32
    %c0_i32_8 = arith.constant 0 : i32
    %16 = arith.cmpi ne, %15, %c0_i32_8 : i32
    scf.if %16 {
      %c0_11 = arith.constant 0 : index
      %c0_12 = arith.constant 0 : index
      %20 = vector.load %arg4[%c0_11, %c0_12] : memref<2x256xf32, #tpu.memory_space<vmem>>, vector<1x256xf32>
      tpu.vector_store %arg4[%c0_11, %c0_12], %8 {strides = array<i32>} : memref<2x256xf32, #tpu.memory_space<vmem>>, vector<1x256xf32>,
      %c1 = arith.constant 1 : index
      %c0_13 = arith.constant 0 : index
      %21 = vector.load %arg4[%c1, %c0_13] : memref<2x256xf32, #tpu.memory_space<vmem>>, vector<1x256xf32>
      tpu.vector_store %arg4[%c1, %c0_13], %13 {strides = array<i32>} : memref<2x256xf32, #tpu.memory_space<vmem>>, vector<1x256xf32>,
    } else {
    }
    %c0_i32_9 = arith.constant 0 : i32
    %17 = arith.cmpi sgt, %arg0, %c0_i32_9 : i32
    %18 = arith.extui %17 : i1 to i32
    %c0_i32_10 = arith.constant 0 : i32
    %19 = arith.cmpi ne, %18, %c0_i32_10 : i32
    scf.if %19 {
      %c16_i32 = arith.constant 16 : i32
      %20 = arith.muli %arg0, %c16_i32 : i32
      %21 = arith.sitofp %20 : i32 to f32
      %cst_11 = arith.constant 1.600000e+01 : f32
      %22 = arith.addf %21, %cst_11 : f32
      %c0_12 = arith.constant 0 : index
      %c0_13 = arith.constant 0 : index
      %23 = vector.load %arg4[%c0_12, %c0_13] : memref<2x256xf32, #tpu.memory_space<vmem>>, vector<1x256xf32>
      %24 = arith.subf %8, %23 : vector<1x256xf32>
      %c0_14 = arith.constant 0 : index
      %c0_15 = arith.constant 0 : index
      %25 = vector.load %arg4[%c0_14, %c0_15] : memref<2x256xf32, #tpu.memory_space<vmem>>, vector<1x256xf32>
      %cst_16 = arith.constant 1.600000e+01 : f32
      %26 = arith.divf %cst_16, %22 : f32
      %27 = vector.broadcast %26 : f32 to vector<1x256xf32>
      %28 = arith.mulf %24, %27 : vector<1x256xf32>
      %29 = arith.addf %25, %28 : vector<1x256xf32>
      %c0_17 = arith.constant 0 : index
      %c0_18 = arith.constant 0 : index
      %30 = vector.load %arg4[%c0_17, %c0_18] : memref<2x256xf32, #tpu.memory_space<vmem>>, vector<1x256xf32>
      tpu.vector_store %arg4[%c0_17, %c0_18], %29 {strides = array<i32>} : memref<2x256xf32, #tpu.memory_space<vmem>>, vector<1x256xf32>,
      %c1 = arith.constant 1 : index
      %c0_19 = arith.constant 0 : index
      %31 = vector.load %arg4[%c1, %c0_19] : memref<2x256xf32, #tpu.memory_space<vmem>>, vector<1x256xf32>
      %32 = arith.addf %31, %13 : vector<1x256xf32>
      %33 = arith.mulf %24, %24 : vector<1x256xf32>
      %cst_20 = arith.constant 1.600000e+01 : f32
      %34 = arith.mulf %21, %cst_20 : f32
      %35 = arith.divf %34, %22 : f32
      %36 = vector.broadcast %35 : f32 to vector<1x256xf32>
      %37 = arith.mulf %33, %36 : vector<1x256xf32>
      %38 = arith.addf %32, %37 : vector<1x256xf32>
      %c1_21 = arith.constant 1 : index
      %c0_22 = arith.constant 0 : index
      %39 = vector.load %arg4[%c1_21, %c0_22] : memref<2x256xf32, #tpu.memory_space<vmem>>, vector<1x256xf32>
      tpu.vector_store %arg4[%c1_21, %c0_22], %38 {strides = array<i32>} : memref<2x256xf32, #tpu.memory_space<vmem>>, vector<1x256xf32>,
    } else {
    }
    return
  }
  func.func @transform_0(%arg0: i32) -> (i32, i32) {
    %c0_i32 = arith.constant 0 : i32
    %c0_i32_0 = arith.constant 0 : i32
    return %arg0, %c0_i32 : i32, i32
  }
  func.func @transform_1(%arg0: i32) -> (i32, i32) {
    %c0_i32 = arith.constant 0 : i32
    %c0_i32_0 = arith.constant 0 : i32
    %c0_i32_1 = arith.constant 0 : i32
    return %c0_i32, %c0_i32_0 : i32, i32
  }
  func.func @transform_2(%arg0: i32) -> (i32, i32) {
    %c0_i32 = arith.constant 0 : i32
    %c0_i32_0 = arith.constant 0 : i32
    return %arg0, %c0_i32 : i32, i32
  }
  func.func @transform_3(%arg0: i32) -> (i32, i32) {
    %c0_i32 = arith.constant 0 : i32
    %c0_i32_0 = arith.constant 0 : i32
    %c0_i32_1 = arith.constant 0 : i32
    return %c0_i32, %c0_i32_0 : i32, i32
  }
}

</mosaic_0001>

<bundles_post_ra>
// kernel: discriminator_forward.7
= control target key start
LH: loop header
LB: loop body
LE: loop exit
PB: predicated region body
PF: predicated region fallthrough
CT: control target
= control target key end

     0   :  { %s2289_s9 = smov 0   ;;  %s2710_s0 = inlined_call_operand.vmem [shape: bf16[2048,48], index: 0, kind: input, shape index: {}]   ;;  %s2711_s1 = inlined_call_operand.vmem [shape: bf16[48,32], index: 1, kind: input, shape index: {}]   ;;  %s2712_s2 = inlined_call_operand.vmem [shape: bf16[2048,32], index: 2, kind: output, shape index: {}]  }
   0x1 LB: > { %s1839_s10 = sadd.s32 4294967295, %s2272_s9   ;;  %p1843_p0 = scmp.ge.s32.totalorder %s2272_s9, 1  ;;  %s2272_s9 = sphi %s2289_s9, %s12_s9  }
   0x2   : > { %p113_p1 = scmp.lt.s32.totalorder %s2272_s9, 3 }
   0x4   : > { %p114_p2 = pnand %p1843_p0, %p113_p1 }
   0x5   : > { %s1844_s13 = sshll.u32 (!%p114_p2), %s1839_s10, 7 }
   0x6   : > { %117 = sbr.rel (%p114_p2) target bundleno = 411 (0x19b), region = 28  ;;  %p136_p3 = scmp.lt.s32.totalorder (!%p114_p2), %s1844_s13, 255 }
   0xb   : > { %v2248_v0 = vld [vmem:[%s2711_s1 + $0x10] sm:$0xff]  ;;  %v2247_v1 = vld [vmem:[%s2711_s1 + $0x8] sm:$0xff]  ;;  %s2714_s13 = smov (!%p136_p3, %s1844_s13), 255  ;;  %v2246_v2 = vld [vmem:[%s2711_s1] sm:$0xff]  ;;  %vm620_vm0 = vcmask 392192   ;;  %vm1654_vm3 = vcmask 257024  }
   0xc   : > { %818 = vmatpush.bf16.msra.mxu0 %v2248_v0  ;;  %2249 = vmatpush.bf16.msra.mxu1 %v2248_v0  ;;  %s1845_s16 = sshll.u32 %s2714_s13, 2 }
   0xd   : > { %2250 = vmatpush.bf16.msra.mxu2 %v2248_v0  ;;  %2251 = vmatpush.bf16.msra.mxu3 %v2248_v0  ;;  %s2314_s21 = scalar_lea.vmem %s2710_s0, %s1845_s16  ;;  %s2389_s24 = scalar_lea.vmem %s2712_s2, %s1845_s16 }
   0xe   : > { %v2182_v3 = vld [vmem:[%s2314_s21] sm:$0xff]  ;;  %v2183_v7 = vld [vmem:[%s2314_s21 + $0x8] sm:$0xff]  ;;  %v2184_v11 = vld [vmem:[%s2314_s21 + $0x10] sm:$0xff] }
   0xf   : > { %v2198_v4 = vld [vmem:[%s2314_s21 + $0x80] sm:$0xff]  ;;  %v2199_v8 = vld [vmem:[%s2314_s21 + $0x88] sm:$0xff]  ;;  %v2200_v12 = vld [vmem:[%s2314_s21 + $0x90] sm:$0xff] }
  0x10   : > { %819 = vmatpush.bf16.msra.mxu0 %v2247_v1  ;;  %2252 = vmatpush.bf16.msra.mxu1 %v2247_v1  ;;  %v2214_v5 = vld [vmem:[%s2314_s21 + $0x100] sm:$0xff]  ;;  %v2215_v9 = vld [vmem:[%s2314_s21 + $0x108] sm:$0xff]  ;;  %v2216_v13 = vld [vmem:[%s2314_s21 + $0x110] sm:$0xff] }
  0x11   : > { %2253 = vmatpush.bf16.msra.mxu2 %v2247_v1  ;;  %2254 = vmatpush.bf16.msra.mxu3 %v2247_v1  ;;  %v2230_v6 = vld [vmem:[%s2314_s21 + $0x180] sm:$0xff]  ;;  %v2231_v10 = vld [vmem:[%s2314_s21 + $0x188] sm:$0xff]  ;;  %v2232_v14 = vld [vmem:[%s2314_s21 + $0x190] sm:$0xff] }
  0x12   : > { %v2185_v15 = vld [vmem:[%s2314_s21 + $0x18] sm:$0xff]  ;;  %v2186_v19 = vld [vmem:[%s2314_s21 + $0x20] sm:$0xff]  ;;  %v2187_v23 = vld [vmem:[%s2314_s21 + $0x28] sm:$0xff] }
  0x13   : > { %v2201_v16 = vld [vmem:[%s2314_s21 + $0x98] sm:$0xff]  ;;  %v2202_v20 = vld [vmem:[%s2314_s21 + $0xa0] sm:$0xff]  ;;  %v2203_v24 = vld [vmem:[%s2314_s21 + $0xa8] sm:$0xff] }
  0x14   : > { %820 = vmatpush.bf16.msra.mxu0 %v2246_v2  ;;  %2255 = vmatpush.bf16.msra.mxu1 %v2246_v2  ;;  %v2217_v17 = vld [vmem:[%s2314_s21 + $0x118] sm:$0xff]  ;;  %v2218_v21 = vld [vmem:[%s2314_s21 + $0x120] sm:$0xff]  ;;  %v2219_v25 = vld [vmem:[%s2314_s21 + $0x128] sm:$0xff] }
  0x15   : > { %2256 = vmatpush.bf16.msra.mxu2 %v2246_v2  ;;  %2257 = vmatpush.bf16.msra.mxu3 %v2246_v2  ;;  %v2233_v18 = vld [vmem:[%s2314_s21 + $0x198] sm:$0xff]  ;;  %v2234_v22 = vld [vmem:[%s2314_s21 + $0x1a0] sm:$0xff]  ;;  %v2235_v26 = vld [vmem:[%s2314_s21 + $0x1a8] sm:$0xff] }
  0x16   : > { %v2188_v27 = vld [vmem:[%s2314_s21 + $0x30] sm:$0xff]  ;;  %v2189_v31 = vld [vmem:[%s2314_s21 + $0x38] sm:$0xff]  ;;  %v2190_v35 = vld [vmem:[%s2314_s21 + $0x40] sm:$0xff] }
  0x17   : > { %2116 = vmatmul.msk.bf16.vlgmr.msra.gmra.mxu0 %vm620_vm0, %v2182_v3  ;;  %2132 = vmatmul.msk.bf16.vlgmr.msra.gmra.mxu1 %vm620_vm0, %v2198_v4  ;;  %v2204_v28 = vld [vmem:[%s2314_s21 + $0xb0] sm:$0xff]  ;;  %v2205_v32 = vld [vmem:[%s2314_s21 + $0xb8] sm:$0xff]  ;;  %v2206_v36 = vld [vmem:[%s2314_s21 + $0xc0] sm:$0xff] }
  0x18   : > { %2148 = vmatmul.msk.bf16.vlgmr.msra.gmra.mxu2 %vm620_vm0, %v2214_v5  ;;  %2164 = vmatmul.msk.bf16.vlgmr.msra.gmra.mxu3 %vm620_vm0, %v2230_v6  ;;  %v2220_v29 = vld [vmem:[%s2314_s21 + $0x130] sm:$0xff]  ;;  %v2221_v33 = vld [vmem:[%s2314_s21 + $0x138] sm:$0xff]  ;;  %v2222_v39 = vld [vmem:[%s2314_s21 + $0x140] sm:$0xff] }
  0x19   : > { %v2236_v30 = vld [vmem:[%s2314_s21 + $0x1b0] sm:$0xff]  ;;  %v2237_v34 = vld [vmem:[%s2314_s21 + $0x1b8] sm:$0xff]  ;;  %v2238_v40 = vld [vmem:[%s2314_s21 + $0x1c0] sm:$0xff] }
  0x1a   : > { %v2191_v63 = vld [vmem:[%s2314_s21 + $0x48] sm:$0xff] }
  0x1b   : > { %v2207_v2 = vld [vmem:[%s2314_s21 + $0xc8] sm:$0xff] }
  0x1c   : > { %v2223_v3 = vld [vmem:[%s2314_s21 + $0x148] sm:$0xff] }
  0x1d   : > { %v2239_v4 = vld [vmem:[%s2314_s21 + $0x1c8] sm:$0xff] }
  0x27   : > { %2117 = vmatmul.msk.bf16.gmra.mxu0 %vm620_vm0, %v2183_v7  ;;  %2133 = vmatmul.msk.bf16.gmra.mxu1 %vm620_vm0, %v2199_v8 }
  0x28   : > { %2149 = vmatmul.msk.bf16.gmra.mxu2 %vm620_vm0, %v2215_v9  ;;  %2165 = vmatmul.msk.bf16.gmra.mxu3 %vm620_vm0, %v2231_v10 }
  0x37   : > { %2118 = vmatmul.msk.bf16.gmra.mxu0 %vm620_vm0, %v2184_v11  ;;  %2134 = vmatmul.msk.bf16.gmra.mxu1 %vm620_vm0, %v2200_v12 }
  0x38   : > { %2150 = vmatmul.msk.bf16.gmra.mxu2 %vm620_vm0, %v2216_v13  ;;  %2166 = vmatmul.msk.bf16.gmra.mxu3 %vm620_vm0, %v2232_v14 }
  0x47   : > { %2119 = vmatmul.msk.bf16.gmra.mxu0 %vm620_vm0, %v2185_v15  ;;  %2135 = vmatmul.msk.bf16.gmra.mxu1 %vm620_vm0, %v2201_v16 }
  0x48   : > { %2151 = vmatmul.msk.bf16.gmra.mxu2 %vm620_vm0, %v2217_v17  ;;  %2167 = vmatmul.msk.bf16.gmra.mxu3 %vm620_vm0, %v2233_v18 }
  0x57   : > { %2120 = vmatmul.msk.bf16.gmra.mxu0 %vm620_vm0, %v2186_v19  ;;  %2136 = vmatmul.msk.bf16.gmra.mxu1 %vm620_vm0, %v2202_v20 }
  0x58   : > { %2152 = vmatmul.msk.bf16.gmra.mxu2 %vm620_vm0, %v2218_v21  ;;  %2168 = vmatmul.msk.bf16.gmra.mxu3 %vm620_vm0, %v2234_v22 }
  0x67   : > { %2121 = vmatmul.msk.bf16.gmra.mxu0 %vm620_vm0, %v2187_v23  ;;  %2137 = vmatmul.msk.bf16.gmra.mxu1 %vm620_vm0, %v2203_v24 }
  0x68   : > { %2153 = vmatmul.msk.bf16.gmra.mxu2 %vm620_vm0, %v2219_v25  ;;  %2169 = vmatmul.msk.bf16.gmra.mxu3 %vm620_vm0, %v2235_v26 }
  0x77   : > { %2122 = vmatmul.msk.bf16.gmra.mxu0 %vm620_vm0, %v2188_v27  ;;  %2138 = vmatmul.msk.bf16.gmra.mxu1 %vm620_vm0, %v2204_v28 }
  0x78   : > { %2154 = vmatmul.msk.bf16.gmra.mxu2 %vm620_vm0, %v2220_v29  ;;  %2170 = vmatmul.msk.bf16.gmra.mxu3 %vm620_vm0, %v2236_v30 }
  0x87   : > { %2123 = vmatmul.msk.bf16.gmra.mxu0 %vm620_vm0, %v2189_v31  ;;  %2139 = vmatmul.msk.bf16.gmra.mxu1 %vm620_vm0, %v2205_v32 }
  0x88   : > { %2155 = vmatmul.msk.bf16.gmra.mxu2 %vm620_vm0, %v2221_v33  ;;  %2171 = vmatmul.msk.bf16.gmra.mxu3 %vm620_vm0, %v2237_v34 }
  0x94   : > { %v822_v37 = vpop.f32.mrf.mxu0  ;;  %v902_v38 = vpop.f32.mrf.mxu1 }
  0x95   : > { %vm1142_vm1 = vcmp.gt.f32.partialorder %v822_v37, 0.0  ;;  %v1270_v41 = vmul.f32 0.2, %v822_v37  ;;  %vm1174_vm2 = vcmp.gt.f32.partialorder %v902_v38, 0.0  ;;  %v1302_v42 = vmul.f32 0.2, %v902_v38 }
  0x97   : > { %v1398_v43 = vsel %vm1142_vm1, %v822_v37, %v1270_v41  ;;  %v1430_v44 = vsel %vm1174_vm2, %v902_v38, %v1302_v42  ;;  %2124 = vmatmul.msk.bf16.gmra.mxu0 %vm620_vm0, %v2190_v35  ;;  %2140 = vmatmul.msk.bf16.gmra.mxu1 %vm620_vm0, %v2206_v36  ;;  %v2192_v35 = vld [vmem:[%s2314_s21 + $0x50] sm:$0xff] }
  0x98   : > { %v1526_v45 = vpack.c.bf16 %v1398_v43, %v1398_v43  ;;  %v1558_v46 = vpack.c.bf16 %v1430_v44, %v1430_v44  ;;  %2156 = vmatmul.msk.bf16.gmra.mxu2 %vm620_vm0, %v2222_v39  ;;  %2172 = vmatmul.msk.bf16.gmra.mxu3 %vm620_vm0, %v2238_v40  ;;  %v2208_v38 = vld [vmem:[%s2314_s21 + $0xd0] sm:$0xff] }
  0x99   : > { %v2224_v39 = vld [vmem:[%s2314_s21 + $0x150] sm:$0xff] }
  0x9a   : > { %1655 = vst.msk [vmem:[%s2389_s24] sm:$0xf] %vm1654_vm3, %v1526_v45  ;;  %v2240_v40 = vld [vmem:[%s2314_s21 + $0x1d0] sm:$0xff] }
  0x9b   : > { %1687 = vst.msk [vmem:[%s2389_s24 + $0x80] sm:$0xf] %vm1654_vm3, %v1558_v46  ;;  %v982_v47 = vpop.f32.mrf.mxu2  ;;  %v1062_v48 = vpop.f32.mrf.mxu3 }
  0x9c   : > { %vm1206_vm4 = vcmp.gt.f32.partialorder %v982_v47, 0.0  ;;  %v1334_v49 = vmul.f32 0.2, %v982_v47  ;;  %vm1238_vm5 = vcmp.gt.f32.partialorder %v1062_v48, 0.0  ;;  %v1366_v50 = vmul.f32 0.2, %v1062_v48  ;;  %v824_v51 = vpop.f32.mrf.mxu0  ;;  %v904_v52 = vpop.f32.mrf.mxu1 }
  0x9d   : > { %vm1143_vm6 = vcmp.gt.f32.partialorder %v824_v51, 0.0  ;;  %v1271_v53 = vmul.f32 0.2, %v824_v51  ;;  %vm1175_vm7 = vcmp.gt.f32.partialorder %v904_v52, 0.0  ;;  %v1303_v54 = vmul.f32 0.2, %v904_v52 }
  0x9e   : > { %v1462_v55 = vsel %vm1206_vm4, %v982_v47, %v1334_v49  ;;  %v1494_v56 = vsel %vm1238_vm5, %v1062_v48, %v1366_v50 }
  0x9f   : > { %v1590_v57 = vpack.c.bf16 %v1462_v55, %v1462_v55  ;;  %v1622_v58 = vpack.c.bf16 %v1494_v56, %v1494_v56  ;;  %v1399_v59 = vsel %vm1143_vm6, %v824_v51, %v1271_v53  ;;  %v1431_v60 = vsel %vm1175_vm7, %v904_v52, %v1303_v54 }
  0xa0   : > { %v1527_v61 = vpack.c.bf16 %v1399_v59, %v1399_v59  ;;  %v1559_v62 = vpack.c.bf16 %v1431_v60, %v1431_v60 }
  0xa1   : > { %1719 = vst.msk [vmem:[%s2389_s24 + $0x100] sm:$0xf] %vm1654_vm3, %v1590_v57 }
  0xa2   : > { %1751 = vst.msk [vmem:[%s2389_s24 + $0x180] sm:$0xf] %vm1654_vm3, %v1622_v58 }
  0xa3   : > { %1656 = vst.msk [vmem:[%s2389_s24 + $0x4] sm:$0xf] %vm1654_vm3, %v1527_v61  ;;  %v984_v0 = vpop.f32.mrf.mxu2  ;;  %v1064_v1 = vpop.f32.mrf.mxu3 }
  0xa4   : > { %1688 = vst.msk [vmem:[%s2389_s24 + $0x84] sm:$0xf] %vm1654_vm3, %v1559_v62  ;;  %vm1207_vm8 = vcmp.gt.f32.partialorder %v984_v0, 0.0  ;;  %v1335_v5 = vmul.f32 0.2, %v984_v0  ;;  %vm1239_vm9 = vcmp.gt.f32.partialorder %v1064_v1, 0.0  ;;  %v827_v6 = vpop.f32.mrf.mxu0  ;;  %v907_v7 = vpop.f32.mrf.mxu1 }
  0xa5   : > { %v1367_v8 = vmul.f32 0.2, %v1064_v1  ;;  %vm1144_vm10 = vcmp.gt.f32.partialorder %v827_v6, 0.0  ;;  %v1272_v9 = vmul.f32 0.2, %v827_v6  ;;  %vm1176_vm11 = vcmp.gt.f32.partialorder %v907_v7, 0.0 }
  0xa6   : > { %v1463_v10 = vsel %vm1207_vm8, %v984_v0, %v1335_v5  ;;  %v1304_v11 = vmul.f32 0.2, %v907_v7 }
  0xa7   : > { %v1591_v12 = vpack.c.bf16 %v1463_v10, %v1463_v10  ;;  %v1495_v13 = vsel %vm1239_vm9, %v1064_v1, %v1367_v8  ;;  %v1400_v14 = vsel %vm1144_vm10, %v827_v6, %v1272_v9  ;;  %2125 = vmatmul.msk.bf16.gmra.mxu0 %vm620_vm0, %v2191_v63  ;;  %2141 = vmatmul.msk.bf16.gmra.mxu1 %vm620_vm0, %v2207_v2  ;;  %v2209_v10 = vld [vmem:[%s2314_s21 + $0xd8] sm:$0xff] }
  0xa8   : > { %v1623_v15 = vpack.c.bf16 %v1495_v13, %v1495_v13  ;;  %v1528_v16 = vpack.c.bf16 %v1400_v14, %v1400_v14  ;;  %v1432_v17 = vsel %vm1176_vm11, %v907_v7, %v1304_v11  ;;  %2157 = vmatmul.msk.bf16.gmra.mxu2 %vm620_vm0, %v2223_v3  ;;  %2173 = vmatmul.msk.bf16.gmra.mxu3 %vm620_vm0, %v2239_v4  ;;  %v2193_v7 = vld [vmem:[%s2314_s21 + $0x58] sm:$0xff] }
  0xa9   : > { %1720 = vst.msk [vmem:[%s2389_s24 + $0x104] sm:$0xf] %vm1654_vm3, %v1591_v12  ;;  %v1560_v18 = vpack.c.bf16 %v1432_v17, %v1432_v17  ;;  %v2225_v11 = vld [vmem:[%s2314_s21 + $0x158] sm:$0xff] }
  0xaa   : > { %1752 = vst.msk [vmem:[%s2389_s24 + $0x184] sm:$0xf] %vm1654_vm3, %v1623_v15  ;;  %v2241_v12 = vld [vmem:[%s2314_s21 + $0x1d8] sm:$0xff] }
  0xab   : > { %1657 = vst.msk [vmem:[%s2389_s24 + $0x8] sm:$0xf] %vm1654_vm3, %v1528_v16  ;;  %v987_v19 = vpop.f32.mrf.mxu2  ;;  %v1067_v20 = vpop.f32.mrf.mxu3 }
  0xac   : > { %1689 = vst.msk [vmem:[%s2389_s24 + $0x88] sm:$0xf] %vm1654_vm3, %v1560_v18  ;;  %vm1208_vm12 = vcmp.gt.f32.partialorder %v987_v19, 0.0  ;;  %v1336_v21 = vmul.f32 0.2, %v987_v19  ;;  %vm1240_vm13 = vcmp.gt.f32.partialorder %v1067_v20, 0.0  ;;  %v829_v22 = vpop.f32.mrf.mxu0  ;;  %v909_v23 = vpop.f32.mrf.mxu1 }
  0xad   : > { %v1368_v24 = vmul.f32 0.2, %v1067_v20  ;;  %vm1145_vm14 = vcmp.gt.f32.partialorder %v829_v22, 0.0  ;;  %v1273_v25 = vmul.f32 0.2, %v829_v22  ;;  %vm1177_vm15 = vcmp.gt.f32.partialorder %v909_v23, 0.0 }
  0xae   : > { %v1464_v26 = vsel %vm1208_vm12, %v987_v19, %v1336_v21  ;;  %v1305_v27 = vmul.f32 0.2, %v909_v23 }
  0xaf   : > { %v1592_v28 = vpack.c.bf16 %v1464_v26, %v1464_v26  ;;  %v1496_v29 = vsel %vm1240_vm13, %v1067_v20, %v1368_v24  ;;  %v1401_v30 = vsel %vm1145_vm14, %v829_v22, %v1273_v25 }
  0xb0   : > { %v1624_v31 = vpack.c.bf16 %v1496_v29, %v1496_v29  ;;  %v1529_v32 = vpack.c.bf16 %v1401_v30, %v1401_v30  ;;  %v1433_v33 = vsel %vm1177_vm15, %v909_v23, %v1305_v27 }
  0xb1   : > { %1721 = vst.msk [vmem:[%s2389_s24 + $0x108] sm:$0xf] %vm1654_vm3, %v1592_v28  ;;  %v1561_v34 = vpack.c.bf16 %v1433_v33, %v1433_v33 }
  0xb2   : > { %1753 = vst.msk [vmem:[%s2389_s24 + $0x188] sm:$0xf] %vm1654_vm3, %v1624_v31 }
  0xb3   : > { %1658 = vst.msk [vmem:[%s2389_s24 + $0xc] sm:$0xf] %vm1654_vm3, %v1529_v32  ;;  %v989_v36 = vpop.f32.mrf.mxu2  ;;  %v1069_v37 = vpop.f32.mrf.mxu3 }
  0xb4   : > { %1690 = vst.msk [vmem:[%s2389_s24 + $0x8c] sm:$0xf] %vm1654_vm3, %v1561_v34  ;;  %vm1209_vm1 = vcmp.gt.f32.partialorder %v989_v36, 0.0  ;;  %v1337_v41 = vmul.f32 0.2, %v989_v36  ;;  %vm1241_vm2 = vcmp.gt.f32.partialorder %v1069_v37, 0.0  ;;  %v832_v42 = vpop.f32.mrf.mxu0  ;;  %v912_v43 = vpop.f32.mrf.mxu1 }
  0xb5   : > { %v1369_v44 = vmul.f32 0.2, %v1069_v37  ;;  %vm1146_vm4 = vcmp.gt.f32.partialorder %v832_v42, 0.0  ;;  %v1274_v45 = vmul.f32 0.2, %v832_v42  ;;  %vm1178_vm5 = vcmp.gt.f32.partialorder %v912_v43, 0.0 }
  0xb6   : > { %v1465_v46 = vsel %vm1209_vm1, %v989_v36, %v1337_v41  ;;  %v1306_v47 = vmul.f32 0.2, %v912_v43 }
  0xb7   : > { %v1593_v48 = vpack.c.bf16 %v1465_v46, %v1465_v46  ;;  %v1497_v49 = vsel %vm1241_vm2, %v1069_v37, %v1369_v44  ;;  %v1402_v50 = vsel %vm1146_vm4, %v832_v42, %v1274_v45  ;;  %2126 = vmatmul.msk.bf16.gmra.mxu0 %vm620_vm0, %v2192_v35  ;;  %2142 = vmatmul.msk.bf16.gmra.mxu1 %vm620_vm0, %v2208_v38  ;;  %v2210_v46 = vld [vmem:[%s2314_s21 + $0xe0] sm:$0xff] }
  0xb8   : > { %v1625_v51 = vpack.c.bf16 %v1497_v49, %v1497_v49  ;;  %v1530_v52 = vpack.c.bf16 %v1402_v50, %v1402_v50  ;;  %v1434_v53 = vsel %vm1178_vm5, %v912_v43, %v1306_v47  ;;  %2158 = vmatmul.msk.bf16.gmra.mxu2 %vm620_vm0, %v2224_v39  ;;  %2174 = vmatmul.msk.bf16.gmra.mxu3 %vm620_vm0, %v2240_v40  ;;  %v2194_v43 = vld [vmem:[%s2314_s21 + $0x60] sm:$0xff] }
  0xb9   : > { %1722 = vst.msk [vmem:[%s2389_s24 + $0x10c] sm:$0xf] %vm1654_vm3, %v1593_v48  ;;  %v1562_v54 = vpack.c.bf16 %v1434_v53, %v1434_v53  ;;  %v2226_v47 = vld [vmem:[%s2314_s21 + $0x160] sm:$0xff] }
  0xba   : > { %1754 = vst.msk [vmem:[%s2389_s24 + $0x18c] sm:$0xf] %vm1654_vm3, %v1625_v51  ;;  %v2242_v48 = vld [vmem:[%s2314_s21 + $0x1e0] sm:$0xff] }
  0xbb   : > { %1659 = vst.msk [vmem:[%s2389_s24 + $0x10] sm:$0xf] %vm1654_vm3, %v1530_v52  ;;  %v992_v55 = vpop.f32.mrf.mxu2  ;;  %v1072_v56 = vpop.f32.mrf.mxu3 }
  0xbc   : > { %1691 = vst.msk [vmem:[%s2389_s24 + $0x90] sm:$0xf] %vm1654_vm3, %v1562_v54  ;;  %vm1210_vm6 = vcmp.gt.f32.partialorder %v992_v55, 0.0  ;;  %v1338_v57 = vmul.f32 0.2, %v992_v55  ;;  %vm1242_vm7 = vcmp.gt.f32.partialorder %v1072_v56, 0.0  ;;  %v834_v58 = vpop.f32.mrf.mxu0  ;;  %v914_v59 = vpop.f32.mrf.mxu1 }
  0xbd   : > { %v1370_v60 = vmul.f32 0.2, %v1072_v56  ;;  %vm1147_vm8 = vcmp.gt.f32.partialorder %v834_v58, 0.0  ;;  %v1275_v61 = vmul.f32 0.2, %v834_v58  ;;  %vm1179_vm9 = vcmp.gt.f32.partialorder %v914_v59, 0.0 }
  0xbe   : > { %v1466_v62 = vsel %vm1210_vm6, %v992_v55, %v1338_v57  ;;  %v1307_v63 = vmul.f32 0.2, %v914_v59 }
  0xbf   : > { %v1594_v0 = vpack.c.bf16 %v1466_v62, %v1466_v62  ;;  %v1498_v1 = vsel %vm1242_vm7, %v1072_v56, %v1370_v60  ;;  %v1403_v2 = vsel %vm1147_vm8, %v834_v58, %v1275_v61 }
  0xc0   : > { %v1626_v3 = vpack.c.bf16 %v1498_v1, %v1498_v1  ;;  %v1531_v4 = vpack.c.bf16 %v1403_v2, %v1403_v2  ;;  %v1435_v5 = vsel %vm1179_vm9, %v914_v59, %v1307_v63 }
  0xc1   : > { %1723 = vst.msk [vmem:[%s2389_s24 + $0x110] sm:$0xf] %vm1654_vm3, %v1594_v0  ;;  %v1563_v6 = vpack.c.bf16 %v1435_v5, %v1435_v5 }
  0xc2   : > { %1755 = vst.msk [vmem:[%s2389_s24 + $0x190] sm:$0xf] %vm1654_vm3, %v1626_v3 }
  0xc3   : > { %1660 = vst.msk [vmem:[%s2389_s24 + $0x14] sm:$0xf] %vm1654_vm3, %v1531_v4  ;;  %v994_v8 = vpop.f32.mrf.mxu2  ;;  %v1074_v9 = vpop.f32.mrf.mxu3 }
  0xc4   : > { %1692 = vst.msk [vmem:[%s2389_s24 + $0x94] sm:$0xf] %vm1654_vm3, %v1563_v6  ;;  %vm1211_vm10 = vcmp.gt.f32.partialorder %v994_v8, 0.0  ;;  %v1339_v13 = vmul.f32 0.2, %v994_v8  ;;  %vm1243_vm11 = vcmp.gt.f32.partialorder %v1074_v9, 0.0  ;;  %v837_v14 = vpop.f32.mrf.mxu0  ;;  %v917_v15 = vpop.f32.mrf.mxu1 }
  0xc5   : > { %v1371_v16 = vmul.f32 0.2, %v1074_v9  ;;  %vm1148_vm12 = vcmp.gt.f32.partialorder %v837_v14, 0.0  ;;  %v1276_v17 = vmul.f32 0.2, %v837_v14  ;;  %vm1180_vm13 = vcmp.gt.f32.partialorder %v917_v15, 0.0 }
  0xc6   : > { %v1467_v18 = vsel %vm1211_vm10, %v994_v8, %v1339_v13  ;;  %v1308_v19 = vmul.f32 0.2, %v917_v15 }
  0xc7   : > { %v1595_v20 = vpack.c.bf16 %v1467_v18, %v1467_v18  ;;  %v1499_v21 = vsel %vm1243_vm11, %v1074_v9, %v1371_v16  ;;  %v1404_v22 = vsel %vm1148_vm12, %v837_v14, %v1276_v17  ;;  %2127 = vmatmul.msk.bf16.gmra.mxu0 %vm620_vm0, %v2193_v7  ;;  %2143 = vmatmul.msk.bf16.gmra.mxu1 %vm620_vm0, %v2209_v10  ;;  %v2211_v18 = vld [vmem:[%s2314_s21 + $0xe8] sm:$0xff] }
  0xc8   : > { %v1627_v23 = vpack.c.bf16 %v1499_v21, %v1499_v21  ;;  %v1532_v24 = vpack.c.bf16 %v1404_v22, %v1404_v22  ;;  %v1436_v25 = vsel %vm1180_vm13, %v917_v15, %v1308_v19  ;;  %2159 = vmatmul.msk.bf16.gmra.mxu2 %vm620_vm0, %v2225_v11  ;;  %2175 = vmatmul.msk.bf16.gmra.mxu3 %vm620_vm0, %v2241_v12  ;;  %v2195_v15 = vld [vmem:[%s2314_s21 + $0x68] sm:$0xff] }
  0xc9   : > { %1724 = vst.msk [vmem:[%s2389_s24 + $0x114] sm:$0xf] %vm1654_vm3, %v1595_v20  ;;  %v1564_v26 = vpack.c.bf16 %v1436_v25, %v1436_v25  ;;  %v2227_v19 = vld [vmem:[%s2314_s21 + $0x168] sm:$0xff] }
  0xca   : > { %1756 = vst.msk [vmem:[%s2389_s24 + $0x194] sm:$0xf] %vm1654_vm3, %v1627_v23  ;;  %v2243_v20 = vld [vmem:[%s2314_s21 + $0x1e8] sm:$0xff] }
  0xcb   : > { %1661 = vst.msk [vmem:[%s2389_s24 + $0x18] sm:$0xf] %vm1654_vm3, %v1532_v24  ;;  %v997_v27 = vpop.f32.mrf.mxu2  ;;  %v1077_v28 = vpop.f32.mrf.mxu3 }
  0xcc   : > { %1693 = vst.msk [vmem:[%s2389_s24 + $0x98] sm:$0xf] %vm1654_vm3, %v1564_v26  ;;  %vm1212_vm14 = vcmp.gt.f32.partialorder %v997_v27, 0.0  ;;  %v1340_v29 = vmul.f32 0.2, %v997_v27  ;;  %vm1244_vm15 = vcmp.gt.f32.partialorder %v1077_v28, 0.0  ;;  %v839_v30 = vpop.f32.mrf.mxu0  ;;  %v919_v31 = vpop.f32.mrf.mxu1 }
  0xcd   : > { %v1372_v32 = vmul.f32 0.2, %v1077_v28  ;;  %vm1149_vm1 = vcmp.gt.f32.partialorder %v839_v30, 0.0  ;;  %v1277_v33 = vmul.f32 0.2, %v839_v30  ;;  %vm1181_vm2 = vcmp.gt.f32.partialorder %v919_v31, 0.0 }
  0xce   : > { %v1468_v34 = vsel %vm1212_vm14, %v997_v27, %v1340_v29  ;;  %v1309_v35 = vmul.f32 0.2, %v919_v31 }
  0xcf   : > { %v1596_v36 = vpack.c.bf16 %v1468_v34, %v1468_v34  ;;  %v1500_v37 = vsel %vm1244_vm15, %v1077_v28, %v1372_v32  ;;  %v1405_v38 = vsel %vm1149_vm1, %v839_v30, %v1277_v33 }
  0xd0   : > { %v1628_v39 = vpack.c.bf16 %v1500_v37, %v1500_v37  ;;  %v1533_v40 = vpack.c.bf16 %v1405_v38, %v1405_v38  ;;  %v1437_v41 = vsel %vm1181_vm2, %v919_v31, %v1309_v35 }
  0xd1   : > { %1725 = vst.msk [vmem:[%s2389_s24 + $0x118] sm:$0xf] %vm1654_vm3, %v1596_v36  ;;  %v1565_v42 = vpack.c.bf16 %v1437_v41, %v1437_v41 }
  0xd2   : > { %1757 = vst.msk [vmem:[%s2389_s24 + $0x198] sm:$0xf] %vm1654_vm3, %v1628_v39 }
  0xd3   : > { %1662 = vst.msk [vmem:[%s2389_s24 + $0x1c] sm:$0xf] %vm1654_vm3, %v1533_v40  ;;  %v999_v44 = vpop.f32.mrf.mxu2  ;;  %v1079_v45 = vpop.f32.mrf.mxu3 }
  0xd4   : > { %1694 = vst.msk [vmem:[%s2389_s24 + $0x9c] sm:$0xf] %vm1654_vm3, %v1565_v42  ;;  %vm1213_vm4 = vcmp.gt.f32.partialorder %v999_v44, 0.0  ;;  %v1341_v49 = vmul.f32 0.2, %v999_v44  ;;  %vm1245_vm5 = vcmp.gt.f32.partialorder %v1079_v45, 0.0  ;;  %v842_v50 = vpop.f32.mrf.mxu0  ;;  %v922_v51 = vpop.f32.mrf.mxu1 }
  0xd5   : > { %v1373_v52 = vmul.f32 0.2, %v1079_v45  ;;  %vm1150_vm6 = vcmp.gt.f32.partialorder %v842_v50, 0.0  ;;  %v1278_v53 = vmul.f32 0.2, %v842_v50  ;;  %vm1182_vm7 = vcmp.gt.f32.partialorder %v922_v51, 0.0 }
  0xd6   : > { %v1469_v54 = vsel %vm1213_vm4, %v999_v44, %v1341_v49  ;;  %v1310_v55 = vmul.f32 0.2, %v922_v51 }
  0xd7   : > { %v1597_v56 = vpack.c.bf16 %v1469_v54, %v1469_v54  ;;  %v1501_v57 = vsel %vm1245_vm5, %v1079_v45, %v1373_v52  ;;  %v1406_v58 = vsel %vm1150_vm6, %v842_v50, %v1278_v53  ;;  %2128 = vmatmul.msk.bf16.gmra.mxu0 %vm620_vm0, %v2194_v43  ;;  %2144 = vmatmul.msk.bf16.gmra.mxu1 %vm620_vm0, %v2210_v46  ;;  %v2212_v54 = vld [vmem:[%s2314_s21 + $0xf0] sm:$0xff] }
  0xd8   : > { %v1629_v59 = vpack.c.bf16 %v1501_v57, %v1501_v57  ;;  %v1534_v60 = vpack.c.bf16 %v1406_v58, %v1406_v58  ;;  %v1438_v61 = vsel %vm1182_vm7, %v922_v51, %v1310_v55  ;;  %2160 = vmatmul.msk.bf16.gmra.mxu2 %vm620_vm0, %v2226_v47  ;;  %2176 = vmatmul.msk.bf16.gmra.mxu3 %vm620_vm0, %v2242_v48  ;;  %v2196_v51 = vld [vmem:[%s2314_s21 + $0x70] sm:$0xff] }
  0xd9   : > { %1726 = vst.msk [vmem:[%s2389_s24 + $0x11c] sm:$0xf] %vm1654_vm3, %v1597_v56  ;;  %v1566_v62 = vpack.c.bf16 %v1438_v61, %v1438_v61  ;;  %v2228_v55 = vld [vmem:[%s2314_s21 + $0x170] sm:$0xff] }
  0xda   : > { %1758 = vst.msk [vmem:[%s2389_s24 + $0x19c] sm:$0xf] %vm1654_vm3, %v1629_v59  ;;  %v2244_v56 = vld [vmem:[%s2314_s21 + $0x1f0] sm:$0xff] }
  0xdb   : > { %1663 = vst.msk [vmem:[%s2389_s24 + $0x20] sm:$0xf] %vm1654_vm3, %v1534_v60  ;;  %v1002_v63 = vpop.f32.mrf.mxu2  ;;  %v1082_v0 = vpop.f32.mrf.mxu3 }
  0xdc   : > { %1695 = vst.msk [vmem:[%s2389_s24 + $0xa0] sm:$0xf] %vm1654_vm3, %v1566_v62  ;;  %vm1214_vm8 = vcmp.gt.f32.partialorder %v1002_v63, 0.0  ;;  %v1342_v1 = vmul.f32 0.2, %v1002_v63  ;;  %vm1246_vm9 = vcmp.gt.f32.partialorder %v1082_v0, 0.0  ;;  %v844_v2 = vpop.f32.mrf.mxu0  ;;  %v924_v3 = vpop.f32.mrf.mxu1 }
  0xdd   : > { %v1374_v4 = vmul.f32 0.2, %v1082_v0  ;;  %vm1151_vm10 = vcmp.gt.f32.partialorder %v844_v2, 0.0  ;;  %v1279_v5 = vmul.f32 0.2, %v844_v2  ;;  %vm1183_vm11 = vcmp.gt.f32.partialorder %v924_v3, 0.0 }
  0xde   : > { %v1470_v6 = vsel %vm1214_vm8, %v1002_v63, %v1342_v1  ;;  %v1311_v7 = vmul.f32 0.2, %v924_v3 }
  0xdf   : > { %v1598_v8 = vpack.c.bf16 %v1470_v6, %v1470_v6  ;;  %v1502_v9 = vsel %vm1246_vm9, %v1082_v0, %v1374_v4  ;;  %v1407_v10 = vsel %vm1151_vm10, %v844_v2, %v1279_v5 }
  0xe0   : > { %v1630_v11 = vpack.c.bf16 %v1502_v9, %v1502_v9  ;;  %v1535_v12 = vpack.c.bf16 %v1407_v10, %v1407_v10  ;;  %v1439_v13 = vsel %vm1183_vm11, %v924_v3, %v1311_v7 }
  0xe1   : > { %1727 = vst.msk [vmem:[%s2389_s24 + $0x120] sm:$0xf] %vm1654_vm3, %v1598_v8  ;;  %v1567_v14 = vpack.c.bf16 %v1439_v13, %v1439_v13 }
  0xe2   : > { %1759 = vst.msk [vmem:[%s2389_s24 + $0x1a0] sm:$0xf] %vm1654_vm3, %v1630_v11 }
  0xe3   : > { %1664 = vst.msk [vmem:[%s2389_s24 + $0x24] sm:$0xf] %vm1654_vm3, %v1535_v12  ;;  %v1004_v16 = vpop.f32.mrf.mxu2  ;;  %v1084_v17 = vpop.f32.mrf.mxu3 }
  0xe4   : > { %1696 = vst.msk [vmem:[%s2389_s24 + $0xa4] sm:$0xf] %vm1654_vm3, %v1567_v14  ;;  %vm1215_vm12 = vcmp.gt.f32.partialorder %v1004_v16, 0.0  ;;  %v1343_v21 = vmul.f32 0.2, %v1004_v16  ;;  %vm1247_vm13 = vcmp.gt.f32.partialorder %v1084_v17, 0.0  ;;  %v847_v22 = vpop.f32.mrf.mxu0  ;;  %v927_v23 = vpop.f32.mrf.mxu1 }
  0xe5   : > { %v1375_v24 = vmul.f32 0.2, %v1084_v17  ;;  %vm1152_vm14 = vcmp.gt.f32.partialorder %v847_v22, 0.0  ;;  %v1280_v25 = vmul.f32 0.2, %v847_v22  ;;  %vm1184_vm15 = vcmp.gt.f32.partialorder %v927_v23, 0.0 }
  0xe6   : > { %v1471_v26 = vsel %vm1215_vm12, %v1004_v16, %v1343_v21  ;;  %v1312_v27 = vmul.f32 0.2, %v927_v23 }
  0xe7   : > { %v1599_v28 = vpack.c.bf16 %v1471_v26, %v1471_v26  ;;  %v1503_v29 = vsel %vm1247_vm13, %v1084_v17, %v1375_v24  ;;  %v1408_v30 = vsel %vm1152_vm14, %v847_v22, %v1280_v25  ;;  %2129 = vmatmul.msk.bf16.gmra.mxu0 %vm620_vm0, %v2195_v15  ;;  %2145 = vmatmul.msk.bf16.gmra.mxu1 %vm620_vm0, %v2211_v18  ;;  %v2213_v26 = vld [vmem:[%s2314_s21 + $0xf8] sm:$0xff] }
  0xe8   : > { %v1631_v31 = vpack.c.bf16 %v1503_v29, %v1503_v29  ;;  %v1536_v32 = vpack.c.bf16 %v1408_v30, %v1408_v30  ;;  %v1440_v33 = vsel %vm1184_vm15, %v927_v23, %v1312_v27  ;;  %2161 = vmatmul.msk.bf16.gmra.mxu2 %vm620_vm0, %v2227_v19  ;;  %2177 = vmatmul.msk.bf16.gmra.mxu3 %vm620_vm0, %v2243_v20  ;;  %v2197_v23 = vld [vmem:[%s2314_s21 + $0x78] sm:$0xff] }
  0xe9   : > { %1728 = vst.msk [vmem:[%s2389_s24 + $0x124] sm:$0xf] %vm1654_vm3, %v1599_v28  ;;  %v1568_v34 = vpack.c.bf16 %v1440_v33, %v1440_v33  ;;  %v2229_v27 = vld [vmem:[%s2314_s21 + $0x178] sm:$0xff] }
  0xea   : > { %1760 = vst.msk [vmem:[%s2389_s24 + $0x1a4] sm:$0xf] %vm1654_vm3, %v1631_v31  ;;  %v2245_v28 = vld [vmem:[%s2314_s21 + $0x1f8] sm:$0xff] }
  0xeb   : > { %1665 = vst.msk [vmem:[%s2389_s24 + $0x28] sm:$0xf] %vm1654_vm3, %v1536_v32  ;;  %v1007_v35 = vpop.f32.mrf.mxu2  ;;  %v1087_v36 = vpop.f32.mrf.mxu3 }
  0xec   : > { %1697 = vst.msk [vmem:[%s2389_s24 + $0xa8] sm:$0xf] %vm1654_vm3, %v1568_v34  ;;  %vm1216_vm1 = vcmp.gt.f32.partialorder %v1007_v35, 0.0  ;;  %v1344_v37 = vmul.f32 0.2, %v1007_v35  ;;  %vm1248_vm2 = vcmp.gt.f32.partialorder %v1087_v36, 0.0  ;;  %v849_v38 = vpop.f32.mrf.mxu0  ;;  %v929_v39 = vpop.f32.mrf.mxu1 }
  0xed   : > { %v1376_v40 = vmul.f32 0.2, %v1087_v36  ;;  %vm1153_vm4 = vcmp.gt.f32.partialorder %v849_v38, 0.0  ;;  %v1281_v41 = vmul.f32 0.2, %v849_v38  ;;  %vm1185_vm5 = vcmp.gt.f32.partialorder %v929_v39, 0.0 }
  0xee   : > { %v1472_v42 = vsel %vm1216_vm1, %v1007_v35, %v1344_v37  ;;  %v1313_v43 = vmul.f32 0.2, %v929_v39 }
  0xef   : > { %v1600_v44 = vpack.c.bf16 %v1472_v42, %v1472_v42  ;;  %v1504_v45 = vsel %vm1248_vm2, %v1087_v36, %v1376_v40  ;;  %v1409_v46 = vsel %vm1153_vm4, %v849_v38, %v1281_v41 }
  0xf0   : > { %v1632_v47 = vpack.c.bf16 %v1504_v45, %v1504_v45  ;;  %v1537_v48 = vpack.c.bf16 %v1409_v46, %v1409_v46  ;;  %v1441_v49 = vsel %vm1185_vm5, %v929_v39, %v1313_v43 }
  0xf1   : > { %1729 = vst.msk [vmem:[%s2389_s24 + $0x128] sm:$0xf] %vm1654_vm3, %v1600_v44  ;;  %v1569_v50 = vpack.c.bf16 %v1441_v49, %v1441_v49 }
  0xf2   : > { %1761 = vst.msk [vmem:[%s2389_s24 + $0x1a8] sm:$0xf] %vm1654_vm3, %v1632_v47 }
  0xf3   : > { %1666 = vst.msk [vmem:[%s2389_s24 + $0x2c] sm:$0xf] %vm1654_vm3, %v1537_v48  ;;  %v1009_v52 = vpop.f32.mrf.mxu2  ;;  %v1089_v53 = vpop.f32.mrf.mxu3 }
  0xf4   : > { %1698 = vst.msk [vmem:[%s2389_s24 + $0xac] sm:$0xf] %vm1654_vm3, %v1569_v50  ;;  %vm1217_vm6 = vcmp.gt.f32.partialorder %v1009_v52, 0.0  ;;  %v1345_v57 = vmul.f32 0.2, %v1009_v52  ;;  %vm1249_vm7 = vcmp.gt.f32.partialorder %v1089_v53, 0.0  ;;  %v852_v58 = vpop.f32.mrf.mxu0  ;;  %v932_v59 = vpop.f32.mrf.mxu1 }
  0xf5   : > { %v1377_v60 = vmul.f32 0.2, %v1089_v53  ;;  %vm1154_vm8 = vcmp.gt.f32.partialorder %v852_v58, 0.0  ;;  %v1282_v61 = vmul.f32 0.2, %v852_v58  ;;  %vm1186_vm9 = vcmp.gt.f32.partialorder %v932_v59, 0.0 }
  0xf6   : > { %v1473_v62 = vsel %vm1217_vm6, %v1009_v52, %v1345_v57  ;;  %v1314_v63 = vmul.f32 0.2, %v932_v59 }
  0xf7   : > { %v1601_v0 = vpack.c.bf16 %v1473_v62, %v1473_v62  ;;  %v1505_v1 = vsel %vm1249_vm7, %v1089_v53, %v1377_v60  ;;  %v1410_v2 = vsel %vm1154_vm8, %v852_v58, %v1282_v61  ;;  %2130 = vmatmul.msk.bf16.gmra.mxu0 %vm620_vm0, %v2196_v51  ;;  %2146 = vmatmul.msk.bf16.gmra.mxu1 %vm620_vm0, %v2212_v54 }
  0xf8   : > { %v1633_v3 = vpack.c.bf16 %v1505_v1, %v1505_v1  ;;  %v1538_v4 = vpack.c.bf16 %v1410_v2, %v1410_v2  ;;  %v1442_v5 = vsel %vm1186_vm9, %v932_v59, %v1314_v63  ;;  %2162 = vmatmul.msk.bf16.gmra.mxu2 %vm620_vm0, %v2228_v55  ;;  %2178 = vmatmul.msk.bf16.gmra.mxu3 %vm620_vm0, %v2244_v56 }
  0xf9   : > { %1730 = vst.msk [vmem:[%s2389_s24 + $0x12c] sm:$0xf] %vm1654_vm3, %v1601_v0  ;;  %v1570_v6 = vpack.c.bf16 %v1442_v5, %v1442_v5 }
  0xfa   : > { %1762 = vst.msk [vmem:[%s2389_s24 + $0x1ac] sm:$0xf] %vm1654_vm3, %v1633_v3 }
  0xfb   : > { %1667 = vst.msk [vmem:[%s2389_s24 + $0x30] sm:$0xf] %vm1654_vm3, %v1538_v4  ;;  %v1012_v7 = vpop.f32.mrf.mxu2  ;;  %v1092_v8 = vpop.f32.mrf.mxu3 }
  0xfc   : > { %1699 = vst.msk [vmem:[%s2389_s24 + $0xb0] sm:$0xf] %vm1654_vm3, %v1570_v6  ;;  %vm1218_vm10 = vcmp.gt.f32.partialorder %v1012_v7, 0.0  ;;  %v1346_v9 = vmul.f32 0.2, %v1012_v7  ;;  %vm1250_vm11 = vcmp.gt.f32.partialorder %v1092_v8, 0.0  ;;  %v854_v10 = vpop.f32.mrf.mxu0  ;;  %v934_v11 = vpop.f32.mrf.mxu1 }
  0xfd   : > { %v1378_v12 = vmul.f32 0.2, %v1092_v8  ;;  %vm1155_vm12 = vcmp.gt.f32.partialorder %v854_v10, 0.0  ;;  %v1283_v13 = vmul.f32 0.2, %v854_v10  ;;  %vm1187_vm13 = vcmp.gt.f32.partialorder %v934_v11, 0.0 }
  0xfe   : > { %v1474_v14 = vsel %vm1218_vm10, %v1012_v7, %v1346_v9  ;;  %v1315_v15 = vmul.f32 0.2, %v934_v11 }
  0xff   : > { %v1602_v16 = vpack.c.bf16 %v1474_v14, %v1474_v14  ;;  %v1506_v17 = vsel %vm1250_vm11, %v1092_v8, %v1378_v12  ;;  %v1411_v18 = vsel %vm1155_vm12, %v854_v10, %v1283_v13 }
 0x100   : > { %v1634_v19 = vpack.c.bf16 %v1506_v17, %v1506_v17  ;;  %v1539_v20 = vpack.c.bf16 %v1411_v18, %v1411_v18  ;;  %v1443_v21 = vsel %vm1187_vm13, %v934_v11, %v1315_v15 }
 0x101   : > { %1731 = vst.msk [vmem:[%s2389_s24 + $0x130] sm:$0xf] %vm1654_vm3, %v1602_v16  ;;  %v1571_v22 = vpack.c.bf16 %v1443_v21, %v1443_v21 }
 0x102   : > { %1763 = vst.msk [vmem:[%s2389_s24 + $0x1b0] sm:$0xf] %vm1654_vm3, %v1634_v19 }
 0x103   : > { %1668 = vst.msk [vmem:[%s2389_s24 + $0x34] sm:$0xf] %vm1654_vm3, %v1539_v20  ;;  %v1014_v24 = vpop.f32.mrf.mxu2  ;;  %v1094_v25 = vpop.f32.mrf.mxu3 }
 0x104   : > { %1700 = vst.msk [vmem:[%s2389_s24 + $0xb4] sm:$0xf] %vm1654_vm3, %v1571_v22  ;;  %vm1219_vm14 = vcmp.gt.f32.partialorder %v1014_v24, 0.0  ;;  %v1347_v29 = vmul.f32 0.2, %v1014_v24  ;;  %vm1251_vm15 = vcmp.gt.f32.partialorder %v1094_v25, 0.0  ;;  %v857_v30 = vpop.f32.mrf.mxu0  ;;  %v937_v31 = vpop.f32.mrf.mxu1 }
 0x105   : > { %v1379_v32 = vmul.f32 0.2, %v1094_v25  ;;  %vm1156_vm1 = vcmp.gt.f32.partialorder %v857_v30, 0.0  ;;  %v1284_v33 = vmul.f32 0.2, %v857_v30  ;;  %vm1188_vm2 = vcmp.gt.f32.partialorder %v937_v31, 0.0 }
 0x106   : > { %v1475_v34 = vsel %vm1219_vm14, %v1014_v24, %v1347_v29  ;;  %v1316_v35 = vmul.f32 0.2, %v937_v31 }
 0x107   : > { %v1603_v36 = vpack.c.bf16 %v1475_v34, %v1475_v34  ;;  %v1507_v37 = vsel %vm1251_vm15, %v1094_v25, %v1379_v32  ;;  %v1412_v38 = vsel %vm1156_vm1, %v857_v30, %v1284_v33  ;;  %2131 = vmatmul.msk.bf16.gmra.mxu0 %vm620_vm0, %v2197_v23  ;;  %2147 = vmatmul.msk.bf16.gmra.mxu1 %vm620_vm0, %v2213_v26 }
 0x108   : > { %v1635_v39 = vpack.c.bf16 %v1507_v37, %v1507_v37  ;;  %v1540_v40 = vpack.c.bf16 %v1412_v38, %v1412_v38  ;;  %v1444_v41 = vsel %vm1188_vm2, %v937_v31, %v1316_v35  ;;  %2163 = vmatmul.msk.bf16.gmra.mxu2 %vm620_vm0, %v2229_v27  ;;  %2179 = vmatmul.msk.bf16.gmra.mxu3 %vm620_vm0, %v2245_v28 }
 0x109   : > { %1732 = vst.msk [vmem:[%s2389_s24 + $0x134] sm:$0xf] %vm1654_vm3, %v1603_v36  ;;  %v1572_v42 = vpack.c.bf16 %v1444_v41, %v1444_v41 }
 0x10a   : > { %1764 = vst.msk [vmem:[%s2389_s24 + $0x1b4] sm:$0xf] %vm1654_vm3, %v1635_v39 }
 0x10b   : > { %1669 = vst.msk [vmem:[%s2389_s24 + $0x38] sm:$0xf] %vm1654_vm3, %v1540_v40  ;;  %v1017_v43 = vpop.f32.mrf.mxu2  ;;  %v1097_v44 = vpop.f32.mrf.mxu3 }
 0x10c   : > { %1701 = vst.msk [vmem:[%s2389_s24 + $0xb8] sm:$0xf] %vm1654_vm3, %v1572_v42  ;;  %vm1220_vm4 = vcmp.gt.f32.partialorder %v1017_v43, 0.0  ;;  %v1348_v45 = vmul.f32 0.2, %v1017_v43  ;;  %vm1252_vm5 = vcmp.gt.f32.partialorder %v1097_v44, 0.0  ;;  %v859_v46 = vpop.f32.mrf.mxu0  ;;  %v939_v47 = vpop.f32.mrf.mxu1 }
 0x10d   : > { %v1380_v48 = vmul.f32 0.2, %v1097_v44  ;;  %vm1157_vm0 = vcmp.gt.f32.partialorder %v859_v46, 0.0  ;;  %v1285_v49 = vmul.f32 0.2, %v859_v46  ;;  %vm1189_vm6 = vcmp.gt.f32.partialorder %v939_v47, 0.0 }
 0x10e   : > { %v1476_v50 = vsel %vm1220_vm4, %v1017_v43, %v1348_v45  ;;  %v1317_v51 = vmul.f32 0.2, %v939_v47 }
 0x10f   : > { %v1604_v52 = vpack.c.bf16 %v1476_v50, %v1476_v50  ;;  %v1508_v53 = vsel %vm1252_vm5, %v1097_v44, %v1380_v48  ;;  %v1413_v54 = vsel %vm1157_vm0, %v859_v46, %v1285_v49 }
 0x110   : > { %v1636_v55 = vpack.c.bf16 %v1508_v53, %v1508_v53  ;;  %v1541_v56 = vpack.c.bf16 %v1413_v54, %v1413_v54  ;;  %v1445_v57 = vsel %vm1189_vm6, %v939_v47, %v1317_v51 }
 0x111   : > { %1733 = vst.msk [vmem:[%s2389_s24 + $0x138] sm:$0xf] %vm1654_vm3, %v1604_v52  ;;  %v1573_v58 = vpack.c.bf16 %v1445_v57, %v1445_v57 }
 0x112   : > { %1765 = vst.msk [vmem:[%s2389_s24 + $0x1b8] sm:$0xf] %vm1654_vm3, %v1636_v55 }
 0x113   : > { %1670 = vst.msk [vmem:[%s2389_s24 + $0x3c] sm:$0xf] %vm1654_vm3, %v1541_v56  ;;  %v1019_v59 = vpop.f32.mrf.mxu2  ;;  %v1099_v60 = vpop.f32.mrf.mxu3 }
 0x114   : > { %1702 = vst.msk [vmem:[%s2389_s24 + $0xbc] sm:$0xf] %vm1654_vm3, %v1573_v58  ;;  %vm1221_vm7 = vcmp.gt.f32.partialorder %v1019_v59, 0.0  ;;  %v1349_v61 = vmul.f32 0.2, %v1019_v59  ;;  %vm1253_vm8 = vcmp.gt.f32.partialorder %v1099_v60, 0.0  ;;  %v862_v62 = vpop.f32.mrf.mxu0  ;;  %v942_v63 = vpop.f32.mrf.mxu1 }
 0x115   : > { %v1381_v0 = vmul.f32 0.2, %v1099_v60  ;;  %vm1158_vm9 = vcmp.gt.f32.partialorder %v862_v62, 0.0  ;;  %v1286_v1 = vmul.f32 0.2, %v862_v62  ;;  %vm1190_vm10 = vcmp.gt.f32.partialorder %v942_v63, 0.0 }
 0x116   : > { %v1477_v2 = vsel %vm1221_vm7, %v1019_v59, %v1349_v61  ;;  %v1318_v3 = vmul.f32 0.2, %v942_v63 }
 0x117   : > { %v1605_v4 = vpack.c.bf16 %v1477_v2, %v1477_v2  ;;  %v1509_v5 = vsel %vm1253_vm8, %v1099_v60, %v1381_v0  ;;  %v1414_v6 = vsel %vm1158_vm9, %v862_v62, %v1286_v1 }
 0x118   : > { %v1637_v7 = vpack.c.bf16 %v1509_v5, %v1509_v5  ;;  %v1542_v8 = vpack.c.bf16 %v1414_v6, %v1414_v6  ;;  %v1446_v9 = vsel %vm1190_vm10, %v942_v63, %v1318_v3 }
 0x119   : > { %1734 = vst.msk [vmem:[%s2389_s24 + $0x13c] sm:$0xf] %vm1654_vm3, %v1605_v4  ;;  %v1574_v10 = vpack.c.bf16 %v1446_v9, %v1446_v9 }
 0x11a   : > { %1766 = vst.msk [vmem:[%s2389_s24 + $0x1bc] sm:$0xf] %vm1654_vm3, %v1637_v7 }
 0x11b   : > { %1671 = vst.msk [vmem:[%s2389_s24 + $0x40] sm:$0xf] %vm1654_vm3, %v1542_v8  ;;  %v1022_v11 = vpop.f32.mrf.mxu2  ;;  %v1102_v12 = vpop.f32.mrf.mxu3 }
 0x11c   : > { %1703 = vst.msk [vmem:[%s2389_s24 + $0xc0] sm:$0xf] %vm1654_vm3, %v1574_v10  ;;  %vm1222_vm11 = vcmp.gt.f32.partialorder %v1022_v11, 0.0  ;;  %v1350_v13 = vmul.f32 0.2, %v1022_v11  ;;  %vm1254_vm12 = vcmp.gt.f32.partialorder %v1102_v12, 0.0  ;;  %v864_v14 = vpop.f32.mrf.mxu0  ;;  %v944_v15 = vpop.f32.mrf.mxu1 }
 0x11d   : > { %v1382_v16 = vmul.f32 0.2, %v1102_v12  ;;  %vm1159_vm13 = vcmp.gt.f32.partialorder %v864_v14, 0.0  ;;  %v1287_v17 = vmul.f32 0.2, %v864_v14  ;;  %vm1191_vm14 = vcmp.gt.f32.partialorder %v944_v15, 0.0 }
 0x11e   : > { %v1478_v18 = vsel %vm1222_vm11, %v1022_v11, %v1350_v13  ;;  %v1319_v19 = vmul.f32 0.2, %v944_v15 }
 0x11f   : > { %v1606_v20 = vpack.c.bf16 %v1478_v18, %v1478_v18  ;;  %v1510_v21 = vsel %vm1254_vm12, %v1102_v12, %v1382_v16  ;;  %v1415_v22 = vsel %vm1159_vm13, %v864_v14, %v1287_v17 }
 0x120   : > { %v1638_v23 = vpack.c.bf16 %v1510_v21, %v1510_v21  ;;  %v1543_v24 = vpack.c.bf16 %v1415_v22, %v1415_v22  ;;  %v1447_v25 = vsel %vm1191_vm14, %v944_v15, %v1319_v19 }
 0x121   : > { %1735 = vst.msk [vmem:[%s2389_s24 + $0x140] sm:$0xf] %vm1654_vm3, %v1606_v20  ;;  %v1575_v26 = vpack.c.bf16 %v1447_v25, %v1447_v25 }
 0x122   : > { %1767 = vst.msk [vmem:[%s2389_s24 + $0x1c0] sm:$0xf] %vm1654_vm3, %v1638_v23 }
 0x123   : > { %1672 = vst.msk [vmem:[%s2389_s24 + $0x44] sm:$0xf] %vm1654_vm3, %v1543_v24  ;;  %v1024_v27 = vpop.f32.mrf.mxu2  ;;  %v1104_v28 = vpop.f32.mrf.mxu3 }
 0x124   : > { %1704 = vst.msk [vmem:[%s2389_s24 + $0xc4] sm:$0xf] %vm1654_vm3, %v1575_v26  ;;  %vm1223_vm15 = vcmp.gt.f32.partialorder %v1024_v27, 0.0  ;;  %v1351_v29 = vmul.f32 0.2, %v1024_v27  ;;  %vm1255_vm1 = vcmp.gt.f32.partialorder %v1104_v28, 0.0  ;;  %v867_v30 = vpop.f32.mrf.mxu0  ;;  %v947_v31 = vpop.f32.mrf.mxu1 }
 0x125   : > { %v1383_v32 = vmul.f32 0.2, %v1104_v28  ;;  %vm1160_vm2 = vcmp.gt.f32.partialorder %v867_v30, 0.0  ;;  %v1288_v33 = vmul.f32 0.2, %v867_v30  ;;  %vm1192_vm4 = vcmp.gt.f32.partialorder %v947_v31, 0.0 }
 0x126   : > { %v1479_v34 = vsel %vm1223_vm15, %v1024_v27, %v1351_v29  ;;  %v1320_v35 = vmul.f32 0.2, %v947_v31 }
 0x127   : > { %v1607_v36 = vpack.c.bf16 %v1479_v34, %v1479_v34  ;;  %v1511_v37 = vsel %vm1255_vm1, %v1104_v28, %v1383_v32  ;;  %v1416_v38 = vsel %vm1160_vm2, %v867_v30, %v1288_v33 }
 0x128   : > { %v1639_v39 = vpack.c.bf16 %v1511_v37, %v1511_v37  ;;  %v1544_v40 = vpack.c.bf16 %v1416_v38, %v1416_v38  ;;  %v1448_v41 = vsel %vm1192_vm4, %v947_v31, %v1320_v35 }
 0x129   : > { %1736 = vst.msk [vmem:[%s2389_s24 + $0x144] sm:$0xf] %vm1654_vm3, %v1607_v36  ;;  %v1576_v42 = vpack.c.bf16 %v1448_v41, %v1448_v41 }
 0x12a   : > { %1768 = vst.msk [vmem:[%s2389_s24 + $0x1c4] sm:$0xf] %vm1654_vm3, %v1639_v39 }
 0x12b   : > { %1673 = vst.msk [vmem:[%s2389_s24 + $0x48] sm:$0xf] %vm1654_vm3, %v1544_v40  ;;  %v1027_v43 = vpop.f32.mrf.mxu2  ;;  %v1107_v44 = vpop.f32.mrf.mxu3 }
 0x12c   : > { %1705 = vst.msk [vmem:[%s2389_s24 + $0xc8] sm:$0xf] %vm1654_vm3, %v1576_v42  ;;  %vm1224_vm5 = vcmp.gt.f32.partialorder %v1027_v43, 0.0  ;;  %v1352_v45 = vmul.f32 0.2, %v1027_v43  ;;  %vm1256_vm0 = vcmp.gt.f32.partialorder %v1107_v44, 0.0  ;;  %v869_v46 = vpop.f32.mrf.mxu0  ;;  %v949_v47 = vpop.f32.mrf.mxu1 }
 0x12d   : > { %v1384_v48 = vmul.f32 0.2, %v1107_v44  ;;  %vm1161_vm6 = vcmp.gt.f32.partialorder %v869_v46, 0.0  ;;  %v1289_v49 = vmul.f32 0.2, %v869_v46  ;;  %vm1193_vm7 = vcmp.gt.f32.partialorder %v949_v47, 0.0 }
 0x12e   : > { %v1480_v50 = vsel %vm1224_vm5, %v1027_v43, %v1352_v45  ;;  %v1321_v51 = vmul.f32 0.2, %v949_v47 }
 0x12f   : > { %v1608_v52 = vpack.c.bf16 %v1480_v50, %v1480_v50  ;;  %v1512_v53 = vsel %vm1256_vm0, %v1107_v44, %v1384_v48  ;;  %v1417_v54 = vsel %vm1161_vm6, %v869_v46, %v1289_v49 }
 0x130   : > { %v1640_v55 = vpack.c.bf16 %v1512_v53, %v1512_v53  ;;  %v1545_v56 = vpack.c.bf16 %v1417_v54, %v1417_v54  ;;  %v1449_v57 = vsel %vm1193_vm7, %v949_v47, %v1321_v51 }
 0x131   : > { %1737 = vst.msk [vmem:[%s2389_s24 + $0x148] sm:$0xf] %vm1654_vm3, %v1608_v52  ;;  %v1577_v58 = vpack.c.bf16 %v1449_v57, %v1449_v57 }
 0x132   : > { %1769 = vst.msk [vmem:[%s2389_s24 + $0x1c8] sm:$0xf] %vm1654_vm3, %v1640_v55 }
 0x133   : > { %1674 = vst.msk [vmem:[%s2389_s24 + $0x4c] sm:$0xf] %vm1654_vm3, %v1545_v56  ;;  %v1029_v59 = vpop.f32.mrf.mxu2  ;;  %v1109_v60 = vpop.f32.mrf.mxu3 }
 0x134   : > { %1706 = vst.msk [vmem:[%s2389_s24 + $0xcc] sm:$0xf] %vm1654_vm3, %v1577_v58  ;;  %vm1225_vm8 = vcmp.gt.f32.partialorder %v1029_v59, 0.0  ;;  %v1353_v61 = vmul.f32 0.2, %v1029_v59  ;;  %vm1257_vm9 = vcmp.gt.f32.partialorder %v1109_v60, 0.0  ;;  %v872_v62 = vpop.f32.mrf.mxu0  ;;  %v952_v63 = vpop.f32.mrf.mxu1 }
 0x135   : > { %v1385_v0 = vmul.f32 0.2, %v1109_v60  ;;  %vm1162_vm10 = vcmp.gt.f32.partialorder %v872_v62, 0.0  ;;  %v1290_v1 = vmul.f32 0.2, %v872_v62  ;;  %vm1194_vm11 = vcmp.gt.f32.partialorder %v952_v63, 0.0 }
 0x136   : > { %v1481_v2 = vsel %vm1225_vm8, %v1029_v59, %v1353_v61  ;;  %v1322_v3 = vmul.f32 0.2, %v952_v63 }
 0x137   : > { %v1609_v4 = vpack.c.bf16 %v1481_v2, %v1481_v2  ;;  %v1513_v5 = vsel %vm1257_vm9, %v1109_v60, %v1385_v0  ;;  %v1418_v6 = vsel %vm1162_vm10, %v872_v62, %v1290_v1 }
 0x138   : > { %v1641_v7 = vpack.c.bf16 %v1513_v5, %v1513_v5  ;;  %v1546_v8 = vpack.c.bf16 %v1418_v6, %v1418_v6  ;;  %v1450_v9 = vsel %vm1194_vm11, %v952_v63, %v1322_v3 }
 0x139   : > { %1738 = vst.msk [vmem:[%s2389_s24 + $0x14c] sm:$0xf] %vm1654_vm3, %v1609_v4  ;;  %v1578_v10 = vpack.c.bf16 %v1450_v9, %v1450_v9 }
 0x13a   : > { %1770 = vst.msk [vmem:[%s2389_s24 + $0x1cc] sm:$0xf] %vm1654_vm3, %v1641_v7 }
 0x13b   : > { %1675 = vst.msk [vmem:[%s2389_s24 + $0x50] sm:$0xf] %vm1654_vm3, %v1546_v8  ;;  %v1032_v11 = vpop.f32.mrf.mxu2  ;;  %v1112_v12 = vpop.f32.mrf.mxu3 }
 0x13c   : > { %1707 = vst.msk [vmem:[%s2389_s24 + $0xd0] sm:$0xf] %vm1654_vm3, %v1578_v10  ;;  %vm1226_vm12 = vcmp.gt.f32.partialorder %v1032_v11, 0.0  ;;  %v1354_v13 = vmul.f32 0.2, %v1032_v11  ;;  %vm1258_vm13 = vcmp.gt.f32.partialorder %v1112_v12, 0.0  ;;  %v874_v14 = vpop.f32.mrf.mxu0  ;;  %v954_v15 = vpop.f32.mrf.mxu1 }
 0x13d   : > { %v1386_v16 = vmul.f32 0.2, %v1112_v12  ;;  %vm1163_vm14 = vcmp.gt.f32.partialorder %v874_v14, 0.0  ;;  %v1291_v17 = vmul.f32 0.2, %v874_v14  ;;  %vm1195_vm15 = vcmp.gt.f32.partialorder %v954_v15, 0.0 }
 0x13e   : > { %v1482_v18 = vsel %vm1226_vm12, %v1032_v11, %v1354_v13  ;;  %v1323_v19 = vmul.f32 0.2, %v954_v15 }
 0x13f   : > { %v1610_v20 = vpack.c.bf16 %v1482_v18, %v1482_v18  ;;  %v1514_v21 = vsel %vm1258_vm13, %v1112_v12, %v1386_v16  ;;  %v1419_v22 = vsel %vm1163_vm14, %v874_v14, %v1291_v17 }
 0x140   : > { %v1642_v23 = vpack.c.bf16 %v1514_v21, %v1514_v21  ;;  %v1547_v24 = vpack.c.bf16 %v1419_v22, %v1419_v22  ;;  %v1451_v25 = vsel %vm1195_vm15, %v954_v15, %v1323_v19 }
 0x141   : > { %1739 = vst.msk [vmem:[%s2389_s24 + $0x150] sm:$0xf] %vm1654_vm3, %v1610_v20  ;;  %v1579_v26 = vpack.c.bf16 %v1451_v25, %v1451_v25 }
 0x142   : > { %1771 = vst.msk [vmem:[%s2389_s24 + $0x1d0] sm:$0xf] %vm1654_vm3, %v1642_v23 }
 0x143   : > { %1676 = vst.msk [vmem:[%s2389_s24 + $0x54] sm:$0xf] %vm1654_vm3, %v1547_v24  ;;  %v1034_v27 = vpop.f32.mrf.mxu2  ;;  %v1114_v28 = vpop.f32.mrf.mxu3 }
 0x144   : > { %1708 = vst.msk [vmem:[%s2389_s24 + $0xd4] sm:$0xf] %vm1654_vm3, %v1579_v26  ;;  %vm1227_vm1 = vcmp.gt.f32.partialorder %v1034_v27, 0.0  ;;  %v1355_v29 = vmul.f32 0.2, %v1034_v27  ;;  %vm1259_vm2 = vcmp.gt.f32.partialorder %v1114_v28, 0.0  ;;  %v877_v30 = vpop.f32.mrf.mxu0  ;;  %v957_v31 = vpop.f32.mrf.mxu1 }
 0x145   : > { %v1387_v32 = vmul.f32 0.2, %v1114_v28  ;;  %vm1164_vm4 = vcmp.gt.f32.partialorder %v877_v30, 0.0  ;;  %v1292_v33 = vmul.f32 0.2, %v877_v30  ;;  %vm1196_vm5 = vcmp.gt.f32.partialorder %v957_v31, 0.0 }
 0x146   : > { %v1483_v34 = vsel %vm1227_vm1, %v1034_v27, %v1355_v29  ;;  %v1324_v35 = vmul.f32 0.2, %v957_v31 }
 0x147   : > { %v1611_v36 = vpack.c.bf16 %v1483_v34, %v1483_v34  ;;  %v1515_v37 = vsel %vm1259_vm2, %v1114_v28, %v1387_v32  ;;  %v1420_v38 = vsel %vm1164_vm4, %v877_v30, %v1292_v33 }
 0x148   : > { %v1643_v39 = vpack.c.bf16 %v1515_v37, %v1515_v37  ;;  %v1548_v40 = vpack.c.bf16 %v1420_v38, %v1420_v38  ;;  %v1452_v41 = vsel %vm1196_vm5, %v957_v31, %v1324_v35 }
 0x149   : > { %1740 = vst.msk [vmem:[%s2389_s24 + $0x154] sm:$0xf] %vm1654_vm3, %v1611_v36  ;;  %v1580_v42 = vpack.c.bf16 %v1452_v41, %v1452_v41 }
 0x14a   : > { %1772 = vst.msk [vmem:[%s2389_s24 + $0x1d4] sm:$0xf] %vm1654_vm3, %v1643_v39 }
 0x14b   : > { %1677 = vst.msk [vmem:[%s2389_s24 + $0x58] sm:$0xf] %vm1654_vm3, %v1548_v40  ;;  %v1037_v43 = vpop.f32.mrf.mxu2  ;;  %v1117_v44 = vpop.f32.mrf.mxu3 }
 0x14c   : > { %1709 = vst.msk [vmem:[%s2389_s24 + $0xd8] sm:$0xf] %vm1654_vm3, %v1580_v42  ;;  %vm1228_vm0 = vcmp.gt.f32.partialorder %v1037_v43, 0.0  ;;  %v1356_v45 = vmul.f32 0.2, %v1037_v43  ;;  %vm1260_vm6 = vcmp.gt.f32.partialorder %v1117_v44, 0.0  ;;  %v879_v46 = vpop.f32.mrf.mxu0  ;;  %v959_v47 = vpop.f32.mrf.mxu1 }
 0x14d   : > { %v1388_v48 = vmul.f32 0.2, %v1117_v44  ;;  %vm1165_vm7 = vcmp.gt.f32.partialorder %v879_v46, 0.0  ;;  %v1293_v49 = vmul.f32 0.2, %v879_v46  ;;  %vm1197_vm8 = vcmp.gt.f32.partialorder %v959_v47, 0.0 }
 0x14e   : > { %v1484_v50 = vsel %vm1228_vm0, %v1037_v43, %v1356_v45  ;;  %v1325_v51 = vmul.f32 0.2, %v959_v47 }
 0x14f   : > { %v1612_v52 = vpack.c.bf16 %v1484_v50, %v1484_v50  ;;  %v1516_v53 = vsel %vm1260_vm6, %v1117_v44, %v1388_v48  ;;  %v1421_v54 = vsel %vm1165_vm7, %v879_v46, %v1293_v49 }
 0x150   : > { %v1644_v55 = vpack.c.bf16 %v1516_v53, %v1516_v53  ;;  %v1549_v56 = vpack.c.bf16 %v1421_v54, %v1421_v54  ;;  %v1453_v57 = vsel %vm1197_vm8, %v959_v47, %v1325_v51 }
 0x151   : > { %1741 = vst.msk [vmem:[%s2389_s24 + $0x158] sm:$0xf] %vm1654_vm3, %v1612_v52  ;;  %v1581_v58 = vpack.c.bf16 %v1453_v57, %v1453_v57 }
 0x152   : > { %1773 = vst.msk [vmem:[%s2389_s24 + $0x1d8] sm:$0xf] %vm1654_vm3, %v1644_v55 }
 0x153   : > { %1678 = vst.msk [vmem:[%s2389_s24 + $0x5c] sm:$0xf] %vm1654_vm3, %v1549_v56  ;;  %v1039_v59 = vpop.f32.mrf.mxu2  ;;  %v1119_v60 = vpop.f32.mrf.mxu3 }
 0x154   : > { %1710 = vst.msk [vmem:[%s2389_s24 + $0xdc] sm:$0xf] %vm1654_vm3, %v1581_v58  ;;  %vm1229_vm9 = vcmp.gt.f32.partialorder %v1039_v59, 0.0  ;;  %v1357_v61 = vmul.f32 0.2, %v1039_v59  ;;  %vm1261_vm10 = vcmp.gt.f32.partialorder %v1119_v60, 0.0  ;;  %v882_v62 = vpop.f32.mrf.mxu0  ;;  %v962_v63 = vpop.f32.mrf.mxu1 }
 0x155   : > { %v1389_v0 = vmul.f32 0.2, %v1119_v60  ;;  %vm1166_vm11 = vcmp.gt.f32.partialorder %v882_v62, 0.0  ;;  %v1294_v1 = vmul.f32 0.2, %v882_v62  ;;  %vm1198_vm12 = vcmp.gt.f32.partialorder %v962_v63, 0.0 }
 0x156   : > { %v1485_v2 = vsel %vm1229_vm9, %v1039_v59, %v1357_v61  ;;  %v1326_v3 = vmul.f32 0.2, %v962_v63 }
 0x157   : > { %v1613_v4 = vpack.c.bf16 %v1485_v2, %v1485_v2  ;;  %v1517_v5 = vsel %vm1261_vm10, %v1119_v60, %v1389_v0  ;;  %v1422_v6 = vsel %vm1166_vm11, %v882_v62, %v1294_v1 }
 0x158   : > { %v1645_v7 = vpack.c.bf16 %v1517_v5, %v1517_v5  ;;  %v1550_v8 = vpack.c.bf16 %v1422_v6, %v1422_v6  ;;  %v1454_v9 = vsel %vm1198_vm12, %v962_v63, %v1326_v3 }
 0x159   : > { %1742 = vst.msk [vmem:[%s2389_s24 + $0x15c] sm:$0xf] %vm1654_vm3, %v1613_v4  ;;  %v1582_v10 = vpack.c.bf16 %v1454_v9, %v1454_v9 }
 0x15a   : > { %1774 = vst.msk [vmem:[%s2389_s24 + $0x1dc] sm:$0xf] %vm1654_vm3, %v1645_v7 }
 0x15b   : > { %1679 = vst.msk [vmem:[%s2389_s24 + $0x60] sm:$0xf] %vm1654_vm3, %v1550_v8  ;;  %v1042_v11 = vpop.f32.mrf.mxu2  ;;  %v1122_v12 = vpop.f32.mrf.mxu3 }
 0x15c   : > { %1711 = vst.msk [vmem:[%s2389_s24 + $0xe0] sm:$0xf] %vm1654_vm3, %v1582_v10  ;;  %vm1230_vm13 = vcmp.gt.f32.partialorder %v1042_v11, 0.0  ;;  %v1358_v13 = vmul.f32 0.2, %v1042_v11  ;;  %vm1262_vm14 = vcmp.gt.f32.partialorder %v1122_v12, 0.0  ;;  %v884_v14 = vpop.f32.mrf.mxu0  ;;  %v964_v15 = vpop.f32.mrf.mxu1 }
 0x15d   : > { %v1390_v16 = vmul.f32 0.2, %v1122_v12  ;;  %vm1167_vm15 = vcmp.gt.f32.partialorder %v884_v14, 0.0  ;;  %v1295_v17 = vmul.f32 0.2, %v884_v14  ;;  %vm1199_vm1 = vcmp.gt.f32.partialorder %v964_v15, 0.0 }
 0x15e   : > { %v1486_v18 = vsel %vm1230_vm13, %v1042_v11, %v1358_v13  ;;  %v1327_v19 = vmul.f32 0.2, %v964_v15 }
 0x15f   : > { %v1614_v20 = vpack.c.bf16 %v1486_v18, %v1486_v18  ;;  %v1518_v21 = vsel %vm1262_vm14, %v1122_v12, %v1390_v16  ;;  %v1423_v22 = vsel %vm1167_vm15, %v884_v14, %v1295_v17 }
 0x160   : > { %v1646_v23 = vpack.c.bf16 %v1518_v21, %v1518_v21  ;;  %v1551_v24 = vpack.c.bf16 %v1423_v22, %v1423_v22  ;;  %v1455_v25 = vsel %vm1199_vm1, %v964_v15, %v1327_v19 }
 0x161   : > { %1743 = vst.msk [vmem:[%s2389_s24 + $0x160] sm:$0xf] %vm1654_vm3, %v1614_v20  ;;  %v1583_v26 = vpack.c.bf16 %v1455_v25, %v1455_v25 }
 0x162   : > { %1775 = vst.msk [vmem:[%s2389_s24 + $0x1e0] sm:$0xf] %vm1654_vm3, %v1646_v23 }
 0x163   : > { %1680 = vst.msk [vmem:[%s2389_s24 + $0x64] sm:$0xf] %vm1654_vm3, %v1551_v24  ;;  %v1044_v27 = vpop.f32.mrf.mxu2  ;;  %v1124_v28 = vpop.f32.mrf.mxu3 }
 0x164   : > { %1712 = vst.msk [vmem:[%s2389_s24 + $0xe4] sm:$0xf] %vm1654_vm3, %v1583_v26  ;;  %vm1231_vm2 = vcmp.gt.f32.partialorder %v1044_v27, 0.0  ;;  %v1359_v29 = vmul.f32 0.2, %v1044_v27  ;;  %vm1263_vm4 = vcmp.gt.f32.partialorder %v1124_v28, 0.0  ;;  %v887_v30 = vpop.f32.mrf.mxu0  ;;  %v967_v31 = vpop.f32.mrf.mxu1 }
 0x165   : > { %v1391_v32 = vmul.f32 0.2, %v1124_v28  ;;  %vm1168_vm5 = vcmp.gt.f32.partialorder %v887_v30, 0.0  ;;  %v1296_v33 = vmul.f32 0.2, %v887_v30  ;;  %vm1200_vm0 = vcmp.gt.f32.partialorder %v967_v31, 0.0 }
 0x166   : > { %v1487_v34 = vsel %vm1231_vm2, %v1044_v27, %v1359_v29  ;;  %v1328_v35 = vmul.f32 0.2, %v967_v31 }
 0x167   : > { %v1615_v36 = vpack.c.bf16 %v1487_v34, %v1487_v34  ;;  %v1519_v37 = vsel %vm1263_vm4, %v1124_v28, %v1391_v32  ;;  %v1424_v38 = vsel %vm1168_vm5, %v887_v30, %v1296_v33 }
 0x168   : > { %v1647_v39 = vpack.c.bf16 %v1519_v37, %v1519_v37  ;;  %v1552_v40 = vpack.c.bf16 %v1424_v38, %v1424_v38  ;;  %v1456_v41 = vsel %vm1200_vm0, %v967_v31, %v1328_v35 }
 0x169   : > { %1744 = vst.msk [vmem:[%s2389_s24 + $0x164] sm:$0xf] %vm1654_vm3, %v1615_v36  ;;  %v1584_v42 = vpack.c.bf16 %v1456_v41, %v1456_v41 }
 0x16a   : > { %1776 = vst.msk [vmem:[%s2389_s24 + $0x1e4] sm:$0xf] %vm1654_vm3, %v1647_v39 }
 0x16b   : > { %1681 = vst.msk [vmem:[%s2389_s24 + $0x68] sm:$0xf] %vm1654_vm3, %v1552_v40  ;;  %v1047_v43 = vpop.f32.mrf.mxu2  ;;  %v1127_v44 = vpop.f32.mrf.mxu3 }
 0x16c   : > { %1713 = vst.msk [vmem:[%s2389_s24 + $0xe8] sm:$0xf] %vm1654_vm3, %v1584_v42  ;;  %vm1232_vm6 = vcmp.gt.f32.partialorder %v1047_v43, 0.0  ;;  %v1360_v45 = vmul.f32 0.2, %v1047_v43  ;;  %vm1264_vm7 = vcmp.gt.f32.partialorder %v1127_v44, 0.0  ;;  %v889_v46 = vpop.f32.mrf.mxu0  ;;  %v969_v47 = vpop.f32.mrf.mxu1 }
 0x16d   : > { %v1392_v48 = vmul.f32 0.2, %v1127_v44  ;;  %vm1169_vm8 = vcmp.gt.f32.partialorder %v889_v46, 0.0  ;;  %v1297_v49 = vmul.f32 0.2, %v889_v46  ;;  %vm1201_vm9 = vcmp.gt.f32.partialorder %v969_v47, 0.0 }
 0x16e   : > { %v1488_v50 = vsel %vm1232_vm6, %v1047_v43, %v1360_v45  ;;  %v1329_v51 = vmul.f32 0.2, %v969_v47 }
 0x16f   : > { %v1616_v52 = vpack.c.bf16 %v1488_v50, %v1488_v50  ;;  %v1520_v53 = vsel %vm1264_vm7, %v1127_v44, %v1392_v48  ;;  %v1425_v54 = vsel %vm1169_vm8, %v889_v46, %v1297_v49 }
 0x170   : > { %v1648_v55 = vpack.c.bf16 %v1520_v53, %v1520_v53  ;;  %v1553_v56 = vpack.c.bf16 %v1425_v54, %v1425_v54  ;;  %v1457_v57 = vsel %vm1201_vm9, %v969_v47, %v1329_v51 }
 0x171   : > { %1745 = vst.msk [vmem:[%s2389_s24 + $0x168] sm:$0xf] %vm1654_vm3, %v1616_v52  ;;  %v1585_v58 = vpack.c.bf16 %v1457_v57, %v1457_v57 }
 0x172   : > { %1777 = vst.msk [vmem:[%s2389_s24 + $0x1e8] sm:$0xf] %vm1654_vm3, %v1648_v55 }
 0x173   : > { %1682 = vst.msk [vmem:[%s2389_s24 + $0x6c] sm:$0xf] %vm1654_vm3, %v1553_v56  ;;  %v1049_v59 = vpop.f32.mrf.mxu2  ;;  %v1129_v60 = vpop.f32.mrf.mxu3 }
 0x174   : > { %1714 = vst.msk [vmem:[%s2389_s24 + $0xec] sm:$0xf] %vm1654_vm3, %v1585_v58  ;;  %vm1233_vm10 = vcmp.gt.f32.partialorder %v1049_v59, 0.0  ;;  %v1361_v61 = vmul.f32 0.2, %v1049_v59  ;;  %vm1265_vm11 = vcmp.gt.f32.partialorder %v1129_v60, 0.0  ;;  %v892_v62 = vpop.f32.mrf.mxu0  ;;  %v972_v63 = vpop.f32.mrf.mxu1 }
 0x175   : > { %v1393_v0 = vmul.f32 0.2, %v1129_v60  ;;  %vm1170_vm12 = vcmp.gt.f32.partialorder %v892_v62, 0.0  ;;  %v1298_v1 = vmul.f32 0.2, %v892_v62  ;;  %vm1202_vm13 = vcmp.gt.f32.partialorder %v972_v63, 0.0 }
 0x176   : > { %v1489_v2 = vsel %vm1233_vm10, %v1049_v59, %v1361_v61  ;;  %v1330_v3 = vmul.f32 0.2, %v972_v63 }
 0x177   : > { %v1617_v4 = vpack.c.bf16 %v1489_v2, %v1489_v2  ;;  %v1521_v5 = vsel %vm1265_vm11, %v1129_v60, %v1393_v0  ;;  %v1426_v6 = vsel %vm1170_vm12, %v892_v62, %v1298_v1 }
 0x178   : > { %v1649_v7 = vpack.c.bf16 %v1521_v5, %v1521_v5  ;;  %v1554_v8 = vpack.c.bf16 %v1426_v6, %v1426_v6  ;;  %v1458_v9 = vsel %vm1202_vm13, %v972_v63, %v1330_v3 }
 0x179   : > { %1746 = vst.msk [vmem:[%s2389_s24 + $0x16c] sm:$0xf] %vm1654_vm3, %v1617_v4  ;;  %v1586_v10 = vpack.c.bf16 %v1458_v9, %v1458_v9 }
 0x17a   : > { %1778 = vst.msk [vmem:[%s2389_s24 + $0x1ec] sm:$0xf] %vm1654_vm3, %v1649_v7 }
 0x17b   : > { %1683 = vst.msk [vmem:[%s2389_s24 + $0x70] sm:$0xf] %vm1654_vm3, %v1554_v8  ;;  %v1052_v11 = vpop.f32.mrf.mxu2  ;;  %v1132_v12 = vpop.f32.mrf.mxu3 }
 0x17c   : > { %1715 = vst.msk [vmem:[%s2389_s24 + $0xf0] sm:$0xf] %vm1654_vm3, %v1586_v10  ;;  %vm1234_vm14 = vcmp.gt.f32.partialorder %v1052_v11, 0.0  ;;  %v1362_v13 = vmul.f32 0.2, %v1052_v11  ;;  %vm1266_vm15 = vcmp.gt.f32.partialorder %v1132_v12, 0.0  ;;  %v894_v14 = vpop.f32.mrf.mxu0  ;;  %v974_v15 = vpop.f32.mrf.mxu1 }
 0x17d   : > { %v1394_v16 = vmul.f32 0.2, %v1132_v12  ;;  %vm1171_vm1 = vcmp.gt.f32.partialorder %v894_v14, 0.0  ;;  %v1299_v17 = vmul.f32 0.2, %v894_v14  ;;  %vm1203_vm2 = vcmp.gt.f32.partialorder %v974_v15, 0.0 }
 0x17e   : > { %v1490_v18 = vsel %vm1234_vm14, %v1052_v11, %v1362_v13  ;;  %v1331_v19 = vmul.f32 0.2, %v974_v15 }
 0x17f   : > { %v1618_v20 = vpack.c.bf16 %v1490_v18, %v1490_v18  ;;  %v1522_v21 = vsel %vm1266_vm15, %v1132_v12, %v1394_v16  ;;  %v1427_v22 = vsel %vm1171_vm1, %v894_v14, %v1299_v17 }
 0x180   : > { %v1650_v23 = vpack.c.bf16 %v1522_v21, %v1522_v21  ;;  %v1555_v24 = vpack.c.bf16 %v1427_v22, %v1427_v22  ;;  %v1459_v25 = vsel %vm1203_vm2, %v974_v15, %v1331_v19 }
 0x181   : > { %1747 = vst.msk [vmem:[%s2389_s24 + $0x170] sm:$0xf] %vm1654_vm3, %v1618_v20  ;;  %v1587_v26 = vpack.c.bf16 %v1459_v25, %v1459_v25 }
 0x182   : > { %1779 = vst.msk [vmem:[%s2389_s24 + $0x1f0] sm:$0xf] %vm1654_vm3, %v1650_v23 }
 0x183   : > { %1684 = vst.msk [vmem:[%s2389_s24 + $0x74] sm:$0xf] %vm1654_vm3, %v1555_v24  ;;  %v1054_v27 = vpop.f32.mrf.mxu2  ;;  %v1134_v28 = vpop.f32.mrf.mxu3 }
 0x184   : > { %1716 = vst.msk [vmem:[%s2389_s24 + $0xf4] sm:$0xf] %vm1654_vm3, %v1587_v26  ;;  %vm1235_vm4 = vcmp.gt.f32.partialorder %v1054_v27, 0.0  ;;  %v1363_v29 = vmul.f32 0.2, %v1054_v27  ;;  %vm1267_vm5 = vcmp.gt.f32.partialorder %v1134_v28, 0.0  ;;  %v897_v30 = vpop.f32.mrf.mxu0  ;;  %v977_v31 = vpop.f32.mrf.mxu1 }
 0x185   : > { %v1395_v32 = vmul.f32 0.2, %v1134_v28  ;;  %vm1172_vm0 = vcmp.gt.f32.partialorder %v897_v30, 0.0  ;;  %v1300_v33 = vmul.f32 0.2, %v897_v30  ;;  %vm1204_vm6 = vcmp.gt.f32.partialorder %v977_v31, 0.0 }
 0x186   : > { %v1491_v34 = vsel %vm1235_vm4, %v1054_v27, %v1363_v29  ;;  %v1332_v35 = vmul.f32 0.2, %v977_v31 }
 0x187   : > { %v1619_v36 = vpack.c.bf16 %v1491_v34, %v1491_v34  ;;  %v1523_v37 = vsel %vm1267_vm5, %v1134_v28, %v1395_v32  ;;  %v1428_v38 = vsel %vm1172_vm0, %v897_v30, %v1300_v33 }
 0x188   : > { %v1651_v39 = vpack.c.bf16 %v1523_v37, %v1523_v37  ;;  %v1556_v40 = vpack.c.bf16 %v1428_v38, %v1428_v38  ;;  %v1460_v41 = vsel %vm1204_vm6, %v977_v31, %v1332_v35 }
 0x189   : > { %1748 = vst.msk [vmem:[%s2389_s24 + $0x174] sm:$0xf] %vm1654_vm3, %v1619_v36  ;;  %v1588_v42 = vpack.c.bf16 %v1460_v41, %v1460_v41 }
 0x18a   : > { %1780 = vst.msk [vmem:[%s2389_s24 + $0x1f4] sm:$0xf] %vm1654_vm3, %v1651_v39 }
 0x18b   : > { %1685 = vst.msk [vmem:[%s2389_s24 + $0x78] sm:$0xf] %vm1654_vm3, %v1556_v40  ;;  %v1057_v43 = vpop.f32.mrf.mxu2  ;;  %v1137_v44 = vpop.f32.mrf.mxu3 }
 0x18c   : > { %1717 = vst.msk [vmem:[%s2389_s24 + $0xf8] sm:$0xf] %vm1654_vm3, %v1588_v42  ;;  %vm1236_vm7 = vcmp.gt.f32.partialorder %v1057_v43, 0.0  ;;  %v1364_v45 = vmul.f32 0.2, %v1057_v43  ;;  %vm1268_vm8 = vcmp.gt.f32.partialorder %v1137_v44, 0.0  ;;  %v899_v46 = vpop.f32.mrf.mxu0  ;;  %v979_v47 = vpop.f32.mrf.mxu1 }
 0x18d   : > { %v1396_v48 = vmul.f32 0.2, %v1137_v44  ;;  %vm1173_vm9 = vcmp.gt.f32.partialorder %v899_v46, 0.0  ;;  %v1301_v49 = vmul.f32 0.2, %v899_v46  ;;  %vm1205_vm10 = vcmp.gt.f32.partialorder %v979_v47, 0.0 }
 0x18e   : > { %v1492_v50 = vsel %vm1236_vm7, %v1057_v43, %v1364_v45  ;;  %v1333_v51 = vmul.f32 0.2, %v979_v47 }
 0x18f   : > { %v1620_v52 = vpack.c.bf16 %v1492_v50, %v1492_v50  ;;  %v1524_v53 = vsel %vm1268_vm8, %v1137_v44, %v1396_v48  ;;  %v1429_v54 = vsel %vm1173_vm9, %v899_v46, %v1301_v49 }
 0x190   : > { %v1652_v55 = vpack.c.bf16 %v1524_v53, %v1524_v53  ;;  %v1557_v56 = vpack.c.bf16 %v1429_v54, %v1429_v54  ;;  %v1461_v57 = vsel %vm1205_vm10, %v979_v47, %v1333_v51 }
 0x191   : > { %1749 = vst.msk [vmem:[%s2389_s24 + $0x178] sm:$0xf] %vm1654_vm3, %v1620_v52  ;;  %v1589_v58 = vpack.c.bf16 %v1461_v57, %v1461_v57 }
 0x192   : > { %1781 = vst.msk [vmem:[%s2389_s24 + $0x1f8] sm:$0xf] %vm1654_vm3, %v1652_v55 }
 0x193   : > { %1686 = vst.msk [vmem:[%s2389_s24 + $0x7c] sm:$0xf] %vm1654_vm3, %v1557_v56  ;;  %v1059_v59 = vpop.f32.mrf.mxu2  ;;  %v1139_v60 = vpop.f32.mrf.mxu3 }
 0x194   : > { %1718 = vst.msk [vmem:[%s2389_s24 + $0xfc] sm:$0xf] %vm1654_vm3, %v1589_v58  ;;  %vm1237_vm11 = vcmp.gt.f32.partialorder %v1059_v59, 0.0  ;;  %v1365_v61 = vmul.f32 0.2, %v1059_v59  ;;  %vm1269_vm12 = vcmp.gt.f32.partialorder %v1139_v60, 0.0 }
 0x195   : > { %v1397_v62 = vmul.f32 0.2, %v1139_v60 }
 0x196   : > { %v1493_v63 = vsel %vm1237_vm11, %v1059_v59, %v1365_v61 }
 0x197   : > { %v1621_v0 = vpack.c.bf16 %v1493_v63, %v1493_v63  ;;  %v1525_v1 = vsel %vm1269_vm12, %v1139_v60, %v1397_v62 }
 0x198   : > { %v1653_v2 = vpack.c.bf16 %v1525_v1, %v1525_v1 }
 0x199   : > { %1750 = vst.msk [vmem:[%s2389_s24 + $0x17c] sm:$0xf] %vm1654_vm3, %v1621_v0 }
 0x19a   : > { %1782 = vst.msk [vmem:[%s2389_s24 + $0x1fc] sm:$0xf] %vm1654_vm3, %v1653_v2 }
 0x19b PF: > { %s12_s9 = sadd.s32 1, %s2272_s9  }
 0x19c   : > { %p9_p4 = scmp.ge.s32.totalorder %s12_s9, 4  }
 0x19e   :  { %11 = sbr.rel (!%p9_p4) target bundleno = 1 (0x1), region = 58 }

// kernel: discriminator_forward.9
= control target key start
LH: loop header
LB: loop body
LE: loop exit
PB: predicated region body
PF: predicated region fallthrough
CT: control target
= control target key end

     0   :  { %s704_s15 = smov 0   ;;  %s946_s0 = inlined_call_operand.vmem [shape: bf16[512,64], index: 0, kind: input, shape index: {}]   ;;  %s947_s1 = inlined_call_operand.vmem [shape: f32[2,64], index: 1, kind: input, shape index: {}]   ;;  %s948_s2 = inlined_call_operand.vmem [shape: f32[1,64], index: 2, kind: input, shape index: {}]   ;;  %s949_s3 = inlined_call_operand.vmem [shape: f32[1,64], index: 3, kind: input, shape index: {}]   ;;  %s950_s4 = inlined_call_operand.vmem [shape: bf16[512,64], index: 4, kind: output, shape index: {}]  }
   0x1 LB: > { %s571_s16 = sadd.s32 4294967295, %s677_s15   ;;  %p575_p0 = scmp.ge.s32.totalorder %s677_s15, 1  ;;  %s677_s15 = sphi %s704_s15, %s14_s15  }
   0x2   : > { %p163_p1 = scmp.lt.s32.totalorder %s677_s15, 3 }
   0x4   : > { %p164_p2 = pnand %p575_p0, %p163_p1 }
   0x5   : > { %s576_s17 = sshll.u32 (!%p164_p2), %s571_s16, 5 }
   0x6   : > { %167 = sbr.rel (%p164_p2) target bundleno = 94 (0x5e), region = 36  ;;  %p190_p3 = scmp.lt.s32.totalorder (!%p164_p2), %s576_s17, 63 }
   0xb   : > { %v202_v0 = vld [vmem:[%s947_s1 + $0x1] sm:$0x1]  ;;  %s954_s17 = smov (!%p190_p3, %s576_s17), 63  ;;  %v204_v19 = vld [vmem:[%s948_s2] sm:$0x1]  ;;  %vm482_vm3 = vcmask 519168  }
   0xc   : > { %v203_v1 = vmul.f32 0.001953125, %v202_v0  ;;  %s577_s20 = sshll.u32 %s954_s17, 2  ;;  %v201_v31 = vld [vmem:[%s947_s1] sm:$0x1] }
   0xd   : > { %s723_s23 = scalar_lea.vmem %s946_s0, %s577_s20  ;;  %v217_v42 = vld [vmem:[%s949_s3] sm:$0x1]  ;;  %s808_s6 = scalar_lea.vmem %s950_s4, %s577_s20 }
   0xe   : > { %v205_v2 = vadd.f32 1e-05, %v203_v1  ;;  %v583_v7 = vld [vmem:[%s723_s23] sm:$0xff]   ;;  %v646_v8 = vld [vmem:[%s723_s23 + $0x8] sm:$0xff]   ;;  %v647_v9 = vld [vmem:[%s723_s23 + $0x10] sm:$0xff]  }
   0xf   : > { %v648_v11 = vld [vmem:[%s723_s23 + $0x18] sm:$0xff]   ;;  %v649_v12 = vld [vmem:[%s723_s23 + $0x20] sm:$0xff]   ;;  %v584_v14 = vunpack.c.l.bf16 %v583_v7  ;;  %v585_v15 = vunpack.c.h.bf16 %v583_v7  ;;  %v588_v16 = vunpack.c.l.bf16 %v646_v8  ;;  %v650_v17 = vld [vmem:[%s723_s23 + $0x28] sm:$0xff]   ;;  %v589_v21 = vunpack.c.h.bf16 %v646_v8 }
  0x10   : > { %669 = vrsqrt.f32 %v205_v2  ;;  %vm212_vm0 = vweird.f32 %v205_v2  ;;  %v651_v18 = vld [vmem:[%s723_s23 + $0x30] sm:$0xff]   ;;  %v592_v22 = vunpack.c.l.bf16 %v647_v9  ;;  %v593_v23 = vunpack.c.h.bf16 %v647_v9  ;;  %v740_v24 = vld [vmem:[%s723_s23 + $0x38] sm:$0xff]   ;;  %v743_v29 = vld [vmem:[%s723_s23 + $0x40] sm:$0xff]  }
  0x11   : > { %v596_v25 = vunpack.c.l.bf16 %v648_v11  ;;  %v597_v26 = vunpack.c.h.bf16 %v648_v11  ;;  %v600_v27 = vunpack.c.l.bf16 %v649_v12  ;;  %v601_v28 = vunpack.c.h.bf16 %v649_v12  ;;  %v746_v30 = vld [vmem:[%s723_s23 + $0x48] sm:$0xff]   ;;  %v754_v36 = vld [vmem:[%s723_s23 + $0x50] sm:$0xff]   ;;  %v759_v41 = vld [vmem:[%s723_s23 + $0x58] sm:$0xff]  }
  0x12   : > { %v604_v33 = vunpack.c.l.bf16 %v650_v17  ;;  %v605_v34 = vunpack.c.h.bf16 %v650_v17  ;;  %v608_v35 = vunpack.c.l.bf16 %v651_v18  ;;  %v609_v38 = vunpack.c.h.bf16 %v651_v18  ;;  %v769_v47 = vld [vmem:[%s723_s23 + $0x60] sm:$0xff]  }
  0x13   : > { %v612_v39 = vunpack.c.l.bf16 %v740_v24  ;;  %v613_v40 = vunpack.c.h.bf16 %v740_v24  ;;  %v616_v43 = vunpack.c.l.bf16 %v743_v29  ;;  %v617_v44 = vunpack.c.h.bf16 %v743_v29 }
  0x14   : > { %v620_v45 = vunpack.c.l.bf16 %v746_v30  ;;  %v621_v46 = vunpack.c.h.bf16 %v746_v30  ;;  %v624_v50 = vunpack.c.l.bf16 %v754_v36  ;;  %v625_v51 = vunpack.c.h.bf16 %v754_v36 }
  0x15   : > { %v628_v52 = vunpack.c.l.bf16 %v759_v41  ;;  %v629_v53 = vunpack.c.h.bf16 %v759_v41  ;;  %v632_v54 = vunpack.c.l.bf16 %v769_v47  ;;  %v633_v55 = vunpack.c.h.bf16 %v769_v47 }
  0x16   : > { %v670_v3 = vpop.eup %669 }
  0x17   : > { %v207_v4 = vmul.f32 %v670_v3, %v205_v2  ;;  %vm213_vm1 = vweird.f32 %v670_v3 }
  0x18   : > { %vm730_vm2 = vmor %vm212_vm0, %vm213_vm1 }
  0x19   : > { %v208_v5 = vmul.f32 %v670_v3, %v207_v4 }
  0x1b   : > { %v209_v6 = vmul.f32 0.5, %v208_v5 }
  0x1d   : > { %v210_v10 = vsub.f32 1.5, %v209_v6 }
  0x1f   : > { %v211_v20 = vmul.f32 %v670_v3, %v210_v10 }
  0x21   : > { %v215_v32 = vsel %vm730_vm2, %v670_v3, %v211_v20 }
  0x22   : > { %v216_v37 = vmul.f32 %v215_v32, %v204_v19 }
  0x24   : > { %v218_v48 = vmul.f32 %v216_v37, %v201_v31  ;;  %v771_v49 = vperm.slane %v216_v37, 0 }
  0x26   : > { %v219_v56 = vsub.f32 %v217_v42, %v218_v48  ;;  %v287_v57 = vmul.f32 %v584_v14, %v771_v49  ;;  %v288_v58 = vmul.f32 %v585_v15, %v771_v49  ;;  %v289_v59 = vmul.f32 %v588_v16, %v771_v49 }
  0x27   : > { %v290_v60 = vmul.f32 %v589_v21, %v771_v49  ;;  %v291_v61 = vmul.f32 %v592_v22, %v771_v49  ;;  %v292_v62 = vmul.f32 %v593_v23, %v771_v49  ;;  %v293_v63 = vmul.f32 %v596_v25, %v771_v49 }
  0x28   : > { %v786_v0 = vperm.slane %v219_v56, 0  ;;  %v294_v1 = vmul.f32 %v597_v26, %v771_v49  ;;  %v295_v2 = vmul.f32 %v600_v27, %v771_v49  ;;  %v296_v3 = vmul.f32 %v601_v28, %v771_v49 }
  0x29   : > { %v297_v4 = vmul.f32 %v604_v33, %v771_v49  ;;  %v298_v5 = vmul.f32 %v605_v34, %v771_v49  ;;  %v299_v6 = vmul.f32 %v608_v35, %v771_v49  ;;  %v300_v7 = vmul.f32 %v609_v38, %v771_v49 }
  0x2a   : > { %v322_v8 = vadd.f32 %v786_v0, %v287_v57  ;;  %v323_v9 = vadd.f32 %v786_v0, %v288_v58  ;;  %v324_v10 = vadd.f32 %v786_v0, %v289_v59  ;;  %v325_v11 = vadd.f32 %v786_v0, %v290_v60 }
  0x2b   : > { %v326_v12 = vadd.f32 %v786_v0, %v291_v61  ;;  %v327_v13 = vadd.f32 %v786_v0, %v292_v62  ;;  %v328_v14 = vadd.f32 %v786_v0, %v293_v63  ;;  %v329_v15 = vadd.f32 %v786_v0, %v294_v1 }
  0x2c   : > { %vm354_vm4 = vcmp.gt.f32.partialorder %v322_v8, 0.0  ;;  %v386_v16 = vmul.f32 0.2, %v322_v8  ;;  %vm355_vm5 = vcmp.gt.f32.partialorder %v323_v9, 0.0  ;;  %v387_v17 = vmul.f32 0.2, %v323_v9 }
  0x2d   : > { %vm356_vm6 = vcmp.gt.f32.partialorder %v324_v10, 0.0  ;;  %v388_v18 = vmul.f32 0.2, %v324_v10  ;;  %vm357_vm7 = vcmp.gt.f32.partialorder %v325_v11, 0.0  ;;  %v389_v19 = vmul.f32 0.2, %v325_v11 }
  0x2e   : > { %v418_v20 = vsel %vm354_vm4, %v322_v8, %v386_v16  ;;  %v419_v21 = vsel %vm355_vm5, %v323_v9, %v387_v17  ;;  %vm358_vm8 = vcmp.gt.f32.partialorder %v326_v12, 0.0  ;;  %v390_v22 = vmul.f32 0.2, %v326_v12 }
  0x2f   : > { %v450_v23 = vpack.c.bf16 %v418_v20, %v418_v20  ;;  %v451_v25 = vpack.c.bf16 %v419_v21, %v419_v21  ;;  %v420_v26 = vsel %vm356_vm6, %v324_v10, %v388_v18  ;;  %v421_v27 = vsel %vm357_vm7, %v325_v11, %v389_v19 }
  0x30   : > { %v452_v28 = vpack.c.bf16 %v420_v26, %v420_v26  ;;  %v453_v31 = vpack.c.bf16 %v421_v27, %v421_v27  ;;  %v422_v32 = vsel %vm358_vm8, %v326_v12, %v390_v22  ;;  %vm359_vm9 = vcmp.gt.f32.partialorder %v327_v13, 0.0 }
  0x31   : > { %483 = vst.msk [vmem:[%s808_s6] sm:$0xf] %vm482_vm3, %v450_v23  ;;  %v454_v33 = vpack.c.bf16 %v422_v32, %v422_v32  ;;  %v391_v34 = vmul.f32 0.2, %v327_v13  ;;  %vm360_vm10 = vcmp.gt.f32.partialorder %v328_v14, 0.0  ;;  %vm361_vm11 = vcmp.gt.f32.partialorder %v329_v15, 0.0 }
  0x32   : > { %484 = vst.msk [vmem:[%s808_s6 + $0x4] sm:$0xf] %vm482_vm3, %v451_v25  ;;  %v392_v35 = vmul.f32 0.2, %v328_v14  ;;  %v393_v37 = vmul.f32 0.2, %v329_v15  ;;  %v330_v38 = vadd.f32 %v786_v0, %v295_v2  ;;  %v331_v42 = vadd.f32 %v786_v0, %v296_v3 }
  0x33   : > { %485 = vst.msk [vmem:[%s808_s6 + $0x8] sm:$0xf] %vm482_vm3, %v452_v28  ;;  %v423_v48 = vsel %vm359_vm9, %v327_v13, %v391_v34  ;;  %v332_v56 = vadd.f32 %v786_v0, %v297_v4  ;;  %v333_v57 = vadd.f32 %v786_v0, %v298_v5  ;;  %v334_v58 = vadd.f32 %v786_v0, %v299_v6 }
  0x34   : > { %486 = vst.msk [vmem:[%s808_s6 + $0xc] sm:$0xf] %vm482_vm3, %v453_v31  ;;  %v455_v59 = vpack.c.bf16 %v423_v48, %v423_v48  ;;  %v424_v60 = vsel %vm360_vm10, %v328_v14, %v392_v35  ;;  %v425_v61 = vsel %vm361_vm11, %v329_v15, %v393_v37  ;;  %vm362_vm12 = vcmp.gt.f32.partialorder %v330_v38, 0.0 }
  0x35   : > { %487 = vst.msk [vmem:[%s808_s6 + $0x10] sm:$0xf] %vm482_vm3, %v454_v33  ;;  %v456_v62 = vpack.c.bf16 %v424_v60, %v424_v60  ;;  %v457_v63 = vpack.c.bf16 %v425_v61, %v425_v61  ;;  %v394_v1 = vmul.f32 0.2, %v330_v38  ;;  %vm363_vm13 = vcmp.gt.f32.partialorder %v331_v42, 0.0  ;;  %v658_v61 = vld [vmem:[%s723_s23 + $0x68] sm:$0xff]  }
  0x36   : > { %488 = vst.msk [vmem:[%s808_s6 + $0x14] sm:$0xf] %vm482_vm3, %v455_v59  ;;  %v395_v2 = vmul.f32 0.2, %v331_v42  ;;  %vm364_vm14 = vcmp.gt.f32.partialorder %v332_v56, 0.0  ;;  %vm365_vm15 = vcmp.gt.f32.partialorder %v333_v57, 0.0  ;;  %v335_v3 = vadd.f32 %v786_v0, %v300_v7 }
  0x37   : > { %489 = vst.msk [vmem:[%s808_s6 + $0x18] sm:$0xf] %vm482_vm3, %v456_v62  ;;  %v426_v4 = vsel %vm362_vm12, %v330_v38, %v394_v1  ;;  %v396_v5 = vmul.f32 0.2, %v332_v56  ;;  %v397_v6 = vmul.f32 0.2, %v333_v57  ;;  %v301_v8 = vmul.f32 %v612_v39, %v771_v49 }
  0x38   : > { %490 = vst.msk [vmem:[%s808_s6 + $0x1c] sm:$0xf] %vm482_vm3, %v457_v63  ;;  %v458_v9 = vpack.c.bf16 %v426_v4, %v426_v4  ;;  %v427_v10 = vsel %vm363_vm13, %v331_v42, %v395_v2  ;;  %vm366_vm0 = vcmp.gt.f32.partialorder %v334_v58, 0.0  ;;  %v398_v11 = vmul.f32 0.2, %v334_v58 }
  0x39   : > { %v459_v12 = vpack.c.bf16 %v427_v10, %v427_v10  ;;  %v428_v13 = vsel %vm364_vm14, %v332_v56, %v396_v5  ;;  %v429_v7 = vsel %vm365_vm15, %v333_v57, %v397_v6  ;;  %vm367_vm1 = vcmp.gt.f32.partialorder %v335_v3, 0.0 }
  0x3a   : > { %491 = vst.msk [vmem:[%s808_s6 + $0x20] sm:$0xf] %vm482_vm3, %v458_v9  ;;  %v460_v14 = vpack.c.bf16 %v428_v13, %v428_v13  ;;  %v461_v15 = vpack.c.bf16 %v429_v7, %v429_v7  ;;  %v430_v16 = vsel %vm366_vm0, %v334_v58, %v398_v11  ;;  %v399_v17 = vmul.f32 0.2, %v335_v3 }
  0x3b   : > { %492 = vst.msk [vmem:[%s808_s6 + $0x24] sm:$0xf] %vm482_vm3, %v459_v12  ;;  %v462_v39 = vpack.c.bf16 %v430_v16, %v430_v16  ;;  %v336_v18 = vadd.f32 %v786_v0, %v301_v8  ;;  %v302_v19 = vmul.f32 %v613_v40, %v771_v49  ;;  %v303_v20 = vmul.f32 %v616_v43, %v771_v49 }
  0x3c   : > { %493 = vst.msk [vmem:[%s808_s6 + $0x28] sm:$0xf] %vm482_vm3, %v460_v14  ;;  %v431_v21 = vsel %vm367_vm1, %v335_v3, %v399_v17  ;;  %v304_v22 = vmul.f32 %v617_v44, %v771_v49  ;;  %v305_v23 = vmul.f32 %v620_v45, %v771_v49  ;;  %v306_v24 = vmul.f32 %v621_v46, %v771_v49  ;;  %v659_v14 = vld [vmem:[%s723_s23 + $0x70] sm:$0xff]  }
  0x3d   : > { %494 = vst.msk [vmem:[%s808_s6 + $0x2c] sm:$0xf] %vm482_vm3, %v461_v15  ;;  %v463_v40 = vpack.c.bf16 %v431_v21, %v431_v21  ;;  %vm368_vm2 = vcmp.gt.f32.partialorder %v336_v18, 0.0  ;;  %v400_v43 = vmul.f32 0.2, %v336_v18  ;;  %v337_v25 = vadd.f32 %v786_v0, %v302_v19  ;;  %v660_v21 = vld [vmem:[%s723_s23 + $0x78] sm:$0xff]  }
  0x3e   : > { %495 = vst.msk [vmem:[%s808_s6 + $0x30] sm:$0xf] %vm482_vm3, %v462_v39  ;;  %v338_v29 = vadd.f32 %v786_v0, %v303_v20  ;;  %v339_v44 = vadd.f32 %v786_v0, %v304_v22  ;;  %v340_v45 = vadd.f32 %v786_v0, %v305_v23  ;;  %v341_v26 = vadd.f32 %v786_v0, %v306_v24 }
  0x3f   : > { %496 = vst.msk [vmem:[%s808_s6 + $0x34] sm:$0xf] %vm482_vm3, %v463_v40  ;;  %v432_v30 = vsel %vm368_vm2, %v336_v18, %v400_v43  ;;  %vm369_vm4 = vcmp.gt.f32.partialorder %v337_v25, 0.0  ;;  %v401_v46 = vmul.f32 0.2, %v337_v25  ;;  %v307_v27 = vmul.f32 %v624_v50, %v771_v49 }
  0x40   : > { %v464_v28 = vpack.c.bf16 %v432_v30, %v432_v30  ;;  %vm370_vm5 = vcmp.gt.f32.partialorder %v338_v29, 0.0  ;;  %v402_v31 = vmul.f32 0.2, %v338_v29  ;;  %vm371_vm6 = vcmp.gt.f32.partialorder %v339_v44, 0.0 }
  0x41   : > { %v433_v32 = vsel %vm369_vm4, %v337_v25, %v401_v46  ;;  %v403_v33 = vmul.f32 0.2, %v339_v44  ;;  %vm372_vm7 = vcmp.gt.f32.partialorder %v340_v45, 0.0  ;;  %v404_v34 = vmul.f32 0.2, %v340_v45 }
  0x42   : > { %497 = vst.msk [vmem:[%s808_s6 + $0x38] sm:$0xf] %vm482_vm3, %v464_v28  ;;  %v465_v35 = vpack.c.bf16 %v433_v32, %v433_v32  ;;  %v434_v37 = vsel %vm370_vm5, %v338_v29, %v402_v31  ;;  %vm373_vm8 = vcmp.gt.f32.partialorder %v341_v26, 0.0  ;;  %v405_v38 = vmul.f32 0.2, %v341_v26 }
  0x43   : > { %v466_v42 = vpack.c.bf16 %v434_v37, %v434_v37  ;;  %v435_v50 = vsel %vm371_vm6, %v339_v44, %v403_v33  ;;  %v436_v48 = vsel %vm372_vm7, %v340_v45, %v404_v34  ;;  %v342_v56 = vadd.f32 %v786_v0, %v307_v27 }
  0x44   : > { %498 = vst.msk [vmem:[%s808_s6 + $0x3c] sm:$0xf] %vm482_vm3, %v465_v35  ;;  %v467_v57 = vpack.c.bf16 %v435_v50, %v435_v50  ;;  %v468_v58 = vpack.c.bf16 %v436_v48, %v436_v48  ;;  %v437_v59 = vsel %vm373_vm8, %v341_v26, %v405_v38  ;;  %v308_v60 = vmul.f32 %v625_v51, %v771_v49 }
  0x45   : > { %499 = vst.msk [vmem:[%s808_s6 + $0x40] sm:$0xf] %vm482_vm3, %v466_v42  ;;  %v469_v62 = vpack.c.bf16 %v437_v59, %v437_v59  ;;  %vm374_vm9 = vcmp.gt.f32.partialorder %v342_v56, 0.0  ;;  %v406_v63 = vmul.f32 0.2, %v342_v56  ;;  %v309_v1 = vmul.f32 %v628_v52, %v771_v49 }
  0x46   : > { %500 = vst.msk [vmem:[%s808_s6 + $0x44] sm:$0xf] %vm482_vm3, %v467_v57  ;;  %v343_v2 = vadd.f32 %v786_v0, %v308_v60  ;;  %v310_v36 = vmul.f32 %v629_v53, %v771_v49  ;;  %v311_v51 = vmul.f32 %v632_v54, %v771_v49  ;;  %v312_v3 = vmul.f32 %v633_v55, %v771_v49 }
  0x47   : > { %501 = vst.msk [vmem:[%s808_s6 + $0x48] sm:$0xf] %vm482_vm3, %v468_v58  ;;  %v438_v52 = vsel %vm374_vm9, %v342_v56, %v406_v63  ;;  %v344_v4 = vadd.f32 %v786_v0, %v309_v1  ;;  %v636_v5 = vunpack.c.l.bf16 %v658_v61  ;;  %v637_v6 = vunpack.c.h.bf16 %v658_v61 }
  0x48   : > { %502 = vst.msk [vmem:[%s808_s6 + $0x4c] sm:$0xf] %vm482_vm3, %v469_v62  ;;  %v470_v41 = vpack.c.bf16 %v438_v52, %v438_v52  ;;  %vm375_vm10 = vcmp.gt.f32.partialorder %v343_v2, 0.0  ;;  %v407_v53 = vmul.f32 0.2, %v343_v2  ;;  %v345_v54 = vadd.f32 %v786_v0, %v310_v36 }
  0x49   : > { %vm376_vm11 = vcmp.gt.f32.partialorder %v344_v4, 0.0  ;;  %v408_v8 = vmul.f32 0.2, %v344_v4  ;;  %v346_v47 = vadd.f32 %v786_v0, %v311_v51  ;;  %v347_v55 = vadd.f32 %v786_v0, %v312_v3 }
  0x4a   : > { %503 = vst.msk [vmem:[%s808_s6 + $0x50] sm:$0xf] %vm482_vm3, %v470_v41  ;;  %v439_v9 = vsel %vm375_vm10, %v343_v2, %v407_v53  ;;  %vm377_vm12 = vcmp.gt.f32.partialorder %v345_v54, 0.0  ;;  %v409_v10 = vmul.f32 0.2, %v345_v54  ;;  %v313_v11 = vmul.f32 %v636_v5, %v771_v49 }
  0x4b   : > { %v471_v12 = vpack.c.bf16 %v439_v9, %v439_v9  ;;  %v440_v13 = vsel %vm376_vm11, %v344_v4, %v408_v8  ;;  %vm378_vm13 = vcmp.gt.f32.partialorder %v346_v47, 0.0  ;;  %v410_v7 = vmul.f32 0.2, %v346_v47 }
  0x4c   : > { %v472_v15 = vpack.c.bf16 %v440_v13, %v440_v13  ;;  %v441_v16 = vsel %vm377_vm12, %v345_v54, %v409_v10  ;;  %vm379_vm14 = vcmp.gt.f32.partialorder %v347_v55, 0.0  ;;  %v411_v17 = vmul.f32 0.2, %v347_v55 }
  0x4d   : > { %504 = vst.msk [vmem:[%s808_s6 + $0x54] sm:$0xf] %vm482_vm3, %v471_v12  ;;  %v473_v39 = vpack.c.bf16 %v441_v16, %v441_v16  ;;  %v442_v18 = vsel %vm378_vm13, %v346_v47, %v410_v7  ;;  %v348_v19 = vadd.f32 %v786_v0, %v313_v11  ;;  %v314_v20 = vmul.f32 %v637_v6, %v771_v49 }
  0x4e   : > { %505 = vst.msk [vmem:[%s808_s6 + $0x58] sm:$0xf] %vm482_vm3, %v472_v15  ;;  %v474_v22 = vpack.c.bf16 %v442_v18, %v442_v18  ;;  %v443_v23 = vsel %vm379_vm14, %v347_v55, %v411_v17  ;;  %v640_v24 = vunpack.c.l.bf16 %v659_v14  ;;  %v641_v40 = vunpack.c.h.bf16 %v659_v14 }
  0x4f   : > { %506 = vst.msk [vmem:[%s808_s6 + $0x5c] sm:$0xf] %vm482_vm3, %v473_v39  ;;  %v475_v43 = vpack.c.bf16 %v443_v23, %v443_v23  ;;  %vm380_vm15 = vcmp.gt.f32.partialorder %v348_v19, 0.0  ;;  %v412_v25 = vmul.f32 0.2, %v348_v19  ;;  %v349_v29 = vadd.f32 %v786_v0, %v314_v20 }
  0x50   : > { %507 = vst.msk [vmem:[%s808_s6 + $0x60] sm:$0xf] %vm482_vm3, %v474_v22  ;;  %v315_v44 = vmul.f32 %v640_v24, %v771_v49  ;;  %v316_v45 = vmul.f32 %v641_v40, %v771_v49  ;;  %v644_v26 = vunpack.c.l.bf16 %v660_v21  ;;  %v645_v30 = vunpack.c.h.bf16 %v660_v21 }
  0x51   : > { %508 = vst.msk [vmem:[%s808_s6 + $0x64] sm:$0xf] %vm482_vm3, %v475_v43  ;;  %v444_v46 = vsel %vm380_vm15, %v348_v19, %v412_v25  ;;  %vm381_vm0 = vcmp.gt.f32.partialorder %v349_v29, 0.0  ;;  %v413_v27 = vmul.f32 0.2, %v349_v29 }
  0x52   : > { %v476_v28 = vpack.c.bf16 %v444_v46, %v444_v46  ;;  %v350_v31 = vadd.f32 %v786_v0, %v315_v44  ;;  %v351_v32 = vadd.f32 %v786_v0, %v316_v45  ;;  %v317_v33 = vmul.f32 %v644_v26, %v771_v49 }
  0x53   : > { %v445_v34 = vsel %vm381_vm0, %v349_v29, %v413_v27  ;;  %v318_v35 = vmul.f32 %v645_v30, %v771_v49 }
  0x54   : > { %509 = vst.msk [vmem:[%s808_s6 + $0x68] sm:$0xf] %vm482_vm3, %v476_v28  ;;  %v477_v37 = vpack.c.bf16 %v445_v34, %v445_v34  ;;  %vm382_vm1 = vcmp.gt.f32.partialorder %v350_v31, 0.0  ;;  %v414_v38 = vmul.f32 0.2, %v350_v31  ;;  %vm383_vm2 = vcmp.gt.f32.partialorder %v351_v32, 0.0 }
  0x55   : > { %v415_v42 = vmul.f32 0.2, %v351_v32  ;;  %v352_v50 = vadd.f32 %v786_v0, %v317_v33  ;;  %v353_v48 = vadd.f32 %v786_v0, %v318_v35 }
  0x56   : > { %510 = vst.msk [vmem:[%s808_s6 + $0x6c] sm:$0xf] %vm482_vm3, %v477_v37  ;;  %v446_v56 = vsel %vm382_vm1, %v350_v31, %v414_v38 }
  0x57   : > { %v478_v57 = vpack.c.bf16 %v446_v56, %v446_v56  ;;  %v447_v49 = vsel %vm383_vm2, %v351_v32, %v415_v42  ;;  %vm384_vm4 = vcmp.gt.f32.partialorder %v352_v50, 0.0  ;;  %v416_v58 = vmul.f32 0.2, %v352_v50 }
  0x58   : > { %v479_v59 = vpack.c.bf16 %v447_v49, %v447_v49  ;;  %vm385_vm5 = vcmp.gt.f32.partialorder %v353_v48, 0.0  ;;  %v417_v60 = vmul.f32 0.2, %v353_v48 }
  0x59   : > { %511 = vst.msk [vmem:[%s808_s6 + $0x70] sm:$0xf] %vm482_vm3, %v478_v57  ;;  %v448_v61 = vsel %vm384_vm4, %v352_v50, %v416_v58 }
  0x5a   : > { %512 = vst.msk [vmem:[%s808_s6 + $0x74] sm:$0xf] %vm482_vm3, %v479_v59  ;;  %v480_v62 = vpack.c.bf16 %v448_v61, %v448_v61  ;;  %v449_v63 = vsel %vm385_vm5, %v353_v48, %v417_v60 }
  0x5b   : > { %v481_v0 = vpack.c.bf16 %v449_v63, %v449_v63 }
  0x5c   : > { %513 = vst.msk [vmem:[%s808_s6 + $0x78] sm:$0xf] %vm482_vm3, %v480_v62 }
  0x5d   : > { %514 = vst.msk [vmem:[%s808_s6 + $0x7c] sm:$0xf] %vm482_vm3, %v481_v0 }
  0x5e PF: > { %s14_s15 = sadd.s32 1, %s677_s15  }
  0x5f   : > { %p11_p4 = scmp.ge.s32.totalorder %s14_s15, 4  }
  0x61   :  { %13 = sbr.rel (!%p11_p4) target bundleno = 1 (0x1), region = 66 }

// kernel: discriminator_forward.8
= control target key start
LH: loop header
LB: loop body
LE: loop exit
PB: predicated region body
PF: predicated region fallthrough
CT: control target
= control target key end

     0   :  { %s2112_s12 = smov 0   ;;  %s2741_s0 = inlined_call_operand.vmem [shape: bf16[512,512], index: 0, kind: input, shape index: {}]   ;;  %s2742_s1 = inlined_call_operand.vmem [shape: bf16[512,64], index: 1, kind: input, shape index: {}]   ;;  %s2743_s2 = inlined_call_operand.vmem [shape: bf16[512,64], index: 2, kind: output, shape index: {0}]   ;;  %s2744_s3 = inlined_call_operand.vmem [shape: f32[2,64], index: 3, kind: output, shape index: {1}]  }
   0x1 LB: > { %s2118_s13 = sadd.s32 4294967295, %s2089_s12   ;;  %p1576_p0 = scmp.ge.s32.totalorder %s2089_s12, 1  ;;  %s2089_s12 = sphi %s2112_s12, %s14_s12  }
   0x2   : > { %p137_p1 = scmp.lt.s32.totalorder %s2089_s12, 3 }
   0x4   : > { %p138_p2 = pnand %p1576_p0, %p137_p1 }
   0x5   : > { %s1577_s11 = sshll.u32 (!%p138_p2), %s2118_s13, 5  ;;  %p1966_p4 = scmp.ne.s32.totalorder (!%p138_p2), %s2118_s13, 0 }
   0x6   : > { %141 = sbr.rel (%p138_p2) target bundleno = 611 (0x263), region = 28  ;;  %p163_p3 = scmp.lt.s32.totalorder (!%p138_p2), %s1577_s11, 63 }
   0xb   : > { %v2043_v0 = vld [vmem:[%s2742_s1 + $0x38] sm:$0xff]  ;;  %v2042_v4 = vld [vmem:[%s2742_s1 + $0x30] sm:$0xff]  ;;  %v2041_v8 = vld [vmem:[%s2742_s1 + $0x28] sm:$0xff]  ;;  %s2746_s11 = smov (!%p163_p3, %s1577_s11), 63  ;;  %vm1203_vm0 = vcmask 519168   ;;  %vm1236_vm1 = vcmask 523264  }
   0xc   : > { %v2051_v1 = vld [vmem:[%s2742_s1 + $0x78] sm:$0xff]  ;;  %815 = vmatpush.bf16.msra.mxu0 %v2043_v0  ;;  %v2050_v5 = vld [vmem:[%s2742_s1 + $0x70] sm:$0xff]  ;;  %v2049_v9 = vld [vmem:[%s2742_s1 + $0x68] sm:$0xff]  ;;  %s1971_s14 = sshll.u32 %s2746_s11, 4  ;;  %s1581_s7 = sshll.u32 %s2746_s11, 2 }
   0xd   : > { %v2059_v2 = vld [vmem:[%s2742_s1 + $0xb8] sm:$0xff]  ;;  %904 = vmatpush.bf16.msra.mxu1 %v2051_v1  ;;  %v2058_v6 = vld [vmem:[%s2742_s1 + $0xb0] sm:$0xff]  ;;  %v2057_v10 = vld [vmem:[%s2742_s1 + $0xa8] sm:$0xff]  ;;  %s2207_s21 = scalar_lea.vmem %s2741_s0, %s1971_s14  ;;  %s2305_s10 = scalar_lea.vmem %s2743_s2, %s1581_s7 }
   0xe   : > { %v2067_v3 = vld [vmem:[%s2742_s1 + $0xf8] sm:$0xff]  ;;  %993 = vmatpush.bf16.msra.mxu2 %v2059_v2  ;;  %v2066_v7 = vld [vmem:[%s2742_s1 + $0xf0] sm:$0xff]  ;;  %v2065_v11 = vld [vmem:[%s2742_s1 + $0xe8] sm:$0xff] }
   0xf   : > { %1082 = vmatpush.bf16.msra.mxu3 %v2067_v3  ;;  %v2040_v12 = vld [vmem:[%s2742_s1 + $0x20] sm:$0xff]  ;;  %v2039_v16 = vld [vmem:[%s2742_s1 + $0x18] sm:$0xff]  ;;  %v2038_v20 = vld [vmem:[%s2742_s1 + $0x10] sm:$0xff] }
  0x10   : > { %816 = vmatpush.bf16.msra.mxu0 %v2042_v4  ;;  %v2048_v13 = vld [vmem:[%s2742_s1 + $0x60] sm:$0xff]  ;;  %v2047_v17 = vld [vmem:[%s2742_s1 + $0x58] sm:$0xff]  ;;  %v2046_v21 = vld [vmem:[%s2742_s1 + $0x50] sm:$0xff] }
  0x11   : > { %905 = vmatpush.bf16.msra.mxu1 %v2050_v5  ;;  %v2056_v14 = vld [vmem:[%s2742_s1 + $0xa0] sm:$0xff]  ;;  %v2055_v18 = vld [vmem:[%s2742_s1 + $0x98] sm:$0xff]  ;;  %v2054_v22 = vld [vmem:[%s2742_s1 + $0x90] sm:$0xff] }
  0x12   : > { %994 = vmatpush.bf16.msra.mxu2 %v2058_v6  ;;  %v2064_v15 = vld [vmem:[%s2742_s1 + $0xe0] sm:$0xff]  ;;  %v2063_v19 = vld [vmem:[%s2742_s1 + $0xd8] sm:$0xff]  ;;  %v2062_v23 = vld [vmem:[%s2742_s1 + $0xd0] sm:$0xff] }
  0x13   : > { %1083 = vmatpush.bf16.msra.mxu3 %v2066_v7  ;;  %v2037_v24 = vld [vmem:[%s2742_s1 + $0x8] sm:$0xff]  ;;  %v2036_v28 = vld [vmem:[%s2742_s1] sm:$0xff]  ;;  %v1974_v33 = vld [vmem:[%s2207_s21 + $0xc] sm:$0xf0] }
  0x14   : > { %817 = vmatpush.bf16.msra.mxu0 %v2041_v8  ;;  %v2045_v25 = vld [vmem:[%s2742_s1 + $0x48] sm:$0xff]  ;;  %v2044_v29 = vld [vmem:[%s2742_s1 + $0x40] sm:$0xff]  ;;  %v1586_v35 = vld [vmem:[%s2207_s21 + $0x10] sm:$0xf0] }
  0x15   : > { %906 = vmatpush.bf16.msra.mxu1 %v2049_v9  ;;  %v2053_v26 = vld [vmem:[%s2742_s1 + $0x88] sm:$0xff]  ;;  %v2052_v30 = vld [vmem:[%s2742_s1 + $0x80] sm:$0xff]  ;;  %v1975_v37 = vld [vmem:[%s2207_s21 + $0x14] sm:$0xf0] }
  0x16   : > { %995 = vmatpush.bf16.msra.mxu2 %v2057_v10  ;;  %v2061_v27 = vld [vmem:[%s2742_s1 + $0xc8] sm:$0xff]  ;;  %v2060_v31 = vld [vmem:[%s2742_s1 + $0xc0] sm:$0xff]  ;;  %v1594_v39 = vld [vmem:[%s2207_s21 + $0x18] sm:$0xf0] }
  0x17   : > { %1084 = vmatpush.bf16.msra.mxu3 %v2065_v11  ;;  %v1584_v32 = vld [vmem:[%s2207_s21] sm:$0xf]  ;;  %v1972_v34 = vld [vmem:[%s2207_s21 + $0x4] sm:$0xf]  ;;  %v1592_v36 = vld [vmem:[%s2207_s21 + $0x8] sm:$0xf] }
  0x18   : > { %818 = vmatpush.bf16.msra.mxu0 %v2040_v12  ;;  %v1973_v38 = vld [vmem:[%s2207_s21 + $0xc] sm:$0xf]  ;;  %v1585_v40 = vor.u32 %v1974_v33, %v1584_v32  ;;  %v1589_v41 = vor.u32 %v1972_v34, %v1586_v35  ;;  %v1593_v42 = vor.u32 %v1975_v37, %v1592_v36  ;;  %v1600_v44 = vld [vmem:[%s2207_s21 + $0x20] sm:$0xf]  ;;  %v1978_v45 = vld [vmem:[%s2207_s21 + $0x2c] sm:$0xf0] }
  0x19   : > { %907 = vmatpush.bf16.msra.mxu1 %v2048_v13  ;;  %v1597_v43 = vor.u32 %v1973_v38, %v1594_v39  ;;  %v1976_v46 = vld [vmem:[%s2207_s21 + $0x24] sm:$0xf]  ;;  %v1602_v47 = vld [vmem:[%s2207_s21 + $0x30] sm:$0xf0]  ;;  %v1608_v48 = vld [vmem:[%s2207_s21 + $0x28] sm:$0xf]  ;;  %v1601_v52 = vor.u32 %v1978_v45, %v1600_v44 }
  0x1a   : > { %996 = vmatpush.bf16.msra.mxu2 %v2056_v14  ;;  %v1979_v49 = vld [vmem:[%s2207_s21 + $0x34] sm:$0xf0]  ;;  %v1977_v50 = vld [vmem:[%s2207_s21 + $0x2c] sm:$0xf]  ;;  %v1610_v51 = vld [vmem:[%s2207_s21 + $0x38] sm:$0xf0]  ;;  %v1605_v53 = vor.u32 %v1976_v46, %v1602_v47 }
  0x1b   : > { %1085 = vmatpush.bf16.msra.mxu3 %v2064_v15  ;;  %v1609_v54 = vor.u32 %v1979_v49, %v1608_v48  ;;  %v1613_v55 = vor.u32 %v1977_v50, %v1610_v51  ;;  %v1616_v56 = vld [vmem:[%s2207_s21 + $0x40] sm:$0xf]  ;;  %v1982_v57 = vld [vmem:[%s2207_s21 + $0x4c] sm:$0xf0]  ;;  %v1980_v58 = vld [vmem:[%s2207_s21 + $0x44] sm:$0xf] }
  0x1c   : > { %819 = vmatpush.bf16.msra.mxu0 %v2039_v16  ;;  %v1618_v59 = vld [vmem:[%s2207_s21 + $0x50] sm:$0xf0]  ;;  %v1624_v60 = vld [vmem:[%s2207_s21 + $0x48] sm:$0xf]  ;;  %v1983_v61 = vld [vmem:[%s2207_s21 + $0x54] sm:$0xf0]  ;;  %v1617_v0 = vor.u32 %v1982_v57, %v1616_v56 }
  0x1d   : > { %908 = vmatpush.bf16.msra.mxu1 %v2047_v17  ;;  %v1981_v62 = vld [vmem:[%s2207_s21 + $0x4c] sm:$0xf]  ;;  %v1626_v63 = vld [vmem:[%s2207_s21 + $0x58] sm:$0xf0]  ;;  %v1621_v1 = vor.u32 %v1980_v58, %v1618_v59  ;;  %v1625_v2 = vor.u32 %v1983_v61, %v1624_v60  ;;  %v1632_v4 = vld [vmem:[%s2207_s21 + $0x60] sm:$0xf] }
  0x1e   : > { %997 = vmatpush.bf16.msra.mxu2 %v2055_v18  ;;  %v1629_v3 = vor.u32 %v1981_v62, %v1626_v63  ;;  %v1986_v5 = vld [vmem:[%s2207_s21 + $0x6c] sm:$0xf0]  ;;  %v1984_v6 = vld [vmem:[%s2207_s21 + $0x64] sm:$0xf]  ;;  %v1634_v7 = vld [vmem:[%s2207_s21 + $0x70] sm:$0xf0] }
  0x1f   : > { %1086 = vmatpush.bf16.msra.mxu3 %v2063_v19  ;;  %v1640_v8 = vld [vmem:[%s2207_s21 + $0x68] sm:$0xf]  ;;  %v1987_v9 = vld [vmem:[%s2207_s21 + $0x74] sm:$0xf0]  ;;  %v1985_v10 = vld [vmem:[%s2207_s21 + $0x6c] sm:$0xf]  ;;  %v1633_v12 = vor.u32 %v1986_v5, %v1632_v4  ;;  %v1637_v13 = vor.u32 %v1984_v6, %v1634_v7 }
  0x20   : > { %820 = vmatpush.bf16.msra.mxu0 %v2038_v20  ;;  %v1642_v11 = vld [vmem:[%s2207_s21 + $0x78] sm:$0xf0]  ;;  %v1641_v14 = vor.u32 %v1987_v9, %v1640_v8  ;;  %v1648_v16 = vld [vmem:[%s2207_s21 + $0x80] sm:$0xf]  ;;  %v1990_v17 = vld [vmem:[%s2207_s21 + $0x8c] sm:$0xf0] }
  0x21   : > { %909 = vmatpush.bf16.msra.mxu1 %v2046_v21  ;;  %v1645_v15 = vor.u32 %v1985_v10, %v1642_v11  ;;  %v1988_v18 = vld [vmem:[%s2207_s21 + $0x84] sm:$0xf]  ;;  %v1650_v19 = vld [vmem:[%s2207_s21 + $0x90] sm:$0xf0]  ;;  %v1656_v20 = vld [vmem:[%s2207_s21 + $0x88] sm:$0xf] }
  0x22   : > { %998 = vmatpush.bf16.msra.mxu2 %v2054_v22  ;;  %v1991_v21 = vld [vmem:[%s2207_s21 + $0x94] sm:$0xf0]  ;;  %v1989_v22 = vld [vmem:[%s2207_s21 + $0x8c] sm:$0xf]  ;;  %v1672_v32 = vld [vmem:[%s2207_s21 + $0xa8] sm:$0xf] }
  0x23   : > { %1087 = vmatpush.bf16.msra.mxu3 %v2062_v23  ;;  %v1658_v23 = vld [vmem:[%s2207_s21 + $0x98] sm:$0xf0]  ;;  %v1995_v33 = vld [vmem:[%s2207_s21 + $0xb4] sm:$0xf0]  ;;  %v1993_v34 = vld [vmem:[%s2207_s21 + $0xac] sm:$0xf] }
  0x24   : > { %821 = vmatpush.bf16.msra.mxu0 %v2037_v24  ;;  %v1649_v24 = vor.u32 %v1990_v17, %v1648_v16  ;;  %v1674_v35 = vld [vmem:[%s2207_s21 + $0xb8] sm:$0xf0]  ;;  %v1673_v38 = vor.u32 %v1995_v33, %v1672_v32  ;;  %v1688_v44 = vld [vmem:[%s2207_s21 + $0xc8] sm:$0xf]  ;;  %v1999_v45 = vld [vmem:[%s2207_s21 + $0xd4] sm:$0xf0] }
  0x25   : > { %910 = vmatpush.bf16.msra.mxu1 %v2045_v25  ;;  %v1653_v25 = vor.u32 %v1988_v18, %v1650_v19  ;;  %v1677_v39 = vor.u32 %v1993_v34, %v1674_v35  ;;  %v1997_v46 = vld [vmem:[%s2207_s21 + $0xcc] sm:$0xf]  ;;  %v1690_v47 = vld [vmem:[%s2207_s21 + $0xd8] sm:$0xf0]  ;;  %v1689_v50 = vor.u32 %v1999_v45, %v1688_v44  ;;  %v1704_v56 = vld [vmem:[%s2207_s21 + $0xe8] sm:$0xf] }
  0x26   : > { %999 = vmatpush.bf16.msra.mxu2 %v2053_v26  ;;  %v1657_v26 = vor.u32 %v1991_v21, %v1656_v20  ;;  %v1693_v51 = vor.u32 %v1997_v46, %v1690_v47  ;;  %v2003_v57 = vld [vmem:[%s2207_s21 + $0xf4] sm:$0xf0]  ;;  %v2001_v58 = vld [vmem:[%s2207_s21 + $0xec] sm:$0xf]  ;;  %v1706_v59 = vld [vmem:[%s2207_s21 + $0xf8] sm:$0xf0] }
  0x27   : > { %1088 = vmatpush.bf16.msra.mxu3 %v2061_v27  ;;  %v1661_v27 = vor.u32 %v1989_v22, %v1658_v23  ;;  %v1705_v62 = vor.u32 %v2003_v57, %v1704_v56  ;;  %v1709_v63 = vor.u32 %v2001_v58, %v1706_v59  ;;  %v1720_v4 = vld [vmem:[%s2207_s21 + $0x108] sm:$0xf]  ;;  %v2007_v5 = vld [vmem:[%s2207_s21 + $0x114] sm:$0xf0]  ;;  %v2005_v6 = vld [vmem:[%s2207_s21 + $0x10c] sm:$0xf] }
  0x28   : > { %822 = vmatpush.bf16.msra.mxu0 %v2036_v28  ;;  %v1664_v28 = vld [vmem:[%s2207_s21 + $0xa0] sm:$0xf]  ;;  %v1722_v7 = vld [vmem:[%s2207_s21 + $0x118] sm:$0xf0]  ;;  %v2010_v22 = vld [vmem:[%s2207_s21 + $0x12c] sm:$0xf0] }
  0x29   : > { %911 = vmatpush.bf16.msra.mxu1 %v2044_v29  ;;  %v1994_v29 = vld [vmem:[%s2207_s21 + $0xac] sm:$0xf0]  ;;  %v1728_v21 = vld [vmem:[%s2207_s21 + $0x120] sm:$0xf]  ;;  %v2013_v56 = vld [vmem:[%s2207_s21 + $0x14c] sm:$0xf] }
  0x2a   : > { %1000 = vmatpush.bf16.msra.mxu2 %v2052_v30  ;;  %v1992_v30 = vld [vmem:[%s2207_s21 + $0xa4] sm:$0xf]  ;;  %v1665_v36 = vor.u32 %v1994_v29, %v1664_v28  ;;  %v2009_v28 = vld [vmem:[%s2207_s21 + $0x12c] sm:$0xf]  ;;  %v1738_v29 = vld [vmem:[%s2207_s21 + $0x138] sm:$0xf0]  ;;  %v1729_v33 = vor.u32 %v2010_v22, %v1728_v21 }
  0x2b   : > { %1089 = vmatpush.bf16.msra.mxu3 %v2060_v31  ;;  %823 = vmatmul.bf16.vlgmr.msra.gmra.mxu0 %v1585_v40  ;;  %v1666_v31 = vld [vmem:[%s2207_s21 + $0xb0] sm:$0xf0]  ;;  %v1680_v40 = vld [vmem:[%s2207_s21 + $0xc0] sm:$0xf]  ;;  %v1754_v57 = vld [vmem:[%s2207_s21 + $0x158] sm:$0xf0] }
  0x2c   : > { %912 = vmatmul.bf16.vlgmr.msra.gmra.mxu1 %v1589_v41  ;;  %v1669_v37 = vor.u32 %v1992_v30, %v1666_v31  ;;  %v1998_v41 = vld [vmem:[%s2207_s21 + $0xcc] sm:$0xf0]  ;;  %v2017_v21 = vld [vmem:[%s2207_s21 + $0x16c] sm:$0xf]  ;;  %v1770_v22 = vld [vmem:[%s2207_s21 + $0x178] sm:$0xf0] }
  0x2d   : > { %1001 = vmatmul.bf16.vlgmr.msra.gmra.mxu2 %v1593_v42  ;;  %v1996_v42 = vld [vmem:[%s2207_s21 + $0xc4] sm:$0xf]  ;;  %v1681_v48 = vor.u32 %v1998_v41, %v1680_v40 }
  0x2e   : > { %1090 = vmatmul.bf16.vlgmr.msra.gmra.mxu3 %v1597_v43  ;;  %v1682_v43 = vld [vmem:[%s2207_s21 + $0xd0] sm:$0xf0] }
  0x2f   : > { %v1685_v49 = vor.u32 %v1996_v42, %v1682_v43 }
  0x3b   : > { %828 = vmatmul.bf16.gmra.mxu0 %v1601_v52  ;;  %v1696_v52 = vld [vmem:[%s2207_s21 + $0xe0] sm:$0xf] }
  0x3c   : > { %917 = vmatmul.bf16.gmra.mxu1 %v1605_v53  ;;  %v2002_v53 = vld [vmem:[%s2207_s21 + $0xec] sm:$0xf0] }
  0x3d   : > { %1006 = vmatmul.bf16.gmra.mxu2 %v1609_v54  ;;  %v2000_v54 = vld [vmem:[%s2207_s21 + $0xe4] sm:$0xf]  ;;  %v1697_v60 = vor.u32 %v2002_v53, %v1696_v52  ;;  %v1746_v53 = vld [vmem:[%s2207_s21 + $0x150] sm:$0xf0] }
  0x3e   : > { %1095 = vmatmul.bf16.gmra.mxu3 %v1613_v55  ;;  %v1698_v55 = vld [vmem:[%s2207_s21 + $0xf0] sm:$0xf0]  ;;  %v2012_v52 = vld [vmem:[%s2207_s21 + $0x144] sm:$0xf] }
  0x3f   : > { %v1701_v61 = vor.u32 %v2000_v54, %v1698_v55  ;;  %v1752_v54 = vld [vmem:[%s2207_s21 + $0x148] sm:$0xf]  ;;  %v2015_v55 = vld [vmem:[%s2207_s21 + $0x154] sm:$0xf0] }
  0x4b   : > { %833 = vmatmul.bf16.gmra.mxu0 %v1617_v0  ;;  %v1712_v0 = vld [vmem:[%s2207_s21 + $0x100] sm:$0xf] }
  0x4c   : > { %922 = vmatmul.bf16.gmra.mxu1 %v1621_v1  ;;  %v2006_v1 = vld [vmem:[%s2207_s21 + $0x10c] sm:$0xf0] }
  0x4d   : > { %1011 = vmatmul.bf16.gmra.mxu2 %v1625_v2  ;;  %v2004_v2 = vld [vmem:[%s2207_s21 + $0x104] sm:$0xf]  ;;  %v1713_v8 = vor.u32 %v2006_v1, %v1712_v0 }
  0x4e   : > { %1100 = vmatmul.bf16.gmra.mxu3 %v1629_v3  ;;  %v1714_v3 = vld [vmem:[%s2207_s21 + $0x110] sm:$0xf0] }
  0x4f   : > { %v1717_v9 = vor.u32 %v2004_v2, %v1714_v3  ;;  %v1753_v2 = vor.u32 %v2015_v55, %v1752_v54  ;;  %v1757_v3 = vor.u32 %v2013_v56, %v1754_v57 }
  0x5b   : > { %838 = vmatmul.bf16.gmra.mxu0 %v1633_v12  ;;  %v1721_v12 = vor.u32 %v2007_v5, %v1720_v4 }
  0x5c   : > { %927 = vmatmul.bf16.gmra.mxu1 %v1637_v13  ;;  %v1725_v13 = vor.u32 %v2005_v6, %v1722_v7 }
  0x5d   : > { %1016 = vmatmul.bf16.gmra.mxu2 %v1641_v14 }
  0x5e   : > { %1105 = vmatmul.bf16.gmra.mxu3 %v1645_v15 }
  0x6b   : > { %843 = vmatmul.bf16.gmra.mxu0 %v1649_v24  ;;  %v2008_v24 = vld [vmem:[%s2207_s21 + $0x124] sm:$0xf] }
  0x6c   : > { %932 = vmatmul.bf16.gmra.mxu1 %v1653_v25  ;;  %v1730_v25 = vld [vmem:[%s2207_s21 + $0x130] sm:$0xf0] }
  0x6d   : > { %1021 = vmatmul.bf16.gmra.mxu2 %v1657_v26  ;;  %v1736_v26 = vld [vmem:[%s2207_s21 + $0x128] sm:$0xf]  ;;  %v1733_v34 = vor.u32 %v2008_v24, %v1730_v25 }
  0x6e   : > { %1110 = vmatmul.bf16.gmra.mxu3 %v1661_v27  ;;  %v2011_v27 = vld [vmem:[%s2207_s21 + $0x134] sm:$0xf0] }
  0x7b   : > { %848 = vmatmul.bf16.gmra.mxu0 %v1665_v36 }
  0x7c   : > { %937 = vmatmul.bf16.gmra.mxu1 %v1669_v37 }
  0x7d   : > { %1026 = vmatmul.bf16.gmra.mxu2 %v1673_v38  ;;  %v1737_v38 = vor.u32 %v2011_v27, %v1736_v26 }
  0x7e   : > { %1115 = vmatmul.bf16.gmra.mxu3 %v1677_v39  ;;  %v1741_v39 = vor.u32 %v2009_v28, %v1738_v29 }
  0x8b   : > { %853 = vmatmul.bf16.gmra.mxu0 %v1681_v48 }
  0x8c   : > { %942 = vmatmul.bf16.gmra.mxu1 %v1685_v49  ;;  %v1744_v49 = vld [vmem:[%s2207_s21 + $0x140] sm:$0xf] }
  0x8d   : > { %1031 = vmatmul.bf16.gmra.mxu2 %v1689_v50  ;;  %v2014_v50 = vld [vmem:[%s2207_s21 + $0x14c] sm:$0xf0] }
  0x8e   : > { %1120 = vmatmul.bf16.gmra.mxu3 %v1693_v51 }
  0x9b   : > { %858 = vmatmul.bf16.gmra.mxu0 %v1697_v60 }
  0x9c   : > { %947 = vmatmul.bf16.gmra.mxu1 %v1701_v61  ;;  %v1745_v61 = vor.u32 %v2014_v50, %v1744_v49  ;;  %v1784_v49 = vld [vmem:[%s2207_s21 + $0x188] sm:$0xf]  ;;  %v2023_v50 = vld [vmem:[%s2207_s21 + $0x194] sm:$0xf0] }
  0x9d   : > { %1036 = vmatmul.bf16.gmra.mxu2 %v1705_v62  ;;  %v1749_v62 = vor.u32 %v2012_v52, %v1746_v53  ;;  %v1786_v52 = vld [vmem:[%s2207_s21 + $0x198] sm:$0xf0] }
  0x9e   : > { %1125 = vmatmul.bf16.gmra.mxu3 %v1709_v63 }
  0xa8   : > { %v824_v10 = vpop.f32.mrf.mxu0 }
  0xa9   : > { %v913_v11 = vpop.f32.mrf.mxu1 }
  0xaa   : > { %v914_v14 = vadd.f32 %v913_v11, %v824_v10 }
  0xab   : > { %863 = vmatmul.bf16.gmra.mxu0 %v1713_v8 }
  0xac   : > { %952 = vmatmul.bf16.gmra.mxu1 %v1717_v9 }
  0xad   : > { %1041 = vmatmul.bf16.gmra.mxu2 %v1721_v12 }
  0xae   : > { %1130 = vmatmul.bf16.gmra.mxu3 %v1725_v13  ;;  %v1760_v13 = vld [vmem:[%s2207_s21 + $0x160] sm:$0xf] }
  0xb0   : > { %v1002_v15 = vpop.f32.mrf.mxu2  ;;  %v826_v18 = vpop.f32.mrf.mxu0 }
  0xb1   : > { %v1091_v16 = vpop.f32.mrf.mxu3  ;;  %v1003_v17 = vadd.f32 %v1002_v15, %v914_v14  ;;  %v915_v19 = vpop.f32.mrf.mxu1  ;;  %v2018_v14 = vld [vmem:[%s2207_s21 + $0x16c] sm:$0xf0] }
  0xb2   : > { %v916_v30 = vadd.f32 %v915_v19, %v826_v18  ;;  %v1768_v18 = vld [vmem:[%s2207_s21 + $0x168] sm:$0xf]  ;;  %v2019_v19 = vld [vmem:[%s2207_s21 + $0x174] sm:$0xf0]  ;;  %v1761_v26 = vor.u32 %v2018_v14, %v1760_v13  ;;  %v2024_v13 = vld [vmem:[%s2207_s21 + $0x1a4] sm:$0xf] }
  0xb3   : > { %v2300_v20 = vadd.f32 %v1091_v16, %v1003_v17  ;;  %v2016_v16 = vld [vmem:[%s2207_s21 + $0x164] sm:$0xf]  ;;  %v1762_v17 = vld [vmem:[%s2207_s21 + $0x170] sm:$0xf0] }
  0xb4   : > { %v1765_v27 = vor.u32 %v2016_v16, %v1762_v17  ;;  %v1794_v14 = vld [vmem:[%s2207_s21 + $0x1b0] sm:$0xf0]  ;;  %v2027_v16 = vld [vmem:[%s2207_s21 + $0x1b4] sm:$0xf0]  ;;  %v2025_v17 = vld [vmem:[%s2207_s21 + $0x1ac] sm:$0xf] }
  0xb5   : > { %v1171_v23 = vpack.c.bf16 %v2300_v20, %v2300_v20 }
  0xb7   : > { %1204 = vst.msk [vmem:[%s2305_s10] sm:$0xf] %vm1203_vm0, %v1171_v23 }
  0xb8   : > { %v1004_v31 = vpop.f32.mrf.mxu2  ;;  %v829_v36 = vpop.f32.mrf.mxu0 }
  0xb9   : > { %v1093_v32 = vpop.f32.mrf.mxu3  ;;  %v1005_v35 = vadd.f32 %v1004_v31, %v916_v30  ;;  %v918_v37 = vpop.f32.mrf.mxu1  ;;  %v1769_v31 = vor.u32 %v2019_v19, %v1768_v18  ;;  %v1802_v18 = vld [vmem:[%s2207_s21 + $0x1b8] sm:$0xf0] }
  0xba   : > { %v919_v42 = vadd.f32 %v918_v37, %v829_v36 }
  0xbb   : > { %v2319_v40 = vadd.f32 %v1093_v32, %v1005_v35  ;;  %868 = vmatmul.bf16.gmra.mxu0 %v1729_v33  ;;  %v1773_v32 = vor.u32 %v2017_v21, %v1770_v22 }
  0xbc   : > { %957 = vmatmul.bf16.gmra.mxu1 %v1733_v34 }
  0xbd   : > { %v1172_v41 = vpack.c.bf16 %v2319_v40, %v2319_v40  ;;  %1046 = vmatmul.bf16.gmra.mxu2 %v1737_v38 }
  0xbe   : > { %1135 = vmatmul.bf16.gmra.mxu3 %v1741_v39 }
  0xbf   : > { %1205 = vst.msk [vmem:[%s2305_s10 + $0x4] sm:$0xf] %vm1203_vm0, %v1172_v41 }
  0xc0   : > { %v1007_v43 = vpop.f32.mrf.mxu2  ;;  %v831_v46 = vpop.f32.mrf.mxu0 }
  0xc1   : > { %v1096_v44 = vpop.f32.mrf.mxu3  ;;  %v1008_v45 = vadd.f32 %v1007_v43, %v919_v42  ;;  %v920_v47 = vpop.f32.mrf.mxu1  ;;  %v1776_v43 = vld [vmem:[%s2207_s21 + $0x180] sm:$0xf] }
  0xc2   : > { %v921_v58 = vadd.f32 %v920_v47, %v831_v46  ;;  %v2020_v46 = vld [vmem:[%s2207_s21 + $0x184] sm:$0xf]  ;;  %v1778_v47 = vld [vmem:[%s2207_s21 + $0x190] sm:$0xf0] }
  0xc3   : > { %v2325_v48 = vadd.f32 %v1096_v44, %v1008_v45  ;;  %v2022_v44 = vld [vmem:[%s2207_s21 + $0x18c] sm:$0xf0]  ;;  %v1781_v57 = vor.u32 %v2020_v46, %v1778_v47  ;;  %v1810_v46 = vld [vmem:[%s2207_s21 + $0x1d0] sm:$0xf0]  ;;  %v1816_v47 = vld [vmem:[%s2207_s21 + $0x1c8] sm:$0xf] }
  0xc4   : > { %v1777_v56 = vor.u32 %v2022_v44, %v1776_v43  ;;  %v2030_v43 = vld [vmem:[%s2207_s21 + $0x1cc] sm:$0xf0] }
  0xc5   : > { %v1173_v51 = vpack.c.bf16 %v2325_v48, %v2325_v48 }
  0xc7   : > { %1206 = vst.msk [vmem:[%s2305_s10 + $0x8] sm:$0xf] %vm1203_vm0, %v1173_v51  ;;  %v2021_v51 = vld [vmem:[%s2207_s21 + $0x18c] sm:$0xf] }
  0xc8   : > { %v1009_v59 = vpop.f32.mrf.mxu2  ;;  %v834_v0 = vpop.f32.mrf.mxu0 }
  0xc9   : > { %v1098_v60 = vpop.f32.mrf.mxu3  ;;  %v1010_v63 = vadd.f32 %v1009_v59, %v921_v58  ;;  %v923_v1 = vpop.f32.mrf.mxu1 }
  0xca   : > { %v924_v6 = vadd.f32 %v923_v1, %v834_v0 }
  0xcb   : > { %v2339_v4 = vadd.f32 %v1098_v60, %v1010_v63  ;;  %873 = vmatmul.bf16.gmra.mxu0 %v1745_v61  ;;  %v1785_v61 = vor.u32 %v2023_v50, %v1784_v49  ;;  %v2031_v49 = vld [vmem:[%s2207_s21 + $0x1d4] sm:$0xf0]  ;;  %v2029_v50 = vld [vmem:[%s2207_s21 + $0x1cc] sm:$0xf] }
  0xcc   : > { %962 = vmatmul.bf16.gmra.mxu1 %v1749_v62  ;;  %v1789_v62 = vor.u32 %v2021_v51, %v1786_v52  ;;  %v1818_v51 = vld [vmem:[%s2207_s21 + $0x1d8] sm:$0xf0] }
  0xcd   : > { %v1174_v5 = vpack.c.bf16 %v2339_v4, %v2339_v4  ;;  %1051 = vmatmul.bf16.gmra.mxu2 %v1753_v2 }
  0xce   : > { %1140 = vmatmul.bf16.gmra.mxu3 %v1757_v3 }
  0xcf   : > { %1207 = vst.msk [vmem:[%s2305_s10 + $0xc] sm:$0xf] %vm1203_vm0, %v1174_v5 }
  0xd0   : > { %v1012_v7 = vpop.f32.mrf.mxu2  ;;  %v836_v10 = vpop.f32.mrf.mxu0 }
  0xd1   : > { %v1101_v8 = vpop.f32.mrf.mxu3  ;;  %v1013_v9 = vadd.f32 %v1012_v7, %v924_v6  ;;  %v925_v11 = vpop.f32.mrf.mxu1 }
  0xd2   : > { %v926_v23 = vadd.f32 %v925_v11, %v836_v10  ;;  %v2026_v10 = vld [vmem:[%s2207_s21 + $0x1ac] sm:$0xf0] }
  0xd3   : > { %v2345_v12 = vadd.f32 %v1101_v8, %v1013_v9  ;;  %v1792_v9 = vld [vmem:[%s2207_s21 + $0x1a0] sm:$0xf] }
  0xd5   : > { %v1175_v15 = vpack.c.bf16 %v2345_v12, %v2345_v12 }
  0xd7   : > { %1208 = vst.msk [vmem:[%s2305_s10 + $0x10] sm:$0xf] %vm1203_vm0, %v1175_v15  ;;  %v1800_v15 = vld [vmem:[%s2207_s21 + $0x1a8] sm:$0xf] }
  0xd8   : > { %v1014_v24 = vpop.f32.mrf.mxu2  ;;  %v839_v29 = vpop.f32.mrf.mxu0 }
  0xd9   : > { %v1103_v25 = vpop.f32.mrf.mxu3  ;;  %v1015_v28 = vadd.f32 %v1014_v24, %v926_v23  ;;  %v928_v30 = vpop.f32.mrf.mxu1  ;;  %v1793_v23 = vor.u32 %v2026_v10, %v1792_v9  ;;  %v1797_v24 = vor.u32 %v2024_v13, %v1794_v14  ;;  %v1824_v10 = vld [vmem:[%s2207_s21 + $0x1e0] sm:$0xf]  ;;  %v2032_v14 = vld [vmem:[%s2207_s21 + $0x1e4] sm:$0xf] }
  0xda   : > { %v929_v35 = vadd.f32 %v928_v30, %v839_v29  ;;  %v1805_v29 = vor.u32 %v2025_v17, %v1802_v18  ;;  %v2035_v17 = vld [vmem:[%s2207_s21 + $0x1f4] sm:$0xf0]  ;;  %v2033_v18 = vld [vmem:[%s2207_s21 + $0x1ec] sm:$0xf] }
  0xdb   : > { %v2359_v33 = vadd.f32 %v1103_v25, %v1015_v28  ;;  %878 = vmatmul.bf16.gmra.mxu0 %v1761_v26  ;;  %v1801_v28 = vor.u32 %v2027_v16, %v1800_v15  ;;  %v1826_v15 = vld [vmem:[%s2207_s21 + $0x1f0] sm:$0xf0]  ;;  %v1832_v16 = vld [vmem:[%s2207_s21 + $0x1e8] sm:$0xf] }
  0xdc   : > { %967 = vmatmul.bf16.gmra.mxu1 %v1765_v27 }
  0xdd   : > { %v1176_v34 = vpack.c.bf16 %v2359_v33, %v2359_v33  ;;  %1056 = vmatmul.bf16.gmra.mxu2 %v1769_v31 }
  0xde   : > { %1145 = vmatmul.bf16.gmra.mxu3 %v1773_v32 }
  0xdf   : > { %1209 = vst.msk [vmem:[%s2305_s10 + $0x14] sm:$0xf] %vm1203_vm0, %v1176_v34 }
  0xe0   : > { %v1017_v36 = vpop.f32.mrf.mxu2  ;;  %v841_v39 = vpop.f32.mrf.mxu0 }
  0xe1   : > { %v1106_v37 = vpop.f32.mrf.mxu3  ;;  %v1018_v38 = vadd.f32 %v1017_v36, %v929_v35  ;;  %v930_v41 = vpop.f32.mrf.mxu1 }
  0xe2   : > { %v931_v53 = vadd.f32 %v930_v41, %v841_v39  ;;  %v1808_v41 = vld [vmem:[%s2207_s21 + $0x1c0] sm:$0xf] }
  0xe3   : > { %v2365_v42 = vadd.f32 %v1106_v37, %v1018_v38 }
  0xe5   : > { %v1177_v45 = vpack.c.bf16 %v2365_v42, %v2365_v42 }
  0xe7   : > { %1210 = vst.msk [vmem:[%s2305_s10 + $0x18] sm:$0xf] %vm1203_vm0, %v1177_v45  ;;  %v2028_v45 = vld [vmem:[%s2207_s21 + $0x1c4] sm:$0xf] }
  0xe8   : > { %v1019_v54 = vpop.f32.mrf.mxu2  ;;  %v844_v59 = vpop.f32.mrf.mxu0 }
  0xe9   : > { %v1108_v55 = vpop.f32.mrf.mxu3  ;;  %v1020_v58 = vadd.f32 %v1019_v54, %v931_v53  ;;  %v933_v60 = vpop.f32.mrf.mxu1 }
  0xea   : > { %v934_v1 = vadd.f32 %v933_v60, %v844_v59  ;;  %v1817_v60 = vor.u32 %v2031_v49, %v1816_v47 }
  0xeb   : > { %v2379_v63 = vadd.f32 %v1108_v55, %v1020_v58  ;;  %883 = vmatmul.bf16.gmra.mxu0 %v1777_v56  ;;  %v1809_v55 = vor.u32 %v2030_v43, %v1808_v41  ;;  %v1813_v56 = vor.u32 %v2028_v45, %v1810_v46 }
  0xec   : > { %972 = vmatmul.bf16.gmra.mxu1 %v1781_v57 }
  0xed   : > { %v1178_v0 = vpack.c.bf16 %v2379_v63, %v2379_v63  ;;  %1061 = vmatmul.bf16.gmra.mxu2 %v1785_v61  ;;  %v1821_v61 = vor.u32 %v2029_v50, %v1818_v51 }
  0xee   : > { %1150 = vmatmul.bf16.gmra.mxu3 %v1789_v62 }
  0xef   : > { %1211 = vst.msk [vmem:[%s2305_s10 + $0x1c] sm:$0xf] %vm1203_vm0, %v1178_v0 }
  0xf0   : > { %v1022_v2 = vpop.f32.mrf.mxu2  ;;  %v846_v6 = vpop.f32.mrf.mxu0 }
  0xf1   : > { %v1111_v3 = vpop.f32.mrf.mxu3  ;;  %v1023_v5 = vadd.f32 %v1022_v2, %v934_v1  ;;  %v935_v7 = vpop.f32.mrf.mxu1 }
  0xf2   : > { %v936_v19 = vadd.f32 %v935_v7, %v846_v6 }
  0xf3   : > { %v2385_v8 = vadd.f32 %v1111_v3, %v1023_v5 }
  0xf5   : > { %v1179_v11 = vpack.c.bf16 %v2385_v8, %v2385_v8 }
  0xf7   : > { %1212 = vst.msk [vmem:[%s2305_s10 + $0x20] sm:$0xf] %vm1203_vm0, %v1179_v11  ;;  %v2034_v11 = vld [vmem:[%s2207_s21 + $0x1ec] sm:$0xf0] }
  0xf8   : > { %v1024_v21 = vpop.f32.mrf.mxu2  ;;  %v849_v26 = vpop.f32.mrf.mxu0 }
  0xf9   : > { %v1113_v22 = vpop.f32.mrf.mxu3  ;;  %v1025_v25 = vadd.f32 %v1024_v21, %v936_v19  ;;  %v938_v27 = vpop.f32.mrf.mxu1  ;;  %v1834_v19 = vld [vmem:[%s2207_s21 + $0x1f8] sm:$0xf0] }
  0xfa   : > { %v939_v32 = vadd.f32 %v938_v27, %v849_v26 }
  0xfb   : > { %v2399_v30 = vadd.f32 %v1113_v22, %v1025_v25  ;;  %888 = vmatmul.bf16.gmra.mxu0 %v1793_v23  ;;  %v1829_v25 = vor.u32 %v2032_v14, %v1826_v15 }
  0xfc   : > { %977 = vmatmul.bf16.gmra.mxu1 %v1797_v24  ;;  %v1825_v24 = vor.u32 %v2034_v11, %v1824_v10 }
  0xfd   : > { %v1180_v31 = vpack.c.bf16 %v2399_v30, %v2399_v30  ;;  %1066 = vmatmul.bf16.gmra.mxu2 %v1801_v28 }
  0xfe   : > { %1155 = vmatmul.bf16.gmra.mxu3 %v1805_v29  ;;  %v1833_v29 = vor.u32 %v2035_v17, %v1832_v16 }
  0xff   : > { %1213 = vst.msk [vmem:[%s2305_s10 + $0x24] sm:$0xf] %vm1203_vm0, %v1180_v31  ;;  %v1837_v31 = vor.u32 %v2033_v18, %v1834_v19 }
 0x100   : > { %v1027_v34 = vpop.f32.mrf.mxu2  ;;  %v851_v37 = vpop.f32.mrf.mxu0 }
 0x101   : > { %v1116_v35 = vpop.f32.mrf.mxu3  ;;  %v1028_v36 = vadd.f32 %v1027_v34, %v939_v32  ;;  %v940_v38 = vpop.f32.mrf.mxu1 }
 0x102   : > { %v941_v52 = vadd.f32 %v940_v38, %v851_v37 }
 0x103   : > { %v2405_v39 = vadd.f32 %v1116_v35, %v1028_v36 }
 0x105   : > { %v1181_v44 = vpack.c.bf16 %v2405_v39, %v2405_v39 }
 0x107   : > { %1214 = vst.msk [vmem:[%s2305_s10 + $0x28] sm:$0xf] %vm1203_vm0, %v1181_v44 }
 0x108   : > { %v1029_v53 = vpop.f32.mrf.mxu2  ;;  %v854_v58 = vpop.f32.mrf.mxu0 }
 0x109   : > { %v1118_v54 = vpop.f32.mrf.mxu3  ;;  %v1030_v57 = vadd.f32 %v1029_v53, %v941_v52  ;;  %v943_v59 = vpop.f32.mrf.mxu1 }
 0x10a   : > { %v944_v1 = vadd.f32 %v943_v59, %v854_v58 }
 0x10b   : > { %v2419_v62 = vadd.f32 %v1118_v54, %v1030_v57  ;;  %893 = vmatmul.bf16.gmra.mxu0 %v1809_v55 }
 0x10c   : > { %982 = vmatmul.bf16.gmra.mxu1 %v1813_v56 }
 0x10d   : > { %v1182_v0 = vpack.c.bf16 %v2419_v62, %v2419_v62  ;;  %1071 = vmatmul.bf16.gmra.mxu2 %v1817_v60 }
 0x10e   : > { %1160 = vmatmul.bf16.gmra.mxu3 %v1821_v61 }
 0x10f   : > { %1215 = vst.msk [vmem:[%s2305_s10 + $0x2c] sm:$0xf] %vm1203_vm0, %v1182_v0 }
 0x110   : > { %v1032_v2 = vpop.f32.mrf.mxu2  ;;  %v856_v6 = vpop.f32.mrf.mxu0 }
 0x111   : > { %v1121_v3 = vpop.f32.mrf.mxu3  ;;  %v1033_v5 = vadd.f32 %v1032_v2, %v944_v1  ;;  %v945_v7 = vpop.f32.mrf.mxu1 }
 0x112   : > { %v946_v21 = vadd.f32 %v945_v7, %v856_v6 }
 0x113   : > { %v2425_v9 = vadd.f32 %v1121_v3, %v1033_v5 }
 0x115   : > { %v1183_v13 = vpack.c.bf16 %v2425_v9, %v2425_v9 }
 0x117   : > { %1216 = vst.msk [vmem:[%s2305_s10 + $0x30] sm:$0xf] %vm1203_vm0, %v1183_v13 }
 0x118   : > { %v1034_v22 = vpop.f32.mrf.mxu2  ;;  %v859_v27 = vpop.f32.mrf.mxu0 }
 0x119   : > { %v1123_v23 = vpop.f32.mrf.mxu3  ;;  %v1035_v26 = vadd.f32 %v1034_v22, %v946_v21  ;;  %v948_v28 = vpop.f32.mrf.mxu1 }
 0x11a   : > { %v949_v35 = vadd.f32 %v948_v28, %v859_v27 }
 0x11b   : > { %v2439_v32 = vadd.f32 %v1123_v23, %v1035_v26  ;;  %898 = vmatmul.bf16.gmra.mxu0 %v1825_v24 }
 0x11c   : > { %987 = vmatmul.bf16.gmra.mxu1 %v1829_v25 }
 0x11d   : > { %v1184_v34 = vpack.c.bf16 %v2439_v32, %v2439_v32  ;;  %1076 = vmatmul.bf16.gmra.mxu2 %v1833_v29 }
 0x11e   : > { %1165 = vmatmul.bf16.gmra.mxu3 %v1837_v31 }
 0x11f   : > { %1217 = vst.msk [vmem:[%s2305_s10 + $0x34] sm:$0xf] %vm1203_vm0, %v1184_v34 }
 0x120   : > { %v1037_v36 = vpop.f32.mrf.mxu2  ;;  %v861_v41 = vpop.f32.mrf.mxu0 }
 0x121   : > { %v1126_v37 = vpop.f32.mrf.mxu3  ;;  %v1038_v38 = vadd.f32 %v1037_v36, %v949_v35  ;;  %v950_v43 = vpop.f32.mrf.mxu1 }
 0x122   : > { %v951_v46 = vadd.f32 %v950_v43, %v861_v41 }
 0x123   : > { %v2445_v44 = vadd.f32 %v1126_v37, %v1038_v38 }
 0x125   : > { %v1185_v45 = vpack.c.bf16 %v2445_v44, %v2445_v44 }
 0x127   : > { %1218 = vst.msk [vmem:[%s2305_s10 + $0x38] sm:$0xf] %vm1203_vm0, %v1185_v45 }
 0x128   : > { %v1039_v47 = vpop.f32.mrf.mxu2  ;;  %v864_v51 = vpop.f32.mrf.mxu0 }
 0x129   : > { %v1128_v49 = vpop.f32.mrf.mxu3  ;;  %v1040_v50 = vadd.f32 %v1039_v47, %v951_v46  ;;  %v953_v52 = vpop.f32.mrf.mxu1 }
 0x12a   : > { %v954_v55 = vadd.f32 %v953_v52, %v864_v51 }
 0x12b   : > { %v2451_v53 = vadd.f32 %v1128_v49, %v1040_v50 }
 0x12d   : > { %v1186_v54 = vpack.c.bf16 %v2451_v53, %v2451_v53 }
 0x12f   : > { %1219 = vst.msk [vmem:[%s2305_s10 + $0x3c] sm:$0xf] %vm1203_vm0, %v1186_v54 }
 0x130   : > { %v1042_v56 = vpop.f32.mrf.mxu2  ;;  %v866_v59 = vpop.f32.mrf.mxu0 }
 0x131   : > { %v1131_v57 = vpop.f32.mrf.mxu3  ;;  %v1043_v58 = vadd.f32 %v1042_v56, %v954_v55  ;;  %v955_v60 = vpop.f32.mrf.mxu1 }
 0x132   : > { %v956_v1 = vadd.f32 %v955_v60, %v866_v59 }
 0x133   : > { %v2457_v61 = vadd.f32 %v1131_v57, %v1043_v58 }
 0x135   : > { %v1187_v0 = vpack.c.bf16 %v2457_v61, %v2457_v61 }
 0x137   : > { %1220 = vst.msk [vmem:[%s2305_s10 + $0x40] sm:$0xf] %vm1203_vm0, %v1187_v0 }
 0x138   : > { %v1044_v2 = vpop.f32.mrf.mxu2  ;;  %v869_v6 = vpop.f32.mrf.mxu0 }
 0x139   : > { %v1133_v3 = vpop.f32.mrf.mxu3  ;;  %v1045_v5 = vadd.f32 %v1044_v2, %v956_v1  ;;  %v958_v7 = vpop.f32.mrf.mxu1 }
 0x13a   : > { %v959_v13 = vadd.f32 %v958_v7, %v869_v6 }
 0x13b   : > { %v2463_v10 = vadd.f32 %v1133_v3, %v1045_v5 }
 0x13d   : > { %v1188_v11 = vpack.c.bf16 %v2463_v10, %v2463_v10 }
 0x13f   : > { %1221 = vst.msk [vmem:[%s2305_s10 + $0x44] sm:$0xf] %vm1203_vm0, %v1188_v11 }
 0x140   : > { %v1047_v14 = vpop.f32.mrf.mxu2  ;;  %v871_v17 = vpop.f32.mrf.mxu0 }
 0x141   : > { %v1136_v15 = vpop.f32.mrf.mxu3  ;;  %v1048_v16 = vadd.f32 %v1047_v14, %v959_v13  ;;  %v960_v18 = vpop.f32.mrf.mxu1 }
 0x142   : > { %v961_v22 = vadd.f32 %v960_v18, %v871_v17 }
 0x143   : > { %v2469_v19 = vadd.f32 %v1136_v15, %v1048_v16  ;;  %v1238_v16 = vsel %vm1236_vm1, %v2319_v40, 0.0 }
 0x145   : > { %v1189_v21 = vpack.c.bf16 %v2469_v19, %v2469_v19 }
 0x147   : > { %1222 = vst.msk [vmem:[%s2305_s10 + $0x48] sm:$0xf] %vm1203_vm0, %v1189_v21  ;;  %v1237_v21 = vsel %vm1236_vm1, %v2300_v20, 0.0 }
 0x148   : > { %v1049_v23 = vpop.f32.mrf.mxu2  ;;  %v874_v26 = vpop.f32.mrf.mxu0 }
 0x149   : > { %v1138_v24 = vpop.f32.mrf.mxu3  ;;  %v1050_v25 = vadd.f32 %v1049_v23, %v961_v22  ;;  %v963_v27 = vpop.f32.mrf.mxu1  ;;  %v1240_v22 = vsel %vm1236_vm1, %v2325_v48, 0.0 }
 0x14a   : > { %v964_v31 = vadd.f32 %v963_v27, %v874_v26  ;;  %v1239_v26 = vadd.f32 %v1238_v16, %v1237_v21  ;;  %v1242_v27 = vsel %vm1236_vm1, %v2339_v4, 0.0 }
 0x14b   : > { %v2475_v28 = vadd.f32 %v1138_v24, %v1050_v25 }
 0x14d   : > { %v1190_v29 = vpack.c.bf16 %v2475_v28, %v2475_v28 }
 0x14f   : > { %1223 = vst.msk [vmem:[%s2305_s10 + $0x4c] sm:$0xf] %vm1203_vm0, %v1190_v29 }
 0x150   : > { %v1052_v34 = vpop.f32.mrf.mxu2  ;;  %v876_v37 = vpop.f32.mrf.mxu0 }
 0x151   : > { %v1141_v35 = vpop.f32.mrf.mxu3  ;;  %v1053_v36 = vadd.f32 %v1052_v34, %v964_v31  ;;  %v965_v38 = vpop.f32.mrf.mxu1  ;;  %v1241_v31 = vadd.f32 %v1240_v22, %v1239_v26  ;;  %v1244_v34 = vsel %vm1236_vm1, %v2345_v12, 0.0  ;;  %v1260_v22 = vsel %vm1236_vm1, %v2425_v9, 0.0 }
 0x152   : > { %v966_v45 = vadd.f32 %v965_v38, %v876_v37  ;;  %v1246_v37 = vsel %vm1236_vm1, %v2359_v33, 0.0 }
 0x153   : > { %v2481_v41 = vadd.f32 %v1141_v35, %v1053_v36  ;;  %v1243_v36 = vadd.f32 %v1242_v27, %v1241_v31 }
 0x155   : > { %v1191_v43 = vpack.c.bf16 %v2481_v41, %v2481_v41 }
 0x157   : > { %1224 = vst.msk [vmem:[%s2305_s10 + $0x50] sm:$0xf] %vm1203_vm0, %v1191_v43  ;;  %v1245_v43 = vadd.f32 %v1244_v34, %v1243_v36 }
 0x158   : > { %v1054_v46 = vpop.f32.mrf.mxu2  ;;  %v879_v50 = vpop.f32.mrf.mxu0 }
 0x159   : > { %v1143_v47 = vpop.f32.mrf.mxu3  ;;  %v1055_v49 = vadd.f32 %v1054_v46, %v966_v45  ;;  %v968_v51 = vpop.f32.mrf.mxu1 }
 0x15a   : > { %v969_v55 = vadd.f32 %v968_v51, %v879_v50 }
 0x15b   : > { %v2487_v52 = vadd.f32 %v1143_v47, %v1055_v49  ;;  %v1248_v47 = vsel %vm1236_vm1, %v2365_v42, 0.0 }
 0x15d   : > { %v1192_v54 = vpack.c.bf16 %v2487_v52, %v2487_v52 }
 0x15f   : > { %1225 = vst.msk [vmem:[%s2305_s10 + $0x54] sm:$0xf] %vm1203_vm0, %v1192_v54  ;;  %v1247_v54 = vadd.f32 %v1246_v37, %v1245_v43 }
 0x160   : > { %v1057_v56 = vpop.f32.mrf.mxu2  ;;  %v881_v59 = vpop.f32.mrf.mxu0 }
 0x161   : > { %v1146_v57 = vpop.f32.mrf.mxu3  ;;  %v1058_v58 = vadd.f32 %v1057_v56, %v969_v55  ;;  %v970_v60 = vpop.f32.mrf.mxu1  ;;  %v1250_v55 = vsel %vm1236_vm1, %v2379_v63, 0.0 }
 0x162   : > { %v971_v2 = vadd.f32 %v970_v60, %v881_v59 }
 0x163   : > { %v2493_v0 = vadd.f32 %v1146_v57, %v1058_v58  ;;  %v1249_v57 = vadd.f32 %v1248_v47, %v1247_v54  ;;  %v1252_v58 = vsel %vm1236_vm1, %v2385_v8, 0.0 }
 0x165   : > { %v1193_v1 = vpack.c.bf16 %v2493_v0, %v2493_v0 }
 0x167   : > { %1226 = vst.msk [vmem:[%s2305_s10 + $0x58] sm:$0xf] %vm1203_vm0, %v1193_v1  ;;  %v1251_v1 = vadd.f32 %v1250_v55, %v1249_v57  ;;  %v1270_v55 = vsel %vm1236_vm1, %v2463_v10, 0.0 }
 0x168   : > { %v1059_v3 = vpop.f32.mrf.mxu2  ;;  %v884_v7 = vpop.f32.mrf.mxu0 }
 0x169   : > { %v1148_v5 = vpop.f32.mrf.mxu3  ;;  %v1060_v6 = vadd.f32 %v1059_v3, %v971_v2  ;;  %v973_v11 = vpop.f32.mrf.mxu1  ;;  %v1254_v2 = vsel %vm1236_vm1, %v2399_v30, 0.0  ;;  %v1253_v3 = vadd.f32 %v1252_v58, %v1251_v1 }
 0x16a   : > { %v974_v15 = vadd.f32 %v973_v11, %v884_v7  ;;  %v1256_v7 = vsel %vm1236_vm1, %v2405_v39, 0.0 }
 0x16b   : > { %v2499_v13 = vadd.f32 %v1148_v5, %v1060_v6  ;;  %v1255_v16 = vadd.f32 %v1254_v2, %v1253_v3 }
 0x16d   : > { %v1194_v14 = vpack.c.bf16 %v2499_v13, %v2499_v13  ;;  %v1257_v21 = vadd.f32 %v1256_v7, %v1255_v16 }
 0x16f   : > { %1227 = vst.msk [vmem:[%s2305_s10 + $0x5c] sm:$0xf] %vm1203_vm0, %v1194_v14 }
 0x170   : > { %v1062_v17 = vpop.f32.mrf.mxu2  ;;  %v886_v24 = vpop.f32.mrf.mxu0 }
 0x171   : > { %v1151_v18 = vpop.f32.mrf.mxu3  ;;  %v1063_v23 = vadd.f32 %v1062_v17, %v974_v15  ;;  %v975_v25 = vpop.f32.mrf.mxu1  ;;  %v1258_v17 = vsel %vm1236_vm1, %v2419_v62, 0.0 }
 0x172   : > { %v976_v38 = vadd.f32 %v975_v25, %v886_v24  ;;  %v1259_v24 = vadd.f32 %v1258_v17, %v1257_v21  ;;  %v1262_v25 = vsel %vm1236_vm1, %v2439_v32, 0.0  ;;  %v1278_v17 = vsel %vm1236_vm1, %v2487_v52, 0.0 }
 0x173   : > { %v2513_v29 = vadd.f32 %v1151_v18, %v1063_v23 }
 0x174   : > { %v1261_v27 = vadd.f32 %v1260_v22, %v1259_v24 }
 0x175   : > { %v1195_v35 = vpack.c.bf16 %v2513_v29, %v2513_v29 }
 0x176   : > { %v1263_v43 = vadd.f32 %v1262_v25, %v1261_v27  ;;  %v1280_v25 = vsel %vm1236_vm1, %v2493_v0, 0.0 }
 0x177   : > { %1228 = vst.msk [vmem:[%s2305_s10 + $0x60] sm:$0xf] %vm1203_vm0, %v1195_v35  ;;  %v1264_v35 = vsel %vm1236_vm1, %v2445_v44, 0.0 }
 0x178   : > { %v1064_v45 = vpop.f32.mrf.mxu2  ;;  %v889_v50 = vpop.f32.mrf.mxu0  ;;  %v1265_v47 = vadd.f32 %v1264_v35, %v1263_v43  ;;  %v1282_v35 = vsel %vm1236_vm1, %v2499_v13, 0.0 }
 0x179   : > { %v1153_v46 = vpop.f32.mrf.mxu3  ;;  %v1065_v49 = vadd.f32 %v1064_v45, %v976_v38  ;;  %v978_v51 = vpop.f32.mrf.mxu1  ;;  %v1266_v45 = vsel %vm1236_vm1, %v2451_v53, 0.0 }
 0x17a   : > { %v979_v60 = vadd.f32 %v978_v51, %v889_v50  ;;  %v1267_v54 = vadd.f32 %v1266_v45, %v1265_v47 }
 0x17b   : > { %v2527_v56 = vadd.f32 %v1153_v46, %v1065_v49  ;;  %v1268_v49 = vsel %vm1236_vm1, %v2457_v61, 0.0 }
 0x17c   : > { %v1269_v57 = vadd.f32 %v1268_v49, %v1267_v54 }
 0x17d   : > { %v1196_v59 = vpack.c.bf16 %v2527_v56, %v2527_v56  ;;  %v1286_v49 = vsel %vm1236_vm1, %v2527_v56, 0.0 }
 0x17f   : > { %1229 = vst.msk [vmem:[%s2305_s10 + $0x64] sm:$0xf] %vm1203_vm0, %v1196_v59 }
 0x180   : > { %v1067_v5 = vpop.f32.mrf.mxu2  ;;  %v891_v14 = vpop.f32.mrf.mxu0 }
 0x181   : > { %v1156_v6 = vpop.f32.mrf.mxu3  ;;  %v1068_v11 = vadd.f32 %v1067_v5, %v979_v60  ;;  %v980_v15 = vpop.f32.mrf.mxu1  ;;  %v1272_v60 = vsel %vm1236_vm1, %v2469_v19, 0.0  ;;  %v1271_v5 = vadd.f32 %v1270_v55, %v1269_v57 }
 0x182   : > { %v981_v26 = vadd.f32 %v980_v15, %v891_v14  ;;  %v1276_v14 = vsel %vm1236_vm1, %v2481_v41, 0.0 }
 0x183   : > { %v2541_v18 = vadd.f32 %v1156_v6, %v1068_v11  ;;  %v1274_v6 = vsel %vm1236_vm1, %v2475_v28, 0.0  ;;  %v1273_v11 = vadd.f32 %v1272_v60, %v1271_v5 }
 0x185   : > { %v1197_v23 = vpack.c.bf16 %v2541_v18, %v2541_v18  ;;  %v1275_v16 = vadd.f32 %v1274_v6, %v1273_v11  ;;  %v1288_v55 = vsel %vm1236_vm1, %v2541_v18, 0.0 }
 0x187   : > { %1230 = vst.msk [vmem:[%s2305_s10 + $0x68] sm:$0xf] %vm1203_vm0, %v1197_v23  ;;  %v1277_v22 = vadd.f32 %v1276_v14, %v1275_v16  ;;  %v2091_v14 = vmov 256.0  }
 0x188   : > { %v1069_v31 = vpop.f32.mrf.mxu2  ;;  %v894_v37 = vpop.f32.mrf.mxu0  ;;  %2079 = vrcp.f32 %v2091_v14 }
 0x189   : > { %v1158_v34 = vpop.f32.mrf.mxu3  ;;  %v1070_v36 = vadd.f32 %v1069_v31, %v981_v26  ;;  %v983_v38 = vpop.f32.mrf.mxu1  ;;  %v1279_v27 = vadd.f32 %v1278_v17, %v1277_v22 }
 0x18a   : > { %v984_v51 = vadd.f32 %v983_v38, %v894_v37  ;;  %v1284_v38 = vsel %vm1236_vm1, %v2513_v29, 0.0 }
 0x18b   : > { %v2555_v46 = vadd.f32 %v1158_v34, %v1070_v36  ;;  %v1281_v37 = vadd.f32 %v1280_v25, %v1279_v27 }
 0x18d   : > { %v1198_v50 = vpack.c.bf16 %v2555_v46, %v2555_v46  ;;  %v1283_v47 = vadd.f32 %v1282_v35, %v1281_v37 }
 0x18e   : > { %v2080_v27 = vpop.eup %2079 }
 0x18f   : > { %1231 = vst.msk [vmem:[%s2305_s10 + $0x6c] sm:$0xf] %vm1203_vm0, %v1198_v50  ;;  %v1285_v50 = vadd.f32 %v1284_v38, %v1283_v47  ;;  %v1307_v38 = vmul.f32 256.0, %v2080_v27  ;;  %vm1311_vm2 = vweird.f32 %v2080_v27 }
 0x190   : > { %v1072_v58 = vpop.f32.mrf.mxu2  ;;  %v896_v2 = vpop.f32.mrf.mxu0 }
 0x191   : > { %v1161_v59 = vpop.f32.mrf.mxu3  ;;  %v1073_v1 = vadd.f32 %v1072_v58, %v984_v51  ;;  %v985_v3 = vpop.f32.mrf.mxu1  ;;  %v1287_v58 = vadd.f32 %v1286_v49, %v1285_v50  ;;  %v1308_v47 = vsub.f32 1.0, %v1307_v38 }
 0x192   : > { %v986_v21 = vadd.f32 %v985_v3, %v896_v2 }
 0x193   : > { %v2569_v7 = vadd.f32 %v1161_v59, %v1073_v1  ;;  %v1290_v59 = vsel %vm1236_vm1, %v2555_v46, 0.0  ;;  %v1289_v1 = vadd.f32 %v1288_v55, %v1287_v58 }
 0x195   : > { %v1199_v15 = vpack.c.bf16 %v2569_v7, %v2569_v7  ;;  %v1292_v5 = vsel %vm1236_vm1, %v2569_v7, 0.0  ;;  %v1291_v11 = vadd.f32 %v1290_v59, %v1289_v1 }
 0x197   : > { %1232 = vst.msk [vmem:[%s2305_s10 + $0x70] sm:$0xf] %vm1203_vm0, %v1199_v15  ;;  %v1293_v17 = vadd.f32 %v1292_v5, %v1291_v11 }
 0x198   : > { %v1074_v23 = vpop.f32.mrf.mxu2  ;;  %v899_v31 = vpop.f32.mrf.mxu0 }
 0x199   : > { %v1163_v24 = vpop.f32.mrf.mxu3  ;;  %v1075_v26 = vadd.f32 %v1074_v23, %v986_v21  ;;  %v988_v34 = vpop.f32.mrf.mxu1 }
 0x19a   : > { %v989_v45 = vadd.f32 %v988_v34, %v899_v31 }
 0x19b   : > { %v2583_v36 = vadd.f32 %v1163_v24, %v1075_v26 }
 0x19d   : > { %v1200_v43 = vpack.c.bf16 %v2583_v36, %v2583_v36  ;;  %v1294_v15 = vsel %vm1236_vm1, %v2583_v36, 0.0 }
 0x19e   : > { %v1295_v24 = vadd.f32 %v1294_v15, %v1293_v17 }
 0x19f   : > { %1233 = vst.msk [vmem:[%s2305_s10 + $0x74] sm:$0xf] %vm1203_vm0, %v1200_v43 }
 0x1a0   : > { %v1077_v51 = vpop.f32.mrf.mxu2  ;;  %v901_v2 = vpop.f32.mrf.mxu0 }
 0x1a1   : > { %v1166_v54 = vpop.f32.mrf.mxu3  ;;  %v1078_v57 = vadd.f32 %v1077_v51, %v989_v45  ;;  %v990_v3 = vpop.f32.mrf.mxu1  ;;  %v1309_v51 = vmul.f32 %v2080_v27, %v1308_v47 }
 0x1a2   : > { %v991_v16 = vadd.f32 %v990_v3, %v901_v2 }
 0x1a3   : > { %v2597_v60 = vadd.f32 %v1166_v54, %v1078_v57  ;;  %v1310_v55 = vadd.f32 %v2080_v27, %v1309_v51 }
 0x1a5   : > { %v1201_v6 = vpack.c.bf16 %v2597_v60, %v2597_v60  ;;  %v1296_v22 = vsel %vm1236_vm1, %v2597_v60, 0.0  ;;  %v1312_v58 = vsel %vm1311_vm2, %v2080_v27, %v1310_v55 }
 0x1a6   : > { %v1297_v31 = vadd.f32 %v1296_v22, %v1295_v24 }
 0x1a7   : > { %1234 = vst.msk [vmem:[%s2305_s10 + $0x78] sm:$0xf] %vm1203_vm0, %v1201_v6 }
 0x1a8   : > { %v1079_v21 = vpop.f32.mrf.mxu2 }
 0x1a9   : > { %v1080_v23 = vadd.f32 %v1079_v21, %v991_v16  ;;  %v1168_v25 = vpop.f32.mrf.mxu3 }
 0x1ab   : > { %v2609_v26 = vadd.f32 %v1168_v25, %v1080_v23 }
 0x1ad   : > { %v1202_v34 = vpack.c.bf16 %v2609_v26, %v2609_v26  ;;  %v1298_v35 = vsel %vm1236_vm1, %v2609_v26, 0.0 }
 0x1ae   : > { %v1299_v37 = vadd.f32 %v1298_v35, %v1297_v31 }
 0x1af   : > { %1235 = vst.msk [vmem:[%s2305_s10 + $0x7c] sm:$0xf] %vm1203_vm0, %v1202_v34 }
 0x1b0   : > { %v1300_v43 = vrot.slane %v1299_v37, 4 }
 0x1b2   : > { %v1301_v45 = vadd.f32 %v1300_v43, %v1299_v37 }
 0x1b4   : > { %v1302_v49 = vrot.slane %v1301_v45, 2 }
 0x1b6   : > { %v1303_v50 = vadd.f32 %v1302_v49, %v1301_v45 }
 0x1b8   : > { %v1304_v54 = vrot.slane %v1303_v50, 1 }
 0x1ba   : > { %v1305_v57 = vadd.f32 %v1304_v54, %v1303_v50 }
 0x1bc   : > { %v2617_v59 = vmul.f32 %v1312_v58, %v1305_v57 }
 0x1be   : > { %v1314_v1 = vsub.f32 %v2300_v20, %v2617_v59  ;;  %v1315_v2 = vsub.f32 %v2319_v40, %v2617_v59  ;;  %v1316_v3 = vsub.f32 %v2325_v48, %v2617_v59  ;;  %v1317_v5 = vsub.f32 %v2339_v4, %v2617_v59 }
 0x1bf   : > { %v1318_v14 = vsub.f32 %v2345_v12, %v2617_v59  ;;  %v1319_v16 = vsub.f32 %v2359_v33, %v2617_v59  ;;  %v1320_v48 = vsub.f32 %v2365_v42, %v2617_v59  ;;  %v1321_v12 = vsub.f32 %v2379_v63, %v2617_v59 }
 0x1c0   : > { %v1346_v6 = vmul.f32 %v1314_v1, %v1314_v1  ;;  %v1347_v11 = vmul.f32 %v1315_v2, %v1315_v2  ;;  %v1348_v15 = vmul.f32 %v1316_v3, %v1316_v3  ;;  %v1349_v17 = vmul.f32 %v1317_v5, %v1317_v5 }
 0x1c1   : > { %v1350_v22 = vmul.f32 %v1318_v14, %v1318_v14  ;;  %v1351_v24 = vmul.f32 %v1319_v16, %v1319_v16  ;;  %v1322_v27 = vsub.f32 %v2385_v8, %v2617_v59  ;;  %v1352_v31 = vmul.f32 %v1320_v48, %v1320_v48 }
 0x1c2   : > { %v1378_v20 = vsel %vm1236_vm1, %v1346_v6, 0.0  ;;  %v1379_v40 = vsel %vm1236_vm1, %v1347_v11, 0.0  ;;  %v1381_v4 = vsel %vm1236_vm1, %v1348_v15, 0.0  ;;  %v1383_v25 = vsel %vm1236_vm1, %v1349_v17, 0.0 }
 0x1c3   : > { %v1380_v21 = vadd.f32 %v1379_v40, %v1378_v20  ;;  %v1385_v34 = vsel %vm1236_vm1, %v1350_v22, 0.0  ;;  %v1323_v42 = vsub.f32 %v2399_v30, %v2617_v59  ;;  %v1353_v37 = vmul.f32 %v1321_v12, %v1321_v12 }
 0x1c4   : > { %v1387_v38 = vsel %vm1236_vm1, %v1351_v24, 0.0  ;;  %v1324_v63 = vsub.f32 %v2405_v39, %v2617_v59  ;;  %v1354_v45 = vmul.f32 %v1322_v27, %v1322_v27  ;;  %v1389_v47 = vsel %vm1236_vm1, %v1352_v31, 0.0 }
 0x1c5   : > { %v1382_v23 = vadd.f32 %v1381_v4, %v1380_v21  ;;  %v1325_v8 = vsub.f32 %v2419_v62, %v2617_v59  ;;  %v1355_v50 = vmul.f32 %v1323_v42, %v1323_v42  ;;  %v1391_v51 = vsel %vm1236_vm1, %v1353_v37, 0.0 }
 0x1c6   : > { %v1326_v30 = vsub.f32 %v2425_v9, %v2617_v59  ;;  %v1356_v55 = vmul.f32 %v1324_v63, %v1324_v63  ;;  %v1393_v57 = vsel %vm1236_vm1, %v1354_v45, 0.0  ;;  %v1327_v39 = vsub.f32 %v2439_v32, %v2617_v59 }
 0x1c7   : > { %v1384_v33 = vadd.f32 %v1383_v25, %v1382_v23  ;;  %v1357_v1 = vmul.f32 %v1325_v8, %v1325_v8  ;;  %v1395_v2 = vsel %vm1236_vm1, %v1355_v50, 0.0  ;;  %v1328_v62 = vsub.f32 %v2445_v44, %v2617_v59 }
 0x1c8   : > { %v1358_v5 = vmul.f32 %v1326_v30, %v1326_v30  ;;  %v1397_v6 = vsel %vm1236_vm1, %v1356_v55, 0.0  ;;  %v1329_v9 = vsub.f32 %v2451_v53, %v2617_v59  ;;  %v1359_v14 = vmul.f32 %v1327_v39, %v1327_v39 }
 0x1c9   : > { %v1386_v35 = vadd.f32 %v1385_v34, %v1384_v33  ;;  %v1399_v15 = vsel %vm1236_vm1, %v1357_v1, 0.0  ;;  %v1330_v32 = vsub.f32 %v2457_v61, %v2617_v59  ;;  %v1360_v17 = vmul.f32 %v1328_v62, %v1328_v62 }
 0x1ca   : > { %v1401_v20 = vsel %vm1236_vm1, %v1358_v5, 0.0  ;;  %v1331_v44 = vsub.f32 %v2463_v10, %v2617_v59  ;;  %v1361_v21 = vmul.f32 %v1329_v9, %v1329_v9  ;;  %v1403_v48 = vsel %vm1236_vm1, %v1359_v14, 0.0 }
 0x1cb   : > { %v1388_v43 = vadd.f32 %v1387_v38, %v1386_v35  ;;  %v1332_v53 = vsub.f32 %v2469_v19, %v2617_v59  ;;  %v1362_v4 = vmul.f32 %v1330_v32, %v1330_v32  ;;  %v1405_v23 = vsel %vm1236_vm1, %v1360_v17, 0.0 }
 0x1cc   : > { %v1333_v61 = vsub.f32 %v2475_v28, %v2617_v59  ;;  %v1363_v24 = vmul.f32 %v1331_v44, %v1331_v44  ;;  %v1407_v25 = vsel %vm1236_vm1, %v1361_v21, 0.0  ;;  %v1334_v10 = vsub.f32 %v2481_v41, %v2617_v59 }
 0x1cd   : > { %v1390_v49 = vadd.f32 %v1389_v47, %v1388_v43  ;;  %v1364_v27 = vmul.f32 %v1332_v53, %v1332_v53  ;;  %v1409_v31 = vsel %vm1236_vm1, %v1362_v4, 0.0  ;;  %v1335_v19 = vsub.f32 %v2487_v52, %v2617_v59 }
 0x1ce   : > { %v1365_v35 = vmul.f32 %v1333_v61, %v1333_v61  ;;  %v1411_v42 = vsel %vm1236_vm1, %v1363_v24, 0.0  ;;  %v1336_v28 = vsub.f32 %v2493_v0, %v2617_v59  ;;  %v1366_v38 = vmul.f32 %v1334_v10, %v1334_v10 }
 0x1cf   : > { %v1392_v54 = vadd.f32 %v1391_v51, %v1390_v49  ;;  %v1413_v43 = vsel %vm1236_vm1, %v1364_v27, 0.0  ;;  %v1337_v41 = vsub.f32 %v2499_v13, %v2617_v59  ;;  %v1367_v45 = vmul.f32 %v1335_v19, %v1335_v19 }
 0x1d0   : > { %v1415_v47 = vsel %vm1236_vm1, %v1365_v35, 0.0  ;;  %v1338_v52 = vsub.f32 %v2513_v29, %v2617_v59  ;;  %v1368_v8 = vmul.f32 %v1336_v28, %v1336_v28  ;;  %v1417_v50 = vsel %vm1236_vm1, %v1366_v38, 0.0 }
 0x1d1   : > { %v1394_v58 = vadd.f32 %v1393_v57, %v1392_v54  ;;  %v1339_v0 = vsub.f32 %v2527_v56, %v2617_v59  ;;  %v1369_v54 = vmul.f32 %v1337_v41, %v1337_v41  ;;  %v1419_v30 = vsel %vm1236_vm1, %v1367_v45, 0.0 }
 0x1d2   : > { %v1340_v13 = vsub.f32 %v2541_v18, %v2617_v59  ;;  %v1370_v57 = vmul.f32 %v1338_v52, %v1338_v52  ;;  %v1341_v29 = vsub.f32 %v2555_v46, %v2617_v59  ;;  %v1342_v56 = vsub.f32 %v2569_v7, %v2617_v59 }
 0x1d3   : > { %v1396_v3 = vadd.f32 %v1395_v2, %v1394_v58  ;;  %v1421_v58 = vsel %vm1236_vm1, %v1368_v8, 0.0  ;;  %v1371_v1 = vmul.f32 %v1339_v0, %v1339_v0  ;;  %v1423_v2 = vsel %vm1236_vm1, %v1369_v54, 0.0 }
 0x1d4   : > { %v1372_v62 = vmul.f32 %v1340_v13, %v1340_v13  ;;  %v1425_v5 = vsel %vm1236_vm1, %v1370_v57, 0.0  ;;  %v1343_v18 = vsub.f32 %v2583_v36, %v2617_v59  ;;  %v1344_v46 = vsub.f32 %v2597_v60, %v2617_v59 }
 0x1d5   : > { %v1398_v11 = vadd.f32 %v1397_v6, %v1396_v3  ;;  %v1427_v9 = vsel %vm1236_vm1, %v1371_v1, 0.0  ;;  %v1345_v7 = vsub.f32 %v2609_v26, %v2617_v59 }
 0x1d6   : > { %v1375_v17 = vmul.f32 %v1343_v18, %v1343_v18  ;;  %v1376_v44 = vmul.f32 %v1344_v46, %v1344_v46 }
 0x1d7   : > { %v1400_v16 = vadd.f32 %v1399_v15, %v1398_v11  ;;  %v1373_v11 = vmul.f32 %v1341_v29, %v1341_v29  ;;  %v1374_v15 = vmul.f32 %v1342_v56, %v1342_v56 }
 0x1d8   : > { %v1437_v60 = vsel %vm1236_vm1, %v1376_v44, 0.0 }
 0x1d9   : > { %v1402_v40 = vadd.f32 %v1401_v20, %v1400_v16  ;;  %v1429_v16 = vsel %vm1236_vm1, %v1372_v62, 0.0  ;;  %v1431_v20 = vsel %vm1236_vm1, %v1373_v11, 0.0  ;;  %v1433_v36 = vsel %vm1236_vm1, %v1374_v15, 0.0 }
 0x1db   : > { %v1404_v22 = vadd.f32 %v1403_v48, %v1402_v40  ;;  %v1377_v48 = vmul.f32 %v1345_v7, %v1345_v7 }
 0x1dd   : > { %v1406_v12 = vadd.f32 %v1405_v23, %v1404_v22  ;;  %v1435_v22 = vsel %vm1236_vm1, %v1375_v17, 0.0  ;;  %v1439_v23 = vsel %vm1236_vm1, %v1377_v48, 0.0 }
 0x1df   : > { %v1408_v33 = vadd.f32 %v1407_v25, %v1406_v12 }
 0x1e1   : > { %v1410_v34 = vadd.f32 %v1409_v31, %v1408_v33 }
 0x1e3   : > { %v1412_v37 = vadd.f32 %v1411_v42, %v1410_v34 }
 0x1e5   : > { %v1414_v63 = vadd.f32 %v1413_v43, %v1412_v37 }
 0x1e7   : > { %v1416_v49 = vadd.f32 %v1415_v47, %v1414_v63 }
 0x1e9   : > { %v1418_v51 = vadd.f32 %v1417_v50, %v1416_v49 }
 0x1eb   : > { %v1420_v55 = vadd.f32 %v1419_v30, %v1418_v51 }
 0x1ed   : > { %v1422_v39 = vadd.f32 %v1421_v58, %v1420_v55 }
 0x1ef   : > { %v1424_v3 = vadd.f32 %v1423_v2, %v1422_v39 }
 0x1f1   : > { %v1426_v6 = vadd.f32 %v1425_v5, %v1424_v3 }
 0x1f3   : > { %v1428_v14 = vadd.f32 %v1427_v9, %v1426_v6 }
 0x1f5   : > { %v1430_v32 = vadd.f32 %v1429_v16, %v1428_v14 }
 0x1f7   : > { %v1432_v40 = vadd.f32 %v1431_v20, %v1430_v32 }
 0x1f9   : > { %v1434_v21 = vadd.f32 %v1433_v36, %v1432_v40 }
 0x1fb   : > { %v1436_v53 = vadd.f32 %v1435_v22, %v1434_v21 }
 0x1fd   : > { %v1438_v4 = vadd.f32 %v1437_v60, %v1436_v53 }
 0x1ff   : > { %v1440_v12 = vadd.f32 %v1439_v23, %v1438_v4 }
 0x201   : > { %v1441_v61 = vrot.slane %v1440_v12, 4 }
 0x203   : > { %v1442_v26 = vadd.f32 %v1441_v61, %v1440_v12 }
 0x205   : > { %v1443_v24 = vrot.slane %v1442_v26, 2 }
 0x207   : > { %v1444_v25 = vadd.f32 %v1443_v24, %v1442_v26  ;;  %1450 = sbr.rel (%p1966_p4) target bundleno = 527 (0x20f), region = 32 }
 0x209   : > { %v1445_v33 = vrot.slane %v1444_v25, 1 }
 0x20b   : > { %v1446_v10 = vadd.f32 %v1445_v33, %v1444_v25 }
 0x20c   : > { %vm1451_vm3 = vcmask 516096  }
 0x20d   : > { %1452 = vst.msk [vmem:[%s2744_s3] sm:$0x1] %vm1451_vm3, %v2617_v59 }
 0x20e   : > { %1453 = vst.msk [vmem:[%s2744_s3 + $0x1] sm:$0x1] %vm1451_vm3, %v1446_v10 }
 0x20f PF: > { %p1967_p5 = scmp.le.s32.totalorder %s2118_s13, 0 }
 0x210   : > { %s1968_s17 = sshll.u32 (!%p1967_p5), %s2118_s13, 8 }
 0x211   : > { %1457 = sbr.rel (%p1967_p5) target bundleno = 611 (0x263), region = 36  ;;  %s1459_s18 = scvt.s32.f32 (!%p1967_p5), %s1968_s17 }
 0x213   : > { %s1460_s19 = sadd.f32 (!%p1967_p5), 256.0, %s1459_s18  ;;  %s1488_s21 = smul.f32 (!%p1967_p5), 256.0, %s1459_s18 }
 0x216   : > { %v1463_v27 = vstv %s1460_s19  ;;  %v1461_v41 = vld [vmem:[%s2744_s3] sm:$0x1]  ;;  %v1485_v47 = vld [vmem:[%s2744_s3 + $0x1] sm:$0x1]  ;;  %vm1483_vm8 = vcmask 516096  }
 0x217   : > { %2081 = vrcp.f32 %v1463_v27  ;;  %v1475_v19 = vand.u32 2147483648, %v1463_v27  ;;  %vm1469_vm4 = vweird.f32 %v1463_v27  ;;  %v1473_v42 = vand.u32 2147483647, %v1463_v27 }
 0x218   : > { %v1462_v45 = vsub.f32 %v2617_v59, %v1461_v41  ;;  %v1486_v8 = vadd.f32 %v1485_v47, %v1446_v10 }
 0x219   : > { %v1476_v28 = vor.u32 1.1754944e-38, %v1475_v19  ;;  %vm1474_vm7 = vcmp.eq.f32.partialorder %v1473_v42, 8.507059e+37 }
 0x21a   : > { %v1487_v49 = vmul.f32 %v1462_v45, %v1462_v45 }
 0x21d   : > { %v2082_v31 = vpop.eup %2081 }
 0x21e   : > { %v1465_v34 = vmul.f32 %v2082_v31, %v1463_v27  ;;  %vm1470_vm5 = vweird.f32 %v2082_v31 }
 0x21f   : > { %vm1471_vm6 = vmor %vm1469_vm4, %vm1470_vm5 }
 0x220   : > { %v1466_v35 = vsub.f32 1.0, %v1465_v34 }
 0x222   : > { %v1467_v37 = vmul.f32 %v2082_v31, %v1466_v35 }
 0x224   : > { %v1468_v38 = vadd.f32 %v2082_v31, %v1467_v37 }
 0x226   : > { %v1472_v43 = vsel %vm1471_vm6, %v2082_v31, %v1468_v38 }
 0x227   : > { %v1477_v63 = vsel %vm1474_vm7, %v1476_v28, %v1472_v43 }
 0x228   : > { %2068 = vpush %v1477_v63 }
 0x259   : > { %s2069_s22 = spop %2068 }
 0x25a   : > { %s1479_s25 = smul.f32 256.0, %s2069_s22 }
 0x25b   : > { %s1505_s26 = smul.f32 %s2069_s22, %s1488_s21 }
 0x25c   : > { %v1480_v52 = vstv %s1479_s25 }
 0x25d   : > { %v1481_v50 = vmul.f32 %v1480_v52, %v1462_v45  ;;  %v1506_v51 = vstv %s1505_s26 }
 0x25e   : > { %v1507_v0 = vmul.f32 %v1506_v51, %v1487_v49 }
 0x25f   : > { %v1482_v54 = vadd.f32 %v1481_v50, %v1461_v41 }
 0x260   : > { %v1508_v30 = vadd.f32 %v1507_v0, %v1486_v8 }
 0x261   : > { %1484 = vst.msk [vmem:[%s2744_s3] sm:$0x1] %vm1483_vm8, %v1482_v54 }
 0x262   : > { %1509 = vst.msk [vmem:[%s2744_s3 + $0x1] sm:$0x1] %vm1483_vm8, %v1508_v30 }
 0x263 PF: > { %s14_s12 = sadd.s32 1, %s2089_s12  }
 0x264   : > { %p11_p6 = scmp.ge.s32.totalorder %s14_s12, 4  }
 0x266   :  { %13 = sbr.rel (!%p11_p6) target bundleno = 1 (0x1), region = 74 }

// kernel: discriminator_forward.11
= control target key start
LH: loop header
LB: loop body
LE: loop exit
PB: predicated region body
PF: predicated region fallthrough
CT: control target
= control target key end

     0   :  { %s450_s15 = smov 0   ;;  %s486_s0 = inlined_call_operand.vmem [shape: bf16[128,128], index: 0, kind: input, shape index: {}]   ;;  %s487_s1 = inlined_call_operand.vmem [shape: f32[2,128], index: 1, kind: input, shape index: {}]   ;;  %s488_s2 = inlined_call_operand.vmem [shape: f32[1,128], index: 2, kind: input, shape index: {}]   ;;  %s489_s3 = inlined_call_operand.vmem [shape: f32[1,128], index: 3, kind: input, shape index: {}]   ;;  %s490_s4 = inlined_call_operand.vmem [shape: bf16[128,128], index: 4, kind: output, shape index: {}]  }
   0x1 LB: > { %s354_s16 = sadd.s32 4294967295, %s423_s15   ;;  %p358_p0 = scmp.ge.s32.totalorder %s423_s15, 1  ;;  %s423_s15 = sphi %s450_s15, %s14_s15  }
   0x2   : > { %p163_p1 = scmp.lt.s32.totalorder %s423_s15, 3 }
   0x4   : > { %p164_p2 = pnand %p358_p0, %p163_p1 }
   0x5   : > { %s359_s19 = sshll.u32 (!%p164_p2), %s354_s16, 3 }
   0x6   : > { %167 = sbr.rel (%p164_p2) target bundleno = 55 (0x37), region = 36  ;;  %p190_p3 = scmp.lt.s32.totalorder (!%p164_p2), %s359_s19, 15 }
   0xb   : > { %v202_v0 = vld [vmem:[%s487_s1 + $0x1] sm:$0x1]  ;;  %s492_s19 = smov (!%p190_p3, %s359_s19), 15  ;;  %v204_v8 = vld [vmem:[%s488_s2] sm:$0x1] }
   0xc   : > { %v203_v1 = vmul.f32 0.0078125, %v202_v0  ;;  %s360_s20 = sshll.u32 %s492_s19, 2  ;;  %v201_v14 = vld [vmem:[%s487_s1] sm:$0x1] }
   0xd   : > { %s193_s23 = scalar_lea.vmem %s486_s0, %s360_s20  ;;  %v217_v20 = vld [vmem:[%s489_s3] sm:$0x1]  ;;  %s199_s6 = scalar_lea.vmem %s490_s4, %s360_s20 }
   0xe   : > { %v205_v2 = vadd.f32 1e-05, %v203_v1  ;;  %v366_v10 = vld [vmem:[%s193_s23] sm:$0xff]   ;;  %v401_v11 = vld [vmem:[%s193_s23 + $0x8] sm:$0xff]   ;;  %v402_v12 = vld [vmem:[%s193_s23 + $0x10] sm:$0xff]  }
   0xf   : > { %v403_v13 = vld [vmem:[%s193_s23 + $0x18] sm:$0xff]   ;;  %v367_v17 = vunpack.c.l.bf16 %v366_v10  ;;  %v368_v18 = vunpack.c.h.bf16 %v366_v10  ;;  %v371_v19 = vunpack.c.l.bf16 %v401_v11  ;;  %v372_v21 = vunpack.c.h.bf16 %v401_v11 }
  0x10   : > { %415 = vrsqrt.f32 %v205_v2  ;;  %vm212_vm0 = vweird.f32 %v205_v2  ;;  %v375_v22 = vunpack.c.l.bf16 %v402_v12  ;;  %v376_v23 = vunpack.c.h.bf16 %v402_v12 }
  0x11   : > { %v379_v24 = vunpack.c.l.bf16 %v403_v13  ;;  %v380_v26 = vunpack.c.h.bf16 %v403_v13 }
  0x16   : > { %v416_v3 = vpop.eup %415 }
  0x17   : > { %v207_v4 = vmul.f32 %v416_v3, %v205_v2  ;;  %vm213_vm1 = vweird.f32 %v416_v3 }
  0x18   : > { %vm214_vm2 = vmor %vm212_vm0, %vm213_vm1 }
  0x19   : > { %v208_v5 = vmul.f32 %v416_v3, %v207_v4 }
  0x1b   : > { %v209_v6 = vmul.f32 0.5, %v208_v5 }
  0x1d   : > { %v210_v7 = vsub.f32 1.5, %v209_v6 }
  0x1f   : > { %v211_v9 = vmul.f32 %v416_v3, %v210_v7 }
  0x21   : > { %v215_v15 = vsel %vm214_vm2, %v416_v3, %v211_v9 }
  0x22   : > { %v216_v16 = vmul.f32 %v215_v15, %v204_v8 }
  0x24   : > { %v218_v25 = vmul.f32 %v216_v16, %v201_v14  ;;  %v237_v27 = vperm.slane %v216_v16, 0 }
  0x26   : > { %v219_v28 = vsub.f32 %v217_v20, %v218_v25  ;;  %v239_v29 = vmul.f32 %v367_v17, %v237_v27  ;;  %v240_v30 = vmul.f32 %v368_v18, %v237_v27  ;;  %v241_v31 = vmul.f32 %v371_v19, %v237_v27 }
  0x27   : > { %v242_v32 = vmul.f32 %v372_v21, %v237_v27  ;;  %v243_v33 = vmul.f32 %v375_v22, %v237_v27  ;;  %v244_v34 = vmul.f32 %v376_v23, %v237_v27  ;;  %v245_v35 = vmul.f32 %v379_v24, %v237_v27 }
  0x28   : > { %v248_v36 = vperm.slane %v219_v28, 0  ;;  %v246_v37 = vmul.f32 %v380_v26, %v237_v27 }
  0x2a   : > { %v250_v38 = vadd.f32 %v248_v36, %v239_v29  ;;  %v251_v39 = vadd.f32 %v248_v36, %v240_v30  ;;  %v252_v40 = vadd.f32 %v248_v36, %v241_v31  ;;  %v253_v41 = vadd.f32 %v248_v36, %v242_v32 }
  0x2b   : > { %v254_v42 = vadd.f32 %v248_v36, %v243_v33  ;;  %v255_v43 = vadd.f32 %v248_v36, %v244_v34  ;;  %v256_v44 = vadd.f32 %v248_v36, %v245_v35  ;;  %v257_v45 = vadd.f32 %v248_v36, %v246_v37 }
  0x2c   : > { %vm258_vm3 = vcmp.gt.f32.partialorder %v250_v38, 0.0  ;;  %vm259_vm4 = vcmp.gt.f32.partialorder %v251_v39, 0.0  ;;  %v266_v46 = vmul.f32 0.2, %v250_v38  ;;  %v267_v47 = vmul.f32 0.2, %v251_v39 }
  0x2d   : > { %vm260_vm5 = vcmp.gt.f32.partialorder %v252_v40, 0.0  ;;  %vm261_vm6 = vcmp.gt.f32.partialorder %v253_v41, 0.0  ;;  %v268_v48 = vmul.f32 0.2, %v252_v40  ;;  %v269_v49 = vmul.f32 0.2, %v253_v41 }
  0x2e   : > { %v274_v50 = vsel %vm258_vm3, %v250_v38, %v266_v46  ;;  %v275_v51 = vsel %vm259_vm4, %v251_v39, %v267_v47  ;;  %vm262_vm7 = vcmp.gt.f32.partialorder %v254_v42, 0.0  ;;  %vm263_vm8 = vcmp.gt.f32.partialorder %v255_v43, 0.0 }
  0x2f   : > { %v384_v52 = vpack.c.bf16 %v275_v51, %v274_v50  ;;  %v276_v53 = vsel %vm260_vm5, %v252_v40, %v268_v48  ;;  %v277_v54 = vsel %vm261_vm6, %v253_v41, %v269_v49  ;;  %v270_v55 = vmul.f32 0.2, %v254_v42 }
  0x30   : > { %v389_v56 = vpack.c.bf16 %v277_v54, %v276_v53  ;;  %v271_v57 = vmul.f32 0.2, %v255_v43  ;;  %vm264_vm9 = vcmp.gt.f32.partialorder %v256_v44, 0.0  ;;  %vm265_vm10 = vcmp.gt.f32.partialorder %v257_v45, 0.0 }
  0x31   : > { %385 = vst [vmem:[%s199_s6] sm:$0xff] %v384_v52   ;;  %v278_v58 = vsel %vm262_vm7, %v254_v42, %v270_v55  ;;  %v272_v59 = vmul.f32 0.2, %v256_v44  ;;  %v273_v60 = vmul.f32 0.2, %v257_v45 }
  0x32   : > { %404 = vst [vmem:[%s199_s6 + $0x8] sm:$0xff] %v389_v56   ;;  %v279_v61 = vsel %vm263_vm8, %v255_v43, %v271_v57 }
  0x33   : > { %v394_v62 = vpack.c.bf16 %v279_v61, %v278_v58  ;;  %v280_v63 = vsel %vm264_vm9, %v256_v44, %v272_v59  ;;  %v281_v0 = vsel %vm265_vm10, %v257_v45, %v273_v60 }
  0x34   : > { %v399_v1 = vpack.c.bf16 %v281_v0, %v280_v63 }
  0x35   : > { %405 = vst [vmem:[%s199_s6 + $0x10] sm:$0xff] %v394_v62  }
  0x36   : > { %406 = vst [vmem:[%s199_s6 + $0x18] sm:$0xff] %v399_v1  }
  0x37 PF: > { %s14_s15 = sadd.s32 1, %s423_s15  }
  0x38   : > { %p11_p4 = scmp.ge.s32.totalorder %s14_s15, 4  }
  0x3a   :  { %13 = sbr.rel (!%p11_p4) target bundleno = 1 (0x1), region = 66 }

// kernel: discriminator_forward.10
= control target key start
LH: loop header
LB: loop body
LE: loop exit
PB: predicated region body
PF: predicated region fallthrough
CT: control target
= control target key end

     0   :  { %s1863_s12 = smov 0   ;;  %s2219_s0 = inlined_call_operand.vmem [shape: bf16[128,1024], index: 0, kind: input, shape index: {}]   ;;  %s2220_s1 = inlined_call_operand.vmem [shape: bf16[1024,128], index: 1, kind: input, shape index: {}]   ;;  %s2221_s2 = inlined_call_operand.vmem [shape: bf16[128,128], index: 2, kind: output, shape index: {0}]   ;;  %s2222_s3 = inlined_call_operand.vmem [shape: f32[2,128], index: 3, kind: output, shape index: {1}]  }
   0x1 LB: > { %s1869_s13 = sadd.s32 4294967295, %s1840_s12   ;;  %p1304_p0 = scmp.ge.s32.totalorder %s1840_s12, 1  ;;  %s1840_s12 = sphi %s1863_s12, %s14_s12  }
   0x2   : > { %p137_p1 = scmp.lt.s32.totalorder %s1840_s12, 3 }
   0x4   : > { %p138_p2 = pnand %p1304_p0, %p137_p1 }
   0x5   : > { %s1305_s11 = sshll.u32 (!%p138_p2), %s1869_s13, 3  ;;  %p1694_p4 = scmp.ne.s32.totalorder (!%p138_p2), %s1869_s13, 0 }
   0x6   : > { %141 = sbr.rel (%p138_p2) target bundleno = 432 (0x1b0), region = 28  ;;  %p163_p3 = scmp.lt.s32.totalorder (!%p138_p2), %s1305_s11, 15 }
   0xb   : > { %v1739_v0 = vld [vmem:[%s2220_s1 + $0x38] sm:$0xff]  ;;  %v1738_v4 = vld [vmem:[%s2220_s1 + $0x30] sm:$0xff]  ;;  %v1737_v8 = vld [vmem:[%s2220_s1 + $0x28] sm:$0xff]  ;;  %s2224_s11 = smov (!%p163_p3, %s1305_s11), 15 }
   0xc   : > { %v1747_v1 = vld [vmem:[%s2220_s1 + $0x78] sm:$0xff]  ;;  %879 = vmatpush.bf16.msra.mxu0 %v1739_v0  ;;  %v1746_v5 = vld [vmem:[%s2220_s1 + $0x70] sm:$0xff]  ;;  %v1745_v9 = vld [vmem:[%s2220_s1 + $0x68] sm:$0xff]  ;;  %s1699_s14 = sshll.u32 %s2224_s11, 5 }
   0xd   : > { %v1755_v2 = vld [vmem:[%s2220_s1 + $0xb8] sm:$0xff]  ;;  %908 = vmatpush.bf16.msra.mxu1 %v1747_v1  ;;  %v1754_v6 = vld [vmem:[%s2220_s1 + $0xb0] sm:$0xff]  ;;  %v1753_v10 = vld [vmem:[%s2220_s1 + $0xa8] sm:$0xff]  ;;  %s1958_s21 = scalar_lea.vmem %s2219_s0, %s1699_s14 }
   0xe   : > { %v1763_v3 = vld [vmem:[%s2220_s1 + $0xf8] sm:$0xff]  ;;  %937 = vmatpush.bf16.msra.mxu2 %v1755_v2  ;;  %v1762_v7 = vld [vmem:[%s2220_s1 + $0xf0] sm:$0xff]  ;;  %v1761_v11 = vld [vmem:[%s2220_s1 + $0xe8] sm:$0xff] }
   0xf   : > { %966 = vmatpush.bf16.msra.mxu3 %v1763_v3  ;;  %v1736_v12 = vld [vmem:[%s2220_s1 + $0x20] sm:$0xff]  ;;  %v1735_v16 = vld [vmem:[%s2220_s1 + $0x18] sm:$0xff]  ;;  %v1734_v20 = vld [vmem:[%s2220_s1 + $0x10] sm:$0xff] }
  0x10   : > { %880 = vmatpush.bf16.msra.mxu0 %v1738_v4  ;;  %v1744_v13 = vld [vmem:[%s2220_s1 + $0x60] sm:$0xff]  ;;  %v1743_v17 = vld [vmem:[%s2220_s1 + $0x58] sm:$0xff]  ;;  %v1742_v21 = vld [vmem:[%s2220_s1 + $0x50] sm:$0xff] }
  0x11   : > { %909 = vmatpush.bf16.msra.mxu1 %v1746_v5  ;;  %v1752_v14 = vld [vmem:[%s2220_s1 + $0xa0] sm:$0xff]  ;;  %v1751_v18 = vld [vmem:[%s2220_s1 + $0x98] sm:$0xff]  ;;  %v1750_v22 = vld [vmem:[%s2220_s1 + $0x90] sm:$0xff] }
  0x12   : > { %938 = vmatpush.bf16.msra.mxu2 %v1754_v6  ;;  %v1760_v15 = vld [vmem:[%s2220_s1 + $0xe0] sm:$0xff]  ;;  %v1759_v19 = vld [vmem:[%s2220_s1 + $0xd8] sm:$0xff]  ;;  %v1758_v23 = vld [vmem:[%s2220_s1 + $0xd0] sm:$0xff] }
  0x13   : > { %967 = vmatpush.bf16.msra.mxu3 %v1762_v7  ;;  %v1733_v24 = vld [vmem:[%s2220_s1 + $0x8] sm:$0xff]  ;;  %v1732_v28 = vld [vmem:[%s2220_s1] sm:$0xff]  ;;  %v1787_v40 = vld [vmem:[%s2220_s1 + $0x1b8] sm:$0xff] }
  0x14   : > { %881 = vmatpush.bf16.msra.mxu0 %v1737_v8  ;;  %v1741_v25 = vld [vmem:[%s2220_s1 + $0x48] sm:$0xff]  ;;  %v1740_v29 = vld [vmem:[%s2220_s1 + $0x40] sm:$0xff]  ;;  %v1771_v41 = vld [vmem:[%s2220_s1 + $0x138] sm:$0xff] }
  0x15   : > { %910 = vmatpush.bf16.msra.mxu1 %v1745_v9  ;;  %v1749_v26 = vld [vmem:[%s2220_s1 + $0x88] sm:$0xff]  ;;  %v1748_v30 = vld [vmem:[%s2220_s1 + $0x80] sm:$0xff]  ;;  %v1795_v46 = vld [vmem:[%s2220_s1 + $0x1f8] sm:$0xff] }
  0x16   : > { %939 = vmatpush.bf16.msra.mxu2 %v1753_v10  ;;  %v1757_v27 = vld [vmem:[%s2220_s1 + $0xc8] sm:$0xff]  ;;  %v1756_v31 = vld [vmem:[%s2220_s1 + $0xc0] sm:$0xff]  ;;  %v1779_v47 = vld [vmem:[%s2220_s1 + $0x178] sm:$0xff] }
  0x17   : > { %968 = vmatpush.bf16.msra.mxu3 %v1761_v11  ;;  %v1312_v32 = vld [vmem:[%s1958_s21] sm:$0xf]  ;;  %v1700_v34 = vld [vmem:[%s1958_s21 + $0x4] sm:$0xf]  ;;  %v1320_v36 = vld [vmem:[%s1958_s21 + $0x8] sm:$0xf] }
  0x18   : > { %882 = vmatpush.bf16.msra.mxu0 %v1736_v12  ;;  %v1704_v33 = vld [vmem:[%s1958_s21 + $0x1c] sm:$0xf0]  ;;  %v1314_v35 = vld [vmem:[%s1958_s21 + $0x20] sm:$0xf0]  ;;  %v1705_v37 = vld [vmem:[%s1958_s21 + $0x24] sm:$0xf0] }
  0x19   : > { %911 = vmatpush.bf16.msra.mxu1 %v1744_v13  ;;  %v1701_v38 = vld [vmem:[%s1958_s21 + $0xc] sm:$0xf]  ;;  %v1313_v42 = vor.u32 %v1704_v33, %v1312_v32  ;;  %v1317_v43 = vor.u32 %v1700_v34, %v1314_v35  ;;  %v1321_v44 = vor.u32 %v1705_v37, %v1320_v36  ;;  %v1786_v48 = vld [vmem:[%s2220_s1 + $0x1b0] sm:$0xff]  ;;  %v1344_v56 = vld [vmem:[%s1958_s21 + $0x40] sm:$0xf] }
  0x1a   : > { %940 = vmatpush.bf16.msra.mxu2 %v1752_v14  ;;  %v1322_v39 = vld [vmem:[%s1958_s21 + $0x28] sm:$0xf0]  ;;  %v1770_v49 = vld [vmem:[%s2220_s1 + $0x130] sm:$0xff]  ;;  %v1784_v57 = vld [vmem:[%s2220_s1 + $0x1a0] sm:$0xff] }
  0x1b   : > { %969 = vmatpush.bf16.msra.mxu3 %v1760_v15  ;;  %v1325_v45 = vor.u32 %v1701_v38, %v1322_v39  ;;  %v1794_v50 = vld [vmem:[%s2220_s1 + $0x1f0] sm:$0xff]  ;;  %v1785_v52 = vld [vmem:[%s2220_s1 + $0x1a8] sm:$0xff]  ;;  %v1768_v58 = vld [vmem:[%s2220_s1 + $0x120] sm:$0xff] }
  0x1c   : > { %883 = vmatpush.bf16.msra.mxu0 %v1735_v16  ;;  %v1778_v51 = vld [vmem:[%s2220_s1 + $0x170] sm:$0xff]  ;;  %v1769_v53 = vld [vmem:[%s2220_s1 + $0x128] sm:$0xff]  ;;  %v1712_v59 = vld [vmem:[%s1958_s21 + $0x5c] sm:$0xf0] }
  0x1d   : > { %912 = vmatpush.bf16.msra.mxu1 %v1743_v17  ;;  %v1793_v54 = vld [vmem:[%s2220_s1 + $0x1e8] sm:$0xff]  ;;  %v1708_v60 = vld [vmem:[%s1958_s21 + $0x44] sm:$0xf]  ;;  %v1783_v4 = vld [vmem:[%s2220_s1 + $0x198] sm:$0xff]  ;;  %v1345_v6 = vor.u32 %v1712_v59, %v1344_v56 }
  0x1e   : > { %941 = vmatpush.bf16.msra.mxu2 %v1751_v18  ;;  %v1777_v55 = vld [vmem:[%s2220_s1 + $0x168] sm:$0xff]  ;;  %v1346_v61 = vld [vmem:[%s1958_s21 + $0x60] sm:$0xf0]  ;;  %v1767_v5 = vld [vmem:[%s2220_s1 + $0x118] sm:$0xff] }
  0x1f   : > { %970 = vmatpush.bf16.msra.mxu3 %v1759_v19  ;;  %v1352_v62 = vld [vmem:[%s1958_s21 + $0x48] sm:$0xf]  ;;  %v1709_v0 = vld [vmem:[%s1958_s21 + $0x4c] sm:$0xf]  ;;  %v1792_v2 = vld [vmem:[%s2220_s1 + $0x1e0] sm:$0xff]  ;;  %v1349_v7 = vor.u32 %v1708_v60, %v1346_v61 }
  0x20   : > { %884 = vmatpush.bf16.msra.mxu0 %v1734_v20  ;;  %v1713_v63 = vld [vmem:[%s1958_s21 + $0x64] sm:$0xf0]  ;;  %v1354_v1 = vld [vmem:[%s1958_s21 + $0x68] sm:$0xf0]  ;;  %v1776_v3 = vld [vmem:[%s2220_s1 + $0x160] sm:$0xff] }
  0x21   : > { %913 = vmatpush.bf16.msra.mxu1 %v1742_v21  ;;  %v1353_v8 = vor.u32 %v1713_v63, %v1352_v62  ;;  %v1357_v9 = vor.u32 %v1709_v0, %v1354_v1  ;;  %v1791_v10 = vld [vmem:[%s2220_s1 + $0x1d8] sm:$0xff]  ;;  %v1782_v12 = vld [vmem:[%s2220_s1 + $0x190] sm:$0xff]  ;;  %v1781_v16 = vld [vmem:[%s2220_s1 + $0x188] sm:$0xff] }
  0x22   : > { %942 = vmatpush.bf16.msra.mxu2 %v1750_v22  ;;  %v1775_v11 = vld [vmem:[%s2220_s1 + $0x158] sm:$0xff]  ;;  %v1766_v13 = vld [vmem:[%s2220_s1 + $0x110] sm:$0xff]  ;;  %v1765_v17 = vld [vmem:[%s2220_s1 + $0x108] sm:$0xff] }
  0x23   : > { %971 = vmatpush.bf16.msra.mxu3 %v1758_v23  ;;  %v1790_v14 = vld [vmem:[%s2220_s1 + $0x1d0] sm:$0xff]  ;;  %v1789_v18 = vld [vmem:[%s2220_s1 + $0x1c8] sm:$0xff]  ;;  %v1376_v20 = vld [vmem:[%s1958_s21 + $0x80] sm:$0xf] }
  0x24   : > { %885 = vmatpush.bf16.msra.mxu0 %v1733_v24  ;;  %v1774_v15 = vld [vmem:[%s2220_s1 + $0x150] sm:$0xff]  ;;  %v1773_v19 = vld [vmem:[%s2220_s1 + $0x148] sm:$0xff]  ;;  %v1780_v21 = vld [vmem:[%s2220_s1 + $0x180] sm:$0xff] }
  0x25   : > { %914 = vmatpush.bf16.msra.mxu1 %v1741_v25  ;;  %v1764_v22 = vld [vmem:[%s2220_s1 + $0x100] sm:$0xff]  ;;  %v1360_v60 = vld [vmem:[%s1958_s21 + $0x50] sm:$0xf]  ;;  %v1710_v62 = vld [vmem:[%s1958_s21 + $0x54] sm:$0xf] }
  0x26   : > { %943 = vmatpush.bf16.msra.mxu2 %v1749_v26  ;;  %v1720_v23 = vld [vmem:[%s1958_s21 + $0x9c] sm:$0xf0]  ;;  %v1716_v24 = vld [vmem:[%s1958_s21 + $0x84] sm:$0xf]  ;;  %v1384_v26 = vld [vmem:[%s1958_s21 + $0x88] sm:$0xf] }
  0x27   : > { %972 = vmatpush.bf16.msra.mxu3 %v1757_v27  ;;  %v1378_v25 = vld [vmem:[%s1958_s21 + $0xa0] sm:$0xf0]  ;;  %v1721_v27 = vld [vmem:[%s1958_s21 + $0xa4] sm:$0xf0]  ;;  %v1377_v32 = vor.u32 %v1720_v23, %v1376_v20  ;;  %v1408_v36 = vld [vmem:[%s1958_s21 + $0xc0] sm:$0xf] }
  0x28   : > { %886 = vmatpush.bf16.msra.mxu0 %v1732_v28  ;;  %v1717_v28 = vld [vmem:[%s1958_s21 + $0x8c] sm:$0xf]  ;;  %v1381_v33 = vor.u32 %v1716_v24, %v1378_v25  ;;  %v1385_v34 = vor.u32 %v1721_v27, %v1384_v26  ;;  %v1728_v37 = vld [vmem:[%s1958_s21 + $0xdc] sm:$0xf0]  ;;  %v1724_v38 = vld [vmem:[%s1958_s21 + $0xc4] sm:$0xf] }
  0x29   : > { %915 = vmatpush.bf16.msra.mxu1 %v1740_v29  ;;  %v1386_v29 = vld [vmem:[%s1958_s21 + $0xa8] sm:$0xf0]  ;;  %v1410_v39 = vld [vmem:[%s1958_s21 + $0xe0] sm:$0xf0]  ;;  %v1714_v61 = vld [vmem:[%s1958_s21 + $0x6c] sm:$0xf0] }
  0x2a   : > { %944 = vmatpush.bf16.msra.mxu2 %v1748_v30  ;;  %v1788_v30 = vld [vmem:[%s2220_s1 + $0x1c0] sm:$0xff]  ;;  %v1389_v35 = vor.u32 %v1717_v28, %v1386_v29  ;;  %v1362_v63 = vld [vmem:[%s1958_s21 + $0x70] sm:$0xf0]  ;;  %v1368_v0 = vld [vmem:[%s1958_s21 + $0x58] sm:$0xf] }
  0x2b   : > { %973 = vmatpush.bf16.msra.mxu3 %v1756_v31  ;;  %887 = vmatmul.bf16.vlgmr.msra.gmra.mxu0 %v1313_v42  ;;  %v1772_v31 = vld [vmem:[%s2220_s1 + $0x140] sm:$0xff]  ;;  %v1725_v42 = vld [vmem:[%s1958_s21 + $0xcc] sm:$0xf]  ;;  %v1715_v1 = vld [vmem:[%s1958_s21 + $0x74] sm:$0xf0] }
  0x2c   : > { %995 = vmatpush.bf16.msrb.mxu0 %v1771_v41  ;;  %916 = vmatmul.bf16.vlgmr.msra.gmra.mxu1 %v1317_v43  ;;  %v1729_v41 = vld [vmem:[%s1958_s21 + $0xe4] sm:$0xf0]  ;;  %v1418_v43 = vld [vmem:[%s1958_s21 + $0xe8] sm:$0xf0]  ;;  %v1424_v20 = vld [vmem:[%s1958_s21 + $0xd0] sm:$0xf] }
  0x2d   : > { %945 = vmatmul.bf16.vlgmr.msra.gmra.mxu2 %v1321_v44  ;;  %1024 = vmatpush.bf16.msrb.mxu1 %v1779_v47  ;;  %v1409_v44 = vor.u32 %v1728_v37, %v1408_v36  ;;  %v1421_v47 = vor.u32 %v1725_v42, %v1418_v43  ;;  %v1426_v23 = vld [vmem:[%s1958_s21 + $0xf0] sm:$0xf0]  ;;  %v1432_v24 = vld [vmem:[%s1958_s21 + $0xd8] sm:$0xf]  ;;  %v1727_v26 = vld [vmem:[%s1958_s21 + $0xdc] sm:$0xf] }
  0x2e   : > { %1053 = vmatpush.bf16.msrb.mxu2 %v1787_v40  ;;  %974 = vmatmul.bf16.vlgmr.msra.gmra.mxu3 %v1325_v45  ;;  %v1416_v40 = vld [vmem:[%s1958_s21 + $0xc8] sm:$0xf]  ;;  %v1413_v45 = vor.u32 %v1724_v38, %v1410_v39  ;;  %v1731_v25 = vld [vmem:[%s1958_s21 + $0xf4] sm:$0xf0]  ;;  %v1434_v27 = vld [vmem:[%s1958_s21 + $0xf8] sm:$0xf0] }
  0x2f   : > { %1082 = vmatpush.bf16.msrb.mxu3 %v1795_v46  ;;  %v1417_v46 = vor.u32 %v1729_v41, %v1416_v40 }
  0x30   : > { %996 = vmatpush.bf16.msrb.mxu0 %v1770_v49  ;;  %v1706_v49 = vld [vmem:[%s1958_s21 + $0x2c] sm:$0xf0] }
  0x31   : > { %1025 = vmatpush.bf16.msrb.mxu1 %v1778_v51  ;;  %v1330_v51 = vld [vmem:[%s1958_s21 + $0x30] sm:$0xf0] }
  0x32   : > { %1054 = vmatpush.bf16.msrb.mxu2 %v1786_v48  ;;  %v1328_v48 = vld [vmem:[%s1958_s21 + $0x10] sm:$0xf] }
  0x33   : > { %1083 = vmatpush.bf16.msrb.mxu3 %v1794_v50  ;;  %v1702_v50 = vld [vmem:[%s1958_s21 + $0x14] sm:$0xf]  ;;  %v1329_v56 = vor.u32 %v1706_v49, %v1328_v48 }
  0x34   : > { %997 = vmatpush.bf16.msrb.mxu0 %v1769_v53  ;;  %v1707_v53 = vld [vmem:[%s1958_s21 + $0x34] sm:$0xf0] }
  0x35   : > { %1026 = vmatpush.bf16.msrb.mxu1 %v1777_v55  ;;  %v1338_v55 = vld [vmem:[%s1958_s21 + $0x38] sm:$0xf0] }
  0x36   : > { %1055 = vmatpush.bf16.msrb.mxu2 %v1785_v52  ;;  %v1336_v52 = vld [vmem:[%s1958_s21 + $0x18] sm:$0xf] }
  0x37   : > { %1084 = vmatpush.bf16.msrb.mxu3 %v1793_v54  ;;  %v1703_v54 = vld [vmem:[%s1958_s21 + $0x1c] sm:$0xf] }
  0x38   : > { %998 = vmatpush.bf16.msrb.mxu0 %v1768_v58  ;;  %v1337_v58 = vor.u32 %v1707_v53, %v1336_v52  ;;  %v1341_v59 = vor.u32 %v1703_v54, %v1338_v55 }
  0x39   : > { %1027 = vmatpush.bf16.msrb.mxu1 %v1776_v3  ;;  %v1370_v3 = vld [vmem:[%s1958_s21 + $0x78] sm:$0xf0] }
  0x3a   : > { %1056 = vmatpush.bf16.msrb.mxu2 %v1784_v57  ;;  %v1333_v57 = vor.u32 %v1702_v50, %v1330_v51 }
  0x3b   : > { %1085 = vmatpush.bf16.msrb.mxu3 %v1792_v2  ;;  %892 = vmatmul.bf16.gmra.mxu0 %v1345_v6  ;;  %v1711_v2 = vld [vmem:[%s1958_s21 + $0x5c] sm:$0xf]  ;;  %v1369_v6 = vor.u32 %v1715_v1, %v1368_v0 }
  0x3c   : > { %999 = vmatpush.bf16.msrb.mxu0 %v1767_v5  ;;  %921 = vmatmul.bf16.gmra.mxu1 %v1349_v7  ;;  %v1365_v5 = vor.u32 %v1710_v62, %v1362_v63  ;;  %v1373_v7 = vor.u32 %v1711_v2, %v1370_v3 }
  0x3d   : > { %950 = vmatmul.bf16.gmra.mxu2 %v1353_v8  ;;  %1028 = vmatpush.bf16.msrb.mxu1 %v1775_v11  ;;  %v1392_v8 = vld [vmem:[%s1958_s21 + $0x90] sm:$0xf]  ;;  %v1394_v11 = vld [vmem:[%s1958_s21 + $0xb0] sm:$0xf0] }
  0x3e   : > { %1057 = vmatpush.bf16.msrb.mxu2 %v1783_v4  ;;  %979 = vmatmul.bf16.gmra.mxu3 %v1357_v9  ;;  %v1361_v4 = vor.u32 %v1714_v61, %v1360_v60  ;;  %v1722_v9 = vld [vmem:[%s1958_s21 + $0xac] sm:$0xf0] }
  0x3f   : > { %1086 = vmatpush.bf16.msrb.mxu3 %v1791_v10  ;;  %v1718_v10 = vld [vmem:[%s1958_s21 + $0x94] sm:$0xf] }
  0x40   : > { %1000 = vmatpush.bf16.msrb.mxu0 %v1766_v13  ;;  %v1723_v13 = vld [vmem:[%s1958_s21 + $0xb4] sm:$0xf0] }
  0x41   : > { %1029 = vmatpush.bf16.msrb.mxu1 %v1774_v15  ;;  %v1402_v15 = vld [vmem:[%s1958_s21 + $0xb8] sm:$0xf0] }
  0x42   : > { %1058 = vmatpush.bf16.msrb.mxu2 %v1782_v12  ;;  %v1400_v12 = vld [vmem:[%s1958_s21 + $0x98] sm:$0xf] }
  0x43   : > { %1087 = vmatpush.bf16.msrb.mxu3 %v1790_v14  ;;  %v1719_v14 = vld [vmem:[%s1958_s21 + $0x9c] sm:$0xf] }
  0x44   : > { %1001 = vmatpush.bf16.msrb.mxu0 %v1765_v17  ;;  %v1397_v17 = vor.u32 %v1718_v10, %v1394_v11 }
  0x45   : > { %1030 = vmatpush.bf16.msrb.mxu1 %v1773_v19  ;;  %v1405_v19 = vor.u32 %v1719_v14, %v1402_v15 }
  0x46   : > { %1059 = vmatpush.bf16.msrb.mxu2 %v1781_v16  ;;  %v1393_v16 = vor.u32 %v1722_v9, %v1392_v8 }
  0x47   : > { %1088 = vmatpush.bf16.msrb.mxu3 %v1789_v18  ;;  %v1401_v18 = vor.u32 %v1723_v13, %v1400_v12 }
  0x48   : > { %1002 = vmatpush.bf16.msrb.mxu0 %v1764_v22  ;;  %v1726_v22 = vld [vmem:[%s1958_s21 + $0xd4] sm:$0xf] }
  0x49   : > { %1031 = vmatpush.bf16.msrb.mxu1 %v1772_v31  ;;  %v1429_v29 = vor.u32 %v1726_v22, %v1426_v23  ;;  %v1437_v31 = vor.u32 %v1727_v26, %v1434_v27 }
  0x4a   : > { %1060 = vmatpush.bf16.msrb.mxu2 %v1780_v21  ;;  %v1730_v21 = vld [vmem:[%s1958_s21 + $0xec] sm:$0xf0]  ;;  %s1309_s21 = sshll.u32 %s2224_s11, 2 }
  0x4b   : > { %1089 = vmatpush.bf16.msrb.mxu3 %v1788_v30  ;;  %897 = vmatmul.bf16.gmra.mxu0 %v1377_v32  ;;  %v1425_v28 = vor.u32 %v1730_v21, %v1424_v20  ;;  %v1433_v30 = vor.u32 %v1731_v25, %v1432_v24  ;;  %s2164_s4 = scalar_lea.vmem %s2221_s2, %s1309_s21 }
  0x4c   : > { %926 = vmatmul.bf16.gmra.mxu1 %v1381_v33 }
  0x4d   : > { %955 = vmatmul.bf16.gmra.mxu2 %v1385_v34 }
  0x4e   : > { %984 = vmatmul.bf16.gmra.mxu3 %v1389_v35 }
  0x5b   : > { %902 = vmatmul.bf16.gmra.mxu0 %v1409_v44 }
  0x5c   : > { %931 = vmatmul.bf16.gmra.mxu1 %v1413_v45 }
  0x5d   : > { %960 = vmatmul.bf16.gmra.mxu2 %v1417_v46 }
  0x5e   : > { %989 = vmatmul.bf16.gmra.mxu3 %v1421_v47 }
  0x6b   : > { %1003 = vmatmul.bf16.vlgmr.msrb.gmra.mxu0 %v1329_v56 }
  0x6c   : > { %1032 = vmatmul.bf16.vlgmr.msrb.gmra.mxu1 %v1333_v57 }
  0x6d   : > { %1061 = vmatmul.bf16.vlgmr.msrb.gmra.mxu2 %v1337_v58 }
  0x6e   : > { %1090 = vmatmul.bf16.vlgmr.msrb.gmra.mxu3 %v1341_v59 }
  0x7b   : > { %1008 = vmatmul.bf16.gmra.mxu0 %v1361_v4 }
  0x7c   : > { %1037 = vmatmul.bf16.gmra.mxu1 %v1365_v5 }
  0x7d   : > { %1066 = vmatmul.bf16.gmra.mxu2 %v1369_v6 }
  0x7e   : > { %1095 = vmatmul.bf16.gmra.mxu3 %v1373_v7 }
  0x8b   : > { %1013 = vmatmul.bf16.gmra.mxu0 %v1393_v16 }
  0x8c   : > { %1042 = vmatmul.bf16.gmra.mxu1 %v1397_v17 }
  0x8d   : > { %1071 = vmatmul.bf16.gmra.mxu2 %v1401_v18 }
  0x8e   : > { %1100 = vmatmul.bf16.gmra.mxu3 %v1405_v19 }
  0x9b   : > { %1018 = vmatmul.bf16.gmra.mxu0 %v1425_v28 }
  0x9c   : > { %1047 = vmatmul.bf16.gmra.mxu1 %v1429_v29 }
  0x9d   : > { %1076 = vmatmul.bf16.gmra.mxu2 %v1433_v30 }
  0x9e   : > { %1105 = vmatmul.bf16.gmra.mxu3 %v1437_v31 }
  0xa8   : > { %v888_v32 = vpop.f32.mrf.mxu0 }
  0xa9   : > { %v917_v33 = vpop.f32.mrf.mxu1 }
  0xaa   : > { %v918_v34 = vadd.f32 %v917_v33, %v888_v32 }
  0xb0   : > { %v946_v35 = vpop.f32.mrf.mxu2  ;;  %v890_v38 = vpop.f32.mrf.mxu0 }
  0xb1   : > { %v975_v36 = vpop.f32.mrf.mxu3  ;;  %v947_v37 = vadd.f32 %v946_v35, %v918_v34  ;;  %v919_v39 = vpop.f32.mrf.mxu1 }
  0xb2   : > { %v920_v11 = vadd.f32 %v919_v39, %v890_v38 }
  0xb3   : > { %v976_v40 = vadd.f32 %v975_v36, %v947_v37 }
  0xb8   : > { %v948_v41 = vpop.f32.mrf.mxu2  ;;  %v893_v43 = vpop.f32.mrf.mxu0 }
  0xb9   : > { %v977_v42 = vpop.f32.mrf.mxu3  ;;  %v922_v44 = vpop.f32.mrf.mxu1  ;;  %v949_v12 = vadd.f32 %v948_v41, %v920_v11 }
  0xba   : > { %v923_v45 = vadd.f32 %v922_v44, %v893_v43 }
  0xbb   : > { %v978_v15 = vadd.f32 %v977_v42, %v949_v12 }
  0xc0   : > { %v951_v46 = vpop.f32.mrf.mxu2  ;;  %v895_v49 = vpop.f32.mrf.mxu0 }
  0xc1   : > { %v980_v47 = vpop.f32.mrf.mxu3  ;;  %v952_v48 = vadd.f32 %v951_v46, %v923_v45  ;;  %v924_v50 = vpop.f32.mrf.mxu1 }
  0xc2   : > { %v925_v28 = vadd.f32 %v924_v50, %v895_v49 }
  0xc3   : > { %v981_v51 = vadd.f32 %v980_v47, %v952_v48 }
  0xc8   : > { %v953_v52 = vpop.f32.mrf.mxu2  ;;  %v898_v54 = vpop.f32.mrf.mxu0 }
  0xc9   : > { %v982_v53 = vpop.f32.mrf.mxu3  ;;  %v927_v55 = vpop.f32.mrf.mxu1  ;;  %v954_v32 = vadd.f32 %v953_v52, %v925_v28 }
  0xca   : > { %v928_v56 = vadd.f32 %v927_v55, %v898_v54 }
  0xcb   : > { %v983_v37 = vadd.f32 %v982_v53, %v954_v32 }
  0xd0   : > { %v956_v57 = vpop.f32.mrf.mxu2  ;;  %v900_v60 = vpop.f32.mrf.mxu0 }
  0xd1   : > { %v985_v58 = vpop.f32.mrf.mxu3  ;;  %v957_v59 = vadd.f32 %v956_v57, %v928_v56  ;;  %v929_v61 = vpop.f32.mrf.mxu1 }
  0xd3   : > { %v986_v62 = vadd.f32 %v985_v58, %v957_v59 }
  0xd8   : > { %v958_v63 = vpop.f32.mrf.mxu2  ;;  %v2140_v1 = vpop.f32.mrf.mxu0 }
  0xd9   : > { %v2138_v0 = vpop.f32.mrf.mxu3  ;;  %v2142_v2 = vpop.f32.mrf.mxu1 }
  0xda   : > { %v933_v12 = vadd.f32 %v2142_v2, %v2140_v1 }
  0xe0   : > { %v2144_v3 = vpop.f32.mrf.mxu2  ;;  %v2148_v5 = vpop.f32.mrf.mxu0 }
  0xe1   : > { %v2146_v4 = vpop.f32.mrf.mxu3  ;;  %v2150_v6 = vpop.f32.mrf.mxu1 }
  0xe8   : > { %v2152_v7 = vpop.f32.mrf.mxu2  ;;  %v1004_v9 = vpop.f32.mrf.mxu0 }
  0xe9   : > { %v2154_v8 = vpop.f32.mrf.mxu3  ;;  %v1033_v10 = vpop.f32.mrf.mxu1  ;;  %v1005_v16 = vadd.f32 %v1004_v9, %v976_v40 }
  0xeb   : > { %v1034_v20 = vadd.f32 %v1033_v10, %v1005_v16 }
  0xf0   : > { %v1062_v13 = vpop.f32.mrf.mxu2  ;;  %v1006_v17 = vpop.f32.mrf.mxu0 }
  0xf1   : > { %v1091_v14 = vpop.f32.mrf.mxu3  ;;  %v1035_v18 = vpop.f32.mrf.mxu1  ;;  %v1007_v19 = vadd.f32 %v1006_v17, %v978_v15  ;;  %v1063_v21 = vadd.f32 %v1062_v13, %v1034_v20 }
  0xf3   : > { %v1036_v22 = vadd.f32 %v1035_v18, %v1007_v19  ;;  %v2157_v29 = vadd.f32 %v1091_v14, %v1063_v21  ;;  %v935_v19 = vadd.f32 %v2150_v6, %v2148_v5 }
  0xf5   : > { %v964_v21 = vadd.f32 %v2152_v7, %v935_v19 }
  0xf8   : > { %v1064_v23 = vpop.f32.mrf.mxu2  ;;  %v1009_v26 = vpop.f32.mrf.mxu0 }
  0xf9   : > { %v1093_v24 = vpop.f32.mrf.mxu3  ;;  %v1065_v25 = vadd.f32 %v1064_v23, %v1036_v22  ;;  %v1038_v27 = vpop.f32.mrf.mxu1  ;;  %v1010_v31 = vadd.f32 %v1009_v26, %v981_v51  ;;  %v930_v51 = vadd.f32 %v929_v61, %v900_v60  ;;  %v993_v26 = vadd.f32 %v2154_v8, %v964_v21 }
  0xfb   : > { %v2159_v30 = vadd.f32 %v1093_v24, %v1065_v25  ;;  %v1039_v34 = vadd.f32 %v1038_v27, %v1010_v31  ;;  %v959_v54 = vadd.f32 %v958_v63, %v930_v51  ;;  %v962_v63 = vadd.f32 %v2144_v3, %v933_v12 }
  0xfc   : > { %v1842_v3 = vmov 64.0  }
  0xfd   : > { %v1799_v33 = vpack.c.bf16 %v2159_v30, %v2157_v29  ;;  %v1127_v41 = vadd.f32 %v2159_v30, %v2157_v29  ;;  %v988_v59 = vadd.f32 %v2138_v0, %v959_v54  ;;  %v991_v17 = vadd.f32 %v2146_v4, %v962_v63 }
  0xfe   : > { %1830 = vrcp.f32 %v1842_v3 }
  0xff   : > { %1800 = vst [vmem:[%s2164_s4] sm:$0xff] %v1799_v33  }
 0x100   : > { %v1067_v35 = vpop.f32.mrf.mxu2  ;;  %v1011_v39 = vpop.f32.mrf.mxu0 }
 0x101   : > { %v1096_v36 = vpop.f32.mrf.mxu3  ;;  %v1068_v38 = vadd.f32 %v1067_v35, %v1039_v34  ;;  %v1040_v40 = vpop.f32.mrf.mxu1  ;;  %v1012_v43 = vadd.f32 %v1011_v39, %v983_v37 }
 0x103   : > { %v2171_v42 = vadd.f32 %v1096_v36, %v1068_v38  ;;  %v1041_v45 = vadd.f32 %v1040_v40, %v1012_v43 }
 0x104   : > { %v1831_v6 = vpop.eup %1830 }
 0x105   : > { %v1128_v44 = vadd.f32 %v1127_v41, %v2171_v42  ;;  %v1141_v35 = vmul.f32 64.0, %v1831_v6  ;;  %vm1145_vm0 = vweird.f32 %v1831_v6 }
 0x107   : > { %v1142_v39 = vsub.f32 1.0, %v1141_v35 }
 0x108   : > { %v1069_v46 = vpop.f32.mrf.mxu2  ;;  %v1014_v49 = vpop.f32.mrf.mxu0 }
 0x109   : > { %v1098_v47 = vpop.f32.mrf.mxu3  ;;  %v1070_v48 = vadd.f32 %v1069_v46, %v1041_v45  ;;  %v1043_v50 = vpop.f32.mrf.mxu1  ;;  %v1015_v53 = vadd.f32 %v1014_v49, %v986_v62  ;;  %v1143_v43 = vmul.f32 %v1831_v6, %v1142_v39 }
 0x10b   : > { %v2174_v52 = vadd.f32 %v1098_v47, %v1070_v48  ;;  %v1044_v56 = vadd.f32 %v1043_v50, %v1015_v53  ;;  %v1144_v46 = vadd.f32 %v1831_v6, %v1143_v43 }
 0x10d   : > { %v1804_v55 = vpack.c.bf16 %v2174_v52, %v2171_v42  ;;  %v1129_v60 = vadd.f32 %v1128_v44, %v2174_v52  ;;  %v1146_v49 = vsel %vm1145_vm0, %v1831_v6, %v1144_v46 }
 0x10f   : > { %1816 = vst [vmem:[%s2164_s4 + $0x8] sm:$0xff] %v1804_v55  }
 0x110   : > { %v1072_v57 = vpop.f32.mrf.mxu2  ;;  %v1016_v10 = vpop.f32.mrf.mxu0 }
 0x111   : > { %v1101_v58 = vpop.f32.mrf.mxu3  ;;  %v1073_v9 = vadd.f32 %v1072_v57, %v1044_v56  ;;  %v1045_v11 = vpop.f32.mrf.mxu1  ;;  %v1017_v62 = vadd.f32 %v1016_v10, %v988_v59 }
 0x113   : > { %v1102_v61 = vadd.f32 %v1101_v58, %v1073_v9  ;;  %v1046_v14 = vadd.f32 %v1045_v11, %v1017_v62 }
 0x115   : > { %v1130_v13 = vadd.f32 %v1129_v60, %v1102_v61 }
 0x118   : > { %v1074_v15 = vpop.f32.mrf.mxu2  ;;  %v1019_v18 = vpop.f32.mrf.mxu0 }
 0x119   : > { %v1103_v16 = vpop.f32.mrf.mxu3  ;;  %v1075_v0 = vadd.f32 %v1074_v15, %v1046_v14  ;;  %v1020_v1 = vadd.f32 %v1019_v18, %v991_v17  ;;  %v1048_v2 = vpop.f32.mrf.mxu1 }
 0x11b   : > { %v1104_v20 = vadd.f32 %v1103_v16, %v1075_v0  ;;  %v1049_v23 = vadd.f32 %v1048_v2, %v1020_v1 }
 0x11d   : > { %v1809_v22 = vpack.c.bf16 %v1104_v20, %v1102_v61  ;;  %v1131_v28 = vadd.f32 %v1130_v13, %v1104_v20 }
 0x11f   : > { %1817 = vst [vmem:[%s2164_s4 + $0x10] sm:$0xff] %v1809_v22  }
 0x120   : > { %v1077_v24 = vpop.f32.mrf.mxu2  ;;  %v1021_v27 = vpop.f32.mrf.mxu0 }
 0x121   : > { %v1106_v25 = vpop.f32.mrf.mxu3  ;;  %v1078_v4 = vadd.f32 %v1077_v24, %v1049_v23  ;;  %v1022_v5 = vadd.f32 %v1021_v27, %v993_v26  ;;  %v1050_v33 = vpop.f32.mrf.mxu1 }
 0x123   : > { %v1107_v31 = vadd.f32 %v1106_v25, %v1078_v4  ;;  %v1051_v34 = vadd.f32 %v1050_v33, %v1022_v5 }
 0x125   : > { %v1132_v32 = vadd.f32 %v1131_v28, %v1107_v31 }
 0x128   : > { %v1079_v7 = vpop.f32.mrf.mxu2 }
 0x129   : > { %v1080_v36 = vadd.f32 %v1079_v7, %v1051_v34  ;;  %v1108_v37 = vpop.f32.mrf.mxu3 }
 0x12b   : > { %v1109_v38 = vadd.f32 %v1108_v37, %v1080_v36 }
 0x12d   : > { %v1814_v40 = vpack.c.bf16 %v1109_v38, %v1107_v31  ;;  %v1133_v41 = vadd.f32 %v1132_v32, %v1109_v38 }
 0x12f   : > { %1818 = vst [vmem:[%s2164_s4 + $0x18] sm:$0xff] %v1814_v40   ;;  %v1134_v8 = vrot.slane %v1133_v41, 4 }
 0x131   : > { %v1135_v44 = vadd.f32 %v1134_v8, %v1133_v41 }
 0x133   : > { %v1136_v45 = vrot.slane %v1135_v44, 2 }
 0x135   : > { %v1137_v47 = vadd.f32 %v1136_v45, %v1135_v44 }
 0x137   : > { %v1138_v48 = vrot.slane %v1137_v47, 1 }
 0x139   : > { %v1139_v50 = vadd.f32 %v1138_v48, %v1137_v47 }
 0x13b   : > { %v1147_v51 = vmul.f32 %v1146_v49, %v1139_v50 }
 0x13d   : > { %v1148_v53 = vsub.f32 %v2157_v29, %v1147_v51  ;;  %v1149_v54 = vsub.f32 %v2159_v30, %v1147_v51  ;;  %v1150_v55 = vsub.f32 %v2171_v42, %v1147_v51  ;;  %v1152_v56 = vsub.f32 %v1102_v61, %v1147_v51 }
 0x13e   : > { %v1154_v57 = vsub.f32 %v1107_v31, %v1147_v51  ;;  %v1151_v58 = vsub.f32 %v2174_v52, %v1147_v51  ;;  %v1153_v12 = vsub.f32 %v1104_v20, %v1147_v51  ;;  %v1155_v14 = vsub.f32 %v1109_v38, %v1147_v51 }
 0x13f   : > { %v1156_v59 = vmul.f32 %v1148_v53, %v1148_v53  ;;  %v1157_v9 = vmul.f32 %v1149_v54, %v1149_v54  ;;  %v1158_v10 = vmul.f32 %v1150_v55, %v1150_v55  ;;  %v1160_v63 = vmul.f32 %v1152_v56, %v1152_v56 }
 0x140   : > { %v1159_v60 = vmul.f32 %v1151_v58, %v1151_v58  ;;  %v1161_v15 = vmul.f32 %v1153_v12, %v1153_v12  ;;  %v1162_v16 = vmul.f32 %v1154_v57, %v1154_v57  ;;  %v1163_v17 = vmul.f32 %v1155_v14, %v1155_v14 }
 0x141   : > { %v1164_v11 = vadd.f32 %v1157_v9, %v1156_v59 }
 0x143   : > { %v1165_v62 = vadd.f32 %v1164_v11, %v1158_v10 }
 0x145   : > { %v1166_v13 = vadd.f32 %v1165_v62, %v1159_v60 }
 0x147   : > { %v1167_v29 = vadd.f32 %v1166_v13, %v1160_v63 }
 0x149   : > { %v1168_v30 = vadd.f32 %v1167_v29, %v1161_v15 }
 0x14b   : > { %v1169_v42 = vadd.f32 %v1168_v30, %v1162_v16 }
 0x14d   : > { %v1170_v61 = vadd.f32 %v1169_v42, %v1163_v17 }
 0x14f   : > { %v1171_v0 = vrot.slane %v1170_v61, 4 }
 0x151   : > { %v1172_v18 = vadd.f32 %v1171_v0, %v1170_v61 }
 0x153   : > { %v1173_v52 = vrot.slane %v1172_v18, 2 }
 0x155   : > { %v1174_v19 = vadd.f32 %v1173_v52, %v1172_v18  ;;  %1180 = sbr.rel (%p1694_p4) target bundleno = 348 (0x15c), region = 32 }
 0x157   : > { %v1175_v1 = vrot.slane %v1174_v19, 1 }
 0x159   : > { %v1176_v2 = vadd.f32 %v1175_v1, %v1174_v19 }
 0x15a   : > { %1181 = vst [vmem:[%s2222_s3] sm:$0x1] %v1147_v51 }
 0x15b   : > { %1182 = vst [vmem:[%s2222_s3 + $0x1] sm:$0x1] %v1176_v2 }
 0x15c PF: > { %p1695_p5 = scmp.le.s32.totalorder %s1869_s13, 0 }
 0x15d   : > { %s1696_s8 = sshll.u32 (!%p1695_p5), %s1869_s13, 6 }
 0x15e   : > { %1186 = sbr.rel (%p1695_p5) target bundleno = 432 (0x1b0), region = 36  ;;  %s1188_s9 = scvt.s32.f32 (!%p1695_p5), %s1696_s8 }
 0x160   : > { %s1189_s10 = sadd.f32 (!%p1695_p5), 64.0, %s1188_s9  ;;  %s1216_s15 = smul.f32 (!%p1695_p5), 64.0, %s1188_s9 }
 0x163   : > { %v1192_v20 = vstv %s1189_s10  ;;  %v1190_v31 = vld [vmem:[%s2222_s3] sm:$0x1]  ;;  %v1213_v6 = vld [vmem:[%s2222_s3 + $0x1] sm:$0x1] }
 0x164   : > { %1832 = vrcp.f32 %v1192_v20  ;;  %v1204_v23 = vand.u32 2147483648, %v1192_v20  ;;  %vm1198_vm1 = vweird.f32 %v1192_v20  ;;  %v1202_v24 = vand.u32 2147483647, %v1192_v20 }
 0x165   : > { %v1191_v5 = vsub.f32 %v1147_v51, %v1190_v31  ;;  %v1214_v34 = vadd.f32 %v1213_v6, %v1176_v2 }
 0x166   : > { %v1205_v26 = vor.u32 1.1754944e-38, %v1204_v23  ;;  %vm1203_vm4 = vcmp.eq.f32.partialorder %v1202_v24, 8.507059e+37 }
 0x167   : > { %v1215_v32 = vmul.f32 %v1191_v5, %v1191_v5 }
 0x16a   : > { %v1833_v21 = vpop.eup %1832 }
 0x16b   : > { %v1194_v22 = vmul.f32 %v1833_v21, %v1192_v20  ;;  %vm1199_vm2 = vweird.f32 %v1833_v21 }
 0x16c   : > { %vm1200_vm3 = vmor %vm1198_vm1, %vm1199_vm2 }
 0x16d   : > { %v1195_v3 = vsub.f32 1.0, %v1194_v22 }
 0x16f   : > { %v1196_v25 = vmul.f32 %v1833_v21, %v1195_v3 }
 0x171   : > { %v1197_v4 = vadd.f32 %v1833_v21, %v1196_v25 }
 0x173   : > { %v1201_v27 = vsel %vm1200_vm3, %v1833_v21, %v1197_v4 }
 0x174   : > { %v1206_v28 = vsel %vm1203_vm4, %v1205_v26, %v1201_v27 }
 0x175   : > { %1819 = vpush %v1206_v28 }
 0x1a6   : > { %s1820_s16 = spop %1819 }
 0x1a7   : > { %s1208_s19 = smul.f32 64.0, %s1820_s16 }
 0x1a8   : > { %s1233_s20 = smul.f32 %s1820_s16, %s1216_s15 }
 0x1a9   : > { %v1209_v33 = vstv %s1208_s19 }
 0x1aa   : > { %v1210_v7 = vmul.f32 %v1209_v33, %v1191_v5  ;;  %v1234_v35 = vstv %s1233_s20 }
 0x1ab   : > { %v1235_v36 = vmul.f32 %v1234_v35, %v1215_v32 }
 0x1ac   : > { %v1211_v37 = vadd.f32 %v1210_v7, %v1190_v31 }
 0x1ad   : > { %v1236_v38 = vadd.f32 %v1235_v36, %v1214_v34 }
 0x1ae   : > { %1212 = vst [vmem:[%s2222_s3] sm:$0x1] %v1211_v37 }
 0x1af   : > { %1237 = vst [vmem:[%s2222_s3 + $0x1] sm:$0x1] %v1236_v38 }
 0x1b0 PF: > { %s14_s12 = sadd.s32 1, %s1840_s12  }
 0x1b1   : > { %p11_p6 = scmp.ge.s32.totalorder %s14_s12, 4  }
 0x1b3   :  { %13 = sbr.rel (!%p11_p6) target bundleno = 1 (0x1), region = 74 }

// kernel: discriminator_forward.13
= control target key start
LH: loop header
LB: loop body
LE: loop exit
PB: predicated region body
PF: predicated region fallthrough
CT: control target
= control target key end

     0   :  { %s428_s18 = smov 0   ;;  %s476_s0 = inlined_call_operand.vmem [shape: bf16[32,256], index: 0, kind: input, shape index: {}]   ;;  %s477_s1 = inlined_call_operand.vmem [shape: f32[2,256], index: 1, kind: input, shape index: {}]   ;;  %s478_s2 = inlined_call_operand.vmem [shape: f32[1,256], index: 2, kind: input, shape index: {}]   ;;  %s479_s3 = inlined_call_operand.vmem [shape: f32[1,256], index: 3, kind: input, shape index: {}]   ;;  %s480_s4 = inlined_call_operand.vmem [shape: f32[16,256], index: 4, kind: input, shape index: {}]   ;;  %s481_s5 = inlined_call_operand.vmem [shape: f32[32,128], index: 5, kind: output, shape index: {}]  }
   0x1 LB: > { %s366_s19 = sadd.s32 4294967295, %s396_s18   ;;  %p370_p0 = scmp.ge.s32.totalorder %s396_s18, 1  ;;  %s396_s18 = sphi %s428_s18, %s15_s18  }
   0x2   : > { %p189_p1 = scmp.lt.s32.totalorder %s396_s18, 3 }
   0x4   : > { %p190_p2 = pnand %p370_p0, %p189_p1 }
   0x5   : > { %s371_s22 = sshll.u32 (!%p190_p2), %s366_s19, 1 }
   0x6   : > { %193 = sbr.rel (%p190_p2) target bundleno = 191 (0xbf), region = 40  ;;  %p219_p3 = scmp.lt.s32.totalorder (!%p190_p2), %s371_s22, 3 }
   0xb   : > { %v376_v0 = vld [vmem:[%s477_s1 + $0x1] ss:$2 sm:$0x3]  ;;  %s483_s22 = smov (!%p219_p3, %s371_s22), 3  ;;  %v288_v35 = vld [vmem:[%s480_s4 + $0x8] sm:$0xff]  ;;  %v289_v46 = vld [vmem:[%s480_s4 + $0x10] sm:$0xff] }
   0xc   : > { %v234_v1 = vmul.f32 0.03125, %v376_v0  ;;  %s379_s23 = sshll.u32 %s483_s22, 3  ;;  %v235_v8 = vld [vmem:[%s478_s2] sm:$0x3]  ;;  %v290_v47 = vld [vmem:[%s480_s4 + $0x18] sm:$0xff] }
   0xd   : > { %s223_s26 = scalar_lea.vmem %s476_s0, %s379_s23  ;;  %v231_v12 = vld [vmem:[%s477_s1] ss:$2 sm:$0x3]  ;;  %s229_s19 = scalar_lea.vmem %s481_s5, %s379_s23 }
   0xe   : > { %v236_v2 = vadd.f32 1e-05, %v234_v1  ;;  %v251_v10 = vld [vmem:[%s223_s26] sm:$0xff]  ;;  %v252_v11 = vld [vmem:[%s223_s26 + $0x8] sm:$0xff] }
   0xf   : > { %v253_v15 = vunpack.c.l.bf16 %v251_v10  ;;  %v254_v16 = vunpack.c.h.bf16 %v251_v10  ;;  %v255_v17 = vunpack.c.l.bf16 %v252_v11  ;;  %v248_v18 = vld [vmem:[%s479_s3] sm:$0x3]  ;;  %v256_v19 = vunpack.c.h.bf16 %v252_v11 }
  0x10   : > { %388 = vrsqrt.f32 %v236_v2  ;;  %vm243_vm0 = vweird.f32 %v236_v2  ;;  %v287_v34 = vld [vmem:[%s480_s4] sm:$0xff] }
  0x16   : > { %v389_v3 = vpop.eup %388 }
  0x17   : > { %v238_v4 = vmul.f32 %v389_v3, %v236_v2  ;;  %vm244_vm1 = vweird.f32 %v389_v3 }
  0x18   : > { %vm245_vm2 = vmor %vm243_vm0, %vm244_vm1 }
  0x19   : > { %v239_v5 = vmul.f32 %v389_v3, %v238_v4 }
  0x1b   : > { %v240_v6 = vmul.f32 0.5, %v239_v5 }
  0x1d   : > { %v241_v7 = vsub.f32 1.5, %v240_v6 }
  0x1f   : > { %v242_v9 = vmul.f32 %v389_v3, %v241_v7 }
  0x21   : > { %v246_v13 = vsel %vm245_vm2, %v389_v3, %v242_v9 }
  0x22   : > { %v247_v14 = vmul.f32 %v246_v13, %v235_v8 }
  0x24   : > { %v249_v20 = vmul.f32 %v247_v14, %v231_v12  ;;  %v258_v21 = vperm.slane %v247_v14, 0  ;;  %v259_v22 = vperm.slane %v247_v14, 1 }
  0x26   : > { %v250_v23 = vsub.f32 %v248_v18, %v249_v20  ;;  %v262_v24 = vmul.f32 %v258_v21, %v253_v15  ;;  %v263_v25 = vmul.f32 %v259_v22, %v254_v16  ;;  %v264_v26 = vmul.f32 %v258_v21, %v255_v17 }
  0x27   : > { %v265_v27 = vmul.f32 %v259_v22, %v256_v19 }
  0x28   : > { %v267_v28 = vperm.slane %v250_v23, 0  ;;  %v268_v29 = vperm.slane %v250_v23, 1 }
  0x2a   : > { %v271_v30 = vadd.f32 %v267_v28, %v262_v24  ;;  %v272_v31 = vadd.f32 %v268_v29, %v263_v25  ;;  %v273_v32 = vadd.f32 %v267_v28, %v264_v26  ;;  %v274_v33 = vadd.f32 %v268_v29, %v265_v27 }
  0x2c   : > { %vm275_vm3 = vcmp.gt.f32.partialorder %v271_v30, 0.0  ;;  %vm276_vm4 = vcmp.gt.f32.partialorder %v272_v31, 0.0  ;;  %v279_v36 = vmul.f32 0.2, %v271_v30  ;;  %v280_v37 = vmul.f32 0.2, %v272_v31 }
  0x2d   : > { %vm277_vm5 = vcmp.gt.f32.partialorder %v273_v32, 0.0  ;;  %vm278_vm6 = vcmp.gt.f32.partialorder %v274_v33, 0.0  ;;  %v281_v38 = vmul.f32 0.2, %v273_v32  ;;  %v282_v39 = vmul.f32 0.2, %v274_v33 }
  0x2e   : > { %v283_v40 = vsel %vm275_vm3, %v271_v30, %v279_v36  ;;  %v284_v41 = vsel %vm276_vm4, %v272_v31, %v280_v37 }
  0x2f   : > { %v291_v42 = vmul.f32 %v287_v34, %v283_v40  ;;  %v292_v43 = vmul.f32 %v288_v35, %v284_v41  ;;  %v285_v44 = vsel %vm277_vm5, %v273_v32, %v281_v38  ;;  %v286_v45 = vsel %vm278_vm6, %v274_v33, %v282_v39 }
  0x30   : > { %v293_v49 = vmul.f32 %v289_v46, %v285_v44  ;;  %v294_v50 = vmul.f32 %v290_v47, %v286_v45 }
  0x31   : > { %v295_v48 = vadd.f32 %v292_v43, %v291_v42 }
  0x32   : > { %v298_v51 = vadd.f32 %v294_v50, %v293_v49 }
  0x33   : > { %296 = vadd.xlane.f32.xlu0 %v295_v48 }
  0x3b   : > { %299 = vadd.xlane.f32.xlu0 %v298_v51 }
  0xa6   : > { %v297_v52 = vpop.xlane.xlu0 %296 }
  0xae   : > { %v300_v53 = vpop.xlane.xlu0 %299 }
  0xaf   : > { %v301_v54 = vadd.f32 %v300_v53, %v297_v52 }
  0xb1   : > { %v302_v55 = vrot.slane %v301_v54, 4 }
  0xb3   : > { %v303_v56 = vadd.f32 %v302_v55, %v301_v54 }
  0xb5   : > { %v304_v57 = vrot.slane %v303_v56, 2 }
  0xb7   : > { %v305_v58 = vadd.f32 %v304_v57, %v303_v56 }
  0xb9   : > { %v306_v59 = vrot.slane %v305_v58, 1 }
  0xbb   : > { %v307_v60 = vadd.f32 %v306_v59, %v305_v58 }
  0xbd   : > { %308 = vst [vmem:[%s229_s19] sm:$0xff] %v307_v60 }
  0xbe   : > { %309 = vst [vmem:[%s229_s19 + $0x8] sm:$0xff] %v307_v60 }
  0xbf PF: > { %s15_s18 = sadd.s32 1, %s396_s18  }
  0xc0   : > { %p12_p4 = scmp.ge.s32.totalorder %s15_s18, 4  }
  0xc2   :  { %14 = sbr.rel (!%p12_p4) target bundleno = 1 (0x1), region = 71 }

// kernel: discriminator_forward.12
= control target key start
LH: loop header
LB: loop body
LE: loop exit
PB: predicated region body
PF: predicated region fallthrough
CT: control target
= control target key end

     0   :  { %s3902_s12 = smov 0   ;;  %s5618_s0 = inlined_call_operand.vmem [shape: bf16[32,2048], index: 0, kind: input, shape index: {}]   ;;  %s5619_s1 = inlined_call_operand.vmem [shape: bf16[2048,256], index: 1, kind: input, shape index: {}]   ;;  %s5620_s2 = inlined_call_operand.vmem [shape: bf16[32,256], index: 2, kind: output, shape index: {0}]   ;;  %s5621_s3 = inlined_call_operand.vmem [shape: f32[2,256], index: 3, kind: output, shape index: {1}]  }
   0x1 LB: > { %s3908_s13 = sadd.s32 4294967295, %s3879_s12   ;;  %p2481_p0 = scmp.ge.s32.totalorder %s3879_s12, 1  ;;  %s3879_s12 = sphi %s3902_s12, %s14_s12  }
   0x2   : > { %p137_p1 = scmp.lt.s32.totalorder %s3879_s12, 3 }
   0x4   : > { %p138_p2 = pnand %p2481_p0, %p137_p1 }
   0x5   : > { %s2482_s24 = sshll.u32 (!%p138_p2), %s3908_s13, 1  ;;  %p3576_p4 = scmp.ne.s32.totalorder (!%p138_p2), %s3908_s13, 0 }
   0x6   : > { %141 = sbr.rel (%p138_p2) target bundleno = 540 (0x21c), region = 28  ;;  %p164_p3 = scmp.lt.s32.totalorder (!%p138_p2), %s2482_s24, 3 }
   0xb   : > { %v2610_v0 = vld [vmem:[%s5619_s1 + $0x70] sm:$0xf]  ;;  %v3617_v1 = vld [vmem:[%s5619_s1 + $0x74] sm:$0xf0]  ;;  %v2602_v11 = vld [vmem:[%s5619_s1 + $0x60] sm:$0xf] }
   0xc   : > { %v2674_v2 = vld [vmem:[%s5619_s1 + $0xf0] sm:$0xf]  ;;  %v2611_v3 = vor.u32 %v3617_v1, %v2610_v0  ;;  %v3633_v4 = vld [vmem:[%s5619_s1 + $0xf4] sm:$0xf0]  ;;  %v3615_v13 = vld [vmem:[%s5619_s1 + $0x64] sm:$0xf0] }
   0xd   : > { %v2738_v5 = vld [vmem:[%s5619_s1 + $0x170] sm:$0xf]  ;;  %v3649_v6 = vld [vmem:[%s5619_s1 + $0x174] sm:$0xf0]  ;;  %v2675_v7 = vor.u32 %v3633_v4, %v2674_v2  ;;  %v2666_v14 = vld [vmem:[%s5619_s1 + $0xe0] sm:$0xf]  ;;  %v2603_v16 = vor.u32 %v3615_v13, %v2602_v11 }
   0xe   : > { %v2739_v8 = vor.u32 %v3649_v6, %v2738_v5  ;;  %v2802_v9 = vld [vmem:[%s5619_s1 + $0x1f0] sm:$0xf]  ;;  %v3665_v10 = vld [vmem:[%s5619_s1 + $0x1f4] sm:$0xf0]  ;;  %1809 = vmatpush.bf16.msra.mxu0 %v2611_v3  ;;  %v3631_v15 = vld [vmem:[%s5619_s1 + $0xe4] sm:$0xf0] }
   0xf   : > { %v2803_v12 = vor.u32 %v3665_v10, %v2802_v9  ;;  %1823 = vmatpush.bf16.msra.mxu1 %v2675_v7  ;;  %v2667_v17 = vor.u32 %v3631_v15, %v2666_v14  ;;  %v2730_v18 = vld [vmem:[%s5619_s1 + $0x160] sm:$0xf]  ;;  %v3647_v19 = vld [vmem:[%s5619_s1 + $0x164] sm:$0xf0]  ;;  %v2594_v23 = vld [vmem:[%s5619_s1 + $0x50] sm:$0xf] }
  0x10   : > { %1837 = vmatpush.bf16.msra.mxu2 %v2739_v8  ;;  %v2794_v20 = vld [vmem:[%s5619_s1 + $0x1e0] sm:$0xf]  ;;  %v2731_v21 = vor.u32 %v3647_v19, %v2730_v18  ;;  %v3663_v22 = vld [vmem:[%s5619_s1 + $0x1e4] sm:$0xf0]  ;;  %v3613_v24 = vld [vmem:[%s5619_s1 + $0x54] sm:$0xf0] }
  0x11   : > { %1851 = vmatpush.bf16.msra.mxu3 %v2803_v12  ;;  %v2795_v25 = vor.u32 %v3663_v22, %v2794_v20  ;;  %v2658_v26 = vld [vmem:[%s5619_s1 + $0xd0] sm:$0xf]  ;;  %v3629_v27 = vld [vmem:[%s5619_s1 + $0xd4] sm:$0xf0]  ;;  %v2595_v29 = vor.u32 %v3613_v24, %v2594_v23  ;;  %v2586_v35 = vld [vmem:[%s5619_s1 + $0x40] sm:$0xf] }
  0x12   : > { %v2722_v28 = vld [vmem:[%s5619_s1 + $0x150] sm:$0xf]  ;;  %1810 = vmatpush.bf16.msra.mxu0 %v2603_v16  ;;  %v3645_v30 = vld [vmem:[%s5619_s1 + $0x154] sm:$0xf0]  ;;  %v2659_v33 = vor.u32 %v3629_v27, %v2658_v26  ;;  %v3611_v36 = vld [vmem:[%s5619_s1 + $0x44] sm:$0xf0] }
  0x13   : > { %v2786_v31 = vld [vmem:[%s5619_s1 + $0x1d0] sm:$0xf]  ;;  %v3661_v32 = vld [vmem:[%s5619_s1 + $0x1d4] sm:$0xf0]  ;;  %1824 = vmatpush.bf16.msra.mxu1 %v2667_v17  ;;  %v2723_v34 = vor.u32 %v3645_v30, %v2722_v28  ;;  %v2650_v37 = vld [vmem:[%s5619_s1 + $0xc0] sm:$0xf]  ;;  %v2587_v44 = vor.u32 %v3611_v36, %v2586_v35 }
  0x14   : > { %1838 = vmatpush.bf16.msra.mxu2 %v2731_v21  ;;  %v2787_v38 = vor.u32 %v3661_v32, %v2786_v31  ;;  %v3627_v39 = vld [vmem:[%s5619_s1 + $0xc4] sm:$0xf0]  ;;  %v2714_v40 = vld [vmem:[%s5619_s1 + $0x140] sm:$0xf]  ;;  %v2578_v47 = vld [vmem:[%s5619_s1 + $0x30] sm:$0xf] }
  0x15   : > { %1852 = vmatpush.bf16.msra.mxu3 %v2795_v25  ;;  %v3643_v41 = vld [vmem:[%s5619_s1 + $0x144] sm:$0xf0]  ;;  %v2778_v42 = vld [vmem:[%s5619_s1 + $0x1c0] sm:$0xf]  ;;  %v2651_v45 = vor.u32 %v3627_v39, %v2650_v37  ;;  %v3609_v48 = vld [vmem:[%s5619_s1 + $0x34] sm:$0xf0] }
  0x16   : > { %v3659_v43 = vld [vmem:[%s5619_s1 + $0x1c4] sm:$0xf0]  ;;  %1811 = vmatpush.bf16.msra.mxu0 %v2595_v29  ;;  %v2715_v46 = vor.u32 %v3643_v41, %v2714_v40  ;;  %v2642_v49 = vld [vmem:[%s5619_s1 + $0xb0] sm:$0xf]  ;;  %v3625_v51 = vld [vmem:[%s5619_s1 + $0xb4] sm:$0xf0]  ;;  %v2579_v56 = vor.u32 %v3609_v48, %v2578_v47 }
  0x17   : > { %1825 = vmatpush.bf16.msra.mxu1 %v2659_v33  ;;  %v2779_v50 = vor.u32 %v3659_v43, %v2778_v42  ;;  %v2706_v52 = vld [vmem:[%s5619_s1 + $0x130] sm:$0xf]  ;;  %v3641_v53 = vld [vmem:[%s5619_s1 + $0x134] sm:$0xf0]  ;;  %v2643_v57 = vor.u32 %v3625_v51, %v2642_v49  ;;  %v2570_v59 = vld [vmem:[%s5619_s1 + $0x20] sm:$0xf] }
  0x18   : > { %1839 = vmatpush.bf16.msra.mxu2 %v2723_v34  ;;  %v2770_v54 = vld [vmem:[%s5619_s1 + $0x1b0] sm:$0xf]  ;;  %v3657_v55 = vld [vmem:[%s5619_s1 + $0x1b4] sm:$0xf0]  ;;  %v2707_v58 = vor.u32 %v3641_v53, %v2706_v52  ;;  %v3607_v60 = vld [vmem:[%s5619_s1 + $0x24] sm:$0xf0] }
  0x19   : > { %1853 = vmatpush.bf16.msra.mxu3 %v2787_v38  ;;  %v2634_v61 = vld [vmem:[%s5619_s1 + $0xa0] sm:$0xf]  ;;  %v2771_v62 = vor.u32 %v3657_v55, %v2770_v54  ;;  %v3623_v63 = vld [vmem:[%s5619_s1 + $0xa4] sm:$0xf0]  ;;  %v2571_v4 = vor.u32 %v3607_v60, %v2570_v59  ;;  %v2562_v7 = vld [vmem:[%s5619_s1 + $0x10] sm:$0xf] }
  0x1a   : > { %1812 = vmatpush.bf16.msra.mxu0 %v2587_v44  ;;  %v2698_v0 = vld [vmem:[%s5619_s1 + $0x120] sm:$0xf]  ;;  %v3639_v1 = vld [vmem:[%s5619_s1 + $0x124] sm:$0xf0]  ;;  %v2635_v5 = vor.u32 %v3623_v63, %v2634_v61  ;;  %v3605_v8 = vld [vmem:[%s5619_s1 + $0x14] sm:$0xf0] }
  0x1b   : > { %1826 = vmatpush.bf16.msra.mxu1 %v2651_v45  ;;  %v2762_v2 = vld [vmem:[%s5619_s1 + $0x1a0] sm:$0xf]  ;;  %v3655_v3 = vld [vmem:[%s5619_s1 + $0x1a4] sm:$0xf0]  ;;  %v2699_v6 = vor.u32 %v3639_v1, %v2698_v0  ;;  %v2626_v9 = vld [vmem:[%s5619_s1 + $0x90] sm:$0xf]  ;;  %v2563_v16 = vor.u32 %v3605_v8, %v2562_v7 }
  0x1c   : > { %1840 = vmatpush.bf16.msra.mxu2 %v2715_v46  ;;  %v2763_v10 = vor.u32 %v3655_v3, %v2762_v2  ;;  %v3621_v11 = vld [vmem:[%s5619_s1 + $0x94] sm:$0xf0]  ;;  %v2690_v12 = vld [vmem:[%s5619_s1 + $0x110] sm:$0xf]  ;;  %v2554_v17 = vld [vmem:[%s5619_s1] sm:$0xf] }
  0x1d   : > { %1854 = vmatpush.bf16.msra.mxu3 %v2779_v50  ;;  %v3637_v13 = vld [vmem:[%s5619_s1 + $0x114] sm:$0xf0]  ;;  %v2754_v14 = vld [vmem:[%s5619_s1 + $0x190] sm:$0xf]  ;;  %v3603_v18 = vld [vmem:[%s5619_s1 + $0x4] sm:$0xf0]  ;;  %v2627_v19 = vor.u32 %v3621_v11, %v2626_v9 }
  0x1e   : > { %1813 = vmatpush.bf16.msra.mxu0 %v2579_v56  ;;  %v3653_v15 = vld [vmem:[%s5619_s1 + $0x194] sm:$0xf0]  ;;  %v2691_v20 = vor.u32 %v3637_v13, %v2690_v12  ;;  %v2618_v21 = vld [vmem:[%s5619_s1 + $0x80] sm:$0xf]  ;;  %v3619_v22 = vld [vmem:[%s5619_s1 + $0x84] sm:$0xf0]  ;;  %v2555_v31 = vor.u32 %v3603_v18, %v2554_v17 }
  0x1f   : > { %1827 = vmatpush.bf16.msra.mxu1 %v2643_v57  ;;  %v2682_v23 = vld [vmem:[%s5619_s1 + $0x100] sm:$0xf]  ;;  %v2755_v24 = vor.u32 %v3653_v15, %v2754_v14  ;;  %v3635_v25 = vld [vmem:[%s5619_s1 + $0x104] sm:$0xf0]  ;;  %v2866_v28 = vld [vmem:[%s5619_s1 + $0x270] sm:$0xf]  ;;  %v2619_v35 = vor.u32 %v3619_v22, %v2618_v21 }
  0x20   : > { %1841 = vmatpush.bf16.msra.mxu2 %v2707_v58  ;;  %v2746_v26 = vld [vmem:[%s5619_s1 + $0x180] sm:$0xf]  ;;  %v3651_v27 = vld [vmem:[%s5619_s1 + $0x184] sm:$0xf0]  ;;  %v3681_v29 = vld [vmem:[%s5619_s1 + $0x274] sm:$0xf0]  ;;  %v2683_v36 = vor.u32 %v3635_v25, %v2682_v23 }
  0x21   : > { %1855 = vmatpush.bf16.msra.mxu3 %v2771_v62  ;;  %v2930_v30 = vld [vmem:[%s5619_s1 + $0x2f0] sm:$0xf]  ;;  %v3697_v32 = vld [vmem:[%s5619_s1 + $0x2f4] sm:$0xf0]  ;;  %v2747_v39 = vor.u32 %v3651_v27, %v2746_v26  ;;  %v2867_v40 = vor.u32 %v3681_v29, %v2866_v28  ;;  %v2858_v43 = vld [vmem:[%s5619_s1 + $0x260] sm:$0xf] }
  0x22   : > { %1814 = vmatpush.bf16.msra.mxu0 %v2571_v4  ;;  %v2994_v33 = vld [vmem:[%s5619_s1 + $0x370] sm:$0xf]  ;;  %v3713_v34 = vld [vmem:[%s5619_s1 + $0x374] sm:$0xf0]  ;;  %v2931_v41 = vor.u32 %v3697_v32, %v2930_v30  ;;  %v3679_v44 = vld [vmem:[%s5619_s1 + $0x264] sm:$0xf0] }
  0x23   : > { %1828 = vmatpush.bf16.msra.mxu1 %v2635_v5  ;;  %v3058_v37 = vld [vmem:[%s5619_s1 + $0x3f0] sm:$0xf]  ;;  %v3729_v38 = vld [vmem:[%s5619_s1 + $0x3f4] sm:$0xf0]  ;;  %v2995_v42 = vor.u32 %v3713_v34, %v2994_v33  ;;  %v2922_v45 = vld [vmem:[%s5619_s1 + $0x2e0] sm:$0xf]  ;;  %v2859_v52 = vor.u32 %v3679_v44, %v2858_v43 }
  0x24   : > { %1842 = vmatpush.bf16.msra.mxu2 %v2699_v6  ;;  %v3059_v46 = vor.u32 %v3729_v38, %v3058_v37  ;;  %v3695_v47 = vld [vmem:[%s5619_s1 + $0x2e4] sm:$0xf0]  ;;  %v2986_v48 = vld [vmem:[%s5619_s1 + $0x360] sm:$0xf]  ;;  %v2850_v53 = vld [vmem:[%s5619_s1 + $0x250] sm:$0xf] }
  0x25   : > { %1856 = vmatpush.bf16.msra.mxu3 %v2763_v10  ;;  %v3711_v49 = vld [vmem:[%s5619_s1 + $0x364] sm:$0xf0]  ;;  %v3050_v50 = vld [vmem:[%s5619_s1 + $0x3e0] sm:$0xf]  ;;  %v3677_v54 = vld [vmem:[%s5619_s1 + $0x254] sm:$0xf0]  ;;  %v2923_v55 = vor.u32 %v3695_v47, %v2922_v45 }
  0x26   : > { %1815 = vmatpush.bf16.msra.mxu0 %v2563_v16  ;;  %v3727_v51 = vld [vmem:[%s5619_s1 + $0x3e4] sm:$0xf0]  ;;  %v2987_v56 = vor.u32 %v3711_v49, %v2986_v48  ;;  %v2914_v57 = vld [vmem:[%s5619_s1 + $0x2d0] sm:$0xf]  ;;  %v3693_v58 = vld [vmem:[%s5619_s1 + $0x2d4] sm:$0xf0]  ;;  %v2851_v2 = vor.u32 %v3677_v54, %v2850_v53 }
  0x27   : > { %1829 = vmatpush.bf16.msra.mxu1 %v2627_v19  ;;  %v2978_v59 = vld [vmem:[%s5619_s1 + $0x350] sm:$0xf]  ;;  %v3051_v60 = vor.u32 %v3727_v51, %v3050_v50  ;;  %v3709_v61 = vld [vmem:[%s5619_s1 + $0x354] sm:$0xf0]  ;;  %s5623_s24 = smov (!%p164_p3, %s2482_s24), 3  ;;  %v2915_v6 = vor.u32 %v3693_v58, %v2914_v57 }
  0x28   : > { %1843 = vmatpush.bf16.msra.mxu2 %v2691_v20  ;;  %v3042_v62 = vld [vmem:[%s5619_s1 + $0x3d0] sm:$0xf]  ;;  %v3725_v63 = vld [vmem:[%s5619_s1 + $0x3d4] sm:$0xf0]  ;;  %v2842_v0 = vld [vmem:[%s5619_s1 + $0x240] sm:$0xf]  ;;  %v2979_v7 = vor.u32 %v3709_v61, %v2978_v59 }
  0x29   : > { %1857 = vmatpush.bf16.msra.mxu3 %v2755_v24  ;;  %v3675_v1 = vld [vmem:[%s5619_s1 + $0x244] sm:$0xf0]  ;;  %v2906_v3 = vld [vmem:[%s5619_s1 + $0x2c0] sm:$0xf]  ;;  %s3584_s27 = sshll.u32 %s5623_s24, 6  ;;  %v3043_v11 = vor.u32 %v3725_v63, %v3042_v62  ;;  %s3585_s18 = sshll.u32 %s5623_s24, 3 }
  0x2a   : > { %1816 = vmatpush.bf16.msra.mxu0 %v2555_v31  ;;  %v3691_v4 = vld [vmem:[%s5619_s1 + $0x2c4] sm:$0xf0]  ;;  %v2970_v5 = vld [vmem:[%s5619_s1 + $0x340] sm:$0xf]  ;;  %s4207_s9 = scalar_lea.vmem %s5618_s0, %s3584_s27  ;;  %v2843_v19 = vor.u32 %v3675_v1, %v2842_v0  ;;  %v2834_v26 = vld [vmem:[%s5619_s1 + $0x230] sm:$0xf]  ;;  %s175_s21 = scalar_lea.vmem %s5620_s2, %s3585_s18 }
  0x2b   : > { %1830 = vmatpush.bf16.msra.mxu1 %v2619_v35  ;;  %v3707_v8 = vld [vmem:[%s5619_s1 + $0x344] sm:$0xf0]  ;;  %v3034_v9 = vld [vmem:[%s5619_s1 + $0x3c0] sm:$0xf]  ;;  %v3586_v17 = vld [vmem:[%s4207_s9 + $0x4] sm:$0xf]  ;;  %v2907_v24 = vor.u32 %v3691_v4, %v2906_v3 }
  0x2c   : > { %1844 = vmatpush.bf16.msra.mxu2 %v2683_v36  ;;  %v3723_v10 = vld [vmem:[%s5619_s1 + $0x3c4] sm:$0xf0]  ;;  %v2490_v12 = vld [vmem:[%s4207_s9] sm:$0xf]  ;;  %v2492_v18 = vld [vmem:[%s4207_s9 + $0x40] sm:$0xf0]  ;;  %v2971_v25 = vor.u32 %v3707_v8, %v2970_v5 }
  0x2d   : > { %1858 = vmatpush.bf16.msra.mxu3 %v2747_v39  ;;  %v3594_v13 = vld [vmem:[%s4207_s9 + $0x3c] sm:$0xf0]  ;;  %v2498_v14 = vld [vmem:[%s4207_s9 + $0x8] sm:$0xf]  ;;  %v4219_v21 = vor.u32 %v3586_v17, %v2492_v18  ;;  %v3587_v22 = vld [vmem:[%s4207_s9 + $0xc] sm:$0xf]  ;;  %v3035_v30 = vor.u32 %v3723_v10, %v3034_v9 }
  0x2e   : > { %1865 = vmatpush.bf16.msrb.mxu0 %v2867_v40  ;;  %v4212_v15 = vor.u32 %v3594_v13, %v2490_v12  ;;  %v3595_v16 = vld [vmem:[%s4207_s9 + $0x44] sm:$0xf0]  ;;  %v2500_v23 = vld [vmem:[%s4207_s9 + $0x48] sm:$0xf0]  ;;  %v3673_v27 = vld [vmem:[%s5619_s1 + $0x234] sm:$0xf0] }
  0x2f   : > { %1879 = vmatpush.bf16.msrb.mxu1 %v2931_v41  ;;  %v4217_v20 = vor.u32 %v3595_v16, %v2498_v14  ;;  %v2898_v28 = vld [vmem:[%s5619_s1 + $0x2b0] sm:$0xf]  ;;  %v4232_v29 = vor.u32 %v3587_v22, %v2500_v23  ;;  %v3689_v31 = vld [vmem:[%s5619_s1 + $0x2b4] sm:$0xf0]  ;;  %v2835_v36 = vor.u32 %v3673_v27, %v2834_v26  ;;  %v2826_v39 = vld [vmem:[%s5619_s1 + $0x220] sm:$0xf] }
  0x30   : > { %1893 = vmatpush.bf16.msrb.mxu2 %v2995_v42  ;;  %1817 = vmatmul.bf16.vlgmr.msra.gmra.mxu0 %v4212_v15  ;;  %v2962_v32 = vld [vmem:[%s5619_s1 + $0x330] sm:$0xf]  ;;  %v3705_v33 = vld [vmem:[%s5619_s1 + $0x334] sm:$0xf0]  ;;  %v2899_v37 = vor.u32 %v3689_v31, %v2898_v28  ;;  %v3671_v40 = vld [vmem:[%s5619_s1 + $0x224] sm:$0xf0] }
  0x31   : > { %1907 = vmatpush.bf16.msrb.mxu3 %v3059_v46  ;;  %1845 = vmatmul.bf16.vlgmr.msra.gmra.mxu2 %v4217_v20  ;;  %v3026_v34 = vld [vmem:[%s5619_s1 + $0x3b0] sm:$0xf]  ;;  %v3721_v35 = vld [vmem:[%s5619_s1 + $0x3b4] sm:$0xf0]  ;;  %v2963_v38 = vor.u32 %v3705_v33, %v2962_v32  ;;  %v2890_v41 = vld [vmem:[%s5619_s1 + $0x2a0] sm:$0xf]  ;;  %v2827_v48 = vor.u32 %v3671_v40, %v2826_v39 }
  0x32   : > { %1866 = vmatpush.bf16.msrb.mxu0 %v2859_v52  ;;  %1831 = vmatmul.bf16.vlgmr.msra.gmra.mxu1 %v4219_v21  ;;  %v3027_v42 = vor.u32 %v3721_v35, %v3026_v34  ;;  %v3687_v43 = vld [vmem:[%s5619_s1 + $0x2a4] sm:$0xf0]  ;;  %v2954_v44 = vld [vmem:[%s5619_s1 + $0x320] sm:$0xf]  ;;  %v2818_v49 = vld [vmem:[%s5619_s1 + $0x210] sm:$0xf] }
  0x33   : > { %1880 = vmatpush.bf16.msrb.mxu1 %v2923_v55  ;;  %1859 = vmatmul.bf16.vlgmr.msra.gmra.mxu3 %v4232_v29  ;;  %v3703_v45 = vld [vmem:[%s5619_s1 + $0x324] sm:$0xf0]  ;;  %v3018_v46 = vld [vmem:[%s5619_s1 + $0x3a0] sm:$0xf]  ;;  %v2891_v50 = vor.u32 %v3687_v43, %v2890_v41  ;;  %v3669_v52 = vld [vmem:[%s5619_s1 + $0x214] sm:$0xf0] }
  0x34   : > { %1894 = vmatpush.bf16.msrb.mxu2 %v2987_v56  ;;  %v3719_v47 = vld [vmem:[%s5619_s1 + $0x3a4] sm:$0xf0]  ;;  %v2955_v51 = vor.u32 %v3703_v45, %v2954_v44  ;;  %v2882_v53 = vld [vmem:[%s5619_s1 + $0x290] sm:$0xf]  ;;  %v3685_v54 = vld [vmem:[%s5619_s1 + $0x294] sm:$0xf0]  ;;  %v2819_v62 = vor.u32 %v3669_v52, %v2818_v49 }
  0x35   : > { %1908 = vmatpush.bf16.msrb.mxu3 %v3051_v60  ;;  %v3019_v55 = vor.u32 %v3719_v47, %v3018_v46  ;;  %v2946_v56 = vld [vmem:[%s5619_s1 + $0x310] sm:$0xf]  ;;  %v3701_v57 = vld [vmem:[%s5619_s1 + $0x314] sm:$0xf0]  ;;  %v2810_v60 = vld [vmem:[%s5619_s1 + $0x200] sm:$0xf]  ;;  %v2883_v3 = vor.u32 %v3685_v54, %v2882_v53 }
  0x36   : > { %1867 = vmatpush.bf16.msrb.mxu0 %v2851_v2  ;;  %v3010_v58 = vld [vmem:[%s5619_s1 + $0x390] sm:$0xf]  ;;  %v3717_v59 = vld [vmem:[%s5619_s1 + $0x394] sm:$0xf0]  ;;  %v3667_v61 = vld [vmem:[%s5619_s1 + $0x204] sm:$0xf0]  ;;  %v2947_v4 = vor.u32 %v3701_v57, %v2946_v56 }
  0x37   : > { %1881 = vmatpush.bf16.msrb.mxu1 %v2915_v6  ;;  %v2874_v63 = vld [vmem:[%s5619_s1 + $0x280] sm:$0xf]  ;;  %v3683_v0 = vld [vmem:[%s5619_s1 + $0x284] sm:$0xf0]  ;;  %v3011_v8 = vor.u32 %v3717_v59, %v3010_v58  ;;  %v3745_v9 = vld [vmem:[%s5619_s1 + $0x474] sm:$0xf0]  ;;  %v2811_v16 = vor.u32 %v3667_v61, %v2810_v60 }
  0x38   : > { %1895 = vmatpush.bf16.msrb.mxu2 %v2979_v7  ;;  %v2938_v1 = vld [vmem:[%s5619_s1 + $0x300] sm:$0xf]  ;;  %v3699_v2 = vld [vmem:[%s5619_s1 + $0x304] sm:$0xf0]  ;;  %v3122_v7 = vld [vmem:[%s5619_s1 + $0x470] sm:$0xf]  ;;  %v2875_v22 = vor.u32 %v3683_v0, %v2874_v63 }
  0x39   : > { %1909 = vmatpush.bf16.msrb.mxu3 %v3043_v11  ;;  %v3002_v5 = vld [vmem:[%s5619_s1 + $0x380] sm:$0xf]  ;;  %v3715_v6 = vld [vmem:[%s5619_s1 + $0x384] sm:$0xf0]  ;;  %v3186_v10 = vld [vmem:[%s5619_s1 + $0x4f0] sm:$0xf]  ;;  %v2939_v23 = vor.u32 %v3699_v2, %v2938_v1  ;;  %v3123_v28 = vor.u32 %v3745_v9, %v3122_v7 }
  0x3a   : > { %1868 = vmatpush.bf16.msrb.mxu0 %v2843_v19  ;;  %v3761_v11 = vld [vmem:[%s5619_s1 + $0x4f4] sm:$0xf0]  ;;  %v3250_v12 = vld [vmem:[%s5619_s1 + $0x570] sm:$0xf]  ;;  %v3588_v26 = vld [vmem:[%s4207_s9 + $0x14] sm:$0xf]  ;;  %v3003_v27 = vor.u32 %v3715_v6, %v3002_v5 }
  0x3b   : > { %1882 = vmatpush.bf16.msrb.mxu1 %v2907_v24  ;;  %v3777_v13 = vld [vmem:[%s5619_s1 + $0x574] sm:$0xf0]  ;;  %v3314_v14 = vld [vmem:[%s5619_s1 + $0x5f0] sm:$0xf]  ;;  %v3589_v31 = vld [vmem:[%s4207_s9 + $0x1c] sm:$0xf]  ;;  %v3187_v33 = vor.u32 %v3761_v11, %v3186_v10 }
  0x3c   : > { %1896 = vmatpush.bf16.msrb.mxu2 %v2971_v25  ;;  %v3793_v17 = vld [vmem:[%s5619_s1 + $0x5f4] sm:$0xf0]  ;;  %v2506_v18 = vld [vmem:[%s4207_s9 + $0x10] sm:$0xf]  ;;  %v2516_v32 = vld [vmem:[%s4207_s9 + $0x58] sm:$0xf0]  ;;  %v3251_v34 = vor.u32 %v3777_v13, %v3250_v12 }
  0x3d   : > { %1910 = vmatpush.bf16.msrb.mxu3 %v3035_v30  ;;  %v3596_v19 = vld [vmem:[%s4207_s9 + $0x4c] sm:$0xf0]  ;;  %v2514_v24 = vld [vmem:[%s4207_s9 + $0x18] sm:$0xf]  ;;  %v2508_v30 = vld [vmem:[%s4207_s9 + $0x50] sm:$0xf0]  ;;  %v4387_v47 = vor.u32 %v3589_v31, %v2516_v32 }
  0x3e   : > { %1869 = vmatpush.bf16.msrb.mxu0 %v2835_v36  ;;  %v3597_v25 = vld [vmem:[%s4207_s9 + $0x54] sm:$0xf0]  ;;  %v3114_v35 = vld [vmem:[%s5619_s1 + $0x460] sm:$0xf]  ;;  %v3743_v36 = vld [vmem:[%s5619_s1 + $0x464] sm:$0xf0]  ;;  %v4366_v39 = vor.u32 %v3596_v19, %v2506_v18  ;;  %v4379_v44 = vor.u32 %v3588_v26, %v2508_v30 }
  0x3f   : > { %1883 = vmatpush.bf16.msrb.mxu1 %v2899_v37  ;;  %v3178_v37 = vld [vmem:[%s5619_s1 + $0x4e0] sm:$0xf]  ;;  %v3759_v40 = vld [vmem:[%s5619_s1 + $0x4e4] sm:$0xf0]  ;;  %v4377_v43 = vor.u32 %v3597_v25, %v2514_v24  ;;  %v3741_v52 = vld [vmem:[%s5619_s1 + $0x454] sm:$0xf0] }
  0x40   : > { %1897 = vmatpush.bf16.msrb.mxu2 %v2963_v38  ;;  %v3315_v38 = vor.u32 %v3793_v17, %v3314_v14  ;;  %v3242_v41 = vld [vmem:[%s5619_s1 + $0x560] sm:$0xf]  ;;  %v3791_v46 = vld [vmem:[%s5619_s1 + $0x5e4] sm:$0xf0]  ;;  %v3179_v49 = vor.u32 %v3759_v40, %v3178_v37  ;;  %v3170_v53 = vld [vmem:[%s5619_s1 + $0x4d0] sm:$0xf] }
  0x41   : > { %1911 = vmatpush.bf16.msrb.mxu3 %v3027_v42  ;;  %v3775_v42 = vld [vmem:[%s5619_s1 + $0x564] sm:$0xf0]  ;;  %v3306_v45 = vld [vmem:[%s5619_s1 + $0x5e0] sm:$0xf]  ;;  %v3234_v56 = vld [vmem:[%s5619_s1 + $0x550] sm:$0xf] }
  0x42   : > { %1870 = vmatpush.bf16.msrb.mxu0 %v2827_v48  ;;  %v3115_v48 = vor.u32 %v3743_v36, %v3114_v35  ;;  %v3307_v54 = vor.u32 %v3791_v46, %v3306_v45  ;;  %v3773_v57 = vld [vmem:[%s5619_s1 + $0x554] sm:$0xf0]  ;;  %v3298_v58 = vld [vmem:[%s5619_s1 + $0x5d0] sm:$0xf]  ;;  %v3098_v63 = vld [vmem:[%s5619_s1 + $0x440] sm:$0xf] }
  0x43   : > { %1884 = vmatpush.bf16.msrb.mxu1 %v2891_v50  ;;  %v3243_v50 = vor.u32 %v3775_v42, %v3242_v41  ;;  %v3789_v59 = vld [vmem:[%s5619_s1 + $0x5d4] sm:$0xf0]  ;;  %v3739_v0 = vld [vmem:[%s5619_s1 + $0x444] sm:$0xf0]  ;;  %v3162_v1 = vld [vmem:[%s5619_s1 + $0x4c0] sm:$0xf] }
  0x44   : > { %1898 = vmatpush.bf16.msrb.mxu2 %v2955_v51  ;;  %v3106_v51 = vld [vmem:[%s5619_s1 + $0x450] sm:$0xf]  ;;  %v3299_v2 = vor.u32 %v3789_v59, %v3298_v58  ;;  %v3771_v5 = vld [vmem:[%s5619_s1 + $0x544] sm:$0xf0]  ;;  %v3290_v6 = vld [vmem:[%s5619_s1 + $0x5c0] sm:$0xf] }
  0x45   : > { %1912 = vmatpush.bf16.msrb.mxu3 %v3019_v55  ;;  %v3757_v55 = vld [vmem:[%s5619_s1 + $0x4d4] sm:$0xf0]  ;;  %v3107_v60 = vor.u32 %v3741_v52, %v3106_v51  ;;  %v3787_v7 = vld [vmem:[%s5619_s1 + $0x5c4] sm:$0xf0]  ;;  %v3090_v11 = vld [vmem:[%s5619_s1 + $0x430] sm:$0xf] }
  0x46   : > { %1871 = vmatpush.bf16.msrb.mxu0 %v2819_v62  ;;  %v3171_v61 = vor.u32 %v3757_v55, %v3170_v53  ;;  %v3235_v62 = vor.u32 %v3773_v57, %v3234_v56  ;;  %v3737_v12 = vld [vmem:[%s5619_s1 + $0x434] sm:$0xf0]  ;;  %v3154_v13 = vld [vmem:[%s5619_s1 + $0x4b0] sm:$0xf]  ;;  %v3291_v14 = vor.u32 %v3787_v7, %v3290_v6  ;;  %v3082_v26 = vld [vmem:[%s5619_s1 + $0x420] sm:$0xf] }
  0x47   : > { %1885 = vmatpush.bf16.msrb.mxu1 %v2883_v3  ;;  %v3755_v3 = vld [vmem:[%s5619_s1 + $0x4c4] sm:$0xf0]  ;;  %v3218_v17 = vld [vmem:[%s5619_s1 + $0x530] sm:$0xf]  ;;  %v3769_v18 = vld [vmem:[%s5619_s1 + $0x534] sm:$0xf0] }
  0x48   : > { %1899 = vmatpush.bf16.msrb.mxu2 %v2947_v4  ;;  %v3226_v4 = vld [vmem:[%s5619_s1 + $0x540] sm:$0xf]  ;;  %v3163_v9 = vor.u32 %v3755_v3, %v3162_v1  ;;  %v3282_v19 = vld [vmem:[%s5619_s1 + $0x5b0] sm:$0xf]  ;;  %v3219_v25 = vor.u32 %v3769_v18, %v3218_v17  ;;  %v3751_v31 = vld [vmem:[%s5619_s1 + $0x4a4] sm:$0xf0] }
  0x49   : > { %1913 = vmatpush.bf16.msrb.mxu3 %v3011_v8  ;;  %v3099_v8 = vor.u32 %v3739_v0, %v3098_v63  ;;  %v3227_v10 = vor.u32 %v3771_v5, %v3226_v4  ;;  %v3210_v32 = vld [vmem:[%s5619_s1 + $0x520] sm:$0xf]  ;;  %v3783_v35 = vld [vmem:[%s5619_s1 + $0x5a4] sm:$0xf0]  ;;  %v3074_v37 = vld [vmem:[%s5619_s1 + $0x410] sm:$0xf] }
  0x4a   : > { %1872 = vmatpush.bf16.msrb.mxu0 %v2811_v16  ;;  %v3753_v16 = vld [vmem:[%s5619_s1 + $0x4b4] sm:$0xf0]  ;;  %v3138_v42 = vld [vmem:[%s5619_s1 + $0x490] sm:$0xf]  ;;  %v3066_v52 = vld [vmem:[%s5619_s1 + $0x400] sm:$0xf] }
  0x4b   : > { %1886 = vmatpush.bf16.msrb.mxu1 %v2875_v22  ;;  %v3785_v22 = vld [vmem:[%s5619_s1 + $0x5b4] sm:$0xf0]  ;;  %v3155_v24 = vor.u32 %v3753_v16, %v3154_v13  ;;  %v3731_v53 = vld [vmem:[%s5619_s1 + $0x404] sm:$0xf0]  ;;  %v3130_v55 = vld [vmem:[%s5619_s1 + $0x480] sm:$0xf] }
  0x4c   : > { %1900 = vmatpush.bf16.msrb.mxu2 %v2939_v23  ;;  %v3091_v23 = vor.u32 %v3737_v12, %v3090_v11  ;;  %v3283_v30 = vor.u32 %v3785_v22, %v3282_v19  ;;  %v3733_v41 = vld [vmem:[%s5619_s1 + $0x414] sm:$0xf0]  ;;  %v3747_v56 = vld [vmem:[%s5619_s1 + $0x484] sm:$0xf0]  ;;  %v3194_v57 = vld [vmem:[%s5619_s1 + $0x500] sm:$0xf]  ;;  %v3067_v7 = vor.u32 %v3731_v53, %v3066_v52 }
  0x4d   : > { %1914 = vmatpush.bf16.msrb.mxu3 %v3003_v27  ;;  %1873 = vmatmul.bf16.vlgmr.msrb.gmra.mxu0 %v4366_v39  ;;  %v3735_v27 = vld [vmem:[%s5619_s1 + $0x424] sm:$0xf0]  ;;  %v3749_v45 = vld [vmem:[%s5619_s1 + $0x494] sm:$0xf0]  ;;  %v3378_v63 = vld [vmem:[%s5619_s1 + $0x670] sm:$0xf]  ;;  %v3131_v11 = vor.u32 %v3747_v56, %v3130_v55 }
  0x4e   : > { %1921 = vmatpush.bf16.msra.mxu0 %v3123_v28  ;;  %1887 = vmatmul.bf16.vlgmr.msrb.gmra.mxu1 %v4379_v44  ;;  %v3146_v28 = vld [vmem:[%s5619_s1 + $0x4a0] sm:$0xf]  ;;  %v3083_v36 = vor.u32 %v3735_v27, %v3082_v26  ;;  %v3781_v51 = vld [vmem:[%s5619_s1 + $0x594] sm:$0xf0]  ;;  %v3763_v58 = vld [vmem:[%s5619_s1 + $0x504] sm:$0xf0]  ;;  %v3139_v59 = vor.u32 %v3749_v45, %v3138_v42 }
  0x4f   : > { %1935 = vmatpush.bf16.msra.mxu1 %v3187_v33  ;;  %1901 = vmatmul.bf16.vlgmr.msrb.gmra.mxu2 %v4377_v43  ;;  %v3767_v33 = vld [vmem:[%s5619_s1 + $0x524] sm:$0xf0]  ;;  %v3809_v1 = vld [vmem:[%s5619_s1 + $0x674] sm:$0xf0]  ;;  %v3506_v4 = vld [vmem:[%s5619_s1 + $0x770] sm:$0xf]  ;;  %v3195_v12 = vor.u32 %v3763_v58, %v3194_v57 }
  0x50   : > { %1949 = vmatpush.bf16.msra.mxu2 %v3251_v34  ;;  %1915 = vmatmul.bf16.vlgmr.msrb.gmra.mxu3 %v4387_v47  ;;  %v3274_v34 = vld [vmem:[%s5619_s1 + $0x5a0] sm:$0xf]  ;;  %v3211_v40 = vor.u32 %v3767_v33, %v3210_v32  ;;  %v3825_v3 = vld [vmem:[%s5619_s1 + $0x6f4] sm:$0xf0]  ;;  %v3570_v6 = vld [vmem:[%s5619_s1 + $0x7f0] sm:$0xf]  ;;  %v3379_v18 = vor.u32 %v3809_v1, %v3378_v63 }
  0x51   : > { %1963 = vmatpush.bf16.msra.mxu3 %v3315_v38  ;;  %v3147_v38 = vor.u32 %v3751_v31, %v3146_v28  ;;  %v3275_v46 = vor.u32 %v3783_v35, %v3274_v34  ;;  %v3841_v5 = vld [vmem:[%s5619_s1 + $0x774] sm:$0xf0]  ;;  %v2530_v13 = vld [vmem:[%s4207_s9 + $0x28] sm:$0xf]  ;;  %v3590_v16 = vld [vmem:[%s4207_s9 + $0x24] sm:$0xf] }
  0x52   : > { %1922 = vmatpush.bf16.msra.mxu0 %v3115_v48  ;;  %v3202_v48 = vld [vmem:[%s5619_s1 + $0x510] sm:$0xf]  ;;  %v2524_v19 = vld [vmem:[%s4207_s9 + $0x60] sm:$0xf0]  ;;  %v3591_v22 = vld [vmem:[%s4207_s9 + $0x2c] sm:$0xf] }
  0x53   : > { %1936 = vmatpush.bf16.msra.mxu1 %v3179_v49  ;;  %v3765_v49 = vld [vmem:[%s5619_s1 + $0x514] sm:$0xf0]  ;;  %v3370_v26 = vld [vmem:[%s5619_s1 + $0x660] sm:$0xf]  ;;  %v3807_v27 = vld [vmem:[%s5619_s1 + $0x664] sm:$0xf0] }
  0x54   : > { %1950 = vmatpush.bf16.msra.mxu2 %v3243_v50  ;;  %v3266_v50 = vld [vmem:[%s5619_s1 + $0x590] sm:$0xf]  ;;  %v3434_v28 = vld [vmem:[%s5619_s1 + $0x6e0] sm:$0xf]  ;;  %v3823_v32 = vld [vmem:[%s5619_s1 + $0x6e4] sm:$0xf0] }
  0x55   : > { %1964 = vmatpush.bf16.msra.mxu3 %v3307_v54  ;;  %v3075_v54 = vor.u32 %v3733_v41, %v3074_v37  ;;  %v3267_v0 = vor.u32 %v3781_v51, %v3266_v50  ;;  %v3498_v33 = vld [vmem:[%s5619_s1 + $0x760] sm:$0xf]  ;;  %v3839_v34 = vld [vmem:[%s5619_s1 + $0x764] sm:$0xf0]  ;;  %v3371_v41 = vor.u32 %v3807_v27, %v3370_v26  ;;  %v3435_v42 = vor.u32 %v3823_v32, %v3434_v28  ;;  %v3821_v51 = vld [vmem:[%s5619_s1 + $0x6d4] sm:$0xf0] }
  0x56   : > { %1923 = vmatpush.bf16.msra.mxu0 %v3107_v60  ;;  %v3203_v60 = vor.u32 %v3765_v49, %v3202_v48  ;;  %v3562_v37 = vld [vmem:[%s5619_s1 + $0x7e0] sm:$0xf]  ;;  %v3499_v45 = vor.u32 %v3839_v34, %v3498_v33  ;;  %v3805_v48 = vld [vmem:[%s5619_s1 + $0x654] sm:$0xf0]  ;;  %v3426_v49 = vld [vmem:[%s5619_s1 + $0x6d0] sm:$0xf] }
  0x57   : > { %1937 = vmatpush.bf16.msra.mxu1 %v3171_v61  ;;  %v3258_v61 = vld [vmem:[%s5619_s1 + $0x580] sm:$0xf]  ;;  %v3490_v52 = vld [vmem:[%s5619_s1 + $0x750] sm:$0xf]  ;;  %v3837_v53 = vld [vmem:[%s5619_s1 + $0x754] sm:$0xf0]  ;;  %v3427_v57 = vor.u32 %v3821_v51, %v3426_v49 }
  0x58   : > { %1951 = vmatpush.bf16.msra.mxu2 %v3235_v62  ;;  %v3779_v62 = vld [vmem:[%s5619_s1 + $0x584] sm:$0xf0]  ;;  %v3853_v55 = vld [vmem:[%s5619_s1 + $0x7d4] sm:$0xf0]  ;;  %v3491_v58 = vor.u32 %v3837_v53, %v3490_v52  ;;  %v3466_v27 = vld [vmem:[%s5619_s1 + $0x720] sm:$0xf] }
  0x59   : > { %1965 = vmatpush.bf16.msra.mxu3 %v3299_v2  ;;  %v3442_v2 = vld [vmem:[%s5619_s1 + $0x6f0] sm:$0xf]  ;;  %v3259_v17 = vor.u32 %v3779_v62, %v3258_v61  ;;  %v3418_v61 = vld [vmem:[%s5619_s1 + $0x6c0] sm:$0xf]  ;;  %v3819_v63 = vld [vmem:[%s5619_s1 + $0x6c4] sm:$0xf0] }
  0x5a   : > { %1924 = vmatpush.bf16.msra.mxu0 %v3099_v8  ;;  %v3857_v8 = vld [vmem:[%s5619_s1 + $0x7f4] sm:$0xf0]  ;;  %v3835_v1 = vld [vmem:[%s5619_s1 + $0x744] sm:$0xf0]  ;;  %v3330_v34 = vld [vmem:[%s5619_s1 + $0x610] sm:$0xf] }
  0x5b   : > { %1938 = vmatpush.bf16.msra.mxu1 %v3163_v9  ;;  %v2522_v9 = vld [vmem:[%s4207_s9 + $0x20] sm:$0xf]  ;;  %v3815_v26 = vld [vmem:[%s5619_s1 + $0x6a4] sm:$0xf0]  ;;  %v3829_v49 = vld [vmem:[%s5619_s1 + $0x714] sm:$0xf0] }
  0x5c   : > { %1952 = vmatpush.bf16.msra.mxu2 %v3227_v10  ;;  %v3598_v10 = vld [vmem:[%s4207_s9 + $0x5c] sm:$0xf0]  ;;  %v3831_v28 = vld [vmem:[%s5619_s1 + $0x724] sm:$0xf0]  ;;  %v3845_v51 = vld [vmem:[%s5619_s1 + $0x794] sm:$0xf0] }
  0x5d   : > { %1966 = vmatpush.bf16.msra.mxu3 %v3291_v14  ;;  %v3599_v14 = vld [vmem:[%s4207_s9 + $0x64] sm:$0xf0]  ;;  %v4578_v31 = vor.u32 %v3598_v10, %v2522_v9  ;;  %v3410_v9 = vld [vmem:[%s5619_s1 + $0x6b0] sm:$0xf]  ;;  %v3322_v52 = vld [vmem:[%s5619_s1 + $0x600] sm:$0xf] }
  0x5e   : > { %1925 = vmatpush.bf16.msra.mxu0 %v3091_v23  ;;  %v2532_v23 = vld [vmem:[%s4207_s9 + $0x68] sm:$0xf0]  ;;  %v4589_v35 = vor.u32 %v3599_v14, %v2530_v13  ;;  %v3833_v13 = vld [vmem:[%s5619_s1 + $0x734] sm:$0xf0]  ;;  %v3538_v14 = vld [vmem:[%s5619_s1 + $0x7b0] sm:$0xf] }
  0x5f   : > { %1939 = vmatpush.bf16.msra.mxu1 %v3155_v24  ;;  %v3443_v24 = vor.u32 %v3825_v3, %v3442_v2  ;;  %v3546_v2 = vld [vmem:[%s5619_s1 + $0x7c0] sm:$0xf]  ;;  %v3851_v3 = vld [vmem:[%s5619_s1 + $0x7c4] sm:$0xf0] }
  0x60   : > { %1953 = vmatpush.bf16.msra.mxu2 %v3219_v25  ;;  %v3507_v25 = vor.u32 %v3841_v5, %v3506_v4  ;;  %v3419_v5 = vor.u32 %v3819_v63, %v3418_v61  ;;  %v3547_v10 = vor.u32 %v3851_v3, %v3546_v2  ;;  %v3847_v32 = vld [vmem:[%s5619_s1 + $0x7a4] sm:$0xf0]  ;;  %v3514_v61 = vld [vmem:[%s5619_s1 + $0x780] sm:$0xf]  ;;  %v3616_v63 = vld [vmem:[%s5619_s1 + $0x74] sm:$0xf] }
  0x61   : > { %1967 = vmatpush.bf16.msra.mxu3 %v3283_v30  ;;  %v3571_v30 = vor.u32 %v3857_v8, %v3570_v6  ;;  %v3801_v8 = vld [vmem:[%s5619_s1 + $0x634] sm:$0xf0]  ;;  %v3795_v53 = vld [vmem:[%s5619_s1 + $0x604] sm:$0xf0]  ;;  %v3632_v2 = vld [vmem:[%s5619_s1 + $0xf4] sm:$0xf] }
  0x62   : > { %1926 = vmatpush.bf16.msra.mxu0 %v3083_v36  ;;  %v4591_v36 = vor.u32 %v3590_v16, %v2524_v19  ;;  %v3849_v16 = vld [vmem:[%s5619_s1 + $0x7b4] sm:$0xf0]  ;;  %v2676_v3 = vld [vmem:[%s5619_s1 + $0xf8] sm:$0xf0] }
  0x63   : > { %1940 = vmatpush.bf16.msra.mxu1 %v3147_v38  ;;  %v3855_v38 = vld [vmem:[%s5619_s1 + $0x7e4] sm:$0xf0] }
  0x64   : > { %1954 = vmatpush.bf16.msra.mxu2 %v3211_v40  ;;  %v4599_v40 = vor.u32 %v3591_v22, %v2532_v23  ;;  %v3563_v50 = vor.u32 %v3855_v38, %v3562_v37  ;;  %v3338_v22 = vld [vmem:[%s5619_s1 + $0x620] sm:$0xf]  ;;  %v3799_v23 = vld [vmem:[%s5619_s1 + $0x624] sm:$0xf0]  ;;  %v3467_v38 = vor.u32 %v3831_v28, %v3466_v27  ;;  %v2604_v27 = vld [vmem:[%s5619_s1 + $0x68] sm:$0xf0] }
  0x65   : > { %1968 = vmatpush.bf16.msra.mxu3 %v3275_v46  ;;  %v3362_v46 = vld [vmem:[%s5619_s1 + $0x650] sm:$0xf]  ;;  %v3339_v33 = vor.u32 %v3799_v23, %v3338_v22  ;;  %v3593_v22 = vld [vmem:[%s4207_s9 + $0x3c] sm:$0xf]  ;;  %v3630_v28 = vld [vmem:[%s5619_s1 + $0xe4] sm:$0xf] }
  0x66   : > { %1927 = vmatpush.bf16.msra.mxu0 %v3075_v54  ;;  %v3554_v54 = vld [vmem:[%s5619_s1 + $0x7d0] sm:$0xf]  ;;  %v3363_v56 = vor.u32 %v3805_v48, %v3362_v46  ;;  %v2548_v23 = vld [vmem:[%s4207_s9 + $0x78] sm:$0xf0] }
  0x67   : > { %1941 = vmatpush.bf16.msra.mxu1 %v3139_v59  ;;  %v3354_v59 = vld [vmem:[%s5619_s1 + $0x640] sm:$0xf]  ;;  %v3555_v62 = vor.u32 %v3853_v55, %v3554_v54  ;;  %v3458_v48 = vld [vmem:[%s5619_s1 + $0x710] sm:$0xf] }
  0x68   : > { %1955 = vmatpush.bf16.msra.mxu2 %v3203_v60  ;;  %v3803_v60 = vld [vmem:[%s5619_s1 + $0x644] sm:$0xf0]  ;;  %v3386_v55 = vld [vmem:[%s5619_s1 + $0x680] sm:$0xf] }
  0x69   : > { %1969 = vmatpush.bf16.msra.mxu3 %v3267_v0  ;;  %v3482_v0 = vld [vmem:[%s5619_s1 + $0x740] sm:$0xf]  ;;  %v3355_v4 = vor.u32 %v3803_v60, %v3354_v59  ;;  %v3459_v60 = vor.u32 %v3829_v49, %v3458_v48 }
  0x6a   : > { %1928 = vmatpush.bf16.msra.mxu0 %v3067_v7  ;;  %v3483_v6 = vor.u32 %v3835_v1, %v3482_v0  ;;  %v3346_v7 = vld [vmem:[%s5619_s1 + $0x630] sm:$0xf]  ;;  %v2612_v1 = vld [vmem:[%s5619_s1 + $0x78] sm:$0xf0] }
  0x6b   : > { %1942 = vmatpush.bf16.msra.mxu1 %v3131_v11  ;;  %v3817_v11 = vld [vmem:[%s5619_s1 + $0x6b4] sm:$0xf0] }
  0x6c   : > { %1956 = vmatpush.bf16.msra.mxu2 %v3195_v12  ;;  %v3474_v12 = vld [vmem:[%s5619_s1 + $0x730] sm:$0xf] }
  0x6d   : > { %1970 = vmatpush.bf16.msra.mxu3 %v3259_v17  ;;  %1929 = vmatmul.bf16.vlgmr.msra.gmra.mxu0 %v4578_v31  ;;  %v3347_v17 = vor.u32 %v3801_v8, %v3346_v7  ;;  %v3475_v19 = vor.u32 %v3833_v13, %v3474_v12  ;;  %v3323_v7 = vor.u32 %v3795_v53, %v3322_v52  ;;  %v2804_v8 = vld [vmem:[%s5619_s1 + $0x1f8] sm:$0xf0]  ;;  %v2546_v13 = vld [vmem:[%s4207_s9 + $0x38] sm:$0xf]  ;;  %v3628_v53 = vld [vmem:[%s5619_s1 + $0xd4] sm:$0xf] }
  0x6e   : > { %1977 = vmatpush.bf16.msrb.mxu0 %v3379_v18  ;;  %1943 = vmatmul.bf16.vlgmr.msra.gmra.mxu1 %v4591_v36  ;;  %v3411_v18 = vor.u32 %v3817_v11, %v3410_v9  ;;  %v2538_v9 = vld [vmem:[%s4207_s9 + $0x30] sm:$0xf]  ;;  %v2596_v52 = vld [vmem:[%s5619_s1 + $0x58] sm:$0xf0] }
  0x6f   : > { %1991 = vmatpush.bf16.msrb.mxu1 %v3443_v24  ;;  %1957 = vmatmul.bf16.vlgmr.msra.gmra.mxu2 %v4589_v35  ;;  %v3402_v24 = vld [vmem:[%s5619_s1 + $0x6a0] sm:$0xf] }
  0x70   : > { %2005 = vmatpush.bf16.msrb.mxu2 %v3507_v25  ;;  %1971 = vmatmul.bf16.vlgmr.msra.gmra.mxu3 %v4599_v40  ;;  %v3539_v25 = vor.u32 %v3849_v16, %v3538_v14  ;;  %v3403_v37 = vor.u32 %v3815_v26, %v3402_v24  ;;  %v3601_v14 = vld [vmem:[%s4207_s9 + $0x74] sm:$0xf0]  ;;  %v3592_v16 = vld [vmem:[%s4207_s9 + $0x34] sm:$0xf]  ;;  %v2679_v24 = vor.u32 %v3632_v2, %v2676_v3  ;;  %v3614_v26 = vld [vmem:[%s5619_s1 + $0x64] sm:$0xf] }
  0x71   : > { %2019 = vmatpush.bf16.msrb.mxu3 %v3571_v30  ;;  %v3530_v30 = vld [vmem:[%s5619_s1 + $0x7a0] sm:$0xf]  ;;  %v2607_v48 = vor.u32 %v3614_v26, %v2604_v27  ;;  %v2652_v3 = vld [vmem:[%s5619_s1 + $0xc8] sm:$0xf0]  ;;  %v3606_v26 = vld [vmem:[%s5619_s1 + $0x24] sm:$0xf] }
  0x72   : > { %1978 = vmatpush.bf16.msrb.mxu0 %v3371_v41  ;;  %v3797_v41 = vld [vmem:[%s5619_s1 + $0x614] sm:$0xf0]  ;;  %v3531_v46 = vor.u32 %v3847_v32, %v3530_v30  ;;  %v2572_v27 = vld [vmem:[%s5619_s1 + $0x28] sm:$0xf0] }
  0x73   : > { %1992 = vmatpush.bf16.msrb.mxu1 %v3435_v42  ;;  %v3394_v42 = vld [vmem:[%s5619_s1 + $0x690] sm:$0xf]  ;;  %v3331_v54 = vor.u32 %v3797_v41, %v3330_v34  ;;  %v3646_v34 = vld [vmem:[%s5619_s1 + $0x164] sm:$0xf] }
  0x74   : > { %2006 = vmatpush.bf16.msrb.mxu2 %v3499_v45  ;;  %v3813_v45 = vld [vmem:[%s5619_s1 + $0x694] sm:$0xf0] }
  0x75   : > { %2020 = vmatpush.bf16.msrb.mxu3 %v3563_v50  ;;  %v3522_v50 = vld [vmem:[%s5619_s1 + $0x790] sm:$0xf]  ;;  %v3395_v59 = vor.u32 %v3813_v45, %v3394_v42  ;;  %v3662_v42 = vld [vmem:[%s5619_s1 + $0x1e4] sm:$0xf]  ;;  %v2796_v45 = vld [vmem:[%s5619_s1 + $0x1e8] sm:$0xf0] }
  0x76   : > { %1979 = vmatpush.bf16.msrb.mxu0 %v3363_v56  ;;  %v3811_v56 = vld [vmem:[%s5619_s1 + $0x684] sm:$0xf0]  ;;  %v3523_v0 = vor.u32 %v3845_v51, %v3522_v50  ;;  %v3612_v51 = vld [vmem:[%s5619_s1 + $0x54] sm:$0xf] }
  0x77   : > { %1993 = vmatpush.bf16.msrb.mxu1 %v3427_v57  ;;  %v3450_v57 = vld [vmem:[%s5619_s1 + $0x700] sm:$0xf]  ;;  %v3387_v11 = vor.u32 %v3811_v56, %v3386_v55  ;;  %v2660_v55 = vld [vmem:[%s5619_s1 + $0xd8] sm:$0xf0]  ;;  %v3644_v56 = vld [vmem:[%s5619_s1 + $0x154] sm:$0xf] }
  0x78   : > { %2007 = vmatpush.bf16.msrb.mxu2 %v3491_v58  ;;  %v3827_v58 = vld [vmem:[%s5619_s1 + $0x704] sm:$0xf0] }
  0x79   : > { %2021 = vmatpush.bf16.msrb.mxu3 %v3555_v62  ;;  %v3843_v62 = vld [vmem:[%s5619_s1 + $0x784] sm:$0xf0]  ;;  %v3451_v12 = vor.u32 %v3827_v58, %v3450_v57  ;;  %v2724_v57 = vld [vmem:[%s5619_s1 + $0x158] sm:$0xf0]  ;;  %v3660_v58 = vld [vmem:[%s5619_s1 + $0x1d4] sm:$0xf] }
  0x7a   : > { %1980 = vmatpush.bf16.msrb.mxu0 %v3355_v4  ;;  %v3648_v4 = vld [vmem:[%s5619_s1 + $0x174] sm:$0xf] }
  0x7b   : > { %1994 = vmatpush.bf16.msrb.mxu1 %v3419_v5  ;;  %v2740_v5 = vld [vmem:[%s5619_s1 + $0x178] sm:$0xf0] }
  0x7c   : > { %2008 = vmatpush.bf16.msrb.mxu2 %v3483_v6  ;;  %v3664_v6 = vld [vmem:[%s5619_s1 + $0x1f4] sm:$0xf] }
  0x7d   : > { %2022 = vmatpush.bf16.msrb.mxu3 %v3547_v10  ;;  %v3600_v10 = vld [vmem:[%s4207_s9 + $0x6c] sm:$0xf0]  ;;  %v2807_v30 = vor.u32 %v3664_v6, %v2804_v8  ;;  %v3658_v6 = vld [vmem:[%s5619_s1 + $0x1c4] sm:$0xf] }
  0x7e   : > { %1981 = vmatpush.bf16.msrb.mxu0 %v3347_v17  ;;  %v3515_v17 = vor.u32 %v3843_v62, %v3514_v61  ;;  %v4790_v32 = vor.u32 %v3600_v10, %v2538_v9  ;;  %v2663_v61 = vor.u32 %v3628_v53, %v2660_v55  ;;  %v2727_v62 = vor.u32 %v3644_v56, %v2724_v57  ;;  %v3620_v53 = vld [vmem:[%s5619_s1 + $0x94] sm:$0xf]  ;;  %v2628_v55 = vld [vmem:[%s5619_s1 + $0x98] sm:$0xf0] }
  0x7f   : > { %1995 = vmatpush.bf16.msrb.mxu1 %v3411_v18  ;;  %v2615_v18 = vor.u32 %v3616_v63, %v2612_v1  ;;  %v3610_v63 = vld [vmem:[%s5619_s1 + $0x44] sm:$0xf]  ;;  %v3636_v56 = vld [vmem:[%s5619_s1 + $0x114] sm:$0xf]  ;;  %v2692_v57 = vld [vmem:[%s5619_s1 + $0x118] sm:$0xf0] }
  0x80   : > { %2009 = vmatpush.bf16.msrb.mxu2 %v3475_v19  ;;  %v2540_v19 = vld [vmem:[%s4207_s9 + $0x70] sm:$0xf0]  ;;  %v3626_v1 = vld [vmem:[%s5619_s1 + $0xc4] sm:$0xf] }
  0x81   : > { %2023 = vmatpush.bf16.msrb.mxu3 %v3539_v25  ;;  %v2743_v25 = vor.u32 %v3648_v4, %v2740_v5  ;;  %v4803_v41 = vor.u32 %v3592_v16, %v2540_v19  ;;  %v3642_v4 = vld [vmem:[%s5619_s1 + $0x144] sm:$0xf]  ;;  %v2716_v5 = vld [vmem:[%s5619_s1 + $0x148] sm:$0xf0]  ;;  %v2655_v9 = vor.u32 %v3626_v1, %v2652_v3  ;;  %v2644_v16 = vld [vmem:[%s5619_s1 + $0xb8] sm:$0xf0] }
  0x82   : > { %1982 = vmatpush.bf16.msrb.mxu0 %v3339_v33  ;;  %v2668_v33 = vld [vmem:[%s5619_s1 + $0xe8] sm:$0xf0]  ;;  %v2719_v10 = vor.u32 %v3642_v4, %v2716_v5  ;;  %v3656_v19 = vld [vmem:[%s5619_s1 + $0x1b4] sm:$0xf]  ;;  %v3618_v1 = vld [vmem:[%s5619_s1 + $0x84] sm:$0xf] }
  0x83   : > { %1996 = vmatpush.bf16.msrb.mxu1 %v3403_v37  ;;  %v2732_v37 = vld [vmem:[%s5619_s1 + $0x168] sm:$0xf0]  ;;  %v2671_v49 = vor.u32 %v3630_v28, %v2668_v33  ;;  %v3622_v28 = vld [vmem:[%s5619_s1 + $0xa4] sm:$0xf] }
  0x84   : > { %2010 = vmatpush.bf16.msrb.mxu2 %v3467_v38  ;;  %v4801_v38 = vor.u32 %v3601_v14, %v2546_v13  ;;  %v2735_v50 = vor.u32 %v3646_v34, %v2732_v37  ;;  %v3624_v13 = vld [vmem:[%s5619_s1 + $0xb4] sm:$0xf]  ;;  %v2636_v33 = vld [vmem:[%s5619_s1 + $0xa8] sm:$0xf0]  ;;  %v3638_v34 = vld [vmem:[%s5619_s1 + $0x124] sm:$0xf] }
  0x85   : > { %2024 = vmatpush.bf16.msrb.mxu3 %v3531_v46  ;;  %v4811_v46 = vor.u32 %v3593_v22, %v2548_v23  ;;  %v2772_v22 = vld [vmem:[%s5619_s1 + $0x1b8] sm:$0xf0]  ;;  %v2700_v37 = vld [vmem:[%s5619_s1 + $0x128] sm:$0xf0]  ;;  %v3634_v3 = vld [vmem:[%s5619_s1 + $0x104] sm:$0xf] }
  0x86   : > { %1983 = vmatpush.bf16.msrb.mxu0 %v3331_v54  ;;  %v2799_v54 = vor.u32 %v3662_v42, %v2796_v45  ;;  %v3654_v42 = vld [vmem:[%s5619_s1 + $0x1a4] sm:$0xf]  ;;  %v2764_v45 = vld [vmem:[%s5619_s1 + $0x1a8] sm:$0xf0] }
  0x87   : > { %1997 = vmatpush.bf16.msrb.mxu1 %v3395_v59  ;;  %v2788_v59 = vld [vmem:[%s5619_s1 + $0x1d8] sm:$0xf0]  ;;  %v2684_v5 = vld [vmem:[%s5619_s1 + $0x108] sm:$0xf0] }
  0x88   : > { %2011 = vmatpush.bf16.msrb.mxu2 %v3459_v60  ;;  %v2599_v60 = vor.u32 %v3612_v51, %v2596_v52  ;;  %v2791_v2 = vor.u32 %v3660_v58, %v2788_v59  ;;  %v3604_v51 = vld [vmem:[%s5619_s1 + $0x14] sm:$0xf]  ;;  %v2564_v52 = vld [vmem:[%s5619_s1 + $0x18] sm:$0xf0] }
  0x89   : > { %2025 = vmatpush.bf16.msrb.mxu3 %v3523_v0  ;;  %v2588_v0 = vld [vmem:[%s5619_s1 + $0x48] sm:$0xf0]  ;;  %v3652_v58 = vld [vmem:[%s5619_s1 + $0x194] sm:$0xf]  ;;  %v2756_v59 = vld [vmem:[%s5619_s1 + $0x198] sm:$0xf0] }
  0x8a   : > { %1984 = vmatpush.bf16.msrb.mxu0 %v3323_v7  ;;  %v2780_v7 = vld [vmem:[%s5619_s1 + $0x1c8] sm:$0xf0]  ;;  %v2591_v8 = vor.u32 %v3610_v63, %v2588_v0  ;;  %v2631_v63 = vor.u32 %v3620_v53, %v2628_v55  ;;  %v2695_v0 = vor.u32 %v3636_v56, %v2692_v57  ;;  %v2759_v4 = vor.u32 %v3652_v58, %v2756_v59  ;;  %v3692_v53 = vld [vmem:[%s5619_s1 + $0x2d4] sm:$0xf]  ;;  %v2916_v55 = vld [vmem:[%s5619_s1 + $0x2d8] sm:$0xf0] }
  0x8b   : > { %1998 = vmatpush.bf16.msrb.mxu1 %v3387_v11  ;;  %v3608_v11 = vld [vmem:[%s5619_s1 + $0x34] sm:$0xf]  ;;  %v2783_v14 = vor.u32 %v3658_v6, %v2780_v7  ;;  %v3650_v6 = vld [vmem:[%s5619_s1 + $0x184] sm:$0xf]  ;;  %v2748_v7 = vld [vmem:[%s5619_s1 + $0x188] sm:$0xf0] }
  0x8c   : > { %2012 = vmatpush.bf16.msrb.mxu2 %v3451_v12  ;;  %v2580_v12 = vld [vmem:[%s5619_s1 + $0x38] sm:$0xf0]  ;;  %v3708_v56 = vld [vmem:[%s5619_s1 + $0x354] sm:$0xf] }
  0x8d   : > { %2026 = vmatpush.bf16.msrb.mxu3 %v3515_v17  ;;  %1985 = vmatmul.bf16.vlgmr.msrb.gmra.mxu0 %v4790_v32  ;;  %v3640_v17 = vld [vmem:[%s5619_s1 + $0x134] sm:$0xf]  ;;  %v2583_v23 = vor.u32 %v3608_v11, %v2580_v12  ;;  %v2932_v12 = vld [vmem:[%s5619_s1 + $0x2f8] sm:$0xf0] }
  0x8e   : > { %2033 = vmatpush.bf16.msra.mxu0 %v2615_v18  ;;  %1999 = vmatmul.bf16.vlgmr.msrb.gmra.mxu1 %v4803_v41  ;;  %v2708_v18 = vld [vmem:[%s5619_s1 + $0x138] sm:$0xf0]  ;;  %v3724_v58 = vld [vmem:[%s5619_s1 + $0x3d4] sm:$0xf] }
  0x8f   : > { %2047 = vmatpush.bf16.msra.mxu1 %v2679_v24  ;;  %2013 = vmatmul.bf16.vlgmr.msrb.gmra.mxu2 %v4801_v38  ;;  %v2647_v24 = vor.u32 %v3624_v13, %v2644_v16  ;;  %v3712_v13 = vld [vmem:[%s5619_s1 + $0x374] sm:$0xf]  ;;  %v2980_v57 = vld [vmem:[%s5619_s1 + $0x358] sm:$0xf0] }
  0x90   : > { %2061 = vmatpush.bf16.msra.mxu2 %v2743_v25  ;;  %2027 = vmatmul.bf16.vlgmr.msrb.gmra.mxu3 %v4811_v46  ;;  %v2711_v25 = vor.u32 %v3640_v17, %v2708_v18  ;;  %v2687_v17 = vor.u32 %v3634_v3, %v2684_v5  ;;  %v3728_v18 = vld [vmem:[%s5619_s1 + $0x3f4] sm:$0xf]  ;;  %v3044_v59 = vld [vmem:[%s5619_s1 + $0x3d8] sm:$0xf0]  ;;  %v3036_v3 = vld [vmem:[%s5619_s1 + $0x3c8] sm:$0xf0] }
  0x91   : > { %2075 = vmatpush.bf16.msra.mxu3 %v2807_v30  ;;  %v2775_v30 = vor.u32 %v3656_v19, %v2772_v22  ;;  %v3060_v19 = vld [vmem:[%s5619_s1 + $0x3f8] sm:$0xf0]  ;;  %v2751_v22 = vor.u32 %v3650_v6, %v2748_v7  ;;  %v3672_v7 = vld [vmem:[%s5619_s1 + $0x234] sm:$0xf] }
  0x92   : > { %2034 = vmatpush.bf16.msra.mxu0 %v2607_v48  ;;  %v2575_v48 = vor.u32 %v3606_v26, %v2572_v27  ;;  %v3678_v26 = vld [vmem:[%s5619_s1 + $0x264] sm:$0xf]  ;;  %v2860_v27 = vld [vmem:[%s5619_s1 + $0x268] sm:$0xf0] }
  0x93   : > { %2048 = vmatpush.bf16.msra.mxu1 %v2671_v49  ;;  %v2639_v49 = vor.u32 %v3622_v28, %v2636_v33  ;;  %v3694_v28 = vld [vmem:[%s5619_s1 + $0x2e4] sm:$0xf]  ;;  %v2924_v33 = vld [vmem:[%s5619_s1 + $0x2e8] sm:$0xf0] }
  0x94   : > { %2062 = vmatpush.bf16.msra.mxu2 %v2735_v50  ;;  %v2703_v50 = vor.u32 %v3638_v34, %v2700_v37  ;;  %v3710_v34 = vld [vmem:[%s5619_s1 + $0x364] sm:$0xf]  ;;  %v2988_v37 = vld [vmem:[%s5619_s1 + $0x368] sm:$0xf0] }
  0x95   : > { %2076 = vmatpush.bf16.msra.mxu3 %v2799_v54  ;;  %v2767_v54 = vor.u32 %v3654_v42, %v2764_v45  ;;  %v3726_v42 = vld [vmem:[%s5619_s1 + $0x3e4] sm:$0xf]  ;;  %v3052_v45 = vld [vmem:[%s5619_s1 + $0x3e8] sm:$0xf0] }
  0x96   : > { %2035 = vmatpush.bf16.msra.mxu0 %v2599_v60  ;;  %v2567_v60 = vor.u32 %v3604_v51, %v2564_v52  ;;  %v3676_v51 = vld [vmem:[%s5619_s1 + $0x254] sm:$0xf]  ;;  %v2852_v52 = vld [vmem:[%s5619_s1 + $0x258] sm:$0xf0] }
  0x97   : > { %2049 = vmatpush.bf16.msra.mxu1 %v2663_v61  ;;  %v3602_v61 = vld [vmem:[%s5619_s1 + $0x4] sm:$0xf] }
  0x98   : > { %2063 = vmatpush.bf16.msra.mxu2 %v2727_v62  ;;  %v2556_v62 = vld [vmem:[%s5619_s1 + $0x8] sm:$0xf0] }
  0x99   : > { %2077 = vmatpush.bf16.msra.mxu3 %v2791_v2  ;;  %v2620_v2 = vld [vmem:[%s5619_s1 + $0x88] sm:$0xf0]  ;;  %v2559_v11 = vor.u32 %v3602_v61, %v2556_v62  ;;  %v2919_v61 = vor.u32 %v3692_v53, %v2916_v55  ;;  %v3674_v62 = vld [vmem:[%s5619_s1 + $0x244] sm:$0xf]  ;;  %v3700_v55 = vld [vmem:[%s5619_s1 + $0x314] sm:$0xf] }
  0x9a   : > { %2036 = vmatpush.bf16.msra.mxu0 %v2591_v8  ;;  %v3680_v8 = vld [vmem:[%s5619_s1 + $0x274] sm:$0xf]  ;;  %v2623_v16 = vor.u32 %v3618_v1, %v2620_v2  ;;  %v2972_v1 = vld [vmem:[%s5619_s1 + $0x348] sm:$0xf0]  ;;  %v3722_v2 = vld [vmem:[%s5619_s1 + $0x3c4] sm:$0xf] }
  0x9b   : > { %2050 = vmatpush.bf16.msra.mxu1 %v2655_v9  ;;  %v2868_v9 = vld [vmem:[%s5619_s1 + $0x278] sm:$0xf0] }
  0x9c   : > { %2064 = vmatpush.bf16.msra.mxu2 %v2719_v10  ;;  %v3696_v10 = vld [vmem:[%s5619_s1 + $0x2f4] sm:$0xf] }
  0x9d   : > { %2078 = vmatpush.bf16.msra.mxu3 %v2783_v14  ;;  %v2996_v14 = vld [vmem:[%s5619_s1 + $0x378] sm:$0xf0] }
  0x9e   : > { %2037 = vmatpush.bf16.msra.mxu0 %v2583_v23  ;;  %v2871_v23 = vor.u32 %v3680_v8, %v2868_v9  ;;  %v2836_v8 = vld [vmem:[%s5619_s1 + $0x238] sm:$0xf0]  ;;  %v3688_v9 = vld [vmem:[%s5619_s1 + $0x2b4] sm:$0xf] }
  0x9f   : > { %2051 = vmatpush.bf16.msra.mxu1 %v2647_v24  ;;  %v2935_v24 = vor.u32 %v3696_v10, %v2932_v12  ;;  %v3039_v10 = vor.u32 %v3722_v2, %v3036_v3  ;;  %v3704_v12 = vld [vmem:[%s5619_s1 + $0x334] sm:$0xf]  ;;  %v3004_v2 = vld [vmem:[%s5619_s1 + $0x388] sm:$0xf0] }
  0xa0   : > { %2065 = vmatpush.bf16.msra.mxu2 %v2711_v25  ;;  %v2999_v25 = vor.u32 %v3712_v13, %v2996_v14  ;;  %v2964_v13 = vld [vmem:[%s5619_s1 + $0x338] sm:$0xf0]  ;;  %v3720_v14 = vld [vmem:[%s5619_s1 + $0x3b4] sm:$0xf] }
  0xa1   : > { %2079 = vmatpush.bf16.msra.mxu3 %v2775_v30  ;;  %v3063_v30 = vor.u32 %v3728_v18, %v3060_v19  ;;  %v2967_v19 = vor.u32 %v3704_v12, %v2964_v13  ;;  %v3776_v12 = vld [vmem:[%s5619_s1 + $0x574] sm:$0xf]  ;;  %v3252_v13 = vld [vmem:[%s5619_s1 + $0x578] sm:$0xf0] }
  0xa2   : > { %2038 = vmatpush.bf16.msra.mxu0 %v2575_v48  ;;  %v2863_v48 = vor.u32 %v3678_v26, %v2860_v27  ;;  %v2892_v26 = vld [vmem:[%s5619_s1 + $0x2a8] sm:$0xf0]  ;;  %v3702_v27 = vld [vmem:[%s5619_s1 + $0x324] sm:$0xf] }
  0xa3   : > { %2052 = vmatpush.bf16.msra.mxu1 %v2639_v49  ;;  %v2927_v49 = vor.u32 %v3694_v28, %v2924_v33  ;;  %v2956_v28 = vld [vmem:[%s5619_s1 + $0x328] sm:$0xf0] }
  0xa4   : > { %2066 = vmatpush.bf16.msra.mxu2 %v2703_v50  ;;  %v2991_v50 = vor.u32 %v3710_v34, %v2988_v37  ;;  %v3020_v33 = vld [vmem:[%s5619_s1 + $0x3a8] sm:$0xf0] }
  0xa5   : > { %2080 = vmatpush.bf16.msra.mxu3 %v2767_v54  ;;  %v3055_v54 = vor.u32 %v3726_v42, %v3052_v45 }
  0xa6   : > { %2039 = vmatpush.bf16.msra.mxu0 %v2567_v60  ;;  %v2855_v60 = vor.u32 %v3676_v51, %v2852_v52  ;;  %v3684_v51 = vld [vmem:[%s5619_s1 + $0x294] sm:$0xf] }
  0xa7   : > { %2053 = vmatpush.bf16.msra.mxu1 %v2631_v63  ;;  %v2844_v63 = vld [vmem:[%s5619_s1 + $0x248] sm:$0xf0] }
  0xa8   : > { %2067 = vmatpush.bf16.msra.mxu2 %v2695_v0  ;;  %v3706_v0 = vld [vmem:[%s5619_s1 + $0x344] sm:$0xf] }
  0xa9   : > { %2081 = vmatpush.bf16.msra.mxu3 %v2759_v4  ;;  %v2847_v4 = vor.u32 %v3674_v62, %v2844_v63  ;;  %v2975_v6 = vor.u32 %v3706_v0, %v2972_v1  ;;  %v3682_v63 = vld [vmem:[%s5619_s1 + $0x284] sm:$0xf]  ;;  %v2940_v0 = vld [vmem:[%s5619_s1 + $0x308] sm:$0xf0] }
  0xaa   : > { %2040 = vmatpush.bf16.msra.mxu0 %v2559_v11  ;;  %v2900_v11 = vld [vmem:[%s5619_s1 + $0x2b8] sm:$0xf0]  ;;  %v3714_v1 = vld [vmem:[%s5619_s1 + $0x384] sm:$0xf] }
  0xab   : > { %2054 = vmatpush.bf16.msra.mxu1 %v2623_v16  ;;  %v3028_v16 = vld [vmem:[%s5619_s1 + $0x3b8] sm:$0xf0]  ;;  %v2903_v18 = vor.u32 %v3688_v9, %v2900_v11 }
  0xac   : > { %2068 = vmatpush.bf16.msra.mxu2 %v2687_v17  ;;  %v2839_v17 = vor.u32 %v3672_v7, %v2836_v8  ;;  %v3188_v11 = vld [vmem:[%s5619_s1 + $0x4f8] sm:$0xf0] }
  0xad   : > { %2082 = vmatpush.bf16.msra.mxu3 %v2751_v22  ;;  %2041 = vmatmul.bf16.vlgmr.msra.gmra.mxu0 %v4212_v15  ;;  %v2983_v15 = vor.u32 %v3708_v56, %v2980_v57  ;;  %v3670_v22 = vld [vmem:[%s5619_s1 + $0x224] sm:$0xf]  ;;  %v1818_v34 = vpop.f32.mrf.mxu0  ;;  %v2948_v56 = vld [vmem:[%s5619_s1 + $0x318] sm:$0xf0]  ;;  %v3716_v57 = vld [vmem:[%s5619_s1 + $0x394] sm:$0xf] }
  0xae   : > { %2089 = vmatpush.bf16.msrb.mxu0 %v2871_v23  ;;  %2055 = vmatmul.bf16.vlgmr.msra.gmra.mxu1 %v4219_v21  ;;  %v3047_v21 = vor.u32 %v3724_v58, %v3044_v59  ;;  %v2828_v23 = vld [vmem:[%s5619_s1 + $0x228] sm:$0xf0]  ;;  %v3012_v58 = vld [vmem:[%s5619_s1 + $0x398] sm:$0xf0]  ;;  %v2951_v62 = vor.u32 %v3700_v55, %v2948_v56  ;;  %v3756_v56 = vld [vmem:[%s5619_s1 + $0x4d4] sm:$0xf] }
  0xaf   : > { %2103 = vmatpush.bf16.msrb.mxu1 %v2935_v24  ;;  %2069 = vmatmul.bf16.vlgmr.msra.gmra.mxu2 %v4217_v20  ;;  %v3690_v20 = vld [vmem:[%s5619_s1 + $0x2c4] sm:$0xf]  ;;  %v2831_v37 = vor.u32 %v3670_v22, %v2828_v23  ;;  %v1832_v42 = vpop.f32.mrf.mxu1  ;;  %v3108_v55 = vld [vmem:[%s5619_s1 + $0x458] sm:$0xf0] }
  0xb0   : > { %2117 = vmatpush.bf16.msrb.mxu2 %v2999_v25  ;;  %2083 = vmatmul.bf16.vlgmr.msra.gmra.mxu3 %v4232_v29  ;;  %v2908_v29 = vld [vmem:[%s5619_s1 + $0x2c8] sm:$0xf0]  ;;  %v3686_v24 = vld [vmem:[%s5619_s1 + $0x2a4] sm:$0xf]  ;;  %v3031_v25 = vor.u32 %v3720_v14, %v3028_v16  ;;  %v1833_v52 = vadd.f32 %v1832_v42, %v1818_v34 }
  0xb1   : > { %2131 = vmatpush.bf16.msrb.mxu3 %v3063_v30  ;;  %v2911_v5 = vor.u32 %v3690_v20, %v2908_v29  ;;  %v3718_v30 = vld [vmem:[%s5619_s1 + $0x3a4] sm:$0xf]  ;;  %v2895_v45 = vor.u32 %v3686_v24, %v2892_v26  ;;  %v2876_v20 = vld [vmem:[%s5619_s1 + $0x288] sm:$0xf0]  ;;  %v3015_v29 = vor.u32 %v3716_v57, %v3012_v58  ;;  %v3007_v24 = vor.u32 %v3714_v1, %v3004_v2 }
  0xb2   : > { %2090 = vmatpush.bf16.msrb.mxu0 %v2863_v48  ;;  %v2959_v48 = vor.u32 %v3702_v27, %v2956_v28  ;;  %v3023_v53 = vor.u32 %v3718_v30, %v3020_v33  ;;  %v3255_v27 = vor.u32 %v3776_v12, %v3252_v13  ;;  %v3742_v28 = vld [vmem:[%s5619_s1 + $0x464] sm:$0xf]  ;;  %v3116_v30 = vld [vmem:[%s5619_s1 + $0x468] sm:$0xf0]  ;;  %v3736_v12 = vld [vmem:[%s5619_s1 + $0x434] sm:$0xf] }
  0xb3   : > { %2104 = vmatpush.bf16.msrb.mxu1 %v2927_v49  ;;  %v3668_v49 = vld [vmem:[%s5619_s1 + $0x214] sm:$0xf]  ;;  %v3758_v33 = vld [vmem:[%s5619_s1 + $0x4e4] sm:$0xf]  ;;  %v3164_v1 = vld [vmem:[%s5619_s1 + $0x4c8] sm:$0xf0] }
  0xb4   : > { %2118 = vmatpush.bf16.msrb.mxu2 %v2991_v50  ;;  %v2820_v50 = vld [vmem:[%s5619_s1 + $0x218] sm:$0xf0]  ;;  %v1846_v3 = vpop.f32.mrf.mxu2  ;;  %v3774_v42 = vld [vmem:[%s5619_s1 + $0x564] sm:$0xf] }
  0xb5   : > { %2132 = vmatpush.bf16.msrb.mxu3 %v3055_v54  ;;  %v2884_v54 = vld [vmem:[%s5619_s1 + $0x298] sm:$0xf0]  ;;  %v2823_v59 = vor.u32 %v3668_v49, %v2820_v50  ;;  %v1847_v7 = vadd.f32 %v1846_v3, %v1833_v52  ;;  %v1820_v14 = vpop.f32.mrf.mxu0  ;;  %v3308_v49 = vld [vmem:[%s5619_s1 + $0x5e8] sm:$0xf0]  ;;  %v3119_v50 = vor.u32 %v3742_v28, %v3116_v30  ;;  %v3770_v2 = vld [vmem:[%s5619_s1 + $0x544] sm:$0xf] }
  0xb6   : > { %2091 = vmatpush.bf16.msrb.mxu0 %v2855_v60  ;;  %v3666_v60 = vld [vmem:[%s5619_s1 + $0x204] sm:$0xf]  ;;  %v1860_v8 = vpop.f32.mrf.mxu3  ;;  %v3228_v3 = vld [vmem:[%s5619_s1 + $0x548] sm:$0xf0]  ;;  %v3092_v13 = vld [vmem:[%s5619_s1 + $0x438] sm:$0xf0] }
  0xb7   : > { %2105 = vmatpush.bf16.msrb.mxu1 %v2919_v61  ;;  %v2812_v61 = vld [vmem:[%s5619_s1 + $0x208] sm:$0xf0]  ;;  %v1834_v16 = vpop.f32.mrf.mxu1  ;;  %v1861_v22 = vadd.f32 %v1860_v8, %v1847_v7  ;;  %v3734_v28 = vld [vmem:[%s5619_s1 + $0x424] sm:$0xf] }
  0xb8   : > { %2119 = vmatpush.bf16.msrb.mxu2 %v2983_v15  ;;  %v2887_v15 = vor.u32 %v3684_v51, %v2884_v54  ;;  %v2815_v9 = vor.u32 %v3666_v60, %v2812_v61  ;;  %v1835_v23 = vadd.f32 %v1834_v16, %v1820_v14  ;;  %v3740_v54 = vld [vmem:[%s5619_s1 + $0x454] sm:$0xf]  ;;  %v3236_v61 = vld [vmem:[%s5619_s1 + $0x558] sm:$0xf0]  ;;  %v3084_v30 = vld [vmem:[%s5619_s1 + $0x428] sm:$0xf0] }
  0xb9   : > { %2133 = vmatpush.bf16.msrb.mxu3 %v3047_v21  ;;  %v3698_v21 = vld [vmem:[%s5619_s1 + $0x304] sm:$0xf]  ;;  %v3772_v60 = vld [vmem:[%s5619_s1 + $0x554] sm:$0xf] }
  0xba   : > { %2092 = vmatpush.bf16.msrb.mxu0 %v2847_v4  ;;  %v3744_v4 = vld [vmem:[%s5619_s1 + $0x474] sm:$0xf] }
  0xbb   : > { %2106 = vmatpush.bf16.msrb.mxu1 %v2911_v5  ;;  %v3124_v5 = vld [vmem:[%s5619_s1 + $0x478] sm:$0xf0]  ;;  %v3752_v14 = vld [vmem:[%s5619_s1 + $0x4b4] sm:$0xf] }
  0xbc   : > { %2120 = vmatpush.bf16.msrb.mxu2 %v2975_v6  ;;  %v3760_v6 = vld [vmem:[%s5619_s1 + $0x4f4] sm:$0xf]  ;;  %v1848_v51 = vpop.f32.mrf.mxu2 }
  0xbd   : > { %2134 = vmatpush.bf16.msrb.mxu3 %v3039_v10  ;;  %v2879_v10 = vor.u32 %v3682_v63, %v2876_v20  ;;  %v3191_v26 = vor.u32 %v3760_v6, %v3188_v11  ;;  %v1849_v57 = vadd.f32 %v1848_v51, %v1835_v23  ;;  %v3111_v20 = vor.u32 %v3740_v54, %v3108_v55  ;;  %v3292_v6 = vld [vmem:[%s5619_s1 + $0x5c8] sm:$0xf0]  ;;  %v3784_v23 = vld [vmem:[%s5619_s1 + $0x5b4] sm:$0xf] }
  0xbe   : > { %2093 = vmatpush.bf16.msrb.mxu0 %v2839_v17  ;;  %v2943_v17 = vor.u32 %v3698_v21, %v2940_v0  ;;  %v3754_v0 = vld [vmem:[%s5619_s1 + $0x4c4] sm:$0xf]  ;;  %v3231_v11 = vor.u32 %v3770_v2, %v3228_v3  ;;  %v3087_v55 = vor.u32 %v3734_v28, %v3084_v30 }
  0xbf   : > { %2107 = vmatpush.bf16.msrb.mxu1 %v2903_v18  ;;  %v3792_v18 = vld [vmem:[%s5619_s1 + $0x5f4] sm:$0xf]  ;;  %v3746_v3 = vld [vmem:[%s5619_s1 + $0x484] sm:$0xf] }
  0xc0   : > { %2121 = vmatpush.bf16.msrb.mxu2 %v2967_v19  ;;  %v3316_v19 = vld [vmem:[%s5619_s1 + $0x5f8] sm:$0xf0] }
  0xc1   : > { %2135 = vmatpush.bf16.msrb.mxu3 %v3031_v25  ;;  %v3127_v25 = vor.u32 %v3744_v4, %v3124_v5  ;;  %v3319_v34 = vor.u32 %v3792_v18, %v3316_v19  ;;  %v3786_v5 = vld [vmem:[%s5619_s1 + $0x5c4] sm:$0xf]  ;;  %v3156_v18 = vld [vmem:[%s5619_s1 + $0x4b8] sm:$0xf0]  ;;  %v3768_v19 = vld [vmem:[%s5619_s1 + $0x534] sm:$0xf] }
  0xc2   : > { %2094 = vmatpush.bf16.msrb.mxu0 %v2831_v37  ;;  %v3180_v37 = vld [vmem:[%s5619_s1 + $0x4e8] sm:$0xf0]  ;;  %v3295_v16 = vor.u32 %v3786_v5, %v3292_v6  ;;  %v3762_v5 = vld [vmem:[%s5619_s1 + $0x504] sm:$0xf] }
  0xc3   : > { %2108 = vmatpush.bf16.msrb.mxu1 %v2895_v45  ;;  %v3244_v45 = vld [vmem:[%s5619_s1 + $0x568] sm:$0xf0]  ;;  %v3183_v52 = vor.u32 %v3758_v33, %v3180_v37  ;;  %v3750_v33 = vld [vmem:[%s5619_s1 + $0x4a4] sm:$0xf] }
  0xc4   : > { %2122 = vmatpush.bf16.msrb.mxu2 %v2959_v48  ;;  %v3790_v48 = vld [vmem:[%s5619_s1 + $0x5e4] sm:$0xf] }
  0xc5   : > { %2136 = vmatpush.bf16.msrb.mxu3 %v3023_v53  ;;  %v3247_v53 = vor.u32 %v3774_v42, %v3244_v45  ;;  %v3311_v58 = vor.u32 %v3790_v48, %v3308_v49  ;;  %v3148_v42 = vld [vmem:[%s5619_s1 + $0x4a8] sm:$0xf0]  ;;  %v3766_v45 = vld [vmem:[%s5619_s1 + $0x524] sm:$0xf] }
  0xc6   : > { %2095 = vmatpush.bf16.msrb.mxu0 %v2823_v59  ;;  %v3172_v59 = vld [vmem:[%s5619_s1 + $0x4d8] sm:$0xf0]  ;;  %v3212_v48 = vld [vmem:[%s5619_s1 + $0x528] sm:$0xf0] }
  0xc7   : > { %2109 = vmatpush.bf16.msrb.mxu1 %v2887_v15  ;;  %v1862_v15 = vpop.f32.mrf.mxu3  ;;  %v3175_v21 = vor.u32 %v3756_v56, %v3172_v59  ;;  %v3215_v59 = vor.u32 %v3766_v45, %v3212_v48  ;;  %v3822_v45 = vld [vmem:[%s5619_s1 + $0x6e4] sm:$0xf] }
  0xc8   : > { %2123 = vmatpush.bf16.msrb.mxu2 %v2951_v62  ;;  %v3300_v62 = vld [vmem:[%s5619_s1 + $0x5d8] sm:$0xf0]  ;;  %v1863_v63 = vadd.f32 %v1862_v15, %v1849_v57  ;;  %v3748_v15 = vld [vmem:[%s5619_s1 + $0x494] sm:$0xf] }
  0xc9   : > { %2137 = vmatpush.bf16.msrb.mxu3 %v3015_v29  ;;  %v3239_v29 = vor.u32 %v3772_v60, %v3236_v61  ;;  %v3732_v60 = vld [vmem:[%s5619_s1 + $0x414] sm:$0xf]  ;;  %v3076_v61 = vld [vmem:[%s5619_s1 + $0x418] sm:$0xf0] }
  0xca   : > { %2096 = vmatpush.bf16.msrb.mxu0 %v2815_v9  ;;  %v1874_v4 = vpop.f32.mrf.mxu0 }
  0xcb   : > { %2110 = vmatpush.bf16.msrb.mxu1 %v2879_v10  ;;  %v1875_v7 = vadd.f32 %v1874_v4, %v1861_v22  ;;  %v1888_v9 = vpop.f32.mrf.mxu1  ;;  %v3167_v10 = vor.u32 %v3754_v0, %v3164_v1  ;;  %v3220_v22 = vld [vmem:[%s5619_s1 + $0x538] sm:$0xf0]  ;;  %v3730_v0 = vld [vmem:[%s5619_s1 + $0x404] sm:$0xf]  ;;  %v3132_v4 = vld [vmem:[%s5619_s1 + $0x488] sm:$0xf0] }
  0xcc   : > { %2124 = vmatpush.bf16.msrb.mxu2 %v2943_v17 }
  0xcd   : > { %2138 = vmatpush.bf16.msrb.mxu3 %v3007_v24  ;;  %2097 = vmatmul.bf16.vlgmr.msrb.gmra.mxu0 %v4366_v39  ;;  %v3788_v39 = vld [vmem:[%s5619_s1 + $0x5d4] sm:$0xf]  ;;  %v1889_v17 = vadd.f32 %v1888_v9, %v1875_v7  ;;  %v3284_v24 = vld [vmem:[%s5619_s1 + $0x5b8] sm:$0xf0]  ;;  %v3778_v9 = vld [vmem:[%s5619_s1 + $0x584] sm:$0xf] }
  0xce   : > { %2145 = vmatpush.bf16.msra.mxu0 %v3127_v25  ;;  %2111 = vmatmul.bf16.vlgmr.msrb.gmra.mxu1 %v4379_v44  ;;  %v3100_v44 = vld [vmem:[%s5619_s1 + $0x448] sm:$0xf0]  ;;  %v3095_v25 = vor.u32 %v3736_v12, %v3092_v13  ;;  %v3808_v13 = vld [vmem:[%s5619_s1 + $0x674] sm:$0xf] }
  0xcf   : > { %2159 = vmatpush.bf16.msra.mxu1 %v3191_v26  ;;  %2125 = vmatmul.bf16.vlgmr.msrb.gmra.mxu2 %v4377_v43  ;;  %v3738_v43 = vld [vmem:[%s5619_s1 + $0x444] sm:$0xf]  ;;  %v3159_v26 = vor.u32 %v3752_v14, %v3156_v18  ;;  %v3380_v14 = vld [vmem:[%s5619_s1 + $0x678] sm:$0xf0] }
  0xd0   : > { %2173 = vmatpush.bf16.msra.mxu2 %v3255_v27  ;;  %2139 = vmatmul.bf16.vlgmr.msrb.gmra.mxu3 %v4387_v47  ;;  %v3303_v47 = vor.u32 %v3788_v39, %v3300_v62  ;;  %v3103_v8 = vor.u32 %v3738_v43, %v3100_v44  ;;  %v3223_v27 = vor.u32 %v3768_v19, %v3220_v22  ;;  %v3268_v43 = vld [vmem:[%s5619_s1 + $0x598] sm:$0xf0]  ;;  %v3840_v19 = vld [vmem:[%s5619_s1 + $0x774] sm:$0xf] }
  0xd1   : > { %2187 = vmatpush.bf16.msra.mxu3 %v3319_v34  ;;  %v3287_v34 = vor.u32 %v3784_v23, %v3284_v24  ;;  %v3079_v44 = vor.u32 %v3732_v60, %v3076_v61  ;;  %v3444_v18 = vld [vmem:[%s5619_s1 + $0x6f8] sm:$0xf0]  ;;  %v3135_v24 = vor.u32 %v3746_v3, %v3132_v4  ;;  %v3383_v30 = vor.u32 %v3808_v13, %v3380_v14  ;;  %v3820_v60 = vld [vmem:[%s5619_s1 + $0x6d4] sm:$0xf]  ;;  %v3548_v3 = vld [vmem:[%s5619_s1 + $0x7c8] sm:$0xf0] }
  0xd2   : > { %2146 = vmatpush.bf16.msra.mxu0 %v3119_v50  ;;  %v1902_v37 = vpop.f32.mrf.mxu2  ;;  %v1876_v50 = vpop.f32.mrf.mxu0  ;;  %v3508_v22 = vld [vmem:[%s5619_s1 + $0x778] sm:$0xf0]  ;;  %v3832_v14 = vld [vmem:[%s5619_s1 + $0x734] sm:$0xf] }
  0xd3   : > { %2160 = vmatpush.bf16.msra.mxu1 %v3183_v52  ;;  %v1903_v49 = vadd.f32 %v1902_v37, %v1889_v17  ;;  %v1916_v51 = vpop.f32.mrf.mxu3  ;;  %v3782_v52 = vld [vmem:[%s5619_s1 + $0x5a4] sm:$0xf]  ;;  %v1877_v54 = vadd.f32 %v1876_v50, %v1863_v63  ;;  %v1890_v56 = vpop.f32.mrf.mxu1  ;;  %v3140_v63 = vld [vmem:[%s5619_s1 + $0x498] sm:$0xf0] }
  0xd4   : > { %2174 = vmatpush.bf16.msra.mxu2 %v3247_v53  ;;  %v3276_v53 = vld [vmem:[%s5619_s1 + $0x5a8] sm:$0xf0]  ;;  %v3143_v1 = vor.u32 %v3748_v15, %v3140_v63  ;;  %v3806_v37 = vld [vmem:[%s5619_s1 + $0x664] sm:$0xf]  ;;  %v3428_v15 = vld [vmem:[%s5619_s1 + $0x6d8] sm:$0xf0] }
  0xd5   : > { %2188 = vmatpush.bf16.msra.mxu3 %v3311_v58  ;;  %v5305_v57 = vadd.f32 %v1916_v51, %v1903_v49  ;;  %v3151_v58 = vor.u32 %v3750_v33, %v3148_v42  ;;  %v3279_v39 = vor.u32 %v3782_v52, %v3276_v53  ;;  %v1891_v62 = vadd.f32 %v1890_v56, %v1877_v54  ;;  %v3372_v42 = vld [vmem:[%s5619_s1 + $0x668] sm:$0xf0]  ;;  %v3838_v50 = vld [vmem:[%s5619_s1 + $0x764] sm:$0xf]  ;;  %v3556_v63 = vld [vmem:[%s5619_s1 + $0x7d8] sm:$0xf0] }
  0xd6   : > { %2147 = vmatpush.bf16.msra.mxu0 %v3111_v20  ;;  %v3764_v20 = vld [vmem:[%s5619_s1 + $0x514] sm:$0xf]  ;;  %v3436_v49 = vld [vmem:[%s5619_s1 + $0x6e8] sm:$0xf0]  ;;  %v3854_v52 = vld [vmem:[%s5619_s1 + $0x7e4] sm:$0xf]  ;;  %v3375_v54 = vor.u32 %v3806_v37, %v3372_v42 }
  0xd7   : > { %2161 = vmatpush.bf16.msra.mxu1 %v3175_v21  ;;  %v3204_v21 = vld [vmem:[%s5619_s1 + $0x518] sm:$0xf0]  ;;  %v3500_v51 = vld [vmem:[%s5619_s1 + $0x768] sm:$0xf0] }
  0xd8   : > { %2175 = vmatpush.bf16.msra.mxu2 %v3239_v29  ;;  %v3780_v29 = vld [vmem:[%s5619_s1 + $0x594] sm:$0xf]  ;;  %v3207_v2 = vor.u32 %v3764_v20, %v3204_v21  ;;  %v3564_v53 = vld [vmem:[%s5619_s1 + $0x7e8] sm:$0xf0]  ;;  %v3503_v56 = vor.u32 %v3838_v50, %v3500_v51  ;;  %v3431_v21 = vor.u32 %v3820_v60, %v3428_v15  ;;  %v3412_v13 = vld [vmem:[%s5619_s1 + $0x6b8] sm:$0xf0] }
  0xd9   : > { %2189 = vmatpush.bf16.msra.mxu3 %v3303_v47  ;;  %v3068_v47 = vld [vmem:[%s5619_s1 + $0x408] sm:$0xf0]  ;;  %v3271_v6 = vor.u32 %v3780_v29, %v3268_v43  ;;  %v3567_v61 = vor.u32 %v3854_v52, %v3564_v53  ;;  %v3818_v43 = vld [vmem:[%s5619_s1 + $0x6c4] sm:$0xf]  ;;  %v3812_v60 = vld [vmem:[%s5619_s1 + $0x694] sm:$0xf] }
  0xda   : > { %2148 = vmatpush.bf16.msra.mxu0 %v3103_v8  ;;  %v1904_v7 = vpop.f32.mrf.mxu2  ;;  %v3196_v8 = vld [vmem:[%s5619_s1 + $0x508] sm:$0xf0]  ;;  %v3071_v17 = vor.u32 %v3730_v0, %v3068_v47  ;;  %v3834_v0 = vld [vmem:[%s5619_s1 + $0x744] sm:$0xf]  ;;  %v3396_v15 = vld [vmem:[%s5619_s1 + $0x698] sm:$0xf0] }
  0xdb   : > { %2162 = vmatpush.bf16.msra.mxu1 %v3167_v10  ;;  %v3260_v10 = vld [vmem:[%s5619_s1 + $0x588] sm:$0xf0]  ;;  %v1918_v12 = vpop.f32.mrf.mxu3 }
  0xdc   : > { %2176 = vmatpush.bf16.msra.mxu2 %v3231_v11  ;;  %v1905_v11 = vadd.f32 %v1904_v7, %v1891_v62  ;;  %v3263_v28 = vor.u32 %v3778_v9, %v3260_v10  ;;  %v3492_v62 = vld [vmem:[%s5619_s1 + $0x758] sm:$0xf0]  ;;  %v3484_v47 = vld [vmem:[%s5619_s1 + $0x748] sm:$0xf0]  ;;  %v3800_v9 = vld [vmem:[%s5619_s1 + $0x634] sm:$0xf] }
  0xdd   : > { %2190 = vmatpush.bf16.msra.mxu3 %v3295_v16  ;;  %v3824_v16 = vld [vmem:[%s5619_s1 + $0x6f4] sm:$0xf]  ;;  %v3348_v10 = vld [vmem:[%s5619_s1 + $0x638] sm:$0xf0]  ;;  %v3468_v37 = vld [vmem:[%s5619_s1 + $0x728] sm:$0xf0] }
  0xde   : > { %2149 = vmatpush.bf16.msra.mxu0 %v3095_v25  ;;  %v5373_v23 = vadd.f32 %v1918_v12, %v1905_v11  ;;  %v3199_v25 = vor.u32 %v3762_v5, %v3196_v8  ;;  %v3447_v33 = vor.u32 %v3824_v16, %v3444_v18  ;;  %v3487_v8 = vor.u32 %v3834_v0, %v3484_v47  ;;  %v3816_v11 = vld [vmem:[%s5619_s1 + $0x6b4] sm:$0xf]  ;;  %v3476_v16 = vld [vmem:[%s5619_s1 + $0x738] sm:$0xf0]  ;;  %v3532_v50 = vld [vmem:[%s5619_s1 + $0x7a8] sm:$0xf0] }
  0xdf   : > { %2163 = vmatpush.bf16.msra.mxu1 %v3159_v26  ;;  %v3856_v26 = vld [vmem:[%s5619_s1 + $0x7f4] sm:$0xf]  ;;  %v3540_v18 = vld [vmem:[%s5619_s1 + $0x7b8] sm:$0xf0]  ;;  %v3388_v0 = vld [vmem:[%s5619_s1 + $0x688] sm:$0xf0] }
  0xe0   : > { %2177 = vmatpush.bf16.msra.mxu2 %v3223_v27  ;;  %v3572_v27 = vld [vmem:[%s5619_s1 + $0x7f8] sm:$0xf0]  ;;  %v3826_v47 = vld [vmem:[%s5619_s1 + $0x704] sm:$0xf] }
  0xe1   : > { %2191 = vmatpush.bf16.msra.mxu3 %v3287_v34  ;;  %v3511_v34 = vor.u32 %v3840_v19, %v3508_v22  ;;  %v3575_v48 = vor.u32 %v3856_v26, %v3572_v27  ;;  %v3351_v19 = vor.u32 %v3800_v9, %v3348_v10  ;;  %v3415_v22 = vor.u32 %v3816_v11, %v3412_v13  ;;  %v3340_v26 = vld [vmem:[%s5619_s1 + $0x628] sm:$0xf0]  ;;  %v3814_v27 = vld [vmem:[%s5619_s1 + $0x6a4] sm:$0xf] }
  0xe2   : > { %2150 = vmatpush.bf16.msra.mxu0 %v3087_v55  ;;  %v3439_v55 = vor.u32 %v3822_v45, %v3436_v49  ;;  %v3846_v49 = vld [vmem:[%s5619_s1 + $0x7a4] sm:$0xf] }
  0xe3   : > { %2164 = vmatpush.bf16.msra.mxu1 %v3151_v58  ;;  %v3804_v58 = vld [vmem:[%s5619_s1 + $0x654] sm:$0xf] }
  0xe4   : > { %2178 = vmatpush.bf16.msra.mxu2 %v3215_v59  ;;  %v3364_v59 = vld [vmem:[%s5619_s1 + $0x658] sm:$0xf0] }
  0xe5   : > { %2192 = vmatpush.bf16.msra.mxu3 %v3279_v39  ;;  %v3836_v39 = vld [vmem:[%s5619_s1 + $0x754] sm:$0xf]  ;;  %v3367_v20 = vor.u32 %v3804_v58, %v3364_v59  ;;  %v3332_v59 = vld [vmem:[%s5619_s1 + $0x618] sm:$0xf0] }
  0xe6   : > { %2151 = vmatpush.bf16.msra.mxu0 %v3079_v44  ;;  %v3495_v29 = vor.u32 %v3836_v39, %v3492_v62  ;;  %v3420_v44 = vld [vmem:[%s5619_s1 + $0x6c8] sm:$0xf0]  ;;  %v3796_v58 = vld [vmem:[%s5619_s1 + $0x614] sm:$0xf]  ;;  %v3460_v62 = vld [vmem:[%s5619_s1 + $0x718] sm:$0xf0] }
  0xe7   : > { %2165 = vmatpush.bf16.msra.mxu1 %v3143_v1  ;;  %v3423_v7 = vor.u32 %v3818_v43, %v3420_v44  ;;  %v3828_v39 = vld [vmem:[%s5619_s1 + $0x714] sm:$0xf]  ;;  %v3810_v43 = vld [vmem:[%s5619_s1 + $0x684] sm:$0xf] }
  0xe8   : > { %2179 = vmatpush.bf16.msra.mxu2 %v3207_v2  ;;  %v3850_v2 = vld [vmem:[%s5619_s1 + $0x7c4] sm:$0xf] }
  0xe9   : > { %2193 = vmatpush.bf16.msra.mxu3 %v3271_v6 }
  0xea   : > { %2152 = vmatpush.bf16.msra.mxu0 %v3071_v17  ;;  %v1930_v1 = vpop.f32.mrf.mxu0  ;;  %v3848_v17 = vld [vmem:[%s5619_s1 + $0x7b4] sm:$0xf] }
  0xeb   : > { %2166 = vmatpush.bf16.msra.mxu1 %v3135_v24  ;;  %v1931_v4 = vadd.f32 %v1930_v1, %v5305_v57  ;;  %v1944_v6 = vpop.f32.mrf.mxu1  ;;  %v3551_v57 = vor.u32 %v3850_v2, %v3548_v3  ;;  %v3479_v24 = vor.u32 %v3832_v14, %v3476_v16  ;;  %v3452_v1 = vld [vmem:[%s5619_s1 + $0x708] sm:$0xf0]  ;;  %v3881_v14 = vmov 16.0  }
  0xec   : > { %2180 = vmatpush.bf16.msra.mxu2 %v3199_v25  ;;  %v3798_v25 = vld [vmem:[%s5619_s1 + $0x624] sm:$0xf]  ;;  %v3455_v9 = vor.u32 %v3826_v47, %v3452_v1  ;;  %3869 = vrcp.f32 %v3881_v14 }
  0xed   : > { %2194 = vmatpush.bf16.msra.mxu3 %v3263_v28  ;;  %2153 = vmatmul.bf16.vlgmr.msra.gmra.mxu0 %v4578_v31  ;;  %v3852_v31 = vld [vmem:[%s5619_s1 + $0x7d4] sm:$0xf]  ;;  %v1945_v12 = vadd.f32 %v1944_v6, %v1931_v4  ;;  %v3543_v28 = vor.u32 %v3848_v17, %v3540_v18  ;;  %v3343_v52 = vor.u32 %v3798_v25, %v3340_v26  ;;  %v3842_v4 = vld [vmem:[%s5619_s1 + $0x784] sm:$0xf] }
  0xee   : > { %2201 = vmatpush.bf16.msrb.mxu0 %v3383_v30  ;;  %2167 = vmatmul.bf16.vlgmr.msra.gmra.mxu1 %v4591_v36  ;;  %v3356_v36 = vld [vmem:[%s5619_s1 + $0x648] sm:$0xf0] }
  0xef   : > { %2215 = vmatpush.bf16.msrb.mxu1 %v3447_v33  ;;  %2181 = vmatmul.bf16.vlgmr.msra.gmra.mxu2 %v4589_v35  ;;  %v3802_v35 = vld [vmem:[%s5619_s1 + $0x644] sm:$0xf]  ;;  %v3404_v33 = vld [vmem:[%s5619_s1 + $0x6a8] sm:$0xf0] }
  0xf0   : > { %2229 = vmatpush.bf16.msrb.mxu2 %v3511_v34  ;;  %2195 = vmatmul.bf16.vlgmr.msra.gmra.mxu3 %v4599_v40  ;;  %v3559_v40 = vor.u32 %v3852_v31, %v3556_v63  ;;  %v3359_v5 = vor.u32 %v3802_v35, %v3356_v36  ;;  %v3830_v34 = vld [vmem:[%s5619_s1 + $0x724] sm:$0xf]  ;;  %v3844_v31 = vld [vmem:[%s5619_s1 + $0x794] sm:$0xf]  ;;  %v3524_v63 = vld [vmem:[%s5619_s1 + $0x798] sm:$0xf0] }
  0xf1   : > { %2243 = vmatpush.bf16.msrb.mxu3 %v3575_v48  ;;  %v3794_v35 = vld [vmem:[%s5619_s1 + $0x604] sm:$0xf]  ;;  %v3324_v36 = vld [vmem:[%s5619_s1 + $0x608] sm:$0xf0] }
  0xf2   : > { %2202 = vmatpush.bf16.msrb.mxu0 %v3375_v54  ;;  %v1958_v30 = vpop.f32.mrf.mxu2  ;;  %v1932_v45 = vpop.f32.mrf.mxu0  ;;  %v3327_v6 = vor.u32 %v3794_v35, %v3324_v36 }
  0xf3   : > { %2216 = vmatpush.bf16.msrb.mxu1 %v3439_v55  ;;  %v1959_v42 = vadd.f32 %v1958_v30, %v1945_v12  ;;  %v1972_v48 = vpop.f32.mrf.mxu3  ;;  %v1933_v51 = vadd.f32 %v1932_v45, %v5373_v23  ;;  %v1946_v53 = vpop.f32.mrf.mxu1  ;;  %v3407_v55 = vor.u32 %v3814_v27, %v3404_v33  ;;  %v3535_v23 = vor.u32 %v3846_v49, %v3532_v50 }
  0xf4   : > { %2230 = vmatpush.bf16.msrb.mxu2 %v3503_v56  ;;  %v3471_v56 = vor.u32 %v3830_v34, %v3468_v37 }
  0xf5   : > { %2244 = vmatpush.bf16.msrb.mxu3 %v3567_v61  ;;  %v1973_v54 = vadd.f32 %v1972_v48, %v1959_v42  ;;  %v1947_v61 = vadd.f32 %v1946_v53, %v1933_v51 }
  0xf6   : > { %2203 = vmatpush.bf16.msrb.mxu0 %v3367_v20  ;;  %v3335_v20 = vor.u32 %v3796_v58, %v3332_v59 }
  0xf7   : > { %2217 = vmatpush.bf16.msrb.mxu1 %v3431_v21  ;;  %v3399_v21 = vor.u32 %v3812_v60, %v3396_v15 }
  0xf8   : > { %2231 = vmatpush.bf16.msrb.mxu2 %v3495_v29  ;;  %v3463_v29 = vor.u32 %v3828_v39, %v3460_v62 }
  0xf9   : > { %2245 = vmatpush.bf16.msrb.mxu3 %v3559_v40  ;;  %v3527_v40 = vor.u32 %v3844_v31, %v3524_v63 }
  0xfa   : > { %2204 = vmatpush.bf16.msrb.mxu0 %v3359_v5  ;;  %v1960_v44 = vpop.f32.mrf.mxu2  ;;  %v3516_v5 = vld [vmem:[%s5619_s1 + $0x788] sm:$0xf0] }
  0xfb   : > { %2218 = vmatpush.bf16.msrb.mxu1 %v3423_v7  ;;  %v1961_v2 = vadd.f32 %v1960_v44, %v1947_v61  ;;  %v1974_v3 = vpop.f32.mrf.mxu3  ;;  %v3519_v10 = vor.u32 %v3842_v4, %v3516_v5 }
  0xfc   : > { %2232 = vmatpush.bf16.msrb.mxu2 %v3487_v8  ;;  %v3391_v8 = vor.u32 %v3810_v43, %v3388_v0 }
  0xfd   : > { %2246 = vmatpush.bf16.msrb.mxu3 %v3551_v57  ;;  %v1975_v7 = vadd.f32 %v1974_v3, %v1961_v2 }
  0xfe   : > { %2205 = vmatpush.bf16.msrb.mxu0 %v3351_v19 }
  0xff   : > { %2219 = vmatpush.bf16.msrb.mxu1 %v3415_v22 }
 0x100   : > { %2233 = vmatpush.bf16.msrb.mxu2 %v3479_v24 }
 0x101   : > { %2247 = vmatpush.bf16.msrb.mxu3 %v3543_v28 }
 0x102   : > { %2206 = vmatpush.bf16.msrb.mxu0 %v3343_v52 }
 0x103   : > { %2220 = vmatpush.bf16.msrb.mxu1 %v3407_v55 }
 0x104   : > { %2234 = vmatpush.bf16.msrb.mxu2 %v3471_v56 }
 0x105   : > { %2248 = vmatpush.bf16.msrb.mxu3 %v3535_v23 }
 0x106   : > { %2207 = vmatpush.bf16.msrb.mxu0 %v3335_v20 }
 0x107   : > { %2221 = vmatpush.bf16.msrb.mxu1 %v3399_v21 }
 0x108   : > { %2235 = vmatpush.bf16.msrb.mxu2 %v3463_v29 }
 0x109   : > { %2249 = vmatpush.bf16.msrb.mxu3 %v3527_v40 }
 0x10a   : > { %2208 = vmatpush.bf16.msrb.mxu0 %v3327_v6  ;;  %v1986_v11 = vpop.f32.mrf.mxu0 }
 0x10b   : > { %2222 = vmatpush.bf16.msrb.mxu1 %v3391_v8  ;;  %v1987_v57 = vadd.f32 %v1986_v11, %v1973_v54  ;;  %v2000_v12 = vpop.f32.mrf.mxu1 }
 0x10c   : > { %2236 = vmatpush.bf16.msrb.mxu2 %v3455_v9 }
 0x10d   : > { %2250 = vmatpush.bf16.msrb.mxu3 %v3519_v10  ;;  %2209 = vmatmul.bf16.vlgmr.msrb.gmra.mxu0 %v4790_v32  ;;  %v2001_v13 = vadd.f32 %v2000_v12, %v1987_v57 }
 0x10e   : > { %2223 = vmatmul.bf16.vlgmr.msrb.gmra.mxu1 %v4803_v41  ;;  %v3870_v41 = vpop.eup %3869 }
 0x10f   : > { %2237 = vmatmul.bf16.vlgmr.msrb.gmra.mxu2 %v4801_v38  ;;  %v2276_v38 = vmul.f32 16.0, %v3870_v41  ;;  %vm2280_vm0 = vweird.f32 %v3870_v41 }
 0x110   : > { %2251 = vmatmul.bf16.vlgmr.msrb.gmra.mxu3 %v4811_v46 }
 0x111   : > { %v2277_v30 = vsub.f32 1.0, %v2276_v38 }
 0x112   : > { %v2014_v16 = vpop.f32.mrf.mxu2  ;;  %v1988_v18 = vpop.f32.mrf.mxu0 }
 0x113   : > { %v2015_v17 = vadd.f32 %v2014_v16, %v2001_v13  ;;  %v2028_v19 = vpop.f32.mrf.mxu3  ;;  %v1989_v22 = vadd.f32 %v1988_v18, %v1975_v7  ;;  %v2002_v24 = vpop.f32.mrf.mxu1  ;;  %v2278_v37 = vmul.f32 %v3870_v41, %v2277_v30 }
 0x115   : > { %v5559_v25 = vadd.f32 %v2028_v19, %v2015_v17  ;;  %v2003_v32 = vadd.f32 %v2002_v24, %v1989_v22  ;;  %v2279_v48 = vadd.f32 %v3870_v41, %v2278_v37 }
 0x117   : > { %v5565_v51 = vsel %vm2280_vm0, %v3870_v41, %v2279_v48 }
 0x11a   : > { %v2016_v26 = vpop.f32.mrf.mxu2 }
 0x11b   : > { %v2017_v27 = vadd.f32 %v2016_v26, %v2003_v32  ;;  %v2030_v46 = vpop.f32.mrf.mxu3 }
 0x11d   : > { %v5561_v28 = vadd.f32 %v2030_v46, %v2017_v27 }
 0x11f   : > { %v2261_v33 = vadd.f32 %v5561_v28, %v5559_v25 }
 0x121   : > { %v2262_v34 = vrot.slane %v2261_v33, 4 }
 0x123   : > { %v2263_v42 = vadd.f32 %v2262_v34, %v2261_v33 }
 0x125   : > { %v2264_v45 = vrot.slane %v2263_v42, 2 }
 0x127   : > { %v2265_v49 = vadd.f32 %v2264_v45, %v2263_v42 }
 0x129   : > { %v2266_v50 = vrot.slane %v2265_v49, 1 }
 0x12a   : > { %v2042_v31 = vpop.f32.mrf.mxu0 }
 0x12b   : > { %v2267_v52 = vadd.f32 %v2266_v50, %v2265_v49  ;;  %v2056_v63 = vpop.f32.mrf.mxu1 }
 0x12c   : > { %v2057_v40 = vadd.f32 %v2056_v63, %v2042_v31 }
 0x12d   : > { %v5568_v53 = vmul.f32 %v5565_v51, %v2267_v52 }
 0x12f   : > { %v2284_v54 = vsub.f32 %v5559_v25, %v5568_v53  ;;  %v2286_v55 = vsub.f32 %v5561_v28, %v5568_v53 }
 0x131   : > { %v2288_v56 = vmul.f32 %v2284_v54, %v2284_v54  ;;  %v2290_v58 = vmul.f32 %v2286_v55, %v2286_v55 }
 0x132   : > { %v2070_v20 = vpop.f32.mrf.mxu2  ;;  %v2044_v29 = vpop.f32.mrf.mxu0 }
 0x133   : > { %v2292_v59 = vadd.f32 %v2290_v58, %v2288_v56  ;;  %v2084_v21 = vpop.f32.mrf.mxu3  ;;  %v2058_v35 = vpop.f32.mrf.mxu1  ;;  %v2071_v47 = vadd.f32 %v2070_v20, %v2057_v40 }
 0x134   : > { %v2059_v5 = vadd.f32 %v2058_v35, %v2044_v29 }
 0x135   : > { %v2293_v60 = vrot.slane %v2292_v59, 4  ;;  %v2085_v2 = vadd.f32 %v2084_v21, %v2071_v47 }
 0x137   : > { %v2294_v23 = vadd.f32 %v2293_v60, %v2292_v59 }
 0x139   : > { %v2295_v61 = vrot.slane %v2294_v23, 2 }
 0x13a   : > { %v2072_v36 = vpop.f32.mrf.mxu2 }
 0x13b   : > { %v2296_v15 = vadd.f32 %v2295_v61, %v2294_v23  ;;  %v2086_v43 = vpop.f32.mrf.mxu3  ;;  %v2073_v8 = vadd.f32 %v2072_v36, %v2059_v5 }
 0x13d   : > { %v2297_v39 = vrot.slane %v2296_v15, 1  ;;  %v2087_v12 = vadd.f32 %v2086_v43, %v2073_v8 }
 0x13f   : > { %v5574_v62 = vadd.f32 %v2297_v39, %v2296_v15 }
 0x14a   : > { %v2098_v44 = vpop.f32.mrf.mxu0 }
 0x14b   : > { %v2112_v0 = vpop.f32.mrf.mxu1  ;;  %v2099_v6 = vadd.f32 %v2098_v44, %v2085_v2 }
 0x14d   : > { %v2113_v9 = vadd.f32 %v2112_v0, %v2099_v6 }
 0x152   : > { %v2126_v1 = vpop.f32.mrf.mxu2  ;;  %v2100_v4 = vpop.f32.mrf.mxu0 }
 0x153   : > { %v2140_v3 = vpop.f32.mrf.mxu3  ;;  %v2114_v7 = vpop.f32.mrf.mxu1  ;;  %v2127_v13 = vadd.f32 %v2126_v1, %v2113_v9  ;;  %v2101_v16 = vadd.f32 %v2100_v4, %v2087_v12 }
 0x155   : > { %v2141_v17 = vadd.f32 %v2140_v3, %v2127_v13  ;;  %v2115_v19 = vadd.f32 %v2114_v7, %v2101_v16 }
 0x15a   : > { %v2128_v10 = vpop.f32.mrf.mxu2 }
 0x15b   : > { %v2142_v11 = vpop.f32.mrf.mxu3  ;;  %v2129_v32 = vadd.f32 %v2128_v10, %v2115_v19 }
 0x15d   : > { %v2143_v27 = vadd.f32 %v2142_v11, %v2129_v32 }
 0x16a   : > { %v2154_v57 = vpop.f32.mrf.mxu0 }
 0x16b   : > { %v2168_v14 = vpop.f32.mrf.mxu1  ;;  %v2155_v22 = vadd.f32 %v2154_v57, %v2141_v17 }
 0x16d   : > { %v2169_v26 = vadd.f32 %v2168_v14, %v2155_v22 }
 0x172   : > { %v2182_v18 = vpop.f32.mrf.mxu2  ;;  %v2156_v41 = vpop.f32.mrf.mxu0 }
 0x173   : > { %v2196_v24 = vpop.f32.mrf.mxu3  ;;  %v2170_v38 = vpop.f32.mrf.mxu1  ;;  %v2183_v46 = vadd.f32 %v2182_v18, %v2169_v26  ;;  %v2157_v30 = vadd.f32 %v2156_v41, %v2143_v27 }
 0x175   : > { %v2197_v34 = vadd.f32 %v2196_v24, %v2183_v46  ;;  %v2171_v45 = vadd.f32 %v2170_v38, %v2157_v30 }
 0x17a   : > { %v2184_v33 = vpop.f32.mrf.mxu2 }
 0x17b   : > { %v2198_v37 = vpop.f32.mrf.mxu3  ;;  %v2185_v50 = vadd.f32 %v2184_v33, %v2171_v45 }
 0x17d   : > { %v2199_v55 = vadd.f32 %v2198_v37, %v2185_v50 }
 0x18a   : > { %v2210_v42 = vpop.f32.mrf.mxu0 }
 0x18b   : > { %v2211_v48 = vadd.f32 %v2210_v42, %v2197_v34  ;;  %v2224_v49 = vpop.f32.mrf.mxu1 }
 0x18d   : > { %v2225_v52 = vadd.f32 %v2224_v49, %v2211_v48 }
 0x192   : > { %v2238_v54 = vpop.f32.mrf.mxu2  ;;  %v2212_v59 = vpop.f32.mrf.mxu0 }
 0x193   : > { %v2239_v56 = vadd.f32 %v2238_v54, %v2225_v52  ;;  %v2252_v58 = vpop.f32.mrf.mxu3  ;;  %v2213_v23 = vadd.f32 %v2212_v59, %v2199_v55  ;;  %v2226_v15 = vpop.f32.mrf.mxu1 }
 0x195   : > { %v2253_v60 = vadd.f32 %v2252_v58, %v2239_v56  ;;  %v2227_v39 = vadd.f32 %v2226_v15, %v2213_v23 }
 0x197   : > { %v2257_v61 = vpack.c.bf16 %v2253_v60, %v5559_v25 }
 0x199   : > { %2259 = vst [vmem:[%s175_s21] sm:$0xff] %v2257_v61 }
 0x19a   : > { %v2240_v31 = vpop.f32.mrf.mxu2 }
 0x19b   : > { %v2241_v63 = vadd.f32 %v2240_v31, %v2227_v39  ;;  %v2254_v20 = vpop.f32.mrf.mxu3 }
 0x19d   : > { %v2255_v21 = vadd.f32 %v2254_v20, %v2241_v63 }
 0x19f   : > { %v2258_v29 = vpack.c.bf16 %v2255_v21, %v5561_v28  ;;  %v2268_v35 = vadd.f32 %v2255_v21, %v2253_v60 }
 0x1a1   : > { %2260 = vst [vmem:[%s175_s21 + $0x8] sm:$0xff] %v2258_v29  ;;  %v2269_v36 = vrot.slane %v2268_v35, 4 }
 0x1a3   : > { %v2270_v43 = vadd.f32 %v2269_v36, %v2268_v35 }
 0x1a5   : > { %v2271_v40 = vrot.slane %v2270_v43, 2 }
 0x1a7   : > { %v2272_v44 = vadd.f32 %v2271_v40, %v2270_v43 }
 0x1a9   : > { %v2273_v0 = vrot.slane %v2272_v44, 1 }
 0x1ab   : > { %v2274_v47 = vadd.f32 %v2273_v0, %v2272_v44 }
 0x1ad   : > { %v2283_v1 = vmul.f32 %v5565_v51, %v2274_v47 }
 0x1af   : > { %v2285_v25 = vsub.f32 %v2253_v60, %v2283_v1  ;;  %v2287_v2 = vsub.f32 %v2255_v21, %v2283_v1 }
 0x1b1   : > { %v2289_v3 = vmul.f32 %v2285_v25, %v2285_v25  ;;  %v2291_v4 = vmul.f32 %v2287_v2, %v2287_v2 }
 0x1b3   : > { %v2299_v5 = vadd.f32 %v2291_v4, %v2289_v3 }
 0x1b5   : > { %v2300_v6 = vrot.slane %v2299_v5, 4 }
 0x1b7   : > { %v2301_v7 = vadd.f32 %v2300_v6, %v2299_v5 }
 0x1b9   : > { %v2302_v8 = vrot.slane %v2301_v7, 2 }
 0x1bb   : > { %v2303_v9 = vadd.f32 %v2302_v8, %v2301_v7  ;;  %2309 = sbr.rel (%p3576_p4) target bundleno = 453 (0x1c5), region = 32 }
 0x1bd   : > { %v2304_v28 = vrot.slane %v2303_v9, 1 }
 0x1bf   : > { %v2305_v10 = vadd.f32 %v2304_v28, %v2303_v9 }
 0x1c0   : > { %v2312_v11 = vrot.slane %v2283_v1, 7  ;;  %vm2313_vm1 = vcmask 1040384   ;;  %v2316_v57 = vlaneseq }
 0x1c1   : > { %v2323_v12 = vrot.slane %v2305_v10, 7 }
 0x1c2   : > { %v2314_v51 = vsel %vm2313_vm1, %v5568_v53, %v2312_v11  ;;  %vm2318_vm2 = vcmp.lt.s32.totalorder %v2316_v57, 256 }
 0x1c3   : > { %v2324_v13 = vsel %vm2313_vm1, %v5574_v62, %v2323_v12  ;;  %2320 = vst.msk [vmem:[%s5621_s3] ss:$2 sm:$0x3] %vm2318_vm2, %v2314_v51 }
 0x1c4   : > { %3577 = vst.msk [vmem:[%s5621_s3 + $0x1] ss:$2 sm:$0x3] %vm2318_vm2, %v2324_v13 }
 0x1c5 PF: > { %p3578_p5 = scmp.le.s32.totalorder %s3908_s13, 0 }
 0x1c6   : > { %s3579_s26 = sshll.u32 (!%p3578_p5), %s3908_s13, 4 }
 0x1c7   : > { %2331 = sbr.rel (%p3578_p5) target bundleno = 540 (0x21c), region = 36  ;;  %s5594_s27 = scvt.s32.f32 (!%p3578_p5), %s3579_s26 }
 0x1c9   : > { %s2334_s28 = sadd.f32 (!%p3578_p5), 16.0, %s5594_s27  ;;  %s2385_s30 = smul.f32 (!%p3578_p5), 16.0, %s5594_s27 }
 0x1cc   : > { %v2343_v14 = vstv %s2334_s28  ;;  %v2335_v27 = vld [vmem:[%s5621_s3] ss:$2 sm:$0x3]  ;;  %v2379_v37 = vrot.slane %v2305_v10, 7  ;;  %vm2366_vm7 = vcmask 1040384   ;;  %v2370_v54 = vlaneseq }
 0x1cd   : > { %3871 = vrcp.f32 %v2343_v14  ;;  %v2355_v18 = vand.u32 2147483648, %v2343_v14  ;;  %vm2349_vm3 = vweird.f32 %v2343_v14  ;;  %v2353_v22 = vand.u32 2147483647, %v2343_v14  ;;  %v3580_v48 = vld [vmem:[%s5621_s3 + $0x1] ss:$2 sm:$0x3] }
 0x1ce   : > { %v2338_v46 = vperm.slane %v2335_v27, 1  ;;  %v2337_v30 = vperm.slane %v2335_v27, 0  ;;  %v2380_v49 = vsel %vm2366_vm7, %v5574_v62, %v2379_v37  ;;  %vm2372_vm8 = vcmp.lt.s32.totalorder %v2370_v54, 256 }
 0x1cf   : > { %v2356_v32 = vor.u32 1.1754944e-38, %v2355_v18  ;;  %vm2354_vm6 = vcmp.eq.f32.partialorder %v2353_v22, 8.507059e+37  ;;  %v2382_v59 = vadd.f32 %v3580_v48, %v2380_v49 }
 0x1d0   : > { %v2342_v33 = vsub.f32 %v2283_v1, %v2338_v46  ;;  %v2341_v34 = vsub.f32 %v5568_v53, %v2337_v30 }
 0x1d2   : > { %v2384_v42 = vmul.f32 %v2342_v33, %v2342_v33  ;;  %v2383_v50 = vmul.f32 %v2341_v34, %v2341_v34 }
 0x1d3   : > { %v3872_v16 = vpop.eup %3871 }
 0x1d4   : > { %v2345_v17 = vmul.f32 %v3872_v16, %v2343_v14  ;;  %vm2350_vm4 = vweird.f32 %v3872_v16 }
 0x1d5   : > { %vm2351_vm5 = vmor %vm2349_vm3, %vm2350_vm4 }
 0x1d6   : > { %v2346_v19 = vsub.f32 1.0, %v2345_v17 }
 0x1d8   : > { %v2347_v24 = vmul.f32 %v3872_v16, %v2346_v19 }
 0x1da   : > { %v2348_v41 = vadd.f32 %v3872_v16, %v2347_v24 }
 0x1dc   : > { %v2352_v26 = vsel %vm2351_vm5, %v3872_v16, %v2348_v41 }
 0x1dd   : > { %v2357_v38 = vsel %vm2354_vm6, %v2356_v32, %v2352_v26 }
 0x1de   : > { %3858 = vpush %v2357_v38 }
 0x20f   : > { %s3859_s4 = spop %3858 }
 0x210   : > { %s2359_s5 = smul.f32 16.0, %s3859_s4 }
 0x211   : > { %s2402_s6 = smul.f32 %s3859_s4, %s2385_s30 }
 0x212   : > { %v2360_v45 = vstv %s2359_s5 }
 0x213   : > { %v2362_v52 = vmul.f32 %v2360_v45, %v2342_v33  ;;  %v2403_v55 = vstv %s2402_s6  ;;  %v2361_v53 = vmul.f32 %v2360_v45, %v2341_v34 }
 0x214   : > { %v2405_v56 = vmul.f32 %v2403_v55, %v2384_v42  ;;  %v2404_v60 = vmul.f32 %v2403_v55, %v2383_v50 }
 0x215   : > { %v2365_v58 = vrot.slane %v2362_v52, 7 }
 0x216   : > { %v2408_v23 = vrot.slane %v2405_v56, 7 }
 0x217   : > { %v2367_v61 = vsel %vm2366_vm7, %v2361_v53, %v2365_v58 }
 0x218   : > { %v2369_v15 = vadd.f32 %v2367_v61, %v2335_v27  ;;  %v2409_v39 = vsel %vm2366_vm7, %v2404_v60, %v2408_v23 }
 0x219   : > { %v2411_v31 = vadd.f32 %v2409_v39, %v2382_v59 }
 0x21a   : > { %2374 = vst.msk [vmem:[%s5621_s3] ss:$2 sm:$0x3] %vm2372_vm8, %v2369_v15 }
 0x21b   : > { %3581 = vst.msk [vmem:[%s5621_s3 + $0x1] ss:$2 sm:$0x3] %vm2372_vm8, %v2411_v31 }
 0x21c PF: > { %s14_s12 = sadd.s32 1, %s3879_s12  }
 0x21d   : > { %p11_p6 = scmp.ge.s32.totalorder %s14_s12, 4  }
 0x21f   :  { %13 = sbr.rel (!%p11_p6) target bundleno = 1 (0x1), region = 76 }

</bundles_post_ra>
